<compile_context>
chip_gen: v5e
topology: v5e:2x2
jax: 0.10.0
libtpu: 0.0.40
codegen_flags: <defaults>
</compile_context>

<pallas_src>
import functools

import jax
import jax.numpy as jnp
import numpy as np
from jax import lax
from jax.experimental import pallas as pl
from jax.experimental.pallas import tpu as pltpu


# ----------------------------- Pallas kernels ------------------------------

def _conv_pool_kernel(x_ref, w_ref, b_ref, o_ref, a_ref, v_ref, *,
                      KH, KW, Wp, OH, PH, PW, relu):
    """Fused stride-1 conv (+bias, +optional ReLU) + 3x3/s2 maxpool, one image.

    x_ref: (1, Lflat, C)      padded image, spatial dims flattened row-major
    w_ref: (KH*KW, C, 128)    per-tap weights, OC zero-padded to 128
    b_ref: (1, 128)           f32 bias (zero-padded)
    o_ref: (1, PW, PH, OC)    pooled output, column-major (transposed in glue)
    a_ref: (OH*Wp, 128) f32   conv accumulator scratch
    v_ref: (PH, Wp, 128) f32  vertical-max scratch
    """
    MW = OH * Wp
    acc = jnp.zeros((MW, w_ref.shape[-1]), jnp.float32)
    # Shift-and-matmul: contiguous row-slabs of the flattened padded image.
    # Columns j >= OW of each output row are junk (window wraps into the next
    # padded row) and are never read by the pooling pass below.
    for kh in range(KH):
        for kw in range(KW):
            base = kh * Wp + kw
            acc = acc + jnp.dot(x_ref[0, base:base + MW, :],
                                w_ref[kh * KW + kw],
                                preferred_element_type=jnp.float32)
    acc = acc + b_ref[...]
    if relu:
        acc = jnp.maximum(acc, 0.0)
    a_ref[...] = acc

    # 3x3 / stride-2 max pool over the valid (OH, OW) region, all in f32 VMEM.
    for i in range(PH):                       # vertical 3-row max
        r0 = 2 * i * Wp
        v_ref[i] = jnp.maximum(
            jnp.maximum(a_ref[r0:r0 + Wp], a_ref[r0 + Wp:r0 + 2 * Wp]),
            a_ref[r0 + 2 * Wp:r0 + 3 * Wp])
    oc = o_ref.shape[-1]
    for j in range(PW):                       # horizontal 3-col max
        col = jnp.max(v_ref[:, 2 * j:2 * j + 3, :], axis=1)   # (PH, 128)
        o_ref[0, j] = col[:, :oc].astype(o_ref.dtype)


def _fc_kernel(x_ref, w_ref, b_ref, o_ref):
    # Tiny fused GEMM + bias (K=PH*PW*C after the adaptive-pool fold, ~64 KB of
    # bf16 weight -> no K-split pipelining needed; grid=1, note for v7x).
    acc = jnp.dot(x_ref[...], w_ref[...], preferred_element_type=jnp.float32)
    o_ref[...] = (acc + b_ref[...]).astype(o_ref.dtype)


# --------------------------- conv-stage wrappers ----------------------------

def _run_conv_pool(x_padded, layer, *, Wp, OH, OW, relu):
    """x_padded: (N, Hext, Wp, C) bf16, all conv padding applied plus >=1 extra
    bottom row (so the flattened shifted slabs stay in bounds)."""
    N, Hext, Wp_, C = x_padded.shape
    assert Wp_ == Wp
    KH, KW, OC = layer["kh"], layer["kw"], layer["oc"]
    KK = KH * KW
    PH, PW = (OH - 3) // 2 + 1, (OW - 3) // 2 + 1
    Lflat = Hext * Wp
    assert Lflat >= (OH + KH - 1) * Wp + KW - 1, "insufficient flat padding"
    x_flat = x_padded.reshape(N, Lflat, C)          # contiguous: free reshape

    kernel = functools.partial(_conv_pool_kernel, KH=KH, KW=KW, Wp=Wp, OH=OH,
                               PH=PH, PW=PW, relu=relu)
    out_t = pl.pallas_call(
        kernel,
        out_shape=jax.ShapeDtypeStruct((N, PW, PH, OC), jnp.bfloat16),
        grid_spec=pltpu.PrefetchScalarGridSpec(
            num_scalar_prefetch=0,
            grid=(N,),                               # batch=2 -> both v7x TCs
            in_specs=[
                pl.BlockSpec((1, Lflat, C), lambda n: (n, 0, 0)),
                pl.BlockSpec((KK, C, 128), lambda n: (0, 0, 0)),
                pl.BlockSpec((1, 128), lambda n: (0, 0)),
            ],
            out_specs=pl.BlockSpec((1, PW, PH, OC), lambda n: (n, 0, 0, 0)),
            scratch_shapes=[
                pltpu.VMEM((OH * Wp, 128), jnp.float32),
                pltpu.VMEM((PH, Wp, 128), jnp.float32),
            ]),
        compiler_params=pltpu.CompilerParams(
            dimension_semantics=("parallel",)),
    )(x_flat, layer["w"], layer["b"])
    # kernel stored pooled columns contiguously -> (N, PW, PH, OC); fix order.
    return jnp.transpose(out_t, (0, 2, 1, 3))        # (N, PH, PW, OC)


def _conv_pool_pad(x, layer, *, pad, relu):
    """Stride-1 conv stage: one jnp.pad (conv padding + 1 extra bottom row)."""
    N, H, W, C = x.shape
    KH, KW = layer["kh"], layer["kw"]
    Hp, Wp = H + 2 * pad, W + 2 * pad
    OH, OW = Hp - KH + 1, Wp - KW + 1
    xp = jnp.pad(x, ((0, 0), (pad, pad + 1), (pad, pad), (0, 0)))
    return _run_conv_pool(xp, layer, Wp=Wp, OH=OH, OW=OW, relu=relu)


def _space_to_depth(x, r):
    N, H, W, C = x.shape
    x = x.reshape(N, H // r, r, W // r, r, C)
    x = jnp.transpose(x, (0, 1, 3, 2, 4, 5))         # N, H', W', dh, dw, C
    return x.reshape(N, H // r, W // r, r * r * C)


# ------------------------------- FC head -----------------------------------

def _adaptive_pool_matrix(h, w, oh, ow):
    """Exact PyTorch AdaptiveAvgPool2d as a (h*w, oh*ow) averaging matrix."""
    A = np.zeros((h * w, oh * ow), np.float32)
    for p in range(oh):
        hs, he = (p * h) // oh, ((p + 1) * h + oh - 1) // oh
        for q in range(ow):
            ws, we = (q * w) // ow, ((q + 1) * w + ow - 1) // ow
            val = 1.0 / ((he - hs) * (we - ws))
            for hh in range(hs, he):
                for ww in range(ws, we):
                    A[hh * w + ww, p * ow + q] = val
    return A


def _fc_head(prepped, x):
    """AdaptiveAvgPool2d(6,6) + flatten (torch (C,H,W) order) + Linear, folded
    into a single Pallas GEMM by pre-multiplying the FC weight."""
    N, PH, PW, C = x.shape
    fc_w, fc_b = prepped["fc_w"], prepped["fc_b"]     # (OUT, C*36), (OUT,)
    OUT = fc_w.shape[0]
    A = jnp.asarray(_adaptive_pool_matrix(PH, PW, 6, 6))        # (PH*PW, 36)
    wr = fc_w.reshape(OUT, C, 36)
    wfold = jnp.einsum("sp,ocp->sco", A, wr)                    # (PH*PW, C, OUT)
    wfold = wfold.reshape(PH * PW * C, OUT).astype(jnp.bfloat16)
    bias = fc_b.reshape(1, OUT).astype(jnp.float32)
    xf = x.reshape(N, PH * PW * C)                              # free reshape
    K = PH * PW * C

    out = pl.pallas_call(
        _fc_kernel,
        out_shape=jax.ShapeDtypeStruct((N, OUT), jnp.float32),
        grid_spec=pltpu.PrefetchScalarGridSpec(
            num_scalar_prefetch=0,
            grid=(1,),
            in_specs=[pl.BlockSpec((N, K), lambda i: (0, 0)),
                      pl.BlockSpec((K, OUT), lambda i: (0, 0)),
                      pl.BlockSpec((1, OUT), lambda i: (0, 0))],
            out_specs=pl.BlockSpec((N, OUT), lambda i: (0, 0))),
        compiler_params=pltpu.CompilerParams(
            dimension_semantics=("arbitrary",)),
    )(xf, wfold, bias)
    return out


# ------------------------------ model wiring -------------------------------

def init_params(key):
    ks = jax.random.split(key, 8)

    def nrm(k, shape, scale):
        return scale * jax.random.normal(k, shape, dtype=jnp.float32)

    return {
        "conv1_w": nrm(ks[0], (16, 4, 11, 11), 0.05),
        "conv1_b": nrm(ks[1], (16,), 0.05),
        "conv2_w": nrm(ks[2], (32, 16, 5, 5), 0.05),
        "conv2_b": nrm(ks[3], (32,), 0.05),
        "conv3_w": nrm(ks[4], (64, 32, 3, 3), 0.05),
        "conv3_b": nrm(ks[5], (64,), 0.05),
        "fc_w":    nrm(ks[6], (128, 2304), 0.02),   # torch Linear: (out, in)
        "fc_b":    nrm(ks[7], (128,), 0.02),
    }


def prepare_params(params):
    """One-time weight prep: per-tap (C, OCp=128) bf16 GEMM operands; conv1's
    stride-4 is folded into a space-to-depth(4) weight rearrangement."""
    prepped = {}
    r = 4
    w1 = params["conv1_w"]                                      # (OC, IC, 11, 11)
    OC1, IC1, KH1, KW1 = w1.shape
    KHs, KWs = -(-KH1 // r), -(-KW1 // r)                       # 3, 3
    w1p = jnp.pad(w1, ((0, 0), (0, 0), (0, KHs * r - KH1), (0, KWs * r - KW1)))
    w1p = w1p.reshape(OC1, IC1, KHs, r, KWs, r)                 # oc,ic,a,dh,b,dw
    w1p = jnp.transpose(w1p, (2, 4, 3, 5, 1, 0))                # a,b,dh,dw,ic,oc
    w1p = w1p.reshape(KHs * KWs, r * r * IC1, OC1)              # (9, 64, 16)
    prepped["conv1"] = dict(
        w=jnp.pad(w1p, ((0, 0), (0, 0), (0, 128 - OC1))).astype(jnp.bfloat16),
        b=jnp.pad(params["conv1_b"].astype(jnp.float32),
                  (0, 128 - OC1)).reshape(1, 128),
        kh=KHs, kw=KWs, oc=OC1)

    for name in ("conv2", "conv3"):
        w = params[name + "_w"]                                 # (OC, IC, KH, KW)
        OC, IC, KH, KW = w.shape
        wr = jnp.transpose(w, (2, 3, 1, 0)).reshape(KH * KW, IC, OC)
        prepped[name] = dict(
            w=jnp.pad(wr, ((0, 0), (0, 0), (0, 128 - OC))).astype(jnp.bfloat16),
            b=jnp.pad(params[name + "_b"].astype(jnp.float32),
                      (0, 128 - OC)).reshape(1, 128),
            kh=KH, kw=KW, oc=OC)

    prepped["fc_w"] = params["fc_w"]
    prepped["fc_b"] = params["fc_b"]
    return prepped


def cnn_forward(prepped, x_nchw):
    """Pallas implementation of CNN.forward.  x_nchw: (N, 4, H, W)."""
    x = jnp.transpose(x_nchw, (0, 2, 3, 1)).astype(jnp.bfloat16)  # NCHW -> NHWC
    N, H, W, C = x.shape

    # conv1: k=11, s=4, p=2 (+ReLU +maxpool).  Fold the stride into a
    # space-to-depth(4); extra 4 zero rows at the bottom become the +1 padded
    # row the fused kernel needs for its flattened shifted slabs.
    assert (H + 4) % 4 == 0 and (W + 4) % 4 == 0, \
        "conv1 space-to-depth path needs (H+4), (W+4) divisible by 4"
    xp = jnp.pad(x, ((0, 0), (2, 2 + 4), (2, 2), (0, 0)))
    xs = _space_to_depth(xp, 4)                       # (N, Hp/4 + 1, Wp/4, 64)
    Wp1 = (W + 4) // 4
    OH1, OW1 = (H + 4) // 4 - 2, Wp1 - 2
    x = _run_conv_pool(xs, prepped["conv1"], Wp=Wp1, OH=OH1, OW=OW1, relu=True)

    # conv2: k=5, s=1, p=2 (+ReLU +maxpool)
    x = _conv_pool_pad(x, prepped["conv2"], pad=2, relu=True)
    # conv3: k=3, s=1, p=1 (+maxpool, no ReLU)
    x = _conv_pool_pad(x, prepped["conv3"], pad=1, relu=False)

    # adaptive avg pool (6,6) + flatten (torch C,H,W order) + fc, as one GEMM
    return _fc_head(prepped, x)                                   # (N, 128)


# ----------------------------- reference path ------------------------------

def _adaptive_avg_pool2d_ref(x, out_h, out_w):
    x = x.astype(jnp.float32)
    N, H, W, C = x.shape
    rows = []
    for i in range(out_h):
        hs = (i * H) // out_h
        he = -((-(i + 1) * H) // out_h)
        cols = []
        for j in range(out_w):
            ws = (j * W) // out_w
            we = -((-(j + 1) * W) // out_w)
            cols.append(jnp.mean(x[:, hs:he, ws:we, :], axis=(1, 2)))
        rows.append(jnp.stack(cols, axis=1))
    return jnp.stack(rows, axis=1)


def cnn_forward_ref(params, x_nchw):
    """Pure-JAX/XLA f32 reference for correctness checking."""
    x = jnp.transpose(x_nchw, (0, 2, 3, 1)).astype(jnp.float32)

    def conv(x, w_oihw, b, stride, pad):
        w = jnp.transpose(w_oihw, (2, 3, 1, 0))                   # HWIO
        y = lax.conv_general_dilated(
            x, w, window_strides=(stride, stride),
            padding=[(pad, pad), (pad, pad)],
            dimension_numbers=("NHWC", "HWIO", "NHWC"))
        return y + b.reshape(1, 1, 1, -1)

    def mpool(x):
        return lax.reduce_window(x, -jnp.inf, lax.max,
                                 (1, 3, 3, 1), (1, 2, 2, 1), "VALID")

    x = jax.nn.relu(conv(x, params["conv1_w"], params["conv1_b"], 4, 2))
    x = mpool(x)
    x = jax.nn.relu(conv(x, params["conv2_w"], params["conv2_b"], 1, 2))
    x = mpool(x)
    x = conv(x, params["conv3_w"], params["conv3_b"], 1, 1)
    x = mpool(x)
    x = _adaptive_avg_pool2d_ref(x, 6, 6)
    x = jnp.transpose(x, (0, 3, 1, 2)).reshape(x.shape[0], -1)
    return x @ params["fc_w"].T + params["fc_b"]


if __name__ == "__main__":
    key = jax.random.PRNGKey(0)
    pkey, xkey = jax.random.split(key)
    params = init_params(pkey)
    prepped = prepare_params(params)          # hoisted weight preprocessing

    # PyTorch-style NCHW input: batch=2, channels=4, spatial=96 (small, but
    # large enough to survive conv(k11,s4) + three 3x3/s2 maxpools before the
    # 6x6 adaptive average pool and the 2304 -> 128 classifier).
    x = jax.random.normal(xkey, (2, 4, 96, 96), dtype=jnp.float32)

    out = jax.block_until_ready(cnn_forward(prepped, x))
    assert out.shape == (2, 128), out.shape

    ref = jax.block_until_ready(cnn_forward_ref(params, x))
    # bf16 MXU operands + bf16 stage writebacks vs. a pure-f32 reference; all
    # accumulation and pooling happen in f32, so 3e-2 is comfortable.
    np.testing.assert_allclose(np.asarray(out), np.asarray(ref),
                               rtol=3e-2, atol=3e-2)

    print("KERNEL_OK")
</pallas_src>

<mosaic_0001>
module attributes {stable_mosaic.version = 11 : i64} {
  func.func @_conv_pool_kernel(%arg0: i32, %arg1: memref<1x650x64xbf16, #tpu.memory_space<vmem>>, %arg2: memref<9x64x128xbf16, #tpu.memory_space<vmem>>, %arg3: memref<1x128xf32, #tpu.memory_space<vmem>>, %arg4: memref<1x11x11x16xbf16, #tpu.memory_space<vmem>>, %arg5: memref<575x128xf32, #tpu.memory_space<vmem>>, %arg6: memref<11x25x128xf32, #tpu.memory_space<vmem>>) attributes {dimension_semantics = [#tpu.dimension_semantics<parallel>], iteration_bounds = array<i64: 2>, scalar_prefetch = 0 : i64, scratch_operands = 2 : i64, tpu.core_type = #tpu.core_type<tc>, window_params = [{transform_indices = @transform_0, window_bounds = array<i64: 1, 650, 64>}, {pipeline_mode = #tpu.pipeline_mode<synchronous>, transform_indices = @transform_1, window_bounds = array<i64: 9, 64, 128>}, {pipeline_mode = #tpu.pipeline_mode<synchronous>, transform_indices = @transform_2, window_bounds = array<i64: 1, 128>}, {transform_indices = @transform_3, window_bounds = array<i64: 1, 11, 11, 16>}]} {
    %cst = arith.constant 0.000000e+00 : f32
    %0 = vector.broadcast %cst : f32 to vector<575x128xf32>
    %c0 = arith.constant 0 : index
    %c0_0 = arith.constant 0 : index
    %c0_1 = arith.constant 0 : index
    %1 = vector.load %arg1[%c0, %c0_0, %c0_1] : memref<1x650x64xbf16, #tpu.memory_space<vmem>>, vector<1x575x64xbf16>
    %2 = vector.shape_cast %1 : vector<1x575x64xbf16> to vector<575x64xbf16>
    %c0_2 = arith.constant 0 : index
    %c0_3 = arith.constant 0 : index
    %c0_4 = arith.constant 0 : index
    %3 = vector.load %arg2[%c0_2, %c0_3, %c0_4] : memref<9x64x128xbf16, #tpu.memory_space<vmem>>, vector<1x64x128xbf16>
    %4 = vector.shape_cast %3 : vector<1x64x128xbf16> to vector<64x128xbf16>
    %cst_5 = arith.constant dense<0.000000e+00> : vector<575x128xf32>
    %5 = tpu.matmul %2, %4, %cst_5 {dimension_numbers = #tpu.dot_dimension_numbers<[1], [0], [0], [1], [0, 0, 1, 1], [], []>} : vector<575x64xbf16>, vector<64x128xbf16>, vector<575x128xf32> -> vector<575x128xf32>
    %6 = arith.addf %0, %5 : vector<575x128xf32>
    %c0_6 = arith.constant 0 : index
    %c1 = arith.constant 1 : index
    %c0_7 = arith.constant 0 : index
    %7 = vector.load %arg1[%c0_6, %c1, %c0_7] : memref<1x650x64xbf16, #tpu.memory_space<vmem>>, vector<1x575x64xbf16>
    %8 = vector.shape_cast %7 : vector<1x575x64xbf16> to vector<575x64xbf16>
    %c1_8 = arith.constant 1 : index
    %c0_9 = arith.constant 0 : index
    %c0_10 = arith.constant 0 : index
    %9 = vector.load %arg2[%c1_8, %c0_9, %c0_10] : memref<9x64x128xbf16, #tpu.memory_space<vmem>>, vector<1x64x128xbf16>
    %10 = vector.shape_cast %9 : vector<1x64x128xbf16> to vector<64x128xbf16>
    %cst_11 = arith.constant dense<0.000000e+00> : vector<575x128xf32>
    %11 = tpu.matmul %8, %10, %cst_11 {dimension_numbers = #tpu.dot_dimension_numbers<[1], [0], [0], [1], [0, 0, 1, 1], [], []>} : vector<575x64xbf16>, vector<64x128xbf16>, vector<575x128xf32> -> vector<575x128xf32>
    %12 = arith.addf %6, %11 : vector<575x128xf32>
    %c0_12 = arith.constant 0 : index
    %c2 = arith.constant 2 : index
    %c0_13 = arith.constant 0 : index
    %13 = vector.load %arg1[%c0_12, %c2, %c0_13] : memref<1x650x64xbf16, #tpu.memory_space<vmem>>, vector<1x575x64xbf16>
    %14 = vector.shape_cast %13 : vector<1x575x64xbf16> to vector<575x64xbf16>
    %c2_14 = arith.constant 2 : index
    %c0_15 = arith.constant 0 : index
    %c0_16 = arith.constant 0 : index
    %15 = vector.load %arg2[%c2_14, %c0_15, %c0_16] : memref<9x64x128xbf16, #tpu.memory_space<vmem>>, vector<1x64x128xbf16>
    %16 = vector.shape_cast %15 : vector<1x64x128xbf16> to vector<64x128xbf16>
    %cst_17 = arith.constant dense<0.000000e+00> : vector<575x128xf32>
    %17 = tpu.matmul %14, %16, %cst_17 {dimension_numbers = #tpu.dot_dimension_numbers<[1], [0], [0], [1], [0, 0, 1, 1], [], []>} : vector<575x64xbf16>, vector<64x128xbf16>, vector<575x128xf32> -> vector<575x128xf32>
    %18 = arith.addf %12, %17 : vector<575x128xf32>
    %c0_18 = arith.constant 0 : index
    %c25 = arith.constant 25 : index
    %c0_19 = arith.constant 0 : index
    %19 = vector.load %arg1[%c0_18, %c25, %c0_19] : memref<1x650x64xbf16, #tpu.memory_space<vmem>>, vector<1x575x64xbf16>
    %20 = vector.shape_cast %19 : vector<1x575x64xbf16> to vector<575x64xbf16>
    %c3 = arith.constant 3 : index
    %c0_20 = arith.constant 0 : index
    %c0_21 = arith.constant 0 : index
    %21 = vector.load %arg2[%c3, %c0_20, %c0_21] : memref<9x64x128xbf16, #tpu.memory_space<vmem>>, vector<1x64x128xbf16>
    %22 = vector.shape_cast %21 : vector<1x64x128xbf16> to vector<64x128xbf16>
    %cst_22 = arith.constant dense<0.000000e+00> : vector<575x128xf32>
    %23 = tpu.matmul %20, %22, %cst_22 {dimension_numbers = #tpu.dot_dimension_numbers<[1], [0], [0], [1], [0, 0, 1, 1], [], []>} : vector<575x64xbf16>, vector<64x128xbf16>, vector<575x128xf32> -> vector<575x128xf32>
    %24 = arith.addf %18, %23 : vector<575x128xf32>
    %c0_23 = arith.constant 0 : index
    %c26 = arith.constant 26 : index
    %c0_24 = arith.constant 0 : index
    %25 = vector.load %arg1[%c0_23, %c26, %c0_24] : memref<1x650x64xbf16, #tpu.memory_space<vmem>>, vector<1x575x64xbf16>
    %26 = vector.shape_cast %25 : vector<1x575x64xbf16> to vector<575x64xbf16>
    %c4 = arith.constant 4 : index
    %c0_25 = arith.constant 0 : index
    %c0_26 = arith.constant 0 : index
    %27 = vector.load %arg2[%c4, %c0_25, %c0_26] : memref<9x64x128xbf16, #tpu.memory_space<vmem>>, vector<1x64x128xbf16>
    %28 = vector.shape_cast %27 : vector<1x64x128xbf16> to vector<64x128xbf16>
    %cst_27 = arith.constant dense<0.000000e+00> : vector<575x128xf32>
    %29 = tpu.matmul %26, %28, %cst_27 {dimension_numbers = #tpu.dot_dimension_numbers<[1], [0], [0], [1], [0, 0, 1, 1], [], []>} : vector<575x64xbf16>, vector<64x128xbf16>, vector<575x128xf32> -> vector<575x128xf32>
    %30 = arith.addf %24, %29 : vector<575x128xf32>
    %c0_28 = arith.constant 0 : index
    %c27 = arith.constant 27 : index
    %c0_29 = arith.constant 0 : index
    %31 = vector.load %arg1[%c0_28, %c27, %c0_29] : memref<1x650x64xbf16, #tpu.memory_space<vmem>>, vector<1x575x64xbf16>
    %32 = vector.shape_cast %31 : vector<1x575x64xbf16> to vector<575x64xbf16>
    %c5 = arith.constant 5 : index
    %c0_30 = arith.constant 0 : index
    %c0_31 = arith.constant 0 : index
    %33 = vector.load %arg2[%c5, %c0_30, %c0_31] : memref<9x64x128xbf16, #tpu.memory_space<vmem>>, vector<1x64x128xbf16>
    %34 = vector.shape_cast %33 : vector<1x64x128xbf16> to vector<64x128xbf16>
    %cst_32 = arith.constant dense<0.000000e+00> : vector<575x128xf32>
    %35 = tpu.matmul %32, %34, %cst_32 {dimension_numbers = #tpu.dot_dimension_numbers<[1], [0], [0], [1], [0, 0, 1, 1], [], []>} : vector<575x64xbf16>, vector<64x128xbf16>, vector<575x128xf32> -> vector<575x128xf32>
    %36 = arith.addf %30, %35 : vector<575x128xf32>
    %c0_33 = arith.constant 0 : index
    %c50 = arith.constant 50 : index
    %c0_34 = arith.constant 0 : index
    %37 = vector.load %arg1[%c0_33, %c50, %c0_34] : memref<1x650x64xbf16, #tpu.memory_space<vmem>>, vector<1x575x64xbf16>
    %38 = vector.shape_cast %37 : vector<1x575x64xbf16> to vector<575x64xbf16>
    %c6 = arith.constant 6 : index
    %c0_35 = arith.constant 0 : index
    %c0_36 = arith.constant 0 : index
    %39 = vector.load %arg2[%c6, %c0_35, %c0_36] : memref<9x64x128xbf16, #tpu.memory_space<vmem>>, vector<1x64x128xbf16>
    %40 = vector.shape_cast %39 : vector<1x64x128xbf16> to vector<64x128xbf16>
    %cst_37 = arith.constant dense<0.000000e+00> : vector<575x128xf32>
    %41 = tpu.matmul %38, %40, %cst_37 {dimension_numbers = #tpu.dot_dimension_numbers<[1], [0], [0], [1], [0, 0, 1, 1], [], []>} : vector<575x64xbf16>, vector<64x128xbf16>, vector<575x128xf32> -> vector<575x128xf32>
    %42 = arith.addf %36, %41 : vector<575x128xf32>
    %c0_38 = arith.constant 0 : index
    %c51 = arith.constant 51 : index
    %c0_39 = arith.constant 0 : index
    %43 = vector.load %arg1[%c0_38, %c51, %c0_39] : memref<1x650x64xbf16, #tpu.memory_space<vmem>>, vector<1x575x64xbf16>
    %44 = vector.shape_cast %43 : vector<1x575x64xbf16> to vector<575x64xbf16>
    %c7 = arith.constant 7 : index
    %c0_40 = arith.constant 0 : index
    %c0_41 = arith.constant 0 : index
    %45 = vector.load %arg2[%c7, %c0_40, %c0_41] : memref<9x64x128xbf16, #tpu.memory_space<vmem>>, vector<1x64x128xbf16>
    %46 = vector.shape_cast %45 : vector<1x64x128xbf16> to vector<64x128xbf16>
    %cst_42 = arith.constant dense<0.000000e+00> : vector<575x128xf32>
    %47 = tpu.matmul %44, %46, %cst_42 {dimension_numbers = #tpu.dot_dimension_numbers<[1], [0], [0], [1], [0, 0, 1, 1], [], []>} : vector<575x64xbf16>, vector<64x128xbf16>, vector<575x128xf32> -> vector<575x128xf32>
    %48 = arith.addf %42, %47 : vector<575x128xf32>
    %c0_43 = arith.constant 0 : index
    %c52 = arith.constant 52 : index
    %c0_44 = arith.constant 0 : index
    %49 = vector.load %arg1[%c0_43, %c52, %c0_44] : memref<1x650x64xbf16, #tpu.memory_space<vmem>>, vector<1x575x64xbf16>
    %50 = vector.shape_cast %49 : vector<1x575x64xbf16> to vector<575x64xbf16>
    %c8 = arith.constant 8 : index
    %c0_45 = arith.constant 0 : index
    %c0_46 = arith.constant 0 : index
    %51 = vector.load %arg2[%c8, %c0_45, %c0_46] : memref<9x64x128xbf16, #tpu.memory_space<vmem>>, vector<1x64x128xbf16>
    %52 = vector.shape_cast %51 : vector<1x64x128xbf16> to vector<64x128xbf16>
    %cst_47 = arith.constant dense<0.000000e+00> : vector<575x128xf32>
    %53 = tpu.matmul %50, %52, %cst_47 {dimension_numbers = #tpu.dot_dimension_numbers<[1], [0], [0], [1], [0, 0, 1, 1], [], []>} : vector<575x64xbf16>, vector<64x128xbf16>, vector<575x128xf32> -> vector<575x128xf32>
    %54 = arith.addf %48, %53 : vector<575x128xf32>
    %c0_48 = arith.constant 0 : index
    %c0_49 = arith.constant 0 : index
    %55 = vector.load %arg3[%c0_48, %c0_49] : memref<1x128xf32, #tpu.memory_space<vmem>>, vector<1x128xf32>
    %56 = vector.broadcast %55 : vector<1x128xf32> to vector<575x128xf32>
    %57 = arith.addf %54, %56 : vector<575x128xf32>
    %cst_50 = arith.constant 0.000000e+00 : f32
    %58 = vector.broadcast %cst_50 : f32 to vector<575x128xf32>
    %59 = arith.maximumf %57, %58 : vector<575x128xf32>
    %c0_51 = arith.constant 0 : index
    %c0_52 = arith.constant 0 : index
    %60 = vector.load %arg5[%c0_51, %c0_52] : memref<575x128xf32, #tpu.memory_space<vmem>>, vector<575x128xf32>
    tpu.vector_store %arg5[%c0_51, %c0_52], %59 {strides = array<i32>} : memref<575x128xf32, #tpu.memory_space<vmem>>, vector<575x128xf32>,
    %c0_53 = arith.constant 0 : index
    %c0_54 = arith.constant 0 : index
    %61 = vector.load %arg5[%c0_53, %c0_54] : memref<575x128xf32, #tpu.memory_space<vmem>>, vector<25x128xf32>
    %c25_55 = arith.constant 25 : index
    %c0_56 = arith.constant 0 : index
    %62 = vector.load %arg5[%c25_55, %c0_56] : memref<575x128xf32, #tpu.memory_space<vmem>>, vector<25x128xf32>
    %63 = arith.maximumf %61, %62 : vector<25x128xf32>
    %c50_57 = arith.constant 50 : index
    %c0_58 = arith.constant 0 : index
    %64 = vector.load %arg5[%c50_57, %c0_58] : memref<575x128xf32, #tpu.memory_space<vmem>>, vector<25x128xf32>
    %65 = arith.maximumf %63, %64 : vector<25x128xf32>
    %c0_59 = arith.constant 0 : index
    %c0_60 = arith.constant 0 : index
    %c0_61 = arith.constant 0 : index
    %66 = vector.load %arg6[%c0_59, %c0_60, %c0_61] : memref<11x25x128xf32, #tpu.memory_space<vmem>>, vector<1x25x128xf32>
    %67 = vector.shape_cast %66 : vector<1x25x128xf32> to vector<25x128xf32>
    %68 = vector.shape_cast %65 : vector<25x128xf32> to vector<1x25x128xf32>
    tpu.vector_store %arg6[%c0_59, %c0_60, %c0_61], %68 {strides = array<i32>} : memref<11x25x128xf32, #tpu.memory_space<vmem>>, vector<1x25x128xf32>,
    %c50_62 = arith.constant 50 : index
    %c0_63 = arith.constant 0 : index
    %69 = vector.load %arg5[%c50_62, %c0_63] : memref<575x128xf32, #tpu.memory_space<vmem>>, vector<25x128xf32>
    %c75 = arith.constant 75 : index
    %c0_64 = arith.constant 0 : index
    %70 = vector.load %arg5[%c75, %c0_64] : memref<575x128xf32, #tpu.memory_space<vmem>>, vector<25x128xf32>
    %71 = arith.maximumf %69, %70 : vector<25x128xf32>
    %c100 = arith.constant 100 : index
    %c0_65 = arith.constant 0 : index
    %72 = vector.load %arg5[%c100, %c0_65] : memref<575x128xf32, #tpu.memory_space<vmem>>, vector<25x128xf32>
    %73 = arith.maximumf %71, %72 : vector<25x128xf32>
    %c1_66 = arith.constant 1 : index
    %c0_67 = arith.constant 0 : index
    %c0_68 = arith.constant 0 : index
    %74 = vector.load %arg6[%c1_66, %c0_67, %c0_68] : memref<11x25x128xf32, #tpu.memory_space<vmem>>, vector<1x25x128xf32>
    %75 = vector.shape_cast %74 : vector<1x25x128xf32> to vector<25x128xf32>
    %76 = vector.shape_cast %73 : vector<25x128xf32> to vector<1x25x128xf32>
    tpu.vector_store %arg6[%c1_66, %c0_67, %c0_68], %76 {strides = array<i32>} : memref<11x25x128xf32, #tpu.memory_space<vmem>>, vector<1x25x128xf32>,
    %c100_69 = arith.constant 100 : index
    %c0_70 = arith.constant 0 : index
    %77 = vector.load %arg5[%c100_69, %c0_70] : memref<575x128xf32, #tpu.memory_space<vmem>>, vector<25x128xf32>
    %c125 = arith.constant 125 : index
    %c0_71 = arith.constant 0 : index
    %78 = vector.load %arg5[%c125, %c0_71] : memref<575x128xf32, #tpu.memory_space<vmem>>, vector<25x128xf32>
    %79 = arith.maximumf %77, %78 : vector<25x128xf32>
    %c150 = arith.constant 150 : index
    %c0_72 = arith.constant 0 : index
    %80 = vector.load %arg5[%c150, %c0_72] : memref<575x128xf32, #tpu.memory_space<vmem>>, vector<25x128xf32>
    %81 = arith.maximumf %79, %80 : vector<25x128xf32>
    %c2_73 = arith.constant 2 : index
    %c0_74 = arith.constant 0 : index
    %c0_75 = arith.constant 0 : index
    %82 = vector.load %arg6[%c2_73, %c0_74, %c0_75] : memref<11x25x128xf32, #tpu.memory_space<vmem>>, vector<1x25x128xf32>
    %83 = vector.shape_cast %82 : vector<1x25x128xf32> to vector<25x128xf32>
    %84 = vector.shape_cast %81 : vector<25x128xf32> to vector<1x25x128xf32>
    tpu.vector_store %arg6[%c2_73, %c0_74, %c0_75], %84 {strides = array<i32>} : memref<11x25x128xf32, #tpu.memory_space<vmem>>, vector<1x25x128xf32>,
    %c150_76 = arith.constant 150 : index
    %c0_77 = arith.constant 0 : index
    %85 = vector.load %arg5[%c150_76, %c0_77] : memref<575x128xf32, #tpu.memory_space<vmem>>, vector<25x128xf32>
    %c175 = arith.constant 175 : index
    %c0_78 = arith.constant 0 : index
    %86 = vector.load %arg5[%c175, %c0_78] : memref<575x128xf32, #tpu.memory_space<vmem>>, vector<25x128xf32>
    %87 = arith.maximumf %85, %86 : vector<25x128xf32>
    %c200 = arith.constant 200 : index
    %c0_79 = arith.constant 0 : index
    %88 = vector.load %arg5[%c200, %c0_79] : memref<575x128xf32, #tpu.memory_space<vmem>>, vector<25x128xf32>
    %89 = arith.maximumf %87, %88 : vector<25x128xf32>
    %c3_80 = arith.constant 3 : index
    %c0_81 = arith.constant 0 : index
    %c0_82 = arith.constant 0 : index
    %90 = vector.load %arg6[%c3_80, %c0_81, %c0_82] : memref<11x25x128xf32, #tpu.memory_space<vmem>>, vector<1x25x128xf32>
    %91 = vector.shape_cast %90 : vector<1x25x128xf32> to vector<25x128xf32>
    %92 = vector.shape_cast %89 : vector<25x128xf32> to vector<1x25x128xf32>
    tpu.vector_store %arg6[%c3_80, %c0_81, %c0_82], %92 {strides = array<i32>} : memref<11x25x128xf32, #tpu.memory_space<vmem>>, vector<1x25x128xf32>,
    %c200_83 = arith.constant 200 : index
    %c0_84 = arith.constant 0 : index
    %93 = vector.load %arg5[%c200_83, %c0_84] : memref<575x128xf32, #tpu.memory_space<vmem>>, vector<25x128xf32>
    %c225 = arith.constant 225 : index
    %c0_85 = arith.constant 0 : index
    %94 = vector.load %arg5[%c225, %c0_85] : memref<575x128xf32, #tpu.memory_space<vmem>>, vector<25x128xf32>
    %95 = arith.maximumf %93, %94 : vector<25x128xf32>
    %c250 = arith.constant 250 : index
    %c0_86 = arith.constant 0 : index
    %96 = vector.load %arg5[%c250, %c0_86] : memref<575x128xf32, #tpu.memory_space<vmem>>, vector<25x128xf32>
    %97 = arith.maximumf %95, %96 : vector<25x128xf32>
    %c4_87 = arith.constant 4 : index
    %c0_88 = arith.constant 0 : index
    %c0_89 = arith.constant 0 : index
    %98 = vector.load %arg6[%c4_87, %c0_88, %c0_89] : memref<11x25x128xf32, #tpu.memory_space<vmem>>, vector<1x25x128xf32>
    %99 = vector.shape_cast %98 : vector<1x25x128xf32> to vector<25x128xf32>
    %100 = vector.shape_cast %97 : vector<25x128xf32> to vector<1x25x128xf32>
    tpu.vector_store %arg6[%c4_87, %c0_88, %c0_89], %100 {strides = array<i32>} : memref<11x25x128xf32, #tpu.memory_space<vmem>>, vector<1x25x128xf32>,
    %c250_90 = arith.constant 250 : index
    %c0_91 = arith.constant 0 : index
    %101 = vector.load %arg5[%c250_90, %c0_91] : memref<575x128xf32, #tpu.memory_space<vmem>>, vector<25x128xf32>
    %c275 = arith.constant 275 : index
    %c0_92 = arith.constant 0 : index
    %102 = vector.load %arg5[%c275, %c0_92] : memref<575x128xf32, #tpu.memory_space<vmem>>, vector<25x128xf32>
    %103 = arith.maximumf %101, %102 : vector<25x128xf32>
    %c300 = arith.constant 300 : index
    %c0_93 = arith.constant 0 : index
    %104 = vector.load %arg5[%c300, %c0_93] : memref<575x128xf32, #tpu.memory_space<vmem>>, vector<25x128xf32>
    %105 = arith.maximumf %103, %104 : vector<25x128xf32>
    %c5_94 = arith.constant 5 : index
    %c0_95 = arith.constant 0 : index
    %c0_96 = arith.constant 0 : index
    %106 = vector.load %arg6[%c5_94, %c0_95, %c0_96] : memref<11x25x128xf32, #tpu.memory_space<vmem>>, vector<1x25x128xf32>
    %107 = vector.shape_cast %106 : vector<1x25x128xf32> to vector<25x128xf32>
    %108 = vector.shape_cast %105 : vector<25x128xf32> to vector<1x25x128xf32>
    tpu.vector_store %arg6[%c5_94, %c0_95, %c0_96], %108 {strides = array<i32>} : memref<11x25x128xf32, #tpu.memory_space<vmem>>, vector<1x25x128xf32>,
    %c300_97 = arith.constant 300 : index
    %c0_98 = arith.constant 0 : index
    %109 = vector.load %arg5[%c300_97, %c0_98] : memref<575x128xf32, #tpu.memory_space<vmem>>, vector<25x128xf32>
    %c325 = arith.constant 325 : index
    %c0_99 = arith.constant 0 : index
    %110 = vector.load %arg5[%c325, %c0_99] : memref<575x128xf32, #tpu.memory_space<vmem>>, vector<25x128xf32>
    %111 = arith.maximumf %109, %110 : vector<25x128xf32>
    %c350 = arith.constant 350 : index
    %c0_100 = arith.constant 0 : index
    %112 = vector.load %arg5[%c350, %c0_100] : memref<575x128xf32, #tpu.memory_space<vmem>>, vector<25x128xf32>
    %113 = arith.maximumf %111, %112 : vector<25x128xf32>
    %c6_101 = arith.constant 6 : index
    %c0_102 = arith.constant 0 : index
    %c0_103 = arith.constant 0 : index
    %114 = vector.load %arg6[%c6_101, %c0_102, %c0_103] : memref<11x25x128xf32, #tpu.memory_space<vmem>>, vector<1x25x128xf32>
    %115 = vector.shape_cast %114 : vector<1x25x128xf32> to vector<25x128xf32>
    %116 = vector.shape_cast %113 : vector<25x128xf32> to vector<1x25x128xf32>
    tpu.vector_store %arg6[%c6_101, %c0_102, %c0_103], %116 {strides = array<i32>} : memref<11x25x128xf32, #tpu.memory_space<vmem>>, vector<1x25x128xf32>,
    %c350_104 = arith.constant 350 : index
    %c0_105 = arith.constant 0 : index
    %117 = vector.load %arg5[%c350_104, %c0_105] : memref<575x128xf32, #tpu.memory_space<vmem>>, vector<25x128xf32>
    %c375 = arith.constant 375 : index
    %c0_106 = arith.constant 0 : index
    %118 = vector.load %arg5[%c375, %c0_106] : memref<575x128xf32, #tpu.memory_space<vmem>>, vector<25x128xf32>
    %119 = arith.maximumf %117, %118 : vector<25x128xf32>
    %c400 = arith.constant 400 : index
    %c0_107 = arith.constant 0 : index
    %120 = vector.load %arg5[%c400, %c0_107] : memref<575x128xf32, #tpu.memory_space<vmem>>, vector<25x128xf32>
    %121 = arith.maximumf %119, %120 : vector<25x128xf32>
    %c7_108 = arith.constant 7 : index
    %c0_109 = arith.constant 0 : index
    %c0_110 = arith.constant 0 : index
    %122 = vector.load %arg6[%c7_108, %c0_109, %c0_110] : memref<11x25x128xf32, #tpu.memory_space<vmem>>, vector<1x25x128xf32>
    %123 = vector.shape_cast %122 : vector<1x25x128xf32> to vector<25x128xf32>
    %124 = vector.shape_cast %121 : vector<25x128xf32> to vector<1x25x128xf32>
    tpu.vector_store %arg6[%c7_108, %c0_109, %c0_110], %124 {strides = array<i32>} : memref<11x25x128xf32, #tpu.memory_space<vmem>>, vector<1x25x128xf32>,
    %c400_111 = arith.constant 400 : index
    %c0_112 = arith.constant 0 : index
    %125 = vector.load %arg5[%c400_111, %c0_112] : memref<575x128xf32, #tpu.memory_space<vmem>>, vector<25x128xf32>
    %c425 = arith.constant 425 : index
    %c0_113 = arith.constant 0 : index
    %126 = vector.load %arg5[%c425, %c0_113] : memref<575x128xf32, #tpu.memory_space<vmem>>, vector<25x128xf32>
    %127 = arith.maximumf %125, %126 : vector<25x128xf32>
    %c450 = arith.constant 450 : index
    %c0_114 = arith.constant 0 : index
    %128 = vector.load %arg5[%c450, %c0_114] : memref<575x128xf32, #tpu.memory_space<vmem>>, vector<25x128xf32>
    %129 = arith.maximumf %127, %128 : vector<25x128xf32>
    %c8_115 = arith.constant 8 : index
    %c0_116 = arith.constant 0 : index
    %c0_117 = arith.constant 0 : index
    %130 = vector.load %arg6[%c8_115, %c0_116, %c0_117] : memref<11x25x128xf32, #tpu.memory_space<vmem>>, vector<1x25x128xf32>
    %131 = vector.shape_cast %130 : vector<1x25x128xf32> to vector<25x128xf32>
    %132 = vector.shape_cast %129 : vector<25x128xf32> to vector<1x25x128xf32>
    tpu.vector_store %arg6[%c8_115, %c0_116, %c0_117], %132 {strides = array<i32>} : memref<11x25x128xf32, #tpu.memory_space<vmem>>, vector<1x25x128xf32>,
    %c450_118 = arith.constant 450 : index
    %c0_119 = arith.constant 0 : index
    %133 = vector.load %arg5[%c450_118, %c0_119] : memref<575x128xf32, #tpu.memory_space<vmem>>, vector<25x128xf32>
    %c475 = arith.constant 475 : index
    %c0_120 = arith.constant 0 : index
    %134 = vector.load %arg5[%c475, %c0_120] : memref<575x128xf32, #tpu.memory_space<vmem>>, vector<25x128xf32>
    %135 = arith.maximumf %133, %134 : vector<25x128xf32>
    %c500 = arith.constant 500 : index
    %c0_121 = arith.constant 0 : index
    %136 = vector.load %arg5[%c500, %c0_121] : memref<575x128xf32, #tpu.memory_space<vmem>>, vector<25x128xf32>
    %137 = arith.maximumf %135, %136 : vector<25x128xf32>
    %c9 = arith.constant 9 : index
    %c0_122 = arith.constant 0 : index
    %c0_123 = arith.constant 0 : index
    %138 = vector.load %arg6[%c9, %c0_122, %c0_123] : memref<11x25x128xf32, #tpu.memory_space<vmem>>, vector<1x25x128xf32>
    %139 = vector.shape_cast %138 : vector<1x25x128xf32> to vector<25x128xf32>
    %140 = vector.shape_cast %137 : vector<25x128xf32> to vector<1x25x128xf32>
    tpu.vector_store %arg6[%c9, %c0_122, %c0_123], %140 {strides = array<i32>} : memref<11x25x128xf32, #tpu.memory_space<vmem>>, vector<1x25x128xf32>,
    %c500_124 = arith.constant 500 : index
    %c0_125 = arith.constant 0 : index
    %141 = vector.load %arg5[%c500_124, %c0_125] : memref<575x128xf32, #tpu.memory_space<vmem>>, vector<25x128xf32>
    %c525 = arith.constant 525 : index
    %c0_126 = arith.constant 0 : index
    %142 = vector.load %arg5[%c525, %c0_126] : memref<575x128xf32, #tpu.memory_space<vmem>>, vector<25x128xf32>
    %143 = arith.maximumf %141, %142 : vector<25x128xf32>
    %c550 = arith.constant 550 : index
    %c0_127 = arith.constant 0 : index
    %144 = vector.load %arg5[%c550, %c0_127] : memref<575x128xf32, #tpu.memory_space<vmem>>, vector<25x128xf32>
    %145 = arith.maximumf %143, %144 : vector<25x128xf32>
    %c10 = arith.constant 10 : index
    %c0_128 = arith.constant 0 : index
    %c0_129 = arith.constant 0 : index
    %146 = vector.load %arg6[%c10, %c0_128, %c0_129] : memref<11x25x128xf32, #tpu.memory_space<vmem>>, vector<1x25x128xf32>
    %147 = vector.shape_cast %146 : vector<1x25x128xf32> to vector<25x128xf32>
    %148 = vector.shape_cast %145 : vector<25x128xf32> to vector<1x25x128xf32>
    tpu.vector_store %arg6[%c10, %c0_128, %c0_129], %148 {strides = array<i32>} : memref<11x25x128xf32, #tpu.memory_space<vmem>>, vector<1x25x128xf32>,
    %c0_130 = arith.constant 0 : index
    %c0_131 = arith.constant 0 : index
    %c0_132 = arith.constant 0 : index
    %149 = vector.load %arg6[%c0_130, %c0_131, %c0_132] : memref<11x25x128xf32, #tpu.memory_space<vmem>>, vector<11x3x128xf32>
    %cst_133 = arith.constant dense<0xFF800000> : vector<11x128xf32>
    %150 = vector.multi_reduction <maximumf>, %149, %cst_133 [1] : vector<11x3x128xf32> to vector<11x128xf32>
    %151 = vector.extract_strided_slice %150 {offsets = [0, 0], sizes = [11, 16], strides = [1, 1]} : vector<11x128xf32> to vector<11x16xf32>
    %152 = arith.truncf %151 : vector<11x16xf32> to vector<11x16xbf16>
    %c0_134 = arith.constant 0 : index
    %c0_135 = arith.constant 0 : index
    %c0_136 = arith.constant 0 : index
    %c0_137 = arith.constant 0 : index
    %153 = vector.load %arg4[%c0_134, %c0_135, %c0_136, %c0_137] : memref<1x11x11x16xbf16, #tpu.memory_space<vmem>>, vector<1x1x11x16xbf16>
    %154 = vector.shape_cast %153 : vector<1x1x11x16xbf16> to vector<11x16xbf16>
    %155 = vector.shape_cast %152 : vector<11x16xbf16> to vector<1x1x11x16xbf16>
    tpu.vector_store %arg4[%c0_134, %c0_135, %c0_136, %c0_137], %155 {strides = array<i32>} : memref<1x11x11x16xbf16, #tpu.memory_space<vmem>>, vector<1x1x11x16xbf16>,
    %c0_138 = arith.constant 0 : index
    %c2_139 = arith.constant 2 : index
    %c0_140 = arith.constant 0 : index
    %156 = vector.load %arg6[%c0_138, %c2_139, %c0_140] : memref<11x25x128xf32, #tpu.memory_space<vmem>>, vector<11x3x128xf32>
    %cst_141 = arith.constant dense<0xFF800000> : vector<11x128xf32>
    %157 = vector.multi_reduction <maximumf>, %156, %cst_141 [1] : vector<11x3x128xf32> to vector<11x128xf32>
    %158 = vector.extract_strided_slice %157 {offsets = [0, 0], sizes = [11, 16], strides = [1, 1]} : vector<11x128xf32> to vector<11x16xf32>
    %159 = arith.truncf %158 : vector<11x16xf32> to vector<11x16xbf16>
    %c0_142 = arith.constant 0 : index
    %c1_143 = arith.constant 1 : index
    %c0_144 = arith.constant 0 : index
    %c0_145 = arith.constant 0 : index
    %160 = vector.load %arg4[%c0_142, %c1_143, %c0_144, %c0_145] : memref<1x11x11x16xbf16, #tpu.memory_space<vmem>>, vector<1x1x11x16xbf16>
    %161 = vector.shape_cast %160 : vector<1x1x11x16xbf16> to vector<11x16xbf16>
    %162 = vector.shape_cast %159 : vector<11x16xbf16> to vector<1x1x11x16xbf16>
    tpu.vector_store %arg4[%c0_142, %c1_143, %c0_144, %c0_145], %162 {strides = array<i32>} : memref<1x11x11x16xbf16, #tpu.memory_space<vmem>>, vector<1x1x11x16xbf16>,
    %c0_146 = arith.constant 0 : index
    %c4_147 = arith.constant 4 : index
    %c0_148 = arith.constant 0 : index
    %163 = vector.load %arg6[%c0_146, %c4_147, %c0_148] : memref<11x25x128xf32, #tpu.memory_space<vmem>>, vector<11x3x128xf32>
    %cst_149 = arith.constant dense<0xFF800000> : vector<11x128xf32>
    %164 = vector.multi_reduction <maximumf>, %163, %cst_149 [1] : vector<11x3x128xf32> to vector<11x128xf32>
    %165 = vector.extract_strided_slice %164 {offsets = [0, 0], sizes = [11, 16], strides = [1, 1]} : vector<11x128xf32> to vector<11x16xf32>
    %166 = arith.truncf %165 : vector<11x16xf32> to vector<11x16xbf16>
    %c0_150 = arith.constant 0 : index
    %c2_151 = arith.constant 2 : index
    %c0_152 = arith.constant 0 : index
    %c0_153 = arith.constant 0 : index
    %167 = vector.load %arg4[%c0_150, %c2_151, %c0_152, %c0_153] : memref<1x11x11x16xbf16, #tpu.memory_space<vmem>>, vector<1x1x11x16xbf16>
    %168 = vector.shape_cast %167 : vector<1x1x11x16xbf16> to vector<11x16xbf16>
    %169 = vector.shape_cast %166 : vector<11x16xbf16> to vector<1x1x11x16xbf16>
    tpu.vector_store %arg4[%c0_150, %c2_151, %c0_152, %c0_153], %169 {strides = array<i32>} : memref<1x11x11x16xbf16, #tpu.memory_space<vmem>>, vector<1x1x11x16xbf16>,
    %c0_154 = arith.constant 0 : index
    %c6_155 = arith.constant 6 : index
    %c0_156 = arith.constant 0 : index
    %170 = vector.load %arg6[%c0_154, %c6_155, %c0_156] : memref<11x25x128xf32, #tpu.memory_space<vmem>>, vector<11x3x128xf32>
    %cst_157 = arith.constant dense<0xFF800000> : vector<11x128xf32>
    %171 = vector.multi_reduction <maximumf>, %170, %cst_157 [1] : vector<11x3x128xf32> to vector<11x128xf32>
    %172 = vector.extract_strided_slice %171 {offsets = [0, 0], sizes = [11, 16], strides = [1, 1]} : vector<11x128xf32> to vector<11x16xf32>
    %173 = arith.truncf %172 : vector<11x16xf32> to vector<11x16xbf16>
    %c0_158 = arith.constant 0 : index
    %c3_159 = arith.constant 3 : index
    %c0_160 = arith.constant 0 : index
    %c0_161 = arith.constant 0 : index
    %174 = vector.load %arg4[%c0_158, %c3_159, %c0_160, %c0_161] : memref<1x11x11x16xbf16, #tpu.memory_space<vmem>>, vector<1x1x11x16xbf16>
    %175 = vector.shape_cast %174 : vector<1x1x11x16xbf16> to vector<11x16xbf16>
    %176 = vector.shape_cast %173 : vector<11x16xbf16> to vector<1x1x11x16xbf16>
    tpu.vector_store %arg4[%c0_158, %c3_159, %c0_160, %c0_161], %176 {strides = array<i32>} : memref<1x11x11x16xbf16, #tpu.memory_space<vmem>>, vector<1x1x11x16xbf16>,
    %c0_162 = arith.constant 0 : index
    %c8_163 = arith.constant 8 : index
    %c0_164 = arith.constant 0 : index
    %177 = vector.load %arg6[%c0_162, %c8_163, %c0_164] : memref<11x25x128xf32, #tpu.memory_space<vmem>>, vector<11x3x128xf32>
    %cst_165 = arith.constant dense<0xFF800000> : vector<11x128xf32>
    %178 = vector.multi_reduction <maximumf>, %177, %cst_165 [1] : vector<11x3x128xf32> to vector<11x128xf32>
    %179 = vector.extract_strided_slice %178 {offsets = [0, 0], sizes = [11, 16], strides = [1, 1]} : vector<11x128xf32> to vector<11x16xf32>
    %180 = arith.truncf %179 : vector<11x16xf32> to vector<11x16xbf16>
    %c0_166 = arith.constant 0 : index
    %c4_167 = arith.constant 4 : index
    %c0_168 = arith.constant 0 : index
    %c0_169 = arith.constant 0 : index
    %181 = vector.load %arg4[%c0_166, %c4_167, %c0_168, %c0_169] : memref<1x11x11x16xbf16, #tpu.memory_space<vmem>>, vector<1x1x11x16xbf16>
    %182 = vector.shape_cast %181 : vector<1x1x11x16xbf16> to vector<11x16xbf16>
    %183 = vector.shape_cast %180 : vector<11x16xbf16> to vector<1x1x11x16xbf16>
    tpu.vector_store %arg4[%c0_166, %c4_167, %c0_168, %c0_169], %183 {strides = array<i32>} : memref<1x11x11x16xbf16, #tpu.memory_space<vmem>>, vector<1x1x11x16xbf16>,
    %c0_170 = arith.constant 0 : index
    %c10_171 = arith.constant 10 : index
    %c0_172 = arith.constant 0 : index
    %184 = vector.load %arg6[%c0_170, %c10_171, %c0_172] : memref<11x25x128xf32, #tpu.memory_space<vmem>>, vector<11x3x128xf32>
    %cst_173 = arith.constant dense<0xFF800000> : vector<11x128xf32>
    %185 = vector.multi_reduction <maximumf>, %184, %cst_173 [1] : vector<11x3x128xf32> to vector<11x128xf32>
    %186 = vector.extract_strided_slice %185 {offsets = [0, 0], sizes = [11, 16], strides = [1, 1]} : vector<11x128xf32> to vector<11x16xf32>
    %187 = arith.truncf %186 : vector<11x16xf32> to vector<11x16xbf16>
    %c0_174 = arith.constant 0 : index
    %c5_175 = arith.constant 5 : index
    %c0_176 = arith.constant 0 : index
    %c0_177 = arith.constant 0 : index
    %188 = vector.load %arg4[%c0_174, %c5_175, %c0_176, %c0_177] : memref<1x11x11x16xbf16, #tpu.memory_space<vmem>>, vector<1x1x11x16xbf16>
    %189 = vector.shape_cast %188 : vector<1x1x11x16xbf16> to vector<11x16xbf16>
    %190 = vector.shape_cast %187 : vector<11x16xbf16> to vector<1x1x11x16xbf16>
    tpu.vector_store %arg4[%c0_174, %c5_175, %c0_176, %c0_177], %190 {strides = array<i32>} : memref<1x11x11x16xbf16, #tpu.memory_space<vmem>>, vector<1x1x11x16xbf16>,
    %c0_178 = arith.constant 0 : index
    %c12 = arith.constant 12 : index
    %c0_179 = arith.constant 0 : index
    %191 = vector.load %arg6[%c0_178, %c12, %c0_179] : memref<11x25x128xf32, #tpu.memory_space<vmem>>, vector<11x3x128xf32>
    %cst_180 = arith.constant dense<0xFF800000> : vector<11x128xf32>
    %192 = vector.multi_reduction <maximumf>, %191, %cst_180 [1] : vector<11x3x128xf32> to vector<11x128xf32>
    %193 = vector.extract_strided_slice %192 {offsets = [0, 0], sizes = [11, 16], strides = [1, 1]} : vector<11x128xf32> to vector<11x16xf32>
    %194 = arith.truncf %193 : vector<11x16xf32> to vector<11x16xbf16>
    %c0_181 = arith.constant 0 : index
    %c6_182 = arith.constant 6 : index
    %c0_183 = arith.constant 0 : index
    %c0_184 = arith.constant 0 : index
    %195 = vector.load %arg4[%c0_181, %c6_182, %c0_183, %c0_184] : memref<1x11x11x16xbf16, #tpu.memory_space<vmem>>, vector<1x1x11x16xbf16>
    %196 = vector.shape_cast %195 : vector<1x1x11x16xbf16> to vector<11x16xbf16>
    %197 = vector.shape_cast %194 : vector<11x16xbf16> to vector<1x1x11x16xbf16>
    tpu.vector_store %arg4[%c0_181, %c6_182, %c0_183, %c0_184], %197 {strides = array<i32>} : memref<1x11x11x16xbf16, #tpu.memory_space<vmem>>, vector<1x1x11x16xbf16>,
    %c0_185 = arith.constant 0 : index
    %c14 = arith.constant 14 : index
    %c0_186 = arith.constant 0 : index
    %198 = vector.load %arg6[%c0_185, %c14, %c0_186] : memref<11x25x128xf32, #tpu.memory_space<vmem>>, vector<11x3x128xf32>
    %cst_187 = arith.constant dense<0xFF800000> : vector<11x128xf32>
    %199 = vector.multi_reduction <maximumf>, %198, %cst_187 [1] : vector<11x3x128xf32> to vector<11x128xf32>
    %200 = vector.extract_strided_slice %199 {offsets = [0, 0], sizes = [11, 16], strides = [1, 1]} : vector<11x128xf32> to vector<11x16xf32>
    %201 = arith.truncf %200 : vector<11x16xf32> to vector<11x16xbf16>
    %c0_188 = arith.constant 0 : index
    %c7_189 = arith.constant 7 : index
    %c0_190 = arith.constant 0 : index
    %c0_191 = arith.constant 0 : index
    %202 = vector.load %arg4[%c0_188, %c7_189, %c0_190, %c0_191] : memref<1x11x11x16xbf16, #tpu.memory_space<vmem>>, vector<1x1x11x16xbf16>
    %203 = vector.shape_cast %202 : vector<1x1x11x16xbf16> to vector<11x16xbf16>
    %204 = vector.shape_cast %201 : vector<11x16xbf16> to vector<1x1x11x16xbf16>
    tpu.vector_store %arg4[%c0_188, %c7_189, %c0_190, %c0_191], %204 {strides = array<i32>} : memref<1x11x11x16xbf16, #tpu.memory_space<vmem>>, vector<1x1x11x16xbf16>,
    %c0_192 = arith.constant 0 : index
    %c16 = arith.constant 16 : index
    %c0_193 = arith.constant 0 : index
    %205 = vector.load %arg6[%c0_192, %c16, %c0_193] : memref<11x25x128xf32, #tpu.memory_space<vmem>>, vector<11x3x128xf32>
    %cst_194 = arith.constant dense<0xFF800000> : vector<11x128xf32>
    %206 = vector.multi_reduction <maximumf>, %205, %cst_194 [1] : vector<11x3x128xf32> to vector<11x128xf32>
    %207 = vector.extract_strided_slice %206 {offsets = [0, 0], sizes = [11, 16], strides = [1, 1]} : vector<11x128xf32> to vector<11x16xf32>
    %208 = arith.truncf %207 : vector<11x16xf32> to vector<11x16xbf16>
    %c0_195 = arith.constant 0 : index
    %c8_196 = arith.constant 8 : index
    %c0_197 = arith.constant 0 : index
    %c0_198 = arith.constant 0 : index
    %209 = vector.load %arg4[%c0_195, %c8_196, %c0_197, %c0_198] : memref<1x11x11x16xbf16, #tpu.memory_space<vmem>>, vector<1x1x11x16xbf16>
    %210 = vector.shape_cast %209 : vector<1x1x11x16xbf16> to vector<11x16xbf16>
    %211 = vector.shape_cast %208 : vector<11x16xbf16> to vector<1x1x11x16xbf16>
    tpu.vector_store %arg4[%c0_195, %c8_196, %c0_197, %c0_198], %211 {strides = array<i32>} : memref<1x11x11x16xbf16, #tpu.memory_space<vmem>>, vector<1x1x11x16xbf16>,
    %c0_199 = arith.constant 0 : index
    %c18 = arith.constant 18 : index
    %c0_200 = arith.constant 0 : index
    %212 = vector.load %arg6[%c0_199, %c18, %c0_200] : memref<11x25x128xf32, #tpu.memory_space<vmem>>, vector<11x3x128xf32>
    %cst_201 = arith.constant dense<0xFF800000> : vector<11x128xf32>
    %213 = vector.multi_reduction <maximumf>, %212, %cst_201 [1] : vector<11x3x128xf32> to vector<11x128xf32>
    %214 = vector.extract_strided_slice %213 {offsets = [0, 0], sizes = [11, 16], strides = [1, 1]} : vector<11x128xf32> to vector<11x16xf32>
    %215 = arith.truncf %214 : vector<11x16xf32> to vector<11x16xbf16>
    %c0_202 = arith.constant 0 : index
    %c9_203 = arith.constant 9 : index
    %c0_204 = arith.constant 0 : index
    %c0_205 = arith.constant 0 : index
    %216 = vector.load %arg4[%c0_202, %c9_203, %c0_204, %c0_205] : memref<1x11x11x16xbf16, #tpu.memory_space<vmem>>, vector<1x1x11x16xbf16>
    %217 = vector.shape_cast %216 : vector<1x1x11x16xbf16> to vector<11x16xbf16>
    %218 = vector.shape_cast %215 : vector<11x16xbf16> to vector<1x1x11x16xbf16>
    tpu.vector_store %arg4[%c0_202, %c9_203, %c0_204, %c0_205], %218 {strides = array<i32>} : memref<1x11x11x16xbf16, #tpu.memory_space<vmem>>, vector<1x1x11x16xbf16>,
    %c0_206 = arith.constant 0 : index
    %c20 = arith.constant 20 : index
    %c0_207 = arith.constant 0 : index
    %219 = vector.load %arg6[%c0_206, %c20, %c0_207] : memref<11x25x128xf32, #tpu.memory_space<vmem>>, vector<11x3x128xf32>
    %cst_208 = arith.constant dense<0xFF800000> : vector<11x128xf32>
    %220 = vector.multi_reduction <maximumf>, %219, %cst_208 [1] : vector<11x3x128xf32> to vector<11x128xf32>
    %221 = vector.extract_strided_slice %220 {offsets = [0, 0], sizes = [11, 16], strides = [1, 1]} : vector<11x128xf32> to vector<11x16xf32>
    %222 = arith.truncf %221 : vector<11x16xf32> to vector<11x16xbf16>
    %c0_209 = arith.constant 0 : index
    %c10_210 = arith.constant 10 : index
    %c0_211 = arith.constant 0 : index
    %c0_212 = arith.constant 0 : index
    %223 = vector.load %arg4[%c0_209, %c10_210, %c0_211, %c0_212] : memref<1x11x11x16xbf16, #tpu.memory_space<vmem>>, vector<1x1x11x16xbf16>
    %224 = vector.shape_cast %223 : vector<1x1x11x16xbf16> to vector<11x16xbf16>
    %225 = vector.shape_cast %222 : vector<11x16xbf16> to vector<1x1x11x16xbf16>
    tpu.vector_store %arg4[%c0_209, %c10_210, %c0_211, %c0_212], %225 {strides = array<i32>} : memref<1x11x11x16xbf16, #tpu.memory_space<vmem>>, vector<1x1x11x16xbf16>,
    return
  }
  func.func @transform_0(%arg0: i32) -> (i32, i32, i32) {
    %c0_i32 = arith.constant 0 : i32
    %c0_i32_0 = arith.constant 0 : i32
    %c0_i32_1 = arith.constant 0 : i32
    return %arg0, %c0_i32, %c0_i32_0 : i32, i32, i32
  }
  func.func @transform_1(%arg0: i32) -> (i32, i32, i32) {
    %c0_i32 = arith.constant 0 : i32
    %c0_i32_0 = arith.constant 0 : i32
    %c0_i32_1 = arith.constant 0 : i32
    %c0_i32_2 = arith.constant 0 : i32
    return %c0_i32, %c0_i32_0, %c0_i32_1 : i32, i32, i32
  }
  func.func @transform_2(%arg0: i32) -> (i32, i32) {
    %c0_i32 = arith.constant 0 : i32
    %c0_i32_0 = arith.constant 0 : i32
    %c0_i32_1 = arith.constant 0 : i32
    return %c0_i32, %c0_i32_0 : i32, i32
  }
  func.func @transform_3(%arg0: i32) -> (i32, i32, i32, i32) {
    %c0_i32 = arith.constant 0 : i32
    %c0_i32_0 = arith.constant 0 : i32
    %c0_i32_1 = arith.constant 0 : i32
    %c0_i32_2 = arith.constant 0 : i32
    return %arg0, %c0_i32, %c0_i32_0, %c0_i32_1 : i32, i32, i32, i32
  }
}

</mosaic_0001>

<bundles_post_ra>
// kernel: tpu_custom_call.1
= control target key start
LH: loop header
LB: loop body
LE: loop exit
PB: predicated region body
PF: predicated region fallthrough
CT: control target
= control target key end

     0   :  { %s10133_s12 = smov 0   ;;  %s13716_s0 = inlined_call_operand.vmem [shape: bf16[2,650,64], index: 0, kind: input, shape index: {}]   ;;  %s13717_s1 = inlined_call_operand.vmem [shape: bf16[9,64,128], index: 1, kind: input, shape index: {}]   ;;  %s13718_s2 = inlined_call_operand.vmem [shape: f32[1,128], index: 2, kind: input, shape index: {}]   ;;  %s13719_s3 = inlined_call_operand.vmem [shape: bf16[2,11,11,16], index: 3, kind: output, shape index: {}]  }
   0x1 LB: > { %s8513_s13 = sadd.s32 4294967295, %s10111_s12   ;;  %p8517_p0 = scmp.ge.s32.totalorder %s10111_s12, 1  ;;  %s10111_s12 = sphi %s10133_s12, %s13_s12  }
   0x2   : > { %p137_p1 = scmp.lt.s32.totalorder %s10111_s12, 3 }
   0x4   : > { %p138_p2 = pnand %p8517_p0, %p137_p1 }
   0x6   : > { %141 = sbr.rel (%p138_p2) target bundleno = 1559 (0x617), region = 32 }
   0xb   : > { %v9843_v0 = vld [vmem:[%s13717_s1 + $0x38] sm:$0xff]  ;;  %p161_p3 = scmp.lt.s32.totalorder %s8513_s13, 1  ;;  %v9842_v1 = vld [vmem:[%s13717_s1 + $0x30] sm:$0xff]  ;;  %v9841_v2 = vld [vmem:[%s13717_s1 + $0x28] sm:$0xff]  ;;  %vm441_vm0 = vsmask.f32 7424 }
   0xc   : > { %10015 = vmatpush.bf16.msra.mxu1 %v9843_v0  ;;  %10016 = vmatpush.bf16.msra.mxu2 %v9843_v0  ;;  %v9840_v15 = vld [vmem:[%s13717_s1 + $0x20] sm:$0xff]  ;;  %v9883_v26 = vld [vmem:[%s13717_s1 + $0x58] sm:$0xff]  ;;  %vm753_vm1 = vcmask 523264   ;;  %v9882_v47 = vld [vmem:[%s13717_s1 + $0x50] sm:$0xff]  ;;  %vm1601_vm2 = vcmask 1046528   ;;  %vm5957_vm4 = vcmask 1045504  }
   0xd   : > { %s13930_s13 = smov (!%p161_p3, %s8513_s13), 1  ;;  %10017 = vmatpush.bf16.msra.mxu3 %v9843_v0  ;;  %866 = vmatpush.bf16.msra.mxu0 %v9843_v0  ;;  %v9923_v29 = vld [vmem:[%s13717_s1 + $0x78] sm:$0xff]  ;;  %v9922_v48 = vld [vmem:[%s13717_s1 + $0x70] sm:$0xff]  ;;  %vm3749_vm3 = vsmask.f32 6400  ;;  %vm6929_vm5 = vcmask 1042432  }
   0xe   : > { %s10027_s18 = smul.u32 328, %s13930_s13  ;;  %v9839_v36 = vld [vmem:[%s13717_s1 + $0x18] sm:$0xff]  ;;  %v9838_v49 = vld [vmem:[%s13717_s1 + $0x10] sm:$0xff]  ;;  %vm7040_vm6 = vcmask 1041409   ;;  %vm7042_vm7 = vcmask 1042434   ;;  %vm7044_vm8 = vcmask 1043459  }
   0xf   : > { %v9963_v42 = vld [vmem:[%s13717_s1 + $0x98] sm:$0xff]  ;;  %v9962_v51 = vld [vmem:[%s13717_s1 + $0x90] sm:$0xff]  ;;  %vm7046_vm9 = vcmask 1044484   ;;  %vm7048_vm10 = vcmask 1045509   ;;  %vm7050_vm11 = vcmask 1046534   ;;  %vm7052_vm12 = vcmask 1047559  }
  0x10   : > { %10018 = vmatpush.bf16.msra.mxu1 %v9842_v1  ;;  %10019 = vmatpush.bf16.msra.mxu2 %v9842_v1  ;;  %s10156_s23 = scalar_lea.vmem %s13716_s0, %s10027_s18  ;;  %vm7060_vm13 = vcmask 125952   ;;  %s10028_s27 = smul.u32 88, %s13930_s13  ;;  %vm7062_vm14 = vcmask 123904   ;;  %vm7063_vm15 = vsmask.f32 1280 }
  0x11   : > { %10020 = vmatpush.bf16.msra.mxu3 %v9842_v1  ;;  %867 = vmatpush.bf16.msra.mxu0 %v9842_v1  ;;  %v9809_v3 = vld [vmem:[%s10156_s23 + $0x48] sm:$0xff]  ;;  %v10160_v4 = vld [vmem:[%s10156_s23 + $0x50] sm:$0xff]  ;;  %v10164_v6 = vld [vmem:[%s10156_s23 + $0x98] sm:$0xff] }
  0x12   : > { %v9818_v5 = vld [vmem:[%s10156_s23 + $0x90] sm:$0xff]  ;;  %v9827_v7 = vld [vmem:[%s10156_s23 + $0xd8] sm:$0xff]  ;;  %v10168_v8 = vld [vmem:[%s10156_s23 + $0xe0] sm:$0xff]  ;;  %v514_v9 = vshll.u32 %v9809_v3, 16  ;;  %v518_v10 = vshrl.u32 %v9809_v3, 16  ;;  %v522_v11 = vshll.u32 %v10160_v4, 16  ;;  %s13363_s29 = scalar_lea.vmem %s13719_s3, %s10028_s27 }
  0x13   : > { %v586_v12 = vshll.u32 %v9818_v5, 16  ;;  %v10172_v13 = vld [vmem:[%s10156_s23] sm:$0xff]  ;;  %v10175_v14 = vld [vmem:[%s10156_s23 + $0x8] sm:$0xff]  ;;  %v590_v16 = vshrl.u32 %v9818_v5, 16  ;;  %v594_v17 = vshll.u32 %v10164_v6, 16  ;;  %v658_v18 = vshll.u32 %v9827_v7, 16 }
  0x14   : > { %10021 = vmatpush.bf16.msra.mxu1 %v9841_v2  ;;  %10022 = vmatpush.bf16.msra.mxu2 %v9841_v2  ;;  %v662_v19 = vshrl.u32 %v9827_v7, 16  ;;  %v10181_v20 = vrot.slane %v514_v9, 1  ;;  %v524_v21 = vrot.slane %v522_v11, 1  ;;  %v666_v23 = vshll.u32 %v10168_v8, 16  ;;  %v9811_v44 = vld [vmem:[%s10156_s23 + $0x58] sm:$0xff]  ;;  %v9820_v45 = vld [vmem:[%s10156_s23 + $0xa0] sm:$0xff] }
  0x15   : > { %10023 = vmatpush.bf16.msra.mxu3 %v9841_v2  ;;  %868 = vmatpush.bf16.msra.mxu0 %v9841_v2  ;;  %v10183_v22 = vrot.slane %v586_v12, 1  ;;  %v596_v24 = vrot.slane %v594_v17, 1  ;;  %v10186_v25 = vrot.slane %v658_v18, 1  ;;  %v443_v27 = vshrl.u32 %v10172_v13, 16  ;;  %v9829_v46 = vld [vmem:[%s10156_s23 + $0xe8] sm:$0xff]  ;;  %v10227_v50 = vld [vmem:[%s10156_s23 + $0x10] sm:$0xff] }
  0x16   : > { %v445_v28 = vshll.u32 %v10172_v13, 16  ;;  %v520_v30 = vor.u32 %v518_v10, %v10181_v20  ;;  %v668_v32 = vrot.slane %v666_v23, 1  ;;  %v450_v33 = vshll.u32 %v10175_v14, 16  ;;  %v9821_v9 = vld [vmem:[%s10156_s23 + $0xa8] sm:$0xff]  ;;  %v9830_v10 = vld [vmem:[%s10156_s23 + $0xf0] sm:$0xff]  ;;  %v10249_v11 = vld [vmem:[%s10156_s23 + $0x18] sm:$0xff] }
  0x17   : > { %v592_v31 = vor.u32 %v590_v16, %v10183_v22  ;;  %v664_v34 = vor.u32 %v662_v19, %v10186_v25  ;;  %v526_v52 = vshrl.u32 %v10160_v4, 16  ;;  %v530_v53 = vshll.u32 %v9811_v44, 16 }
  0x18   : > { %10024 = vmatpush.bf16.msra.mxu1 %v9840_v15  ;;  %10025 = vmatpush.bf16.msra.mxu2 %v9840_v15  ;;  %v447_v35 = vrot.slane %v445_v28, 1  ;;  %v525_v37 = vsel %vm441_vm0, %v520_v30, %v524_v21  ;;  %v452_v39 = vrot.slane %v450_v33, 1  ;;  %v598_v54 = vshrl.u32 %v10164_v6, 16 }
  0x19   : > { %10026 = vmatpush.bf16.msra.mxu3 %v9840_v15  ;;  %869 = vmatpush.bf16.msra.mxu0 %v9840_v15  ;;  %v597_v38 = vsel %vm441_vm0, %v592_v31, %v596_v24  ;;  %v669_v40 = vsel %vm441_vm0, %v664_v34, %v668_v32  ;;  %v602_v55 = vshll.u32 %v9820_v45, 16  ;;  %v670_v56 = vshrl.u32 %v10168_v8, 16  ;;  %v9812_v8 = vld [vmem:[%s10156_s23 + $0x60] sm:$0xff] }
  0x1a   : > { %v448_v41 = vor.u32 %v447_v35, %v443_v27  ;;  %v674_v57 = vshll.u32 %v9829_v46, 16  ;;  %v454_v58 = vshrl.u32 %v10175_v14, 16  ;;  %v458_v59 = vshll.u32 %v10227_v50, 16 }
  0x1b   : > { %8697 = vmatmul.msk.bf16.vlgmr.msra.gmra.mxu1 %vm753_vm1, %v525_v37  ;;  %8706 = vmatmul.msk.bf16.vlgmr.msra.gmra.mxu2 %vm753_vm1, %v597_v38  ;;  %v528_v60 = vor.u32 %v526_v52, %v524_v21  ;;  %v532_v61 = vrot.slane %v530_v53, 1  ;;  %v600_v62 = vor.u32 %v598_v54, %v596_v24  ;;  %v604_v63 = vrot.slane %v602_v55, 1  ;;  %v9813_v37 = vld [vmem:[%s10156_s23 + $0x68] sm:$0xff]  ;;  %v9822_v38 = vld [vmem:[%s10156_s23 + $0xb0] sm:$0xff] }
  0x1c   : > { %1811 = vmatpush.bf16.msrb.mxu2 %v9883_v26  ;;  %8715 = vmatmul.msk.bf16.vlgmr.msra.gmra.mxu3 %vm753_vm1, %v669_v40  ;;  %v453_v43 = vsel %vm441_vm0, %v448_v41, %v452_v39  ;;  %v672_v0 = vor.u32 %v670_v56, %v668_v32  ;;  %v676_v1 = vrot.slane %v674_v57, 1  ;;  %v456_v2 = vor.u32 %v454_v58, %v452_v39  ;;  %v9831_v39 = vld [vmem:[%s10156_s23 + $0xf8] sm:$0xff]  ;;  %v9881_v40 = vld [vmem:[%s13717_s1 + $0x48] sm:$0xff] }
  0x1d   : > { %2752 = vmatpush.bf16.msrb.mxu3 %v9923_v29  ;;  %1151 = vmatpush.bf16.msrb.mxu1 %v9839_v36  ;;  %v460_v3 = vrot.slane %v458_v59, 1  ;;  %v533_v4 = vsel %vm441_vm0, %v528_v60, %v532_v61  ;;  %v605_v5 = vsel %vm441_vm0, %v600_v62, %v604_v63  ;;  %v534_v12 = vshrl.u32 %v9811_v44, 16  ;;  %v9921_v41 = vld [vmem:[%s13717_s1 + $0x68] sm:$0xff] }
  0x1e   : > { %8688 = vmatmul.msk.bf16.vlgmr.msra.gmra.mxu0 %vm753_vm1, %v453_v43  ;;  %v677_v6 = vsel %vm441_vm0, %v672_v0, %v676_v1  ;;  %v538_v15 = vshll.u32 %v9812_v8, 16  ;;  %v606_v16 = vshrl.u32 %v9820_v45, 16  ;;  %v610_v17 = vshll.u32 %v9821_v9, 16  ;;  %v10274_v43 = vld [vmem:[%s10156_s23 + $0x20] sm:$0xff] }
  0x1f   : > { %3483 = vmatpush.bf16.msrb.mxu0 %v9963_v42  ;;  %v461_v7 = vsel %vm441_vm0, %v456_v2, %v460_v3  ;;  %v678_v18 = vshrl.u32 %v9829_v46, 16  ;;  %v682_v19 = vshll.u32 %v9830_v10, 16  ;;  %v462_v21 = vshrl.u32 %v10227_v50, 16  ;;  %v9837_v42 = vld [vmem:[%s13717_s1 + $0x8] sm:$0xff]  ;;  %v9823_v2 = vld [vmem:[%s10156_s23 + $0xb8] sm:$0xff] }
  0x20   : > { %1812 = vmatpush.bf16.msrb.mxu2 %v9882_v47  ;;  %v466_v23 = vshll.u32 %v10249_v11, 16  ;;  %v536_v24 = vor.u32 %v534_v12, %v532_v61  ;;  %v540_v26 = vrot.slane %v538_v15, 1  ;;  %v608_v27 = vor.u32 %v606_v16, %v604_v63 }
  0x21   : > { %2753 = vmatpush.bf16.msrb.mxu3 %v9922_v48  ;;  %1152 = vmatpush.bf16.msrb.mxu1 %v9838_v49  ;;  %v612_v28 = vrot.slane %v610_v17, 1  ;;  %v680_v29 = vor.u32 %v678_v18, %v676_v1  ;;  %v684_v30 = vrot.slane %v682_v19, 1  ;;  %v464_v31 = vor.u32 %v462_v21, %v460_v3  ;;  %v9814_v1 = vld [vmem:[%s10156_s23 + $0x70] sm:$0xff]  ;;  %v9832_v3 = vld [vmem:[%s10156_s23 + $0x100] sm:$0xff] }
  0x22   : > { %v468_v32 = vrot.slane %v466_v23, 1  ;;  %v541_v33 = vsel %vm441_vm0, %v536_v24, %v540_v26  ;;  %v542_v44 = vshrl.u32 %v9812_v8, 16  ;;  %v546_v45 = vshll.u32 %v9813_v37, 16 }
  0x23   : > { %3484 = vmatpush.bf16.msrb.mxu0 %v9962_v51  ;;  %v613_v34 = vsel %vm441_vm0, %v608_v27, %v612_v28  ;;  %v685_v35 = vsel %vm441_vm0, %v680_v29, %v684_v30  ;;  %v614_v46 = vshrl.u32 %v9821_v9, 16  ;;  %v618_v47 = vshll.u32 %v9822_v38, 16 }
  0x24   : > { %v469_v36 = vsel %vm441_vm0, %v464_v31, %v468_v32  ;;  %1813 = vmatpush.bf16.msrb.mxu2 %v9881_v40  ;;  %v686_v48 = vshrl.u32 %v9830_v10, 16  ;;  %v690_v49 = vshll.u32 %v9831_v39, 16  ;;  %v470_v51 = vshrl.u32 %v10249_v11, 16 }
  0x25   : > { %2754 = vmatpush.bf16.msrb.mxu3 %v9921_v41  ;;  %1153 = vmatpush.bf16.msrb.mxu1 %v9837_v42  ;;  %v474_v52 = vshll.u32 %v10274_v43, 16  ;;  %v544_v53 = vor.u32 %v542_v44, %v540_v26  ;;  %v548_v54 = vrot.slane %v546_v45, 1  ;;  %v616_v55 = vor.u32 %v614_v46, %v612_v28 }
  0x26   : > { %v620_v56 = vrot.slane %v618_v47, 1  ;;  %v688_v57 = vor.u32 %v686_v48, %v684_v30  ;;  %v692_v58 = vrot.slane %v690_v49, 1  ;;  %v472_v59 = vor.u32 %v470_v51, %v468_v32  ;;  %v9815_v32 = vld [vmem:[%s10156_s23 + $0x78] sm:$0xff] }
  0x27   : > { %v476_v60 = vrot.slane %v474_v52, 1  ;;  %v549_v61 = vsel %vm441_vm0, %v544_v53, %v548_v54  ;;  %v622_v8 = vshrl.u32 %v9822_v38, 16  ;;  %v626_v9 = vshll.u32 %v9823_v2, 16 }
  0x28   : > { %v621_v62 = vsel %vm441_vm0, %v616_v55, %v620_v56  ;;  %v693_v63 = vsel %vm441_vm0, %v688_v57, %v692_v58  ;;  %v694_v10 = vshrl.u32 %v9831_v39, 16  ;;  %v698_v12 = vshll.u32 %v9832_v3, 16 }
  0x29   : > { %v477_v0 = vsel %vm441_vm0, %v472_v59, %v476_v60  ;;  %v478_v15 = vshrl.u32 %v10274_v43, 16  ;;  %v624_v19 = vor.u32 %v622_v8, %v620_v56  ;;  %v628_v21 = vrot.slane %v626_v9, 1 }
  0x2a   : > { %v696_v23 = vor.u32 %v694_v10, %v692_v58  ;;  %v700_v24 = vrot.slane %v698_v12, 1  ;;  %v558_v38 = vshrl.u32 %v9814_v1, 16  ;;  %v562_v39 = vshll.u32 %v9815_v32, 16 }
  0x2b   : > { %8698 = vmatmul.msk.bf16.gmra.mxu1 %vm753_vm1, %v533_v4  ;;  %8707 = vmatmul.msk.bf16.gmra.mxu2 %vm753_vm1, %v605_v5  ;;  %v9961_v4 = vld [vmem:[%s13717_s1 + $0x88] sm:$0xff]  ;;  %v480_v26 = vor.u32 %v478_v15, %v476_v60  ;;  %v629_v29 = vsel %vm441_vm0, %v624_v19, %v628_v21  ;;  %v630_v40 = vshrl.u32 %v9823_v2, 16  ;;  %v702_v42 = vshrl.u32 %v9832_v3, 16  ;;  %v9816_v60 = vld [vmem:[%s10156_s23 + $0x80] sm:$0xff] }
  0x2c   : > { %8716 = vmatmul.msk.bf16.gmra.mxu3 %vm753_vm1, %v677_v6  ;;  %v10293_v5 = vld [vmem:[%s10156_s23 + $0x28] sm:$0xff]  ;;  %3485 = vmatpush.bf16.msrb.mxu0 %v9961_v4  ;;  %v550_v6 = vshrl.u32 %v9813_v37, 16  ;;  %v701_v30 = vsel %vm441_vm0, %v696_v23, %v700_v24  ;;  %v10315_v37 = vld [vmem:[%s10156_s23 + $0x30] sm:$0xff]  ;;  %v564_v48 = vrot.slane %v562_v39, 1  ;;  %v566_v2 = vshrl.u32 %v9815_v32, 16  ;;  %v10353_v32 = vld [vmem:[%s10156_s23 + $0x40] sm:$0xff] }
  0x2d   : > { %v482_v16 = vshll.u32 %v10293_v5, 16  ;;  %v486_v45 = vshrl.u32 %v10293_v5, 16  ;;  %v490_v46 = vshll.u32 %v10315_v37, 16  ;;  %v632_v49 = vor.u32 %v630_v40, %v628_v21 }
  0x2e   : > { %8689 = vmatmul.msk.bf16.gmra.mxu0 %vm753_vm1, %v461_v7  ;;  %v554_v7 = vshll.u32 %v9814_v1, 16  ;;  %v552_v17 = vor.u32 %v550_v6, %v548_v54  ;;  %v704_v52 = vor.u32 %v702_v42, %v700_v24  ;;  %v10337_v1 = vld [vmem:[%s10156_s23 + $0x38] sm:$0xff]  ;;  %v570_v3 = vshll.u32 %v9816_v60, 16 }
  0x2f   : > { %v484_v27 = vrot.slane %v482_v16, 1  ;;  %v492_v55 = vrot.slane %v490_v46, 1  ;;  %v494_v9 = vshrl.u32 %v10315_v37, 16  ;;  %v498_v10 = vshll.u32 %v10337_v1, 16 }
  0x30   : > { %v556_v18 = vrot.slane %v554_v7, 1  ;;  %v568_v12 = vor.u32 %v566_v2, %v564_v48  ;;  %v572_v15 = vrot.slane %v570_v3, 1  ;;  %v502_v40 = vshrl.u32 %v10337_v1, 16 }
  0x31   : > { %v485_v31 = vsel %vm441_vm0, %v480_v26, %v484_v27  ;;  %v488_v54 = vor.u32 %v486_v45, %v484_v27  ;;  %v496_v21 = vor.u32 %v494_v9, %v492_v55  ;;  %v500_v23 = vrot.slane %v498_v10, 1  ;;  %v9884_v9 = vld [vmem:[%s10156_s23 + $0xc] sm:$0xff] }
  0x32   : > { %v557_v28 = vsel %vm441_vm0, %v552_v17, %v556_v18  ;;  %v560_v47 = vor.u32 %v558_v38, %v556_v18  ;;  %v573_v24 = vsel %vm441_vm0, %v568_v12, %v572_v15 }
  0x33   : > { %v493_v59 = vsel %vm441_vm0, %v488_v54, %v492_v55 }
  0x34   : > { %v565_v56 = vsel %vm441_vm0, %v560_v47, %v564_v48 }
  0x3b   : > { %8699 = vmatmul.msk.bf16.gmra.mxu1 %vm753_vm1, %v541_v33  ;;  %8708 = vmatmul.msk.bf16.gmra.mxu2 %vm753_vm1, %v613_v34  ;;  %v9824_v33 = vld [vmem:[%s10156_s23 + $0xc0] sm:$0xff]  ;;  %v9833_v34 = vld [vmem:[%s10156_s23 + $0x108] sm:$0xff] }
  0x3c   : > { %8717 = vmatmul.msk.bf16.gmra.mxu3 %vm753_vm1, %v685_v35  ;;  %v9880_v35 = vld [vmem:[%s13717_s1 + $0x40] sm:$0xff]  ;;  %v634_v41 = vshll.u32 %v9824_v33, 16  ;;  %v706_v44 = vshll.u32 %v9833_v34, 16  ;;  %v638_v4 = vshrl.u32 %v9824_v33, 16  ;;  %v710_v7 = vshrl.u32 %v9833_v34, 16 }
  0x3d   : > { %1814 = vmatpush.bf16.msrb.mxu2 %v9880_v35  ;;  %v574_v33 = vshrl.u32 %v9816_v60, 16 }
  0x3e   : > { %8690 = vmatmul.msk.bf16.gmra.mxu0 %vm753_vm1, %v469_v36  ;;  %v9920_v36 = vld [vmem:[%s13717_s1 + $0x60] sm:$0xff]  ;;  %v636_v51 = vrot.slane %v634_v41, 1  ;;  %v708_v53 = vrot.slane %v706_v44, 1  ;;  %v506_v41 = vshll.u32 %v10353_v32, 16 }
  0x3f   : > { %2755 = vmatpush.bf16.msrb.mxu3 %v9920_v36  ;;  %v576_v42 = vor.u32 %v574_v33, %v572_v15  ;;  %v9885_v15 = vld [vmem:[%s10156_s23 + $0x14] sm:$0xff] }
  0x40   : > { %v637_v57 = vsel %vm441_vm0, %v632_v49, %v636_v51  ;;  %v709_v58 = vsel %vm441_vm0, %v704_v52, %v708_v53  ;;  %v640_v16 = vor.u32 %v638_v4, %v636_v51  ;;  %v712_v18 = vor.u32 %v710_v7, %v708_v53 }
  0x41   : > { %v504_v49 = vor.u32 %v502_v40, %v500_v23  ;;  %v508_v51 = vrot.slane %v506_v41, 1 }
  0x43   : > { %v509_v55 = vsel %vm441_vm0, %v504_v49, %v508_v51 }
  0x4b   : > { %8700 = vmatmul.msk.bf16.gmra.mxu1 %vm753_vm1, %v549_v61  ;;  %8709 = vmatmul.msk.bf16.gmra.mxu2 %vm753_vm1, %v621_v62  ;;  %v9825_v61 = vld [vmem:[%s10156_s23 + $0xc8] sm:$0xff]  ;;  %v9836_v62 = vld [vmem:[%s13717_s1] sm:$0xff] }
  0x4c   : > { %8718 = vmatmul.msk.bf16.gmra.mxu3 %vm753_vm1, %v693_v63  ;;  %v9834_v63 = vld [vmem:[%s10156_s23 + $0x110] sm:$0xff]  ;;  %1154 = vmatpush.bf16.msrb.mxu1 %v9836_v62  ;;  %v642_v6 = vshll.u32 %v9825_v61, 16  ;;  %v646_v35 = vshrl.u32 %v9825_v61, 16  ;;  %v510_v61 = vshrl.u32 %v10353_v32, 16  ;;  %v10014_v62 = vld [vmem:[%s13717_s1 + $0x118] sm:$0xff] }
  0x4d   : > { %v714_v8 = vshll.u32 %v9834_v63, 16  ;;  %v718_v38 = vshrl.u32 %v9834_v63, 16 }
  0x4e   : > { %8691 = vmatmul.msk.bf16.gmra.mxu0 %vm753_vm1, %v477_v0  ;;  %v9960_v0 = vld [vmem:[%s13717_s1 + $0x80] sm:$0xff]  ;;  %v644_v17 = vrot.slane %v642_v6, 1  ;;  %v512_v3 = vor.u32 %v510_v61, %v508_v51 }
  0x4f   : > { %3486 = vmatpush.bf16.msrb.mxu0 %v9960_v0  ;;  %v716_v19 = vrot.slane %v714_v8, 1 }
  0x50   : > { %v645_v26 = vsel %vm441_vm0, %v640_v16, %v644_v17  ;;  %v648_v45 = vor.u32 %v646_v35, %v644_v17  ;;  %v517_v12 = vsel %vm441_vm0, %v512_v3, %v10181_v20  ;;  %v2332_v16 = vshll.u32 %v9884_v9, 16 }
  0x51   : > { %v717_v27 = vsel %vm441_vm0, %v712_v18, %v716_v19  ;;  %v720_v47 = vor.u32 %v718_v38, %v716_v19  ;;  %v9194_v19 = vld [vmem:[%s10156_s23 + $0xc] sm:$0xe] }
  0x53   : > { %6167 = vmatpush.bf16.msra.mxu0 %v10014_v62 }
  0x5b   : > { %8701 = vmatmul.msk.bf16.gmra.mxu1 %vm753_vm1, %v557_v28  ;;  %8710 = vmatmul.msk.bf16.gmra.mxu2 %vm753_vm1, %v629_v29  ;;  %v501_v28 = vsel %vm441_vm0, %v496_v21, %v500_v23  ;;  %v9817_v29 = vld [vmem:[%s10156_s23 + $0x88] sm:$0xff]  ;;  %v9924_v21 = vld [vmem:[%s10156_s23 + $0xc] sm:$0xf0] }
  0x5c   : > { %8719 = vmatmul.msk.bf16.gmra.mxu3 %vm753_vm1, %v701_v30  ;;  %v9826_v30 = vld [vmem:[%s10156_s23 + $0xd0] sm:$0xff]  ;;  %v578_v34 = vshll.u32 %v9817_v29, 16  ;;  %v9845_v23 = vld [vmem:[%s10156_s23 + $0x8] sm:$0xff] }
  0x5d   : > { %v650_v36 = vshll.u32 %v9826_v30, 16  ;;  %v654_v60 = vshrl.u32 %v9826_v30, 16  ;;  %v9925_v30 = vld [vmem:[%s10156_s23 + $0x14] sm:$0xff] }
  0x5e   : > { %8692 = vmatmul.msk.bf16.gmra.mxu0 %vm753_vm1, %v485_v31  ;;  %v9835_v31 = vld [vmem:[%s10156_s23 + $0x118] sm:$0xff]  ;;  %v580_v44 = vrot.slane %v578_v34, 1  ;;  %v1603_v34 = vrot.slane %v9845_v23, 1  ;;  %v3275_v40 = vrot.slane %v9925_v30, 1 }
  0x5f   : > { %v722_v39 = vshll.u32 %v9835_v31, 16  ;;  %v652_v46 = vrot.slane %v650_v36, 1  ;;  %v726_v2 = vshrl.u32 %v9835_v31, 16  ;;  %v10408_v31 = vor.u32 %v9924_v21, %v9194_v19  ;;  %v9927_v19 = vld [vmem:[%s10156_s23 + $0x24] sm:$0xff] }
  0x60   : > { %v581_v52 = vsel %vm441_vm0, %v576_v42, %v580_v44 }
  0x61   : > { %v724_v48 = vrot.slane %v722_v39, 1  ;;  %v653_v53 = vsel %vm441_vm0, %v648_v45, %v652_v46  ;;  %v656_v0 = vor.u32 %v654_v60, %v652_v46  ;;  %13737 = vst [vmem:[#allocation5_spill] sm:$0xff] %v10408_v31  ;;  %v3274_v39 = vrot.slane %v10408_v31, 1 }
  0x63   : > { %v725_v54 = vsel %vm441_vm0, %v720_v47, %v724_v48  ;;  %v661_v7 = vsel %vm441_vm0, %v656_v0, %v10186_v25  ;;  %v728_v8 = vor.u32 %v726_v2, %v724_v48  ;;  %v9844_v25 = vld [vmem:[%s10156_s23] sm:$0xf0]  ;;  %v3276_v47 = vsel %vm1601_vm2, %v3274_v39, %v3275_v40  ;;  %v9886_v48 = vld [vmem:[%s10156_s23 + $0x1c] sm:$0xff] }
  0x6b   : > { %8702 = vmatmul.msk.bf16.gmra.mxu1 %vm753_vm1, %v565_v56  ;;  %8711 = vmatmul.msk.bf16.gmra.mxu2 %vm753_vm1, %v637_v57  ;;  %v10006_v56 = vld [vmem:[%s13717_s1 + $0xd8] sm:$0xff] }
  0x6c   : > { %8720 = vmatmul.msk.bf16.gmra.mxu3 %vm753_vm1, %v709_v58  ;;  %v10010_v57 = vld [vmem:[%s13717_s1 + $0xf8] sm:$0xff]  ;;  %4949 = vmatpush.bf16.msra.mxu2 %v10006_v56 }
  0x6d   : > { %5683 = vmatpush.bf16.msra.mxu3 %v10010_v57  ;;  %v9967_v58 = vld [vmem:[%s13717_s1 + $0xb8] sm:$0xff] }
  0x6e   : > { %8693 = vmatmul.msk.bf16.gmra.mxu0 %vm753_vm1, %v493_v59  ;;  %v582_v59 = vshrl.u32 %v9817_v29, 16  ;;  %4218 = vmatpush.bf16.msra.mxu1 %v9967_v58  ;;  %v9926_v57 = vld [vmem:[%s10156_s23 + $0x1c] sm:$0xff] }
  0x6f   : > { %v3277_v61 = vrot.slane %v9926_v57, 1 }
  0x70   : > { %v584_v63 = vor.u32 %v582_v59, %v580_v44 }
  0x72   : > { %v589_v6 = vsel %vm441_vm0, %v584_v63, %v10183_v22  ;;  %v8786_v22 = vld [vmem:[%s10156_s23] sm:$0xe] }
  0x7b   : > { %8703 = vmatmul.msk.bf16.gmra.mxu1 %vm753_vm1, %v573_v24  ;;  %8712 = vmatmul.msk.bf16.gmra.mxu2 %vm753_vm1, %v645_v26  ;;  %v8787_v24 = vor.u32 %v9844_v25, %v8786_v22  ;;  %v2330_v26 = vshrl.u32 %v9884_v9, 16  ;;  %v9847_v22 = vld [vmem:[%s10156_s23 + $0x18] sm:$0xff]  ;;  %v2349_v25 = vshrl.u32 %v9886_v48, 16 }
  0x7c   : > { %8721 = vmatmul.msk.bf16.gmra.mxu3 %vm753_vm1, %v717_v27  ;;  %v2334_v27 = vrot.slane %v2332_v16, 1 }
  0x7d   : > { %v1602_v33 = vrot.slane %v8787_v24, 1 }
  0x7e   : > { %8694 = vmatmul.msk.bf16.gmra.mxu0 %vm753_vm1, %v501_v28  ;;  %v2337_v28 = vshll.u32 %v9885_v15, 16  ;;  %v2335_v35 = vor.u32 %v2334_v27, %v2330_v26  ;;  %v3279_v26 = vrot.slane %v9927_v19, 1 }
  0x7f   : > { %v1604_v44 = vsel %vm1601_vm2, %v1602_v33, %v1603_v34 }
  0x80   : > { %v2339_v36 = vrot.slane %v2337_v28, 1 }
  0x82   : > { %v2340_v45 = vsel %vm441_vm0, %v2335_v35, %v2339_v36  ;;  %v3280_v35 = vsel %vm1601_vm2, %v3277_v61, %v3279_v26 }
  0x8b   : > { %8704 = vmatmul.msk.bf16.gmra.mxu1 %vm753_vm1, %v581_v52  ;;  %8713 = vmatmul.msk.bf16.gmra.mxu2 %vm753_vm1, %v653_v53  ;;  %v9846_v53 = vld [vmem:[%s10156_s23 + $0x10] sm:$0xff] }
  0x8c   : > { %8722 = vmatmul.msk.bf16.gmra.mxu3 %vm753_vm1, %v725_v54  ;;  %v2341_v54 = vshrl.u32 %v9885_v15, 16 }
  0x8e   : > { %8695 = vmatmul.msk.bf16.gmra.mxu0 %vm753_vm1, %v509_v55  ;;  %v2345_v55 = vshll.u32 %v9886_v48, 16  ;;  %v2343_v58 = vor.u32 %v2341_v54, %v2339_v36  ;;  %v9888_v36 = vld [vmem:[%s10156_s23 + $0x2c] sm:$0xff] }
  0x8f   : > { %v2361_v48 = vshll.u32 %v9888_v36, 16  ;;  %v9928_v54 = vld [vmem:[%s10156_s23 + $0x2c] sm:$0xff] }
  0x90   : > { %v2347_v59 = vrot.slane %v2345_v55, 1 }
  0x91   : > { %v2363_v57 = vrot.slane %v2361_v48, 1 }
  0x92   : > { %v2348_v2 = vsel %vm441_vm0, %v2343_v58, %v2347_v59  ;;  %v2351_v21 = vor.u32 %v2349_v25, %v2347_v59  ;;  %v3281_v58 = vrot.slane %v9928_v54, 1 }
  0x98   : > { %v10378_v4 = vpop.f32.mrf.mxu1 }
  0x9b   : > { %v10385_v10 = vpop.f32.mrf.mxu0  ;;  %8705 = vmatmul.msk.bf16.gmra.mxu1 %vm753_vm1, %v589_v6  ;;  %8714 = vmatmul.msk.bf16.gmra.mxu2 %vm753_vm1, %v661_v7  ;;  %v3278_v6 = vsel %vm1601_vm2, %v3275_v40, %v3277_v61  ;;  %v9887_v7 = vld [vmem:[%s10156_s23 + $0x24] sm:$0xff] }
  0x9c   : > { %8723 = vmatmul.msk.bf16.gmra.mxu3 %vm753_vm1, %v728_v8  ;;  %v2353_v15 = vshll.u32 %v9887_v7, 16 }
  0x9e   : > { %8696 = vmatmul.msk.bf16.gmra.mxu0 %vm753_vm1, %v517_v12  ;;  %v10396_v17 = vpop.f32.mrf.mxu2  ;;  %v2355_v23 = vrot.slane %v2353_v15, 1 }
  0x9f   : > { %v10398_v18 = vpop.f32.mrf.mxu3 }
  0xa0   : > { %13736 = vst [vmem:[#allocation4_spill] sm:$0xff] %v10398_v18  ;;  %v10402_v20 = vpop.f32.mrf.mxu1  ;;  %v2356_v33 = vsel %vm441_vm0, %v2351_v21, %v2355_v23  ;;  %v2365_v21 = vshrl.u32 %v9888_v36, 16 }
  0xa3   : > { %v10405_v29 = vpop.f32.mrf.mxu0 }
  0xa6   : > { %v10410_v38 = vpop.f32.mrf.mxu2 }
  0xa7   : > { %v10413_v41 = vpop.f32.mrf.mxu3 }
  0xa8   : > { %13738 = vst [vmem:[#allocation6_spill] sm:$0xff] %v10413_v41  ;;  %v10415_v42 = vpop.f32.mrf.mxu1 }
  0xab   : > { %v10419_v46 = vpop.f32.mrf.mxu0  ;;  %8740 = vmatmul.msk.bf16.vlgmr.msrb.gmra.mxu1 %vm753_vm1, %v10172_v13  ;;  %8944 = vmatmul.msk.bf16.vlgmr.msrb.gmra.mxu2 %vm753_vm1, %v1604_v44  ;;  %v1605_v13 = vrot.slane %v9846_v53, 1 }
  0xac   : > { %9148 = vmatmul.msk.bf16.vlgmr.msrb.gmra.mxu3 %vm753_vm1, %v2340_v45  ;;  %v9848_v45 = vld [vmem:[%s10156_s23 + $0x20] sm:$0xff] }
  0xad   : > { %v1606_v0 = vsel %vm1601_vm2, %v1603_v34, %v1605_v13 }
  0xae   : > { %9352 = vmatmul.msk.bf16.vlgmr.msrb.gmra.mxu0 %vm753_vm1, %v3276_v47  ;;  %v10428_v49 = vpop.f32.mrf.mxu2  ;;  %v2357_v47 = vshrl.u32 %v9887_v7, 16  ;;  %v3282_v7 = vsel %vm1601_vm2, %v3279_v26, %v3281_v58 }
  0xaf   : > { %v10430_v51 = vpop.f32.mrf.mxu3 }
  0xb0   : > { %13739 = vst [vmem:[#allocation7_spill] sm:$0xff] %v10430_v51  ;;  %v10432_v52 = vpop.f32.mrf.mxu1  ;;  %v2359_v55 = vor.u32 %v2357_v47, %v2355_v23 }
  0xb3   : > { %v10435_v56 = vpop.f32.mrf.mxu0 }
  0xb6   : > { %v10438_v60 = vpop.f32.mrf.mxu2 }
  0xb7   : > { %13740 = vst [vmem:[#allocation8_spill] sm:$0xff] %v10438_v60  ;;  %v10440_v62 = vpop.f32.mrf.mxu3 }
  0xb8   : > { %13741 = vst [vmem:[#allocation9_spill] sm:$0xff] %v10440_v62  ;;  %v10442_v63 = vpop.f32.mrf.mxu1 }
  0xbb   : > { %v10446_v3 = vpop.f32.mrf.mxu0  ;;  %8741 = vmatmul.msk.bf16.gmra.mxu1 %vm753_vm1, %v10175_v14  ;;  %8945 = vmatmul.msk.bf16.gmra.mxu2 %vm753_vm1, %v1606_v0  ;;  %v1607_v14 = vrot.slane %v9847_v22, 1  ;;  %v9889_v22 = vld [vmem:[%s10156_s23 + $0x34] sm:$0xff] }
  0xbc   : > { %9149 = vmatmul.msk.bf16.gmra.mxu3 %vm753_vm1, %v2348_v2  ;;  %v2364_v2 = vsel %vm441_vm0, %v2359_v55, %v2363_v57  ;;  %v2369_v23 = vshll.u32 %v9889_v22, 16 }
  0xbd   : > { %v1608_v30 = vsel %vm1601_vm2, %v1605_v13, %v1607_v14 }
  0xbe   : > { %9353 = vmatmul.msk.bf16.gmra.mxu0 %vm753_vm1, %v3278_v6  ;;  %v10455_v8 = vpop.f32.mrf.mxu2 }
  0xbf   : > { %13742 = vst [vmem:[#allocation10_spill] sm:$0xff] %v10455_v8  ;;  %v10457_v9 = vpop.f32.mrf.mxu3 }
  0xc0   : > { %13743 = vst [vmem:[#allocation11_spill] sm:$0xff] %v10457_v9  ;;  %v10459_v12 = vpop.f32.mrf.mxu1 }
  0xc3   : > { %v10462_v16 = vpop.f32.mrf.mxu0 }
  0xc6   : > { %v10465_v24 = vpop.f32.mrf.mxu2 }
  0xc7   : > { %13744 = vst [vmem:[#allocation12_spill] sm:$0xff] %v10465_v24  ;;  %v10467_v27 = vpop.f32.mrf.mxu3 }
  0xc8   : > { %13745 = vst [vmem:[#allocation13_spill] sm:$0xff] %v10467_v27  ;;  %v10469_v28 = vpop.f32.mrf.mxu1 }
  0xcb   : > { %v10473_v34 = vpop.f32.mrf.mxu0  ;;  %8742 = vmatmul.msk.bf16.gmra.mxu1 %vm753_vm1, %v10227_v50  ;;  %8946 = vmatmul.msk.bf16.gmra.mxu2 %vm753_vm1, %v1608_v30  ;;  %v1609_v50 = vrot.slane %v9848_v45, 1  ;;  %v9929_v30 = vld [vmem:[%s10156_s23 + $0x34] sm:$0xff] }
  0xcc   : > { %9150 = vmatmul.msk.bf16.gmra.mxu3 %vm753_vm1, %v2356_v33  ;;  %v2367_v33 = vor.u32 %v2365_v21, %v2363_v57  ;;  %v3283_v47 = vrot.slane %v9929_v30, 1  ;;  %v9890_v57 = vld [vmem:[%s10156_s23 + $0x3c] sm:$0xff]  ;;  %v9850_v21 = vld [vmem:[%s10156_s23 + $0x30] sm:$0xff] }
  0xcd   : > { %v1610_v0 = vsel %vm1601_vm2, %v1607_v14, %v1609_v50  ;;  %v9849_v14 = vld [vmem:[%s10156_s23 + $0x28] sm:$0xff]  ;;  %v2377_v30 = vshll.u32 %v9890_v57, 16 }
  0xce   : > { %9354 = vmatmul.msk.bf16.gmra.mxu0 %vm753_vm1, %v3280_v35  ;;  %v10482_v39 = vpop.f32.mrf.mxu2  ;;  %v2371_v35 = vrot.slane %v2369_v23, 1  ;;  %v2373_v23 = vshrl.u32 %v9889_v22, 16 }
  0xcf   : > { %13746 = vst [vmem:[#allocation14_spill] sm:$0xff] %v10482_v39  ;;  %v10484_v40 = vpop.f32.mrf.mxu3 }
  0xd0   : > { %13747 = vst [vmem:[#allocation15_spill] sm:$0xff] %v10484_v40  ;;  %v10486_v44 = vpop.f32.mrf.mxu1  ;;  %v2372_v36 = vsel %vm441_vm0, %v2367_v33, %v2371_v35  ;;  %v9930_v33 = vld [vmem:[%s10156_s23 + $0x3c] sm:$0xff] }
  0xd3   : > { %v10489_v53 = vpop.f32.mrf.mxu0 }
  0xd6   : > { %v10492_v13 = vpop.f32.mrf.mxu2 }
  0xd7   : > { %13748 = vst [vmem:[#allocation16_spill] sm:$0xff] %v10492_v13  ;;  %v10494_v59 = vpop.f32.mrf.mxu3 }
  0xd8   : > { %13749 = vst [vmem:[#allocation17_spill] sm:$0xff] %v10494_v59  ;;  %v10496_v61 = vpop.f32.mrf.mxu1 }
  0xdb   : > { %v10500_v6 = vpop.f32.mrf.mxu0  ;;  %8743 = vmatmul.msk.bf16.gmra.mxu1 %vm753_vm1, %v10249_v11  ;;  %8947 = vmatmul.msk.bf16.gmra.mxu2 %vm753_vm1, %v1610_v0  ;;  %v1611_v11 = vrot.slane %v9849_v14, 1 }
  0xdc   : > { %9151 = vmatmul.msk.bf16.gmra.mxu3 %vm753_vm1, %v2364_v2  ;;  %v3284_v2 = vsel %vm1601_vm2, %v3281_v58, %v3283_v47 }
  0xdd   : > { %v1612_v55 = vsel %vm1601_vm2, %v1609_v50, %v1611_v11 }
  0xde   : > { %9355 = vmatmul.msk.bf16.gmra.mxu0 %vm753_vm1, %v3282_v7  ;;  %v10509_v25 = vpop.f32.mrf.mxu2 }
  0xdf   : > { %13750 = vst [vmem:[#allocation18_spill] sm:$0xff] %v10509_v25  ;;  %v10511_v15 = vpop.f32.mrf.mxu3 }
  0xe0   : > { %13751 = vst [vmem:[#allocation19_spill] sm:$0xff] %v10511_v15  ;;  %v10513_v19 = vpop.f32.mrf.mxu1 }
  0xe3   : > { %v10516_v26 = vpop.f32.mrf.mxu0 }
  0xe6   : > { %v10519_v45 = vpop.f32.mrf.mxu2 }
  0xe7   : > { %13752 = vst [vmem:[#allocation20_spill] sm:$0xff] %v10519_v45  ;;  %v10521_v48 = vpop.f32.mrf.mxu3 }
  0xe8   : > { %13753 = vst [vmem:[#allocation21_spill] sm:$0xff] %v10521_v48  ;;  %v10523_v54 = vpop.f32.mrf.mxu1  ;;  %v2379_v48 = vrot.slane %v2377_v30, 1  ;;  %v9851_v30 = vld [vmem:[%s10156_s23 + $0x38] sm:$0xff] }
  0xeb   : > { %v10527_v0 = vpop.f32.mrf.mxu0  ;;  %8744 = vmatmul.msk.bf16.gmra.mxu1 %vm753_vm1, %v10274_v43  ;;  %8948 = vmatmul.msk.bf16.gmra.mxu2 %vm753_vm1, %v1612_v55  ;;  %v1613_v43 = vrot.slane %v9850_v21, 1  ;;  %v2375_v55 = vor.u32 %v2373_v23, %v2371_v35  ;;  %v9891_v35 = vld [vmem:[%s10156_s23 + $0x44] sm:$0xff] }
  0xec   : > { %9152 = vmatmul.msk.bf16.gmra.mxu3 %vm753_vm1, %v2372_v36 }
  0xed   : > { %v2380_v22 = vsel %vm441_vm0, %v2375_v55, %v2379_v48  ;;  %v2385_v55 = vshll.u32 %v9891_v35, 16 }
  0xee   : > { %9356 = vmatmul.msk.bf16.gmra.mxu0 %vm753_vm1, %v3284_v2  ;;  %v10536_v7 = vpop.f32.mrf.mxu2  ;;  %v3285_v2 = vrot.slane %v9930_v33, 1  ;;  %v2381_v33 = vshrl.u32 %v9890_v57, 16 }
  0xef   : > { %13754 = vst [vmem:[#allocation22_spill] sm:$0xff] %v10536_v7  ;;  %v10538_v50 = vpop.f32.mrf.mxu3  ;;  %v2387_v9 = vrot.slane %v2385_v55, 1  ;;  %v2389_v55 = vshrl.u32 %v9891_v35, 16 }
  0xf0   : > { %13755 = vst [vmem:[#allocation23_spill] sm:$0xff] %v10538_v50  ;;  %v10540_v14 = vpop.f32.mrf.mxu1  ;;  %v1614_v50 = vsel %vm1601_vm2, %v1611_v11, %v1613_v43  ;;  %v3286_v27 = vsel %vm1601_vm2, %v3283_v47, %v3285_v2 }
  0xf3   : > { %v10543_v58 = vpop.f32.mrf.mxu0 }
  0xf6   : > { %v10546_v36 = vpop.f32.mrf.mxu2 }
  0xf7   : > { %13756 = vst [vmem:[#allocation24_spill] sm:$0xff] %v10546_v36  ;;  %v10548_v15 = vpop.f32.mrf.mxu3 }
  0xf8   : > { %13757 = vst [vmem:[#allocation25_spill] sm:$0xff] %v10548_v15  ;;  %v10550_v59 = vpop.f32.mrf.mxu1  ;;  %v9931_v15 = vld [vmem:[%s10156_s23 + $0x44] sm:$0xff] }
  0xfb   : > { %v10554_v40 = vpop.f32.mrf.mxu0  ;;  %8745 = vmatmul.msk.bf16.gmra.mxu1 %vm753_vm1, %v10293_v5  ;;  %8949 = vmatmul.msk.bf16.gmra.mxu2 %vm753_vm1, %v1614_v50  ;;  %v1615_v5 = vrot.slane %v9851_v30, 1  ;;  %v2383_v50 = vor.u32 %v2381_v33, %v2379_v48  ;;  %v9852_v33 = vld [vmem:[%s10156_s23 + $0x40] sm:$0xff] }
  0xfc   : > { %9153 = vmatmul.msk.bf16.gmra.mxu3 %vm753_vm1, %v2380_v22 }
  0xfd   : > { %v2388_v57 = vsel %vm441_vm0, %v2383_v50, %v2387_v9 }
  0xfe   : > { %9357 = vmatmul.msk.bf16.gmra.mxu0 %vm753_vm1, %v3286_v27  ;;  %v10563_v21 = vpop.f32.mrf.mxu2  ;;  %v3287_v27 = vrot.slane %v9931_v15, 1  ;;  %v9892_v15 = vld [vmem:[%s10156_s23 + $0x4c] sm:$0xff] }
  0xff   : > { %13758 = vst [vmem:[#allocation26_spill] sm:$0xff] %v10563_v21  ;;  %v10565_v11 = vpop.f32.mrf.mxu3  ;;  %v2393_v50 = vshll.u32 %v9892_v15, 16 }
 0x100   : > { %13759 = vst [vmem:[#allocation27_spill] sm:$0xff] %v10565_v11  ;;  %v10567_v23 = vpop.f32.mrf.mxu1  ;;  %v1616_v11 = vsel %vm1601_vm2, %v1613_v43, %v1615_v5  ;;  %v3288_v18 = vsel %vm1601_vm2, %v3285_v2, %v3287_v27 }
 0x101   : > { %v2395_v31 = vrot.slane %v2393_v50, 1 }
 0x103   : > { %v10570_v47 = vpop.f32.mrf.mxu0 }
 0x106   : > { %v10573_v22 = vpop.f32.mrf.mxu2 }
 0x107   : > { %13760 = vst [vmem:[#allocation28_spill] sm:$0xff] %v10573_v22  ;;  %v10575_v62 = vpop.f32.mrf.mxu3 }
 0x108   : > { %13761 = vst [vmem:[#allocation29_spill] sm:$0xff] %v10575_v62  ;;  %v10577_v51 = vpop.f32.mrf.mxu1  ;;  %v9932_v62 = vld [vmem:[%s10156_s23 + $0x4c] sm:$0xff] }
 0x10b   : > { %v10581_v41 = vpop.f32.mrf.mxu0  ;;  %8746 = vmatmul.msk.bf16.gmra.mxu1 %vm753_vm1, %v10315_v37  ;;  %8950 = vmatmul.msk.bf16.gmra.mxu2 %vm753_vm1, %v1616_v11  ;;  %v1617_v37 = vrot.slane %v9852_v33, 1  ;;  %v2391_v11 = vor.u32 %v2389_v55, %v2387_v9  ;;  %v9893_v9 = vld [vmem:[%s10156_s23 + $0x54] sm:$0xff]  ;;  %v9853_v33 = vld [vmem:[%s10156_s23 + $0x48] sm:$0xff]  ;;  %v2397_v55 = vshrl.u32 %v9892_v15, 16 }
 0x10c   : > { %9154 = vmatmul.msk.bf16.gmra.mxu3 %vm753_vm1, %v2388_v57  ;;  %v2401_v50 = vshll.u32 %v9893_v9, 16 }
 0x10d   : > { %v2396_v35 = vsel %vm441_vm0, %v2391_v11, %v2395_v31 }
 0x10e   : > { %9358 = vmatmul.msk.bf16.gmra.mxu0 %vm753_vm1, %v3288_v18  ;;  %v10590_v48 = vpop.f32.mrf.mxu2  ;;  %v3289_v18 = vrot.slane %v9932_v62, 1  ;;  %v10005_v62 = vld [vmem:[%s13717_s1 + $0xd0] sm:$0xff] }
 0x10f   : > { %13762 = vst [vmem:[#allocation30_spill] sm:$0xff] %v10590_v48  ;;  %v10592_v43 = vpop.f32.mrf.mxu3  ;;  %4950 = vmatpush.bf16.msra.mxu2 %v10005_v62  ;;  %v1619_v62 = vrot.slane %v9853_v33, 1 }
 0x110   : > { %13763 = vst [vmem:[#allocation31_spill] sm:$0xff] %v10592_v43  ;;  %v10594_v30 = vpop.f32.mrf.mxu1  ;;  %v1618_v43 = vsel %vm1601_vm2, %v1615_v5, %v1617_v37  ;;  %v3290_v36 = vsel %vm1601_vm2, %v3287_v27, %v3289_v18  ;;  %v10009_v5 = vld [vmem:[%s13717_s1 + $0xf0] sm:$0xff] }
 0x111   : > { %5684 = vmatpush.bf16.msra.mxu3 %v10009_v5  ;;  %v2399_v5 = vor.u32 %v2397_v55, %v2395_v31  ;;  %v1620_v45 = vsel %vm1601_vm2, %v1617_v37, %v1619_v62 }
 0x113   : > { %v10597_v2 = vpop.f32.mrf.mxu0 }
 0x116   : > { %v10600_v57 = vpop.f32.mrf.mxu2 }
 0x117   : > { %13764 = vst [vmem:[#allocation32_spill] sm:$0xff] %v10600_v57  ;;  %v10602_v22 = vpop.f32.mrf.mxu3 }
 0x118   : > { %13765 = vst [vmem:[#allocation33_spill] sm:$0xff] %v10602_v22  ;;  %v10604_v48 = vpop.f32.mrf.mxu1  ;;  %v10013_v22 = vld [vmem:[%s13717_s1 + $0x110] sm:$0xff] }
 0x119   : > { %6168 = vmatpush.bf16.msra.mxu0 %v10013_v22  ;;  %v9894_v22 = vld [vmem:[%s10156_s23 + $0x5c] sm:$0xff] }
 0x11b   : > { %v10608_v21 = vpop.f32.mrf.mxu0  ;;  %8747 = vmatmul.msk.bf16.gmra.mxu1 %vm753_vm1, %v10337_v1  ;;  %8951 = vmatmul.msk.bf16.gmra.mxu2 %vm753_vm1, %v1618_v43 }
 0x11c   : > { %9155 = vmatmul.msk.bf16.gmra.mxu3 %vm753_vm1, %v2396_v35  ;;  %v9933_v35 = vld [vmem:[%s10156_s23 + $0x54] sm:$0xff] }
 0x11d   : > { %v3291_v15 = vrot.slane %v9933_v35, 1 }
 0x11e   : > { %9359 = vmatmul.msk.bf16.gmra.mxu0 %vm753_vm1, %v3290_v36  ;;  %v10623_v27 = vpop.f32.mrf.mxu2  ;;  %v9966_v36 = vld [vmem:[%s13717_s1 + $0xb0] sm:$0xff] }
 0x11f   : > { %13766 = vst [vmem:[#allocation34_spill] sm:$0xff] %v10623_v27  ;;  %v10625_v1 = vpop.f32.mrf.mxu3  ;;  %4219 = vmatpush.bf16.msra.mxu1 %v9966_v36  ;;  %v3292_v39 = vsel %vm1601_vm2, %v3289_v18, %v3291_v15  ;;  %v9854_v36 = vld [vmem:[%s10156_s23 + $0x50] sm:$0xff]  ;;  %v2405_v18 = vshrl.u32 %v9893_v9, 16 }
 0x120   : > { %13767 = vst [vmem:[#allocation35_spill] sm:$0xff] %v10625_v1  ;;  %v10627_v43 = vpop.f32.mrf.mxu1  ;;  %v2403_v1 = vrot.slane %v2401_v50, 1 }
 0x122   : > { %v2404_v25 = vsel %vm441_vm0, %v2399_v5, %v2403_v1  ;;  %v2409_v5 = vshll.u32 %v9894_v22, 16 }
 0x123   : > { %v10633_v11 = vpop.f32.mrf.mxu0 }
 0x126   : > { %v10639_v27 = vpop.f32.mrf.mxu2 }
 0x127   : > { %13768 = vst [vmem:[#allocation36_spill] sm:$0xff] %v10639_v27  ;;  %v10641_v57 = vpop.f32.mrf.mxu3  ;;  %v9934_v27 = vld [vmem:[%s10156_s23 + $0x5c] sm:$0xff] }
 0x128   : > { %13769 = vst [vmem:[#allocation37_spill] sm:$0xff] %v10641_v57  ;;  %v1156_v7 = vpop.f32.mrf.mxu1  ;;  %v3293_v24 = vrot.slane %v9934_v27, 1 }
 0x129   : > { %v1157_v31 = vadd.f32 %v1156_v7, %v10385_v10  ;;  %v2407_v10 = vor.u32 %v2405_v18, %v2403_v1  ;;  %v2411_v7 = vrot.slane %v2409_v5, 1  ;;  %v9895_v1 = vld [vmem:[%s10156_s23 + $0x64] sm:$0xff] }
 0x12b   : > { %v3488_v13 = vpop.f32.mrf.mxu0  ;;  %8748 = vmatmul.msk.bf16.gmra.mxu1 %vm753_vm1, %v10353_v32  ;;  %8952 = vmatmul.msk.bf16.gmra.mxu2 %vm753_vm1, %v1620_v45  ;;  %v1621_v45 = vrot.slane %v9854_v36, 1  ;;  %v10038_v36 = vld [vmem:[%s10156_s23 + $0x48] sm:$0xff] }
 0x12c   : > { %9156 = vmatmul.msk.bf16.gmra.mxu3 %vm753_vm1, %v2404_v25 }
 0x12e   : > { %9360 = vmatmul.msk.bf16.gmra.mxu0 %vm753_vm1, %v3292_v39  ;;  %v1816_v33 = vpop.f32.mrf.mxu2 }
 0x12f   : > { %v1996_v37 = vadd.f32 %v1816_v33, %v1157_v31  ;;  %v2757_v55 = vpop.f32.mrf.mxu3 }
 0x130   : > { %v1158_v50 = vpop.f32.mrf.mxu1 }
 0x131   : > { %v2937_v35 = vadd.f32 %v2757_v55, %v1996_v37  ;;  %v1159_v25 = vadd.f32 %v1158_v50, %v10405_v29  ;;  %v1622_v37 = vsel %vm1601_vm2, %v1619_v62, %v1621_v45  ;;  %v2412_v55 = vsel %vm441_vm0, %v2407_v10, %v2411_v7 }
 0x132   : > { %v2417_v10 = vshll.u32 %v9895_v1, 16 }
 0x133   : > { %v3490_v57 = vpop.f32.mrf.mxu0  ;;  %v10655_v32 = vadd.f32 %v3488_v13, %v2937_v35  ;;  %v3294_v13 = vsel %vm1601_vm2, %v3291_v15, %v3293_v24  ;;  %v9855_v15 = vld [vmem:[%s10156_s23 + $0x58] sm:$0xff] }
 0x136   : > { %v1818_v39 = vpop.f32.mrf.mxu2 }
 0x137   : > { %v1997_v31 = vadd.f32 %v1818_v39, %v1159_v25  ;;  %v2759_v33 = vpop.f32.mrf.mxu3  ;;  %v2413_v25 = vshrl.u32 %v9894_v22, 16 }
 0x138   : > { %v1161_v8 = vpop.f32.mrf.mxu1 }
 0x139   : > { %v2938_v9 = vadd.f32 %v2759_v33, %v1997_v31  ;;  %v1162_v27 = vadd.f32 %v1161_v8, %v10419_v46  ;;  %v9935_v31 = vld [vmem:[%s10156_s23 + $0x64] sm:$0xff]  ;;  %v1623_v33 = vrot.slane %v9855_v15, 1  ;;  %v2415_v46 = vor.u32 %v2413_v25, %v2411_v7  ;;  %v10039_v15 = vld [vmem:[%s10156_s23 + $0x50] sm:$0xff] }
 0x13a   : > { %v2419_v8 = vrot.slane %v2417_v10, 1 }
 0x13b   : > { %v3493_v60 = vpop.f32.mrf.mxu0  ;;  %8749 = vmatmul.msk.bf16.gmra.mxu1 %vm753_vm1, %v10038_v36  ;;  %8953 = vmatmul.msk.bf16.gmra.mxu2 %vm753_vm1, %v1622_v37  ;;  %v10664_v29 = vadd.f32 %v3490_v57, %v2938_v9 }
 0x13c   : > { %9157 = vmatmul.msk.bf16.gmra.mxu3 %vm753_vm1, %v2412_v55  ;;  %v3295_v55 = vrot.slane %v9935_v31, 1 }
 0x13e   : > { %9361 = vmatmul.msk.bf16.gmra.mxu0 %vm753_vm1, %v3294_v13  ;;  %v1821_v62 = vpop.f32.mrf.mxu2 }
 0x13f   : > { %v1998_v50 = vadd.f32 %v1821_v62, %v1162_v27  ;;  %v2762_v35 = vpop.f32.mrf.mxu3  ;;  %v1624_v62 = vsel %vm1601_vm2, %v1621_v45, %v1623_v33  ;;  %v9896_v45 = vld [vmem:[%s10156_s23 + $0x6c] sm:$0xff] }
 0x140   : > { %v1163_v18 = vpop.f32.mrf.mxu1 }
 0x141   : > { %v2939_v5 = vadd.f32 %v2762_v35, %v1998_v50  ;;  %v1164_v37 = vadd.f32 %v1163_v18, %v10435_v56  ;;  %v2420_v50 = vsel %vm441_vm0, %v2415_v46, %v2419_v8  ;;  %v2425_v46 = vshll.u32 %v9896_v45, 16 }
 0x143   : > { %v3495_v39 = vpop.f32.mrf.mxu0  ;;  %v10672_v57 = vadd.f32 %v3493_v60, %v2939_v5  ;;  %v3296_v60 = vsel %vm1601_vm2, %v3293_v24, %v3295_v55  ;;  %v9856_v24 = vld [vmem:[%s10156_s23 + $0x60] sm:$0xff] }
 0x146   : > { %v1823_v9 = vpop.f32.mrf.mxu2 }
 0x147   : > { %v1999_v13 = vadd.f32 %v1823_v9, %v1164_v37  ;;  %v2764_v36 = vpop.f32.mrf.mxu3  ;;  %v2421_v37 = vshrl.u32 %v9895_v1, 16 }
 0x148   : > { %v1166_v27 = vpop.f32.mrf.mxu1 }
 0x149   : > { %v2940_v22 = vadd.f32 %v2764_v36, %v1999_v13  ;;  %v1167_v7 = vadd.f32 %v1166_v27, %v10446_v3  ;;  %v9936_v13 = vld [vmem:[%s10156_s23 + $0x6c] sm:$0xff]  ;;  %v1625_v36 = vrot.slane %v9856_v24, 1  ;;  %v2423_v3 = vor.u32 %v2421_v37, %v2419_v8  ;;  %v10040_v24 = vld [vmem:[%s10156_s23 + $0x58] sm:$0xff] }
 0x14a   : > { %v2427_v27 = vrot.slane %v2425_v46, 1 }
 0x14b   : > { %v3498_v35 = vpop.f32.mrf.mxu0  ;;  %8750 = vmatmul.msk.bf16.gmra.mxu1 %vm753_vm1, %v10039_v15  ;;  %8954 = vmatmul.msk.bf16.gmra.mxu2 %vm753_vm1, %v1624_v62  ;;  %v10681_v56 = vadd.f32 %v3495_v39, %v2940_v22 }
 0x14c   : > { %9158 = vmatmul.msk.bf16.gmra.mxu3 %vm753_vm1, %v2420_v50  ;;  %v3297_v50 = vrot.slane %v9936_v13, 1 }
 0x14e   : > { %9362 = vmatmul.msk.bf16.gmra.mxu0 %vm753_vm1, %v3296_v60  ;;  %v1826_v18 = vpop.f32.mrf.mxu2 }
 0x14f   : > { %v2000_v5 = vadd.f32 %v1826_v18, %v1167_v7  ;;  %v2767_v25 = vpop.f32.mrf.mxu3  ;;  %v1626_v18 = vsel %vm1601_vm2, %v1623_v33, %v1625_v36  ;;  %v9897_v33 = vld [vmem:[%s10156_s23 + $0x74] sm:$0xff] }
 0x150   : > { %v1168_v10 = vpop.f32.mrf.mxu1 }
 0x151   : > { %v2941_v31 = vadd.f32 %v2767_v25, %v2000_v5  ;;  %v1169_v62 = vadd.f32 %v1168_v10, %v10462_v16  ;;  %v2428_v5 = vsel %vm441_vm0, %v2423_v3, %v2427_v27  ;;  %v2433_v3 = vshll.u32 %v9897_v33, 16 }
 0x153   : > { %v3500_v9 = vpop.f32.mrf.mxu0  ;;  %v10689_v39 = vadd.f32 %v3498_v35, %v2941_v31  ;;  %v3298_v35 = vsel %vm1601_vm2, %v3295_v55, %v3297_v50  ;;  %v9857_v55 = vld [vmem:[%s10156_s23 + $0x68] sm:$0xff] }
 0x156   : > { %v1828_v22 = vpop.f32.mrf.mxu2 }
 0x157   : > { %v2001_v60 = vadd.f32 %v1828_v22, %v1169_v62  ;;  %v2769_v15 = vpop.f32.mrf.mxu3  ;;  %v2429_v62 = vshrl.u32 %v9896_v45, 16 }
 0x158   : > { %v1171_v7 = vpop.f32.mrf.mxu1 }
 0x159   : > { %v2942_v1 = vadd.f32 %v2769_v15, %v2001_v60  ;;  %v1172_v8 = vadd.f32 %v1171_v7, %v10473_v34  ;;  %v9937_v60 = vld [vmem:[%s10156_s23 + $0x74] sm:$0xff]  ;;  %v1627_v15 = vrot.slane %v9857_v55, 1  ;;  %v2431_v34 = vor.u32 %v2429_v62, %v2427_v27  ;;  %v10041_v55 = vld [vmem:[%s10156_s23 + $0x60] sm:$0xff] }
 0x15a   : > { %v2435_v7 = vrot.slane %v2433_v3, 1 }
 0x15b   : > { %v3503_v25 = vpop.f32.mrf.mxu0  ;;  %8751 = vmatmul.msk.bf16.gmra.mxu1 %vm753_vm1, %v10040_v24  ;;  %8955 = vmatmul.msk.bf16.gmra.mxu2 %vm753_vm1, %v1626_v18  ;;  %v10698_v16 = vadd.f32 %v3500_v9, %v2942_v1 }
 0x15c   : > { %9159 = vmatmul.msk.bf16.gmra.mxu3 %vm753_vm1, %v2428_v5  ;;  %v3299_v5 = vrot.slane %v9937_v60, 1 }
 0x15e   : > { %9363 = vmatmul.msk.bf16.gmra.mxu0 %vm753_vm1, %v3298_v35  ;;  %v1831_v10 = vpop.f32.mrf.mxu2 }
 0x15f   : > { %v2002_v31 = vadd.f32 %v1831_v10, %v1172_v8  ;;  %v2772_v37 = vpop.f32.mrf.mxu3  ;;  %v1628_v10 = vsel %vm1601_vm2, %v1625_v36, %v1627_v15  ;;  %v9898_v36 = vld [vmem:[%s10156_s23 + $0x7c] sm:$0xff] }
 0x160   : > { %v1173_v46 = vpop.f32.mrf.mxu1 }
 0x161   : > { %v2943_v13 = vadd.f32 %v2772_v37, %v2002_v31  ;;  %v1174_v18 = vadd.f32 %v1173_v46, %v10489_v53  ;;  %v2436_v31 = vsel %vm441_vm0, %v2431_v34, %v2435_v7  ;;  %v2441_v34 = vshll.u32 %v9898_v36, 16 }
 0x163   : > { %v3505_v22 = vpop.f32.mrf.mxu0  ;;  %v10706_v9 = vadd.f32 %v3503_v25, %v2943_v13  ;;  %v3300_v25 = vsel %vm1601_vm2, %v3297_v50, %v3299_v5  ;;  %v9858_v50 = vld [vmem:[%s10156_s23 + $0x70] sm:$0xff] }
 0x166   : > { %v1833_v1 = vpop.f32.mrf.mxu2 }
 0x167   : > { %v2003_v35 = vadd.f32 %v1833_v1, %v1174_v18  ;;  %v2774_v24 = vpop.f32.mrf.mxu3  ;;  %v2437_v18 = vshrl.u32 %v9897_v33, 16 }
 0x168   : > { %v1176_v8 = vpop.f32.mrf.mxu1 }
 0x169   : > { %v2944_v45 = vadd.f32 %v2774_v24, %v2003_v35  ;;  %v1177_v27 = vadd.f32 %v1176_v8, %v10500_v6  ;;  %v9938_v35 = vld [vmem:[%s10156_s23 + $0x7c] sm:$0xff]  ;;  %v1629_v24 = vrot.slane %v9858_v50, 1  ;;  %v2439_v6 = vor.u32 %v2437_v18, %v2435_v7  ;;  %v10042_v50 = vld [vmem:[%s10156_s23 + $0x68] sm:$0xff] }
 0x16a   : > { %v2443_v8 = vrot.slane %v2441_v34, 1 }
 0x16b   : > { %v3508_v37 = vpop.f32.mrf.mxu0  ;;  %8752 = vmatmul.msk.bf16.gmra.mxu1 %vm753_vm1, %v10041_v55  ;;  %8956 = vmatmul.msk.bf16.gmra.mxu2 %vm753_vm1, %v1628_v10  ;;  %v10715_v53 = vadd.f32 %v3505_v22, %v2944_v45 }
 0x16c   : > { %9160 = vmatmul.msk.bf16.gmra.mxu3 %vm753_vm1, %v2436_v31  ;;  %v3301_v31 = vrot.slane %v9938_v35, 1 }
 0x16e   : > { %9364 = vmatmul.msk.bf16.gmra.mxu0 %vm753_vm1, %v3300_v25  ;;  %v1836_v46 = vpop.f32.mrf.mxu2 }
 0x16f   : > { %v2004_v13 = vadd.f32 %v1836_v46, %v1177_v27  ;;  %v2777_v62 = vpop.f32.mrf.mxu3  ;;  %v1630_v46 = vsel %vm1601_vm2, %v1627_v15, %v1629_v24  ;;  %v9899_v15 = vld [vmem:[%s10156_s23 + $0x84] sm:$0xff] }
 0x170   : > { %v1178_v3 = vpop.f32.mrf.mxu1 }
 0x171   : > { %v2945_v60 = vadd.f32 %v2777_v62, %v2004_v13  ;;  %v1179_v10 = vadd.f32 %v1178_v3, %v10516_v26  ;;  %v2444_v13 = vsel %vm441_vm0, %v2439_v6, %v2443_v8  ;;  %v2449_v6 = vshll.u32 %v9899_v15, 16 }
 0x173   : > { %v3510_v1 = vpop.f32.mrf.mxu0  ;;  %v10723_v22 = vadd.f32 %v3508_v37, %v2945_v60  ;;  %v3302_v37 = vsel %vm1601_vm2, %v3299_v5, %v3301_v31  ;;  %v9859_v5 = vld [vmem:[%s10156_s23 + $0x78] sm:$0xff] }
 0x176   : > { %v1838_v45 = vpop.f32.mrf.mxu2 }
 0x177   : > { %v2005_v25 = vadd.f32 %v1838_v45, %v1179_v10  ;;  %v2779_v55 = vpop.f32.mrf.mxu3  ;;  %v2445_v10 = vshrl.u32 %v9898_v36, 16 }
 0x178   : > { %v1181_v27 = vpop.f32.mrf.mxu1 }
 0x179   : > { %v2946_v33 = vadd.f32 %v2779_v55, %v2005_v25  ;;  %v1182_v7 = vadd.f32 %v1181_v27, %v10527_v0  ;;  %v9939_v25 = vld [vmem:[%s10156_s23 + $0x84] sm:$0xff]  ;;  %v1631_v55 = vrot.slane %v9859_v5, 1  ;;  %v2447_v0 = vor.u32 %v2445_v10, %v2443_v8  ;;  %v10043_v5 = vld [vmem:[%s10156_s23 + $0x70] sm:$0xff] }
 0x17a   : > { %v2451_v27 = vrot.slane %v2449_v6, 1 }
 0x17b   : > { %v3513_v62 = vpop.f32.mrf.mxu0  ;;  %8753 = vmatmul.msk.bf16.gmra.mxu1 %vm753_vm1, %v10042_v50  ;;  %8957 = vmatmul.msk.bf16.gmra.mxu2 %vm753_vm1, %v1630_v46  ;;  %v10732_v26 = vadd.f32 %v3510_v1, %v2946_v33 }
 0x17c   : > { %9161 = vmatmul.msk.bf16.gmra.mxu3 %vm753_vm1, %v2444_v13  ;;  %v3303_v13 = vrot.slane %v9939_v25, 1 }
 0x17e   : > { %9365 = vmatmul.msk.bf16.gmra.mxu0 %vm753_vm1, %v3302_v37  ;;  %v1841_v3 = vpop.f32.mrf.mxu2 }
 0x17f   : > { %v2006_v60 = vadd.f32 %v1841_v3, %v1182_v7  ;;  %v2782_v18 = vpop.f32.mrf.mxu3  ;;  %v1632_v3 = vsel %vm1601_vm2, %v1629_v24, %v1631_v55  ;;  %v9900_v24 = vld [vmem:[%s10156_s23 + $0x8c] sm:$0xff] }
 0x180   : > { %v1183_v34 = vpop.f32.mrf.mxu1 }
 0x181   : > { %v2947_v35 = vadd.f32 %v2782_v18, %v2006_v60  ;;  %v1184_v46 = vadd.f32 %v1183_v34, %v10543_v58  ;;  %v2452_v60 = vsel %vm441_vm0, %v2447_v0, %v2451_v27  ;;  %v2457_v0 = vshll.u32 %v9900_v24, 16 }
 0x183   : > { %v3515_v45 = vpop.f32.mrf.mxu0  ;;  %v10740_v1 = vadd.f32 %v3513_v62, %v2947_v35  ;;  %v3304_v62 = vsel %vm1601_vm2, %v3301_v31, %v3303_v13  ;;  %v9860_v31 = vld [vmem:[%s10156_s23 + $0x80] sm:$0xff] }
 0x186   : > { %v1843_v33 = vpop.f32.mrf.mxu2 }
 0x187   : > { %v2007_v37 = vadd.f32 %v1843_v33, %v1184_v46  ;;  %v2784_v50 = vpop.f32.mrf.mxu3  ;;  %v2453_v46 = vshrl.u32 %v9899_v15, 16 }
 0x188   : > { %v1186_v7 = vpop.f32.mrf.mxu1 }
 0x189   : > { %v2948_v36 = vadd.f32 %v2784_v50, %v2007_v37  ;;  %v1187_v8 = vadd.f32 %v1186_v7, %v10554_v40  ;;  %v9940_v37 = vld [vmem:[%s10156_s23 + $0x8c] sm:$0xff]  ;;  %v1633_v50 = vrot.slane %v9860_v31, 1  ;;  %v2455_v40 = vor.u32 %v2453_v46, %v2451_v27  ;;  %v10044_v31 = vld [vmem:[%s10156_s23 + $0x78] sm:$0xff] }
 0x18a   : > { %v2459_v7 = vrot.slane %v2457_v0, 1 }
 0x18b   : > { %v3518_v18 = vpop.f32.mrf.mxu0  ;;  %8754 = vmatmul.msk.bf16.gmra.mxu1 %vm753_vm1, %v10043_v5  ;;  %8958 = vmatmul.msk.bf16.gmra.mxu2 %vm753_vm1, %v1632_v3  ;;  %v10749_v58 = vadd.f32 %v3515_v45, %v2948_v36 }
 0x18c   : > { %9162 = vmatmul.msk.bf16.gmra.mxu3 %vm753_vm1, %v2452_v60  ;;  %v3305_v60 = vrot.slane %v9940_v37, 1 }
 0x18e   : > { %9366 = vmatmul.msk.bf16.gmra.mxu0 %vm753_vm1, %v3304_v62  ;;  %v1846_v34 = vpop.f32.mrf.mxu2 }
 0x18f   : > { %v2008_v35 = vadd.f32 %v1846_v34, %v1187_v8  ;;  %v2787_v10 = vpop.f32.mrf.mxu3  ;;  %v1634_v34 = vsel %vm1601_vm2, %v1631_v55, %v1633_v50  ;;  %v9901_v55 = vld [vmem:[%s10156_s23 + $0x94] sm:$0xff] }
 0x190   : > { %v1188_v6 = vpop.f32.mrf.mxu1 }
 0x191   : > { %v2949_v25 = vadd.f32 %v2787_v10, %v2008_v35  ;;  %v1189_v3 = vadd.f32 %v1188_v6, %v10570_v47  ;;  %v2460_v35 = vsel %vm441_vm0, %v2455_v40, %v2459_v7  ;;  %v2465_v40 = vshll.u32 %v9901_v55, 16 }
 0x193   : > { %v3520_v33 = vpop.f32.mrf.mxu0  ;;  %v10757_v45 = vadd.f32 %v3518_v18, %v2949_v25  ;;  %v3306_v18 = vsel %vm1601_vm2, %v3303_v13, %v3305_v60  ;;  %v9861_v13 = vld [vmem:[%s10156_s23 + $0x88] sm:$0xff] }
 0x196   : > { %v1848_v36 = vpop.f32.mrf.mxu2 }
 0x197   : > { %v2009_v62 = vadd.f32 %v1848_v36, %v1189_v3  ;;  %v2789_v5 = vpop.f32.mrf.mxu3  ;;  %v2461_v3 = vshrl.u32 %v9900_v24, 16 }
 0x198   : > { %v1191_v8 = vpop.f32.mrf.mxu1 }
 0x199   : > { %v2950_v15 = vadd.f32 %v2789_v5, %v2009_v62  ;;  %v1192_v27 = vadd.f32 %v1191_v8, %v10581_v41  ;;  %v9941_v62 = vld [vmem:[%s10156_s23 + $0x94] sm:$0xff]  ;;  %v1635_v5 = vrot.slane %v9861_v13, 1  ;;  %v2463_v41 = vor.u32 %v2461_v3, %v2459_v7 }
 0x19a   : > { %v2467_v8 = vrot.slane %v2465_v40, 1 }
 0x19b   : > { %v3523_v10 = vpop.f32.mrf.mxu0  ;;  %8755 = vmatmul.msk.bf16.gmra.mxu1 %vm753_vm1, %v10044_v31  ;;  %8959 = vmatmul.msk.bf16.gmra.mxu2 %vm753_vm1, %v1634_v34  ;;  %v10766_v47 = vadd.f32 %v3520_v33, %v2950_v15 }
 0x19c   : > { %9163 = vmatmul.msk.bf16.gmra.mxu3 %vm753_vm1, %v2460_v35  ;;  %v3307_v35 = vrot.slane %v9941_v62, 1  ;;  %v9862_v62 = vld [vmem:[%s10156_s23 + $0x90] sm:$0xff] }
 0x19e   : > { %9367 = vmatmul.msk.bf16.gmra.mxu0 %vm753_vm1, %v3306_v18  ;;  %v1851_v6 = vpop.f32.mrf.mxu2 }
 0x19f   : > { %v2010_v25 = vadd.f32 %v1851_v6, %v1192_v27  ;;  %v2792_v46 = vpop.f32.mrf.mxu3  ;;  %v1636_v6 = vsel %vm1601_vm2, %v1633_v50, %v1635_v5  ;;  %v10004_v50 = vld [vmem:[%s13717_s1 + $0xc8] sm:$0xff] }
 0x1a0   : > { %v1193_v0 = vpop.f32.mrf.mxu1  ;;  %4951 = vmatpush.bf16.msra.mxu2 %v10004_v50 }
 0x1a1   : > { %v2951_v37 = vadd.f32 %v2792_v46, %v2010_v25  ;;  %v1194_v34 = vadd.f32 %v1193_v0, %v10597_v2  ;;  %v2468_v25 = vsel %vm441_vm0, %v2463_v41, %v2467_v8  ;;  %v10008_v0 = vld [vmem:[%s13717_s1 + $0xe8] sm:$0xff]  ;;  %v2469_v41 = vshrl.u32 %v9901_v55, 16 }
 0x1a2   : > { %5685 = vmatpush.bf16.msra.mxu3 %v10008_v0 }
 0x1a3   : > { %v3525_v36 = vpop.f32.mrf.mxu0  ;;  %v10774_v33 = vadd.f32 %v3523_v10, %v2951_v37  ;;  %v3308_v10 = vsel %vm1601_vm2, %v3305_v60, %v3307_v35  ;;  %v10045_v37 = vld [vmem:[%s10156_s23 + $0x80] sm:$0xff]  ;;  %v2471_v55 = vor.u32 %v2469_v41, %v2467_v8 }
 0x1a4   : > { %v9902_v60 = vld [vmem:[%s10156_s23 + $0x9c] sm:$0xff] }
 0x1a6   : > { %v1853_v15 = vpop.f32.mrf.mxu2 }
 0x1a7   : > { %v2011_v18 = vadd.f32 %v1853_v15, %v1194_v34  ;;  %v2794_v31 = vpop.f32.mrf.mxu3  ;;  %v2473_v15 = vshll.u32 %v9902_v60, 16 }
 0x1a8   : > { %v1196_v27 = vpop.f32.mrf.mxu1 }
 0x1a9   : > { %v2952_v24 = vadd.f32 %v2794_v31, %v2011_v18  ;;  %v1197_v7 = vadd.f32 %v1196_v27, %v10608_v21  ;;  %v9965_v21 = vld [vmem:[%s13717_s1 + $0xa8] sm:$0xff]  ;;  %v9942_v31 = vld [vmem:[%s10156_s23 + $0x9c] sm:$0xff] }
 0x1aa   : > { %v10012_v27 = vld [vmem:[%s13717_s1 + $0x108] sm:$0xff]  ;;  %4220 = vmatpush.bf16.msra.mxu1 %v9965_v21  ;;  %v3309_v50 = vrot.slane %v9942_v31, 1 }
 0x1ab   : > { %v3528_v46 = vpop.f32.mrf.mxu0  ;;  %8756 = vmatmul.msk.bf16.gmra.mxu1 %vm753_vm1, %v10045_v37  ;;  %8960 = vmatmul.msk.bf16.gmra.mxu2 %vm753_vm1, %v1636_v6  ;;  %v10783_v2 = vadd.f32 %v3525_v36, %v2952_v24  ;;  %v1637_v24 = vrot.slane %v9862_v62, 1  ;;  %v10046_v21 = vld [vmem:[%s10156_s23 + $0x88] sm:$0xff] }
 0x1ac   : > { %9164 = vmatmul.msk.bf16.gmra.mxu3 %vm753_vm1, %v2468_v25  ;;  %6169 = vmatpush.bf16.msra.mxu0 %v10012_v27  ;;  %v3310_v62 = vsel %vm1601_vm2, %v3307_v35, %v3309_v50  ;;  %v9863_v35 = vld [vmem:[%s10156_s23 + $0x98] sm:$0xff] }
 0x1ae   : > { %9368 = vmatmul.msk.bf16.gmra.mxu0 %vm753_vm1, %v3308_v10  ;;  %v1856_v13 = vpop.f32.mrf.mxu2  ;;  %v2475_v10 = vrot.slane %v2473_v15, 1 }
 0x1af   : > { %v2012_v3 = vadd.f32 %v1856_v13, %v1197_v7  ;;  %v2797_v40 = vpop.f32.mrf.mxu3 }
 0x1b0   : > { %v1198_v36 = vpop.f32.mrf.mxu1 }
 0x1b1   : > { %v2953_v34 = vadd.f32 %v2797_v40, %v2012_v3  ;;  %v1199_v25 = vadd.f32 %v1198_v36, %v10633_v11  ;;  %v1638_v3 = vsel %vm1601_vm2, %v1635_v5, %v1637_v24  ;;  %v9903_v5 = vld [vmem:[%s10156_s23 + $0xa4] sm:$0xff] }
 0x1b3   : > { %v3530_v18 = vpop.f32.mrf.mxu0  ;;  %v10803_v6 = vadd.f32 %v3528_v46, %v2953_v34  ;;  %v2476_v46 = vsel %vm441_vm0, %v2471_v55, %v2475_v10  ;;  %v2481_v55 = vshll.u32 %v9903_v5, 16 }
 0x1b6   : > { %v1858_v37 = vpop.f32.mrf.mxu2 }
 0x1b7   : > { %v2013_v7 = vadd.f32 %v1858_v37, %v1199_v25  ;;  %v2799_v0 = vpop.f32.mrf.mxu3  ;;  %v2477_v25 = vshrl.u32 %v9902_v60, 16 }
 0x1b8   : > { %v1201_v13 = vpop.f32.mrf.mxu1 }
 0x1b9   : > { %v2954_v40 = vadd.f32 %v2799_v0, %v2013_v7  ;;  %v1202_v8 = vadd.f32 %v1201_v13, %v10378_v4  ;;  %v9943_v7 = vld [vmem:[%s10156_s23 + $0xa4] sm:$0xff]  ;;  %v1639_v0 = vrot.slane %v9863_v35, 1  ;;  %v2479_v4 = vor.u32 %v2477_v25, %v2475_v10  ;;  %v10047_v35 = vld [vmem:[%s10156_s23 + $0x90] sm:$0xff] }
 0x1ba   : > { %v2483_v13 = vrot.slane %v2481_v55, 1 }
 0x1bb   : > { %v3533_v34 = vpop.f32.mrf.mxu0  ;;  %8757 = vmatmul.msk.bf16.gmra.mxu1 %vm753_vm1, %v10046_v21  ;;  %8961 = vmatmul.msk.bf16.gmra.mxu2 %vm753_vm1, %v1638_v3  ;;  %v10812_v11 = vadd.f32 %v3530_v18, %v2954_v40 }
 0x1bc   : > { %9165 = vmatmul.msk.bf16.gmra.mxu3 %vm753_vm1, %v2476_v46  ;;  %v3311_v46 = vrot.slane %v9943_v7, 1 }
 0x1be   : > { %9369 = vmatmul.msk.bf16.gmra.mxu0 %vm753_vm1, %v3310_v62  ;;  %v1861_v36 = vpop.f32.mrf.mxu2 }
 0x1bf   : > { %v2014_v41 = vadd.f32 %v1861_v36, %v1202_v8  ;;  %v2802_v15 = vpop.f32.mrf.mxu3  ;;  %v1640_v36 = vsel %vm1601_vm2, %v1637_v24, %v1639_v0  ;;  %v9904_v24 = vld [vmem:[%s10156_s23 + $0xac] sm:$0xff] }
 0x1c0   : > { %v1203_v31 = vpop.f32.mrf.mxu1 }
 0x1c1   : > { %v2955_v27 = vadd.f32 %v2802_v15, %v2014_v41  ;;  %v1204_v3 = vadd.f32 %v1203_v31, %v10402_v20  ;;  %v2484_v41 = vsel %vm441_vm0, %v2479_v4, %v2483_v13  ;;  %v2489_v4 = vshll.u32 %v9904_v24, 16 }
 0x1c3   : > { %v3535_v37 = vpop.f32.mrf.mxu0  ;;  %v10820_v18 = vadd.f32 %v3533_v34, %v2955_v27  ;;  %v3312_v34 = vsel %vm1601_vm2, %v3309_v50, %v3311_v46  ;;  %v9864_v50 = vld [vmem:[%s10156_s23 + $0xa0] sm:$0xff] }
 0x1c6   : > { %v1863_v40 = vpop.f32.mrf.mxu2 }
 0x1c7   : > { %v2015_v62 = vadd.f32 %v1863_v40, %v1204_v3  ;;  %v2804_v21 = vpop.f32.mrf.mxu3  ;;  %v2485_v3 = vshrl.u32 %v9903_v5, 16 }
 0x1c8   : > { %v1206_v8 = vpop.f32.mrf.mxu1 }
 0x1c9   : > { %v2956_v60 = vadd.f32 %v2804_v21, %v2015_v62  ;;  %v1207_v10 = vadd.f32 %v1206_v8, %v10415_v42  ;;  %v9944_v62 = vld [vmem:[%s10156_s23 + $0xac] sm:$0xff]  ;;  %v1641_v21 = vrot.slane %v9864_v50, 1  ;;  %v2487_v42 = vor.u32 %v2485_v3, %v2483_v13  ;;  %v10048_v50 = vld [vmem:[%s10156_s23 + $0x98] sm:$0xff] }
 0x1ca   : > { %v2491_v8 = vrot.slane %v2489_v4, 1 }
 0x1cb   : > { %v3538_v15 = vpop.f32.mrf.mxu0  ;;  %8758 = vmatmul.msk.bf16.gmra.mxu1 %vm753_vm1, %v10047_v35  ;;  %8962 = vmatmul.msk.bf16.gmra.mxu2 %vm753_vm1, %v1640_v36  ;;  %v10829_v20 = vadd.f32 %v3535_v37, %v2956_v60 }
 0x1cc   : > { %9166 = vmatmul.msk.bf16.gmra.mxu3 %vm753_vm1, %v2484_v41  ;;  %v3313_v41 = vrot.slane %v9944_v62, 1 }
 0x1ce   : > { %9370 = vmatmul.msk.bf16.gmra.mxu0 %vm753_vm1, %v3312_v34  ;;  %v1866_v31 = vpop.f32.mrf.mxu2 }
 0x1cf   : > { %v2016_v27 = vadd.f32 %v1866_v31, %v1207_v10  ;;  %v2807_v25 = vpop.f32.mrf.mxu3  ;;  %v1642_v31 = vsel %vm1601_vm2, %v1639_v0, %v1641_v21  ;;  %v9905_v0 = vld [vmem:[%s10156_s23 + $0xb4] sm:$0xff] }
 0x1d0   : > { %v1208_v55 = vpop.f32.mrf.mxu1 }
 0x1d1   : > { %v2957_v7 = vadd.f32 %v2807_v25, %v2016_v27  ;;  %v1209_v36 = vadd.f32 %v1208_v55, %v10432_v52  ;;  %v2492_v27 = vsel %vm441_vm0, %v2487_v42, %v2491_v8  ;;  %v2497_v42 = vshll.u32 %v9905_v0, 16 }
 0x1d3   : > { %v3540_v40 = vpop.f32.mrf.mxu0  ;;  %v10837_v37 = vadd.f32 %v3538_v15, %v2957_v7  ;;  %v3314_v15 = vsel %vm1601_vm2, %v3311_v46, %v3313_v41  ;;  %v9865_v46 = vld [vmem:[%s10156_s23 + $0xa8] sm:$0xff] }
 0x1d6   : > { %v1868_v60 = vpop.f32.mrf.mxu2 }
 0x1d7   : > { %v2017_v34 = vadd.f32 %v1868_v60, %v1209_v36  ;;  %v2809_v35 = vpop.f32.mrf.mxu3  ;;  %v2493_v36 = vshrl.u32 %v9904_v24, 16 }
 0x1d8   : > { %v1211_v10 = vpop.f32.mrf.mxu1 }
 0x1d9   : > { %v2958_v5 = vadd.f32 %v2809_v35, %v2017_v34  ;;  %v1212_v13 = vadd.f32 %v1211_v10, %v10442_v63  ;;  %v9945_v34 = vld [vmem:[%s10156_s23 + $0xb4] sm:$0xff]  ;;  %v1643_v35 = vrot.slane %v9865_v46, 1  ;;  %v2495_v63 = vor.u32 %v2493_v36, %v2491_v8  ;;  %v10049_v46 = vld [vmem:[%s10156_s23 + $0xa0] sm:$0xff] }
 0x1da   : > { %v2499_v10 = vrot.slane %v2497_v42, 1 }
 0x1db   : > { %v3543_v25 = vpop.f32.mrf.mxu0  ;;  %8759 = vmatmul.msk.bf16.gmra.mxu1 %vm753_vm1, %v10048_v50  ;;  %8963 = vmatmul.msk.bf16.gmra.mxu2 %vm753_vm1, %v1642_v31  ;;  %v10846_v52 = vadd.f32 %v3540_v40, %v2958_v5 }
 0x1dc   : > { %9167 = vmatmul.msk.bf16.gmra.mxu3 %vm753_vm1, %v2492_v27  ;;  %v3315_v27 = vrot.slane %v9945_v34, 1 }
 0x1de   : > { %9371 = vmatmul.msk.bf16.gmra.mxu0 %vm753_vm1, %v3314_v15  ;;  %v1871_v55 = vpop.f32.mrf.mxu2 }
 0x1df   : > { %v2018_v7 = vadd.f32 %v1871_v55, %v1212_v13  ;;  %v2812_v3 = vpop.f32.mrf.mxu3  ;;  %v1644_v55 = vsel %vm1601_vm2, %v1641_v21, %v1643_v35  ;;  %v9906_v21 = vld [vmem:[%s10156_s23 + $0xbc] sm:$0xff] }
 0x1e0   : > { %v1213_v4 = vpop.f32.mrf.mxu1 }
 0x1e1   : > { %v2959_v62 = vadd.f32 %v2812_v3, %v2018_v7  ;;  %v1214_v31 = vadd.f32 %v1213_v4, %v10459_v12  ;;  %v2500_v7 = vsel %vm441_vm0, %v2495_v63, %v2499_v10  ;;  %v2505_v63 = vshll.u32 %v9906_v21, 16 }
 0x1e3   : > { %v3545_v60 = vpop.f32.mrf.mxu0  ;;  %v10854_v40 = vadd.f32 %v3543_v25, %v2959_v62  ;;  %v3316_v25 = vsel %vm1601_vm2, %v3313_v41, %v3315_v27  ;;  %v9866_v41 = vld [vmem:[%s10156_s23 + $0xb0] sm:$0xff] }
 0x1e6   : > { %v1873_v5 = vpop.f32.mrf.mxu2 }
 0x1e7   : > { %v2019_v15 = vadd.f32 %v1873_v5, %v1214_v31  ;;  %v2814_v50 = vpop.f32.mrf.mxu3  ;;  %v2501_v31 = vshrl.u32 %v9905_v0, 16 }
 0x1e8   : > { %v1216_v13 = vpop.f32.mrf.mxu1 }
 0x1e9   : > { %v2960_v24 = vadd.f32 %v2814_v50, %v2019_v15  ;;  %v1217_v8 = vadd.f32 %v1216_v13, %v10469_v28  ;;  %v9946_v15 = vld [vmem:[%s10156_s23 + $0xbc] sm:$0xff]  ;;  %v1645_v50 = vrot.slane %v9866_v41, 1  ;;  %v2503_v28 = vor.u32 %v2501_v31, %v2499_v10  ;;  %v10050_v41 = vld [vmem:[%s10156_s23 + $0xa8] sm:$0xff] }
 0x1ea   : > { %v2507_v13 = vrot.slane %v2505_v63, 1 }
 0x1eb   : > { %v3548_v3 = vpop.f32.mrf.mxu0  ;;  %8760 = vmatmul.msk.bf16.gmra.mxu1 %vm753_vm1, %v10049_v46  ;;  %8964 = vmatmul.msk.bf16.gmra.mxu2 %vm753_vm1, %v1644_v55  ;;  %v10863_v12 = vadd.f32 %v3545_v60, %v2960_v24 }
 0x1ec   : > { %9168 = vmatmul.msk.bf16.gmra.mxu3 %vm753_vm1, %v2500_v7  ;;  %v3317_v7 = vrot.slane %v9946_v15, 1 }
 0x1ee   : > { %9372 = vmatmul.msk.bf16.gmra.mxu0 %vm753_vm1, %v3316_v25  ;;  %v1876_v4 = vpop.f32.mrf.mxu2 }
 0x1ef   : > { %v2020_v62 = vadd.f32 %v1876_v4, %v1217_v8  ;;  %v2817_v36 = vpop.f32.mrf.mxu3  ;;  %v1646_v4 = vsel %vm1601_vm2, %v1643_v35, %v1645_v50  ;;  %v9907_v35 = vld [vmem:[%s10156_s23 + $0xc4] sm:$0xff] }
 0x1f0   : > { %v1218_v42 = vpop.f32.mrf.mxu1 }
 0x1f1   : > { %v2961_v34 = vadd.f32 %v2817_v36, %v2020_v62  ;;  %v1219_v55 = vadd.f32 %v1218_v42, %v10486_v44  ;;  %v2508_v62 = vsel %vm441_vm0, %v2503_v28, %v2507_v13  ;;  %v2513_v28 = vshll.u32 %v9907_v35, 16 }
 0x1f3   : > { %v3550_v5 = vpop.f32.mrf.mxu0  ;;  %v10871_v60 = vadd.f32 %v3548_v3, %v2961_v34  ;;  %v3318_v3 = vsel %vm1601_vm2, %v3315_v27, %v3317_v7  ;;  %v9867_v27 = vld [vmem:[%s10156_s23 + $0xb8] sm:$0xff] }
 0x1f6   : > { %v1878_v24 = vpop.f32.mrf.mxu2 }
 0x1f7   : > { %v2021_v25 = vadd.f32 %v1878_v24, %v1219_v55  ;;  %v2819_v46 = vpop.f32.mrf.mxu3  ;;  %v2509_v55 = vshrl.u32 %v9906_v21, 16 }
 0x1f8   : > { %v1221_v8 = vpop.f32.mrf.mxu1 }
 0x1f9   : > { %v2962_v0 = vadd.f32 %v2819_v46, %v2021_v25  ;;  %v1222_v10 = vadd.f32 %v1221_v8, %v10496_v61  ;;  %v9947_v25 = vld [vmem:[%s10156_s23 + $0xc4] sm:$0xff]  ;;  %v1647_v46 = vrot.slane %v9867_v27, 1  ;;  %v2511_v61 = vor.u32 %v2509_v55, %v2507_v13  ;;  %v10051_v27 = vld [vmem:[%s10156_s23 + $0xb0] sm:$0xff] }
 0x1fa   : > { %v2515_v8 = vrot.slane %v2513_v28, 1 }
 0x1fb   : > { %v3553_v36 = vpop.f32.mrf.mxu0  ;;  %8761 = vmatmul.msk.bf16.gmra.mxu1 %vm753_vm1, %v10050_v41  ;;  %8965 = vmatmul.msk.bf16.gmra.mxu2 %vm753_vm1, %v1646_v4  ;;  %v10880_v44 = vadd.f32 %v3550_v5, %v2962_v0 }
 0x1fc   : > { %9169 = vmatmul.msk.bf16.gmra.mxu3 %vm753_vm1, %v2508_v62  ;;  %v3319_v62 = vrot.slane %v9947_v25, 1 }
 0x1fe   : > { %9373 = vmatmul.msk.bf16.gmra.mxu0 %vm753_vm1, %v3318_v3  ;;  %v1881_v42 = vpop.f32.mrf.mxu2 }
 0x1ff   : > { %v2022_v34 = vadd.f32 %v1881_v42, %v1222_v10  ;;  %v2822_v31 = vpop.f32.mrf.mxu3  ;;  %v1648_v42 = vsel %vm1601_vm2, %v1645_v50, %v1647_v46  ;;  %v9908_v50 = vld [vmem:[%s10156_s23 + $0xcc] sm:$0xff] }
 0x200   : > { %v1223_v63 = vpop.f32.mrf.mxu1 }
 0x201   : > { %v2963_v15 = vadd.f32 %v2822_v31, %v2022_v34  ;;  %v1224_v4 = vadd.f32 %v1223_v63, %v10513_v19  ;;  %v2516_v34 = vsel %vm441_vm0, %v2511_v61, %v2515_v8  ;;  %v2521_v61 = vshll.u32 %v9908_v50, 16 }
 0x203   : > { %v3555_v24 = vpop.f32.mrf.mxu0  ;;  %v10888_v5 = vadd.f32 %v3553_v36, %v2963_v15  ;;  %v3320_v36 = vsel %vm1601_vm2, %v3317_v7, %v3319_v62  ;;  %v9868_v7 = vld [vmem:[%s10156_s23 + $0xc0] sm:$0xff] }
 0x205   : > { %13770 = vst [vmem:[#allocation38_spill] sm:$0xff] %v10888_v5 }
 0x206   : > { %v1883_v0 = vpop.f32.mrf.mxu2 }
 0x207   : > { %v2023_v3 = vadd.f32 %v1883_v0, %v1224_v4  ;;  %v2824_v41 = vpop.f32.mrf.mxu3  ;;  %v2517_v4 = vshrl.u32 %v9907_v35, 16 }
 0x208   : > { %v1226_v10 = vpop.f32.mrf.mxu1 }
 0x209   : > { %v2964_v21 = vadd.f32 %v2824_v41, %v2023_v3  ;;  %v1227_v13 = vadd.f32 %v1226_v10, %v10523_v54  ;;  %v9948_v3 = vld [vmem:[%s10156_s23 + $0xcc] sm:$0xff]  ;;  %v1649_v41 = vrot.slane %v9868_v7, 1  ;;  %v2519_v54 = vor.u32 %v2517_v4, %v2515_v8  ;;  %v10052_v7 = vld [vmem:[%s10156_s23 + $0xb8] sm:$0xff] }
 0x20a   : > { %v2523_v10 = vrot.slane %v2521_v61, 1 }
 0x20b   : > { %v3558_v31 = vpop.f32.mrf.mxu0  ;;  %8762 = vmatmul.msk.bf16.gmra.mxu1 %vm753_vm1, %v10051_v27  ;;  %8966 = vmatmul.msk.bf16.gmra.mxu2 %vm753_vm1, %v1648_v42  ;;  %v10897_v19 = vadd.f32 %v3555_v24, %v2964_v21 }
 0x20c   : > { %9170 = vmatmul.msk.bf16.gmra.mxu3 %vm753_vm1, %v2516_v34  ;;  %v3321_v34 = vrot.slane %v9948_v3, 1 }
 0x20d   : > { %13771 = vst [vmem:[#allocation39_spill] sm:$0xff] %v10897_v19 }
 0x20e   : > { %9374 = vmatmul.msk.bf16.gmra.mxu0 %vm753_vm1, %v3320_v36  ;;  %v1886_v63 = vpop.f32.mrf.mxu2 }
 0x20f   : > { %v2024_v15 = vadd.f32 %v1886_v63, %v1227_v13  ;;  %v2827_v55 = vpop.f32.mrf.mxu3  ;;  %v1650_v63 = vsel %vm1601_vm2, %v1647_v46, %v1649_v41  ;;  %v9909_v46 = vld [vmem:[%s10156_s23 + $0xd4] sm:$0xff] }
 0x210   : > { %v1228_v28 = vpop.f32.mrf.mxu1 }
 0x211   : > { %v2965_v25 = vadd.f32 %v2827_v55, %v2024_v15  ;;  %v1229_v42 = vadd.f32 %v1228_v28, %v10540_v14  ;;  %v2524_v15 = vsel %vm441_vm0, %v2519_v54, %v2523_v10  ;;  %v2529_v54 = vshll.u32 %v9909_v46, 16 }
 0x213   : > { %v3560_v0 = vpop.f32.mrf.mxu0  ;;  %v10905_v24 = vadd.f32 %v3558_v31, %v2965_v25  ;;  %v3322_v31 = vsel %vm1601_vm2, %v3319_v62, %v3321_v34  ;;  %v9869_v62 = vld [vmem:[%s10156_s23 + $0xc8] sm:$0xff] }
 0x215   : > { %13772 = vst [vmem:[#allocation40_spill] sm:$0xff] %v10905_v24 }
 0x216   : > { %v1888_v21 = vpop.f32.mrf.mxu2 }
 0x217   : > { %v2025_v36 = vadd.f32 %v1888_v21, %v1229_v42  ;;  %v2829_v27 = vpop.f32.mrf.mxu3  ;;  %v2525_v42 = vshrl.u32 %v9908_v50, 16 }
 0x218   : > { %v1231_v13 = vpop.f32.mrf.mxu1 }
 0x219   : > { %v2966_v35 = vadd.f32 %v2829_v27, %v2025_v36  ;;  %v1232_v8 = vadd.f32 %v1231_v13, %v10550_v59  ;;  %v9949_v36 = vld [vmem:[%s10156_s23 + $0xd4] sm:$0xff]  ;;  %v1651_v27 = vrot.slane %v9869_v62, 1  ;;  %v2527_v59 = vor.u32 %v2525_v42, %v2523_v10  ;;  %v10053_v62 = vld [vmem:[%s10156_s23 + $0xc0] sm:$0xff] }
 0x21a   : > { %v2531_v13 = vrot.slane %v2529_v54, 1 }
 0x21b   : > { %v3563_v55 = vpop.f32.mrf.mxu0  ;;  %8763 = vmatmul.msk.bf16.gmra.mxu1 %vm753_vm1, %v10052_v7  ;;  %8967 = vmatmul.msk.bf16.gmra.mxu2 %vm753_vm1, %v1650_v63  ;;  %v10914_v14 = vadd.f32 %v3560_v0, %v2966_v35 }
 0x21c   : > { %9171 = vmatmul.msk.bf16.gmra.mxu3 %vm753_vm1, %v2524_v15  ;;  %v3323_v15 = vrot.slane %v9949_v36, 1 }
 0x21d   : > { %13773 = vst [vmem:[#allocation41_spill] sm:$0xff] %v10914_v14 }
 0x21e   : > { %9375 = vmatmul.msk.bf16.gmra.mxu0 %vm753_vm1, %v3322_v31  ;;  %v1891_v28 = vpop.f32.mrf.mxu2 }
 0x21f   : > { %v2026_v25 = vadd.f32 %v1891_v28, %v1232_v8  ;;  %v2832_v4 = vpop.f32.mrf.mxu3  ;;  %v1652_v28 = vsel %vm1601_vm2, %v1649_v41, %v1651_v27  ;;  %v9910_v41 = vld [vmem:[%s10156_s23 + $0xdc] sm:$0xff] }
 0x220   : > { %v1233_v61 = vpop.f32.mrf.mxu1 }
 0x221   : > { %v2967_v3 = vadd.f32 %v2832_v4, %v2026_v25  ;;  %v1234_v63 = vadd.f32 %v1233_v61, %v10567_v23  ;;  %v2532_v25 = vsel %vm441_vm0, %v2527_v59, %v2531_v13  ;;  %v2537_v59 = vshll.u32 %v9910_v41, 16 }
 0x223   : > { %v3565_v21 = vpop.f32.mrf.mxu0  ;;  %v10922_v0 = vadd.f32 %v3563_v55, %v2967_v3  ;;  %v3324_v55 = vsel %vm1601_vm2, %v3321_v34, %v3323_v15  ;;  %v9870_v34 = vld [vmem:[%s10156_s23 + $0xd0] sm:$0xff] }
 0x225   : > { %13774 = vst [vmem:[#allocation42_spill] sm:$0xff] %v10922_v0 }
 0x226   : > { %v1893_v35 = vpop.f32.mrf.mxu2 }
 0x227   : > { %v2027_v31 = vadd.f32 %v1893_v35, %v1234_v63  ;;  %v2834_v7 = vpop.f32.mrf.mxu3  ;;  %v2533_v63 = vshrl.u32 %v9909_v46, 16 }
 0x228   : > { %v1236_v8 = vpop.f32.mrf.mxu1 }
 0x229   : > { %v2968_v50 = vadd.f32 %v2834_v7, %v2027_v31  ;;  %v1237_v23 = vadd.f32 %v1236_v8, %v10577_v51  ;;  %v9950_v31 = vld [vmem:[%s10156_s23 + $0xdc] sm:$0xff]  ;;  %v1653_v7 = vrot.slane %v9870_v34, 1  ;;  %v2535_v51 = vor.u32 %v2533_v63, %v2531_v13  ;;  %v9911_v13 = vld [vmem:[%s10156_s23 + $0xe4] sm:$0xff] }
 0x22a   : > { %v2539_v8 = vrot.slane %v2537_v59, 1  ;;  %v9871_v59 = vld [vmem:[%s10156_s23 + $0xd8] sm:$0xff] }
 0x22b   : > { %v3568_v4 = vpop.f32.mrf.mxu0  ;;  %8764 = vmatmul.msk.bf16.gmra.mxu1 %vm753_vm1, %v10053_v62  ;;  %8968 = vmatmul.msk.bf16.gmra.mxu2 %vm753_vm1, %v1652_v28  ;;  %v10935_v61 = vadd.f32 %v3565_v21, %v2968_v50 }
 0x22c   : > { %9172 = vmatmul.msk.bf16.gmra.mxu3 %vm753_vm1, %v2532_v25 }
 0x22d   : > { %13775 = vst [vmem:[#allocation43_spill] sm:$0xff] %v10935_v61  ;;  %v10054_v61 = vld [vmem:[%s10156_s23 + $0xc8] sm:$0xff] }
 0x22e   : > { %9376 = vmatmul.msk.bf16.gmra.mxu0 %vm753_vm1, %v3324_v55  ;;  %v1896_v10 = vpop.f32.mrf.mxu2  ;;  %v3325_v55 = vrot.slane %v9950_v31, 1 }
 0x22f   : > { %v2028_v3 = vadd.f32 %v1896_v10, %v1237_v23  ;;  %v2837_v42 = vpop.f32.mrf.mxu3  ;;  %v1654_v10 = vsel %vm1601_vm2, %v1651_v27, %v1653_v7 }
 0x230   : > { %v1238_v54 = vpop.f32.mrf.mxu1  ;;  %v3326_v34 = vsel %vm1601_vm2, %v3323_v15, %v3325_v55  ;;  %v10007_v15 = vld [vmem:[%s13717_s1 + $0xe0] sm:$0xff] }
 0x231   : > { %v2969_v36 = vadd.f32 %v2837_v42, %v2028_v3  ;;  %v1239_v28 = vadd.f32 %v1238_v54, %v10594_v30  ;;  %v2540_v3 = vsel %vm441_vm0, %v2535_v51, %v2539_v8  ;;  %v10003_v30 = vld [vmem:[%s13717_s1 + $0xc0] sm:$0xff]  ;;  %5686 = vmatpush.bf16.msra.mxu3 %v10007_v15 }
 0x232   : > { %4952 = vmatpush.bf16.msra.mxu2 %v10003_v30  ;;  %v9964_v51 = vld [vmem:[%s13717_s1 + $0xa0] sm:$0xff] }
 0x233   : > { %v3570_v35 = vpop.f32.mrf.mxu0  ;;  %v10940_v62 = vadd.f32 %v3568_v4, %v2969_v36  ;;  %4221 = vmatpush.bf16.msra.mxu1 %v9964_v51 }
 0x235   : > { %13776 = vst [vmem:[#allocation44_spill] sm:$0xff] %v10940_v62 }
 0x236   : > { %v1898_v25 = vpop.f32.mrf.mxu2 }
 0x237   : > { %v2029_v21 = vadd.f32 %v1898_v25, %v1239_v28  ;;  %v2839_v50 = vpop.f32.mrf.mxu3  ;;  %v2541_v28 = vshrl.u32 %v9910_v41, 16 }
 0x238   : > { %v1241_v23 = vpop.f32.mrf.mxu1 }
 0x239   : > { %v2970_v46 = vadd.f32 %v2839_v50, %v2029_v21  ;;  %v1242_v27 = vadd.f32 %v1241_v23, %v10604_v48  ;;  %v2545_v48 = vshll.u32 %v9911_v13, 16  ;;  %v9951_v21 = vld [vmem:[%s10156_s23 + $0xe4] sm:$0xff] }
 0x23a   : > { %v10011_v50 = vld [vmem:[%s13717_s1 + $0x100] sm:$0xff] }
 0x23b   : > { %v3573_v42 = vpop.f32.mrf.mxu0  ;;  %8765 = vmatmul.msk.bf16.gmra.mxu1 %vm753_vm1, %v10054_v61  ;;  %8969 = vmatmul.msk.bf16.gmra.mxu2 %vm753_vm1, %v1654_v10  ;;  %v10958_v61 = vadd.f32 %v3570_v35, %v2970_v46  ;;  %v1655_v35 = vrot.slane %v9871_v59, 1  ;;  %v2543_v10 = vor.u32 %v2541_v28, %v2539_v8  ;;  %v2547_v46 = vrot.slane %v2545_v48, 1 }
 0x23c   : > { %9173 = vmatmul.msk.bf16.gmra.mxu3 %vm753_vm1, %v2540_v3  ;;  %6170 = vmatpush.bf16.msra.mxu0 %v10011_v50  ;;  %v3327_v3 = vrot.slane %v9951_v21, 1  ;;  %v2549_v50 = vshrl.u32 %v9911_v13, 16 }
 0x23d   : > { %13777 = vst [vmem:[#allocation45_spill] sm:$0xff] %v10958_v61 }
 0x23e   : > { %9377 = vmatmul.msk.bf16.gmra.mxu0 %vm753_vm1, %v3326_v34  ;;  %v1901_v4 = vpop.f32.mrf.mxu2  ;;  %v3328_v51 = vsel %vm1601_vm2, %v3325_v55, %v3327_v3  ;;  %v9872_v55 = vld [vmem:[%s10156_s23 + $0xe0] sm:$0xff] }
 0x23f   : > { %v2030_v54 = vadd.f32 %v1901_v4, %v1242_v27  ;;  %v2842_v36 = vpop.f32.mrf.mxu3  ;;  %v1656_v4 = vsel %vm1601_vm2, %v1653_v7, %v1655_v35  ;;  %v9912_v7 = vld [vmem:[%s10156_s23 + $0xec] sm:$0xff] }
 0x240   : > { %v1243_v63 = vpop.f32.mrf.mxu1 }
 0x241   : > { %v2971_v31 = vadd.f32 %v2842_v36, %v2030_v54  ;;  %v1244_v23 = vadd.f32 %v1243_v63, %v10627_v43  ;;  %v2548_v36 = vsel %vm441_vm0, %v2543_v10, %v2547_v46  ;;  %v10055_v43 = vld [vmem:[%s10156_s23 + $0xd0] sm:$0xff] }
 0x243   : > { %v3575_v25 = vpop.f32.mrf.mxu0  ;;  %v10969_v34 = vadd.f32 %v3573_v42, %v2971_v31 }
 0x245   : > { %13778 = vst [vmem:[#allocation46_spill] sm:$0xff] %v10969_v34 }
 0x246   : > { %v1903_v41 = vpop.f32.mrf.mxu2 }
 0x247   : > { %v2031_v30 = vadd.f32 %v1903_v41, %v1244_v23  ;;  %v2844_v27 = vpop.f32.mrf.mxu3  ;;  %v2553_v23 = vshll.u32 %v9912_v7, 16  ;;  %v9952_v41 = vld [vmem:[%s10156_s23 + $0xec] sm:$0xff] }
 0x248   : > { %v1246_v15 = vpop.f32.mrf.mxu1 }
 0x249   : > { %v2972_v54 = vadd.f32 %v2844_v27, %v2031_v30  ;;  %v1247_v8 = vadd.f32 %v1246_v15, %v10396_v17  ;;  %v1657_v30 = vrot.slane %v9872_v55, 1  ;;  %v2551_v17 = vor.u32 %v2549_v50, %v2547_v46 }
 0x24a   : > { %v2555_v15 = vrot.slane %v2553_v23, 1 }
 0x24b   : > { %v3578_v59 = vpop.f32.mrf.mxu0  ;;  %8766 = vmatmul.msk.bf16.gmra.mxu1 %vm753_vm1, %v10055_v43  ;;  %8970 = vmatmul.msk.bf16.gmra.mxu2 %vm753_vm1, %v1656_v4  ;;  %v10981_v63 = vadd.f32 %v3575_v25, %v2972_v54 }
 0x24c   : > { %9174 = vmatmul.msk.bf16.gmra.mxu3 %vm753_vm1, %v2548_v36  ;;  %v3329_v36 = vrot.slane %v9952_v41, 1  ;;  %v2557_v41 = vshrl.u32 %v9912_v7, 16 }
 0x24d   : > { %13779 = vst [vmem:[#allocation47_spill] sm:$0xff] %v10981_v63  ;;  %v10063_v63 = vld [vmem:[%s10156_s23 + $0x110] sm:$0xff] }
 0x24e   : > { %9378 = vmatmul.msk.bf16.gmra.mxu0 %vm753_vm1, %v3328_v51  ;;  %v1906_v42 = vpop.f32.mrf.mxu2 }
 0x24f   : > { %v2032_v31 = vadd.f32 %v1906_v42, %v1247_v8  ;;  %v2847_v28 = vpop.f32.mrf.mxu3  ;;  %v1658_v8 = vsel %vm1601_vm2, %v1655_v35, %v1657_v30  ;;  %v2556_v42 = vsel %vm441_vm0, %v2551_v17, %v2555_v15  ;;  %v9913_v35 = vld [vmem:[%s10156_s23 + $0xf4] sm:$0xff] }
 0x250   : > { %v1248_v48 = vpop.f32.mrf.mxu1 }
 0x251   : > { %v2973_v21 = vadd.f32 %v2847_v28, %v2032_v31  ;;  %v1249_v27 = vadd.f32 %v1248_v48, %v10410_v38  ;;  %v3330_v28 = vsel %vm1601_vm2, %v3327_v3, %v3329_v36  ;;  %v10056_v38 = vld [vmem:[%s10156_s23 + $0xd8] sm:$0xff]  ;;  %v9873_v3 = vld [vmem:[%s10156_s23 + $0xe8] sm:$0xff] }
 0x253   : > { %v3580_v10 = vpop.f32.mrf.mxu0  ;;  %v10986_v25 = vadd.f32 %v3578_v59, %v2973_v21 }
 0x255   : > { %13780 = vst [vmem:[#allocation48_spill] sm:$0xff] %v10986_v25 }
 0x256   : > { %v1908_v4 = vpop.f32.mrf.mxu2 }
 0x257   : > { %v2033_v54 = vadd.f32 %v1908_v4, %v1249_v27  ;;  %v2849_v51 = vpop.f32.mrf.mxu3  ;;  %v2561_v27 = vshll.u32 %v9913_v35, 16  ;;  %v9953_v4 = vld [vmem:[%s10156_s23 + $0xf4] sm:$0xff] }
 0x258   : > { %v1251_v43 = vpop.f32.mrf.mxu1 }
 0x259   : > { %v2974_v13 = vadd.f32 %v2849_v51, %v2033_v54  ;;  %v1252_v46 = vadd.f32 %v1251_v43, %v10428_v49  ;;  %v1659_v54 = vrot.slane %v9873_v3, 1  ;;  %v13782_v51 = vld [vmem:[#allocation8_spill] sm:$0xff]  ;;  %v2559_v49 = vor.u32 %v2557_v41, %v2555_v15  ;;  %v13784_v15 = vld [vmem:[#allocation10_spill] sm:$0xff] }
 0x25a   : > { %v2563_v43 = vrot.slane %v2561_v27, 1 }
 0x25b   : > { %v3583_v31 = vpop.f32.mrf.mxu0  ;;  %8767 = vmatmul.msk.bf16.gmra.mxu1 %vm753_vm1, %v10056_v38  ;;  %8971 = vmatmul.msk.bf16.gmra.mxu2 %vm753_vm1, %v1658_v8  ;;  %v10998_v21 = vadd.f32 %v3580_v10, %v2974_v13 }
 0x25c   : > { %9175 = vmatmul.msk.bf16.gmra.mxu3 %vm753_vm1, %v2556_v42 }
 0x25d   : > { %13781 = vst [vmem:[#allocation49_spill] sm:$0xff] %v10998_v21 }
 0x25e   : > { %9379 = vmatmul.msk.bf16.gmra.mxu0 %vm753_vm1, %v3330_v28  ;;  %v1911_v59 = vpop.f32.mrf.mxu2  ;;  %v3331_v28 = vrot.slane %v9953_v4, 1 }
 0x25f   : > { %v2034_v48 = vadd.f32 %v1911_v59, %v1252_v46  ;;  %v2852_v55 = vpop.f32.mrf.mxu3  ;;  %v1660_v59 = vsel %vm1601_vm2, %v1657_v30, %v1659_v54  ;;  %v9914_v30 = vld [vmem:[%s10156_s23 + $0xfc] sm:$0xff] }
 0x260   : > { %v1253_v50 = vpop.f32.mrf.mxu1  ;;  %v3332_v3 = vsel %vm1601_vm2, %v3329_v36, %v3331_v28  ;;  %v9874_v36 = vld [vmem:[%s10156_s23 + $0xf0] sm:$0xff] }
 0x261   : > { %v2975_v23 = vadd.f32 %v2852_v55, %v2034_v48  ;;  %v1254_v8 = vadd.f32 %v1253_v50, %v13782_v51  ;;  %v2564_v48 = vsel %vm441_vm0, %v2559_v49, %v2563_v43  ;;  %v10057_v50 = vld [vmem:[%s10156_s23 + $0xe0] sm:$0xff]  ;;  %v2565_v49 = vshrl.u32 %v9913_v35, 16 }
 0x263   : > { %v3585_v17 = vpop.f32.mrf.mxu0  ;;  %v11003_v10 = vadd.f32 %v3583_v31, %v2975_v23 }
 0x265   : > { %13783 = vst [vmem:[#allocation8_spill] sm:$0xff] %v11003_v10 }
 0x266   : > { %v1913_v42 = vpop.f32.mrf.mxu2 }
 0x267   : > { %v2035_v38 = vadd.f32 %v1913_v42, %v1254_v8  ;;  %v2854_v46 = vpop.f32.mrf.mxu3  ;;  %v2569_v42 = vshll.u32 %v9914_v30, 16 }
 0x268   : > { %v1256_v13 = vpop.f32.mrf.mxu1 }
 0x269   : > { %v2976_v7 = vadd.f32 %v2854_v46, %v2035_v38  ;;  %v1257_v31 = vadd.f32 %v1256_v13, %v13784_v15  ;;  %v9954_v46 = vld [vmem:[%s10156_s23 + $0xfc] sm:$0xff]  ;;  %v2567_v13 = vor.u32 %v2565_v49, %v2563_v43  ;;  %v2571_v15 = vrot.slane %v2569_v42, 1  ;;  %v13788_v43 = vld [vmem:[#allocation14_spill] sm:$0xff] }
 0x26a   : > { %v3333_v10 = vrot.slane %v9954_v46, 1 }
 0x26b   : > { %v3588_v55 = vpop.f32.mrf.mxu0  ;;  %8768 = vmatmul.msk.bf16.gmra.mxu1 %vm753_vm1, %v10057_v50  ;;  %8972 = vmatmul.msk.bf16.gmra.mxu2 %vm753_vm1, %v1660_v59  ;;  %v11015_v4 = vadd.f32 %v3585_v17, %v2976_v7  ;;  %v1661_v59 = vrot.slane %v9874_v36, 1 }
 0x26c   : > { %9176 = vmatmul.msk.bf16.gmra.mxu3 %vm753_vm1, %v2564_v48  ;;  %v13786_v48 = vld [vmem:[#allocation12_spill] sm:$0xff]  ;;  %v3334_v36 = vsel %vm1601_vm2, %v3331_v28, %v3333_v10  ;;  %v9875_v28 = vld [vmem:[%s10156_s23 + $0xf8] sm:$0xff] }
 0x26d   : > { %13785 = vst [vmem:[#allocation10_spill] sm:$0xff] %v11015_v4 }
 0x26e   : > { %9380 = vmatmul.msk.bf16.gmra.mxu0 %vm753_vm1, %v3332_v3  ;;  %v1916_v23 = vpop.f32.mrf.mxu2 }
 0x26f   : > { %v2036_v41 = vadd.f32 %v1916_v23, %v1257_v31  ;;  %v2857_v27 = vpop.f32.mrf.mxu3 }
 0x270   : > { %v1258_v51 = vpop.f32.mrf.mxu1 }
 0x271   : > { %v2977_v8 = vadd.f32 %v2857_v27, %v2036_v41  ;;  %v1259_v50 = vadd.f32 %v1258_v51, %v13786_v48  ;;  %v1662_v41 = vsel %vm1601_vm2, %v1659_v54, %v1661_v59  ;;  %v2572_v27 = vsel %vm441_vm0, %v2567_v13, %v2571_v15  ;;  %v10058_v51 = vld [vmem:[%s10156_s23 + $0xe8] sm:$0xff] }
 0x272   : > { %v9915_v54 = vld [vmem:[%s10156_s23 + $0x104] sm:$0xff]  ;;  %v2573_v13 = vshrl.u32 %v9914_v30, 16 }
 0x273   : > { %v3590_v38 = vpop.f32.mrf.mxu0  ;;  %v11020_v17 = vadd.f32 %v3588_v55, %v2977_v8 }
 0x275   : > { %13787 = vst [vmem:[#allocation12_spill] sm:$0xff] %v11020_v17 }
 0x276   : > { %v1918_v3 = vpop.f32.mrf.mxu2 }
 0x277   : > { %v2037_v31 = vadd.f32 %v1918_v3, %v1259_v50  ;;  %v2859_v23 = vpop.f32.mrf.mxu3  ;;  %v2577_v3 = vshll.u32 %v9915_v54, 16 }
 0x278   : > { %v1261_v7 = vpop.f32.mrf.mxu1 }
 0x279   : > { %v2978_v35 = vadd.f32 %v2859_v23, %v2037_v31  ;;  %v1262_v55 = vadd.f32 %v1261_v7, %v13788_v43  ;;  %v9955_v23 = vld [vmem:[%s10156_s23 + $0x104] sm:$0xff]  ;;  %v2575_v7 = vor.u32 %v2573_v13, %v2571_v15  ;;  %v2579_v43 = vrot.slane %v2577_v3, 1 }
 0x27a   : > { %v3335_v17 = vrot.slane %v9955_v23, 1 }
 0x27b   : > { %v3593_v4 = vpop.f32.mrf.mxu0  ;;  %8769 = vmatmul.msk.bf16.gmra.mxu1 %vm753_vm1, %v10058_v51  ;;  %8973 = vmatmul.msk.bf16.gmra.mxu2 %vm753_vm1, %v1662_v41  ;;  %v11032_v46 = vadd.f32 %v3590_v38, %v2978_v35  ;;  %v1663_v41 = vrot.slane %v9875_v28, 1 }
 0x27c   : > { %9177 = vmatmul.msk.bf16.gmra.mxu3 %vm753_vm1, %v2572_v27  ;;  %v13790_v27 = vld [vmem:[#allocation16_spill] sm:$0xff]  ;;  %v3336_v28 = vsel %vm1601_vm2, %v3333_v10, %v3335_v17 }
 0x27d   : > { %13789 = vst [vmem:[#allocation14_spill] sm:$0xff] %v11032_v46  ;;  %v9876_v10 = vld [vmem:[%s10156_s23 + $0x100] sm:$0xff] }
 0x27e   : > { %9381 = vmatmul.msk.bf16.gmra.mxu0 %vm753_vm1, %v3334_v36  ;;  %v1921_v8 = vpop.f32.mrf.mxu2 }
 0x27f   : > { %v2038_v49 = vadd.f32 %v1921_v8, %v1262_v55  ;;  %v2862_v42 = vpop.f32.mrf.mxu3 }
 0x280   : > { %v1263_v48 = vpop.f32.mrf.mxu1 }
 0x281   : > { %v2979_v50 = vadd.f32 %v2862_v42, %v2038_v49  ;;  %v1264_v51 = vadd.f32 %v1263_v48, %v13790_v27  ;;  %v1664_v49 = vsel %vm1601_vm2, %v1661_v59, %v1663_v41  ;;  %v2580_v42 = vsel %vm441_vm0, %v2575_v7, %v2579_v43  ;;  %v10059_v48 = vld [vmem:[%s10156_s23 + $0xf0] sm:$0xff] }
 0x282   : > { %v9916_v59 = vld [vmem:[%s10156_s23 + $0x10c] sm:$0xff]  ;;  %v2581_v7 = vshrl.u32 %v9915_v54, 16 }
 0x283   : > { %v3595_v31 = vpop.f32.mrf.mxu0  ;;  %v11037_v38 = vadd.f32 %v3593_v4, %v2979_v50  ;;  %v13792_v4 = vld [vmem:[#allocation18_spill] sm:$0xff] }
 0x285   : > { %13791 = vst [vmem:[#allocation16_spill] sm:$0xff] %v11037_v38 }
 0x286   : > { %v1923_v36 = vpop.f32.mrf.mxu2 }
 0x287   : > { %v2039_v55 = vadd.f32 %v1923_v36, %v1264_v51  ;;  %v2864_v8 = vpop.f32.mrf.mxu3  ;;  %v2585_v36 = vshll.u32 %v9916_v59, 16 }
 0x288   : > { %v1266_v35 = vpop.f32.mrf.mxu1 }
 0x289   : > { %v2980_v30 = vadd.f32 %v2864_v8, %v2039_v55  ;;  %v1267_v15 = vadd.f32 %v1266_v35, %v13792_v4  ;;  %v9956_v8 = vld [vmem:[%s10156_s23 + $0x10c] sm:$0xff]  ;;  %v2583_v35 = vor.u32 %v2581_v7, %v2579_v43  ;;  %v2587_v4 = vrot.slane %v2585_v36, 1 }
 0x28a   : > { %v3337_v38 = vrot.slane %v9956_v8, 1 }
 0x28b   : > { %v3598_v46 = vpop.f32.mrf.mxu0  ;;  %8770 = vmatmul.msk.bf16.gmra.mxu1 %vm753_vm1, %v10059_v48  ;;  %8974 = vmatmul.msk.bf16.gmra.mxu2 %vm753_vm1, %v1664_v49  ;;  %v11049_v23 = vadd.f32 %v3595_v31, %v2980_v30  ;;  %v1665_v49 = vrot.slane %v9876_v10, 1 }
 0x28c   : > { %9178 = vmatmul.msk.bf16.gmra.mxu3 %vm753_vm1, %v2580_v42  ;;  %v13794_v42 = vld [vmem:[#allocation20_spill] sm:$0xff]  ;;  %v3338_v10 = vsel %vm1601_vm2, %v3335_v17, %v3337_v38  ;;  %v9877_v17 = vld [vmem:[%s10156_s23 + $0x108] sm:$0xff] }
 0x28d   : > { %13793 = vst [vmem:[#allocation18_spill] sm:$0xff] %v11049_v23 }
 0x28e   : > { %9382 = vmatmul.msk.bf16.gmra.mxu0 %vm753_vm1, %v3336_v28  ;;  %v1926_v50 = vpop.f32.mrf.mxu2 }
 0x28f   : > { %v2040_v13 = vadd.f32 %v1926_v50, %v1267_v15  ;;  %v2867_v3 = vpop.f32.mrf.mxu3 }
 0x290   : > { %v1268_v27 = vpop.f32.mrf.mxu1 }
 0x291   : > { %v2981_v51 = vadd.f32 %v2867_v3, %v2040_v13  ;;  %v1269_v48 = vadd.f32 %v1268_v27, %v13794_v42  ;;  %v1666_v13 = vsel %vm1601_vm2, %v1663_v41, %v1665_v49  ;;  %v2588_v3 = vsel %vm441_vm0, %v2583_v35, %v2587_v4  ;;  %v10060_v27 = vld [vmem:[%s10156_s23 + $0xf8] sm:$0xff] }
 0x292   : > { %v9917_v41 = vld [vmem:[%s10156_s23 + $0x114] sm:$0xff]  ;;  %v2589_v35 = vshrl.u32 %v9916_v59, 16 }
 0x293   : > { %v3600_v55 = vpop.f32.mrf.mxu0  ;;  %v11054_v31 = vadd.f32 %v3598_v46, %v2981_v51  ;;  %v13796_v46 = vld [vmem:[#allocation22_spill] sm:$0xff] }
 0x295   : > { %13795 = vst [vmem:[#allocation20_spill] sm:$0xff] %v11054_v31 }
 0x296   : > { %v1928_v28 = vpop.f32.mrf.mxu2 }
 0x297   : > { %v2041_v15 = vadd.f32 %v1928_v28, %v1269_v48  ;;  %v2869_v50 = vpop.f32.mrf.mxu3  ;;  %v2593_v28 = vshll.u32 %v9917_v41, 16 }
 0x298   : > { %v1271_v30 = vpop.f32.mrf.mxu1 }
 0x299   : > { %v2982_v54 = vadd.f32 %v2869_v50, %v2041_v15  ;;  %v1272_v43 = vadd.f32 %v1271_v30, %v13796_v46  ;;  %v9957_v50 = vld [vmem:[%s10156_s23 + $0x114] sm:$0xff]  ;;  %v2591_v30 = vor.u32 %v2589_v35, %v2587_v4  ;;  %v2595_v46 = vrot.slane %v2593_v28, 1 }
 0x29a   : > { %v3339_v31 = vrot.slane %v9957_v50, 1 }
 0x29b   : > { %v3603_v23 = vpop.f32.mrf.mxu0  ;;  %8771 = vmatmul.msk.bf16.gmra.mxu1 %vm753_vm1, %v10060_v27  ;;  %8975 = vmatmul.msk.bf16.gmra.mxu2 %vm753_vm1, %v1666_v13  ;;  %v11066_v8 = vadd.f32 %v3600_v55, %v2982_v54  ;;  %v1667_v13 = vrot.slane %v9877_v17, 1 }
 0x29c   : > { %9179 = vmatmul.msk.bf16.gmra.mxu3 %vm753_vm1, %v2588_v3  ;;  %v13798_v3 = vld [vmem:[#allocation24_spill] sm:$0xff]  ;;  %v3340_v17 = vsel %vm1601_vm2, %v3337_v38, %v3339_v31 }
 0x29d   : > { %13797 = vst [vmem:[#allocation22_spill] sm:$0xff] %v11066_v8 }
 0x29e   : > { %9383 = vmatmul.msk.bf16.gmra.mxu0 %vm753_vm1, %v3338_v10  ;;  %v1931_v51 = vpop.f32.mrf.mxu2 }
 0x29f   : > { %v2042_v7 = vadd.f32 %v1931_v51, %v1272_v43  ;;  %v2872_v36 = vpop.f32.mrf.mxu3 }
 0x2a0   : > { %v1273_v42 = vpop.f32.mrf.mxu1 }
 0x2a1   : > { %v2983_v48 = vadd.f32 %v2872_v36, %v2042_v7  ;;  %v1274_v27 = vadd.f32 %v1273_v42, %v13798_v3  ;;  %v1668_v7 = vsel %vm1601_vm2, %v1665_v49, %v1667_v13  ;;  %v2596_v36 = vsel %vm441_vm0, %v2591_v30, %v2595_v46  ;;  %v10061_v42 = vld [vmem:[%s10156_s23 + $0x100] sm:$0xff]  ;;  %v9878_v3 = vld [vmem:[%s10156_s23 + $0x110] sm:$0xff] }
 0x2a2   : > { %v9918_v49 = vld [vmem:[%s10156_s23 + $0x11c] sm:$0xff]  ;;  %v2597_v30 = vshrl.u32 %v9917_v41, 16 }
 0x2a3   : > { %v3605_v15 = vpop.f32.mrf.mxu0  ;;  %v11071_v55 = vadd.f32 %v3603_v23, %v2983_v48  ;;  %v13800_v23 = vld [vmem:[#allocation26_spill] sm:$0xff] }
 0x2a5   : > { %13799 = vst [vmem:[#allocation24_spill] sm:$0xff] %v11071_v55 }
 0x2a6   : > { %v1933_v10 = vpop.f32.mrf.mxu2 }
 0x2a7   : > { %v2043_v43 = vadd.f32 %v1933_v10, %v1274_v27  ;;  %v2874_v51 = vpop.f32.mrf.mxu3  ;;  %v2601_v10 = vshll.u32 %v9918_v49, 16 }
 0x2a8   : > { %v1276_v54 = vpop.f32.mrf.mxu1 }
 0x2a9   : > { %v2984_v59 = vadd.f32 %v2874_v51, %v2043_v43  ;;  %v1277_v4 = vadd.f32 %v1276_v54, %v13800_v23  ;;  %v9958_v51 = vld [vmem:[%s10156_s23 + $0x11c] sm:$0xff]  ;;  %v2599_v54 = vor.u32 %v2597_v30, %v2595_v46  ;;  %v2603_v23 = vrot.slane %v2601_v10, 1 }
 0x2aa   : > { %v3341_v55 = vrot.slane %v9958_v51, 1 }
 0x2ab   : > { %v3608_v8 = vpop.f32.mrf.mxu0  ;;  %8772 = vmatmul.msk.bf16.gmra.mxu1 %vm753_vm1, %v10061_v42  ;;  %8976 = vmatmul.msk.bf16.gmra.mxu2 %vm753_vm1, %v1668_v7  ;;  %v11084_v27 = vadd.f32 %v3605_v15, %v2984_v59  ;;  %v1669_v7 = vrot.slane %v9878_v3, 1  ;;  %v2604_v41 = vsel %vm441_vm0, %v2599_v54, %v2603_v23  ;;  %v10062_v3 = vld [vmem:[%s10156_s23 + $0x108] sm:$0xff] }
 0x2ac   : > { %9180 = vmatmul.msk.bf16.gmra.mxu3 %vm753_vm1, %v2596_v36  ;;  %v13802_v36 = vld [vmem:[#allocation28_spill] sm:$0xff] }
 0x2ad   : > { %13801 = vst [vmem:[#allocation26_spill] sm:$0xff] %v11084_v27  ;;  %v1670_v15 = vsel %vm1601_vm2, %v1667_v13, %v1669_v7  ;;  %v9919_v13 = vld [vmem:[%s10156_s23 + $0x124] sm:$0xff]  ;;  %v1408_v27 = vld [vmem:[%s10156_s23 + $0x120] sm:$0x1] }
 0x2ae   : > { %9384 = vmatmul.msk.bf16.gmra.mxu0 %vm753_vm1, %v3340_v17  ;;  %v1936_v48 = vpop.f32.mrf.mxu2 }
 0x2af   : > { %v2044_v35 = vadd.f32 %v1936_v48, %v1277_v4  ;;  %v2877_v28 = vpop.f32.mrf.mxu3 }
 0x2b0   : > { %v1278_v50 = vpop.f32.mrf.mxu1 }
 0x2b1   : > { %v2985_v38 = vadd.f32 %v2877_v28, %v2044_v35  ;;  %v1279_v42 = vadd.f32 %v1278_v50, %v13802_v36  ;;  %v3342_v28 = vsel %vm1601_vm2, %v3339_v31, %v3341_v55  ;;  %v13804_v50 = vld [vmem:[#allocation30_spill] sm:$0xff]  ;;  %v9879_v31 = vld [vmem:[%s10156_s23 + $0x118] sm:$0xff] }
 0x2b3   : > { %v3610_v43 = vpop.f32.mrf.mxu0  ;;  %v11094_v46 = vadd.f32 %v3608_v8, %v2985_v38  ;;  %v9959_v8 = vld [vmem:[%s10156_s23 + $0x124] sm:$0xff]  ;;  %v1671_v38 = vrot.slane %v9879_v31, 1 }
 0x2b5   : > { %13803 = vst [vmem:[#allocation28_spill] sm:$0xff] %v11094_v46 }
 0x2b6   : > { %v1938_v17 = vpop.f32.mrf.mxu2 }
 0x2b7   : > { %v2045_v4 = vadd.f32 %v1938_v17, %v1279_v42  ;;  %v2879_v48 = vpop.f32.mrf.mxu3  ;;  %v2605_v17 = vshrl.u32 %v9918_v49, 16 }
 0x2b8   : > { %v1281_v21 = vpop.f32.mrf.mxu1 }
 0x2b9   : > { %v2986_v59 = vadd.f32 %v2879_v48, %v2045_v4  ;;  %v1282_v30 = vadd.f32 %v1281_v21, %v13804_v50  ;;  %v2609_v4 = vshll.u32 %v9919_v13, 16  ;;  %v2607_v21 = vor.u32 %v2605_v17, %v2603_v23  ;;  %v3081_v23 = vld [vmem:[%s10156_s23 + $0x12c] sm:$0x1]  ;;  %v13807_v17 = vld [vmem:[#allocation34_spill] sm:$0xff] }
 0x2ba   : > { %v3343_v50 = vrot.slane %v9959_v8, 1 }
 0x2bb   : > { %v3613_v35 = vpop.f32.mrf.mxu0  ;;  %8773 = vmatmul.msk.bf16.gmra.mxu1 %vm753_vm1, %v10062_v3  ;;  %8977 = vmatmul.msk.bf16.gmra.mxu2 %vm753_vm1, %v1670_v15  ;;  %v13805_v15 = vld [vmem:[#allocation32_spill] sm:$0xff] }
 0x2bc   : > { %9181 = vmatmul.msk.bf16.gmra.mxu3 %vm753_vm1, %v2604_v41  ;;  %v3344_v31 = vsel %vm1601_vm2, %v3341_v55, %v3343_v50 }
 0x2be   : > { %9385 = vmatmul.msk.bf16.gmra.mxu0 %vm753_vm1, %v3342_v28  ;;  %v1941_v10 = vpop.f32.mrf.mxu2  ;;  %v2611_v28 = vrot.slane %v2609_v4, 1 }
 0x2bf   : > { %v2046_v51 = vadd.f32 %v1941_v10, %v1282_v30  ;;  %v2882_v36 = vpop.f32.mrf.mxu3 }
 0x2c0   : > { %v1283_v42 = vpop.f32.mrf.mxu1 }
 0x2c1   : > { %v2987_v54 = vadd.f32 %v2882_v36, %v2046_v51  ;;  %v1284_v41 = vadd.f32 %v1283_v42, %v13805_v15  ;;  %v1672_v51 = vsel %vm1601_vm2, %v1669_v7, %v1671_v38  ;;  %v2612_v36 = vsel %vm441_vm0, %v2607_v21, %v2611_v28  ;;  %vm13598_vm0 = vmand %vm7062_vm14, %vm7063_vm15 }
 0x2c2   : > { %v11115_v42 = vadd.f32 %v3610_v43, %v2986_v59  ;;  %v1563_v7 = vunpack.c.l.b16 %v1408_v27  ;;  %v3236_v15 = vunpack.c.l.b16 %v3081_v23  ;;  %v2613_v59 = vshrl.u32 %v9919_v13, 16  ;;  %v13810_v23 = vld [vmem:[#allocation36_spill] sm:$0xff] }
 0x2c3   : > { %v11101_v48 = vpop.f32.mrf.mxu0 }
 0x2c4   : > { %13806 = vst [vmem:[#allocation30_spill] sm:$0xff] %v11115_v42  ;;  %v11124_v43 = vpack.c.b16 %v3236_v15, %v3236_v15  ;;  %v2615_v42 = vor.u32 %v2613_v59, %v2611_v28  ;;  %v10065_v28 = vld [vmem:[%s10156_s23 + $0x14] sm:$0xff] }
 0x2c5   : > { %v3759_v59 = vshrl.u32 %v10065_v28, 16 }
 0x2c6   : > { %v1943_v3 = vpop.f32.mrf.mxu2  ;;  %13808 = vst [vmem:[#allocation32_spill] sm:$0xff] %v11124_v43 }
 0x2c7   : > { %v2047_v30 = vadd.f32 %v1943_v3, %v1284_v41  ;;  %v2884_v10 = vpop.f32.mrf.mxu3  ;;  %v1600_v3 = vpack.c.b16 %v1563_v7, %v1563_v7  ;;  %v3345_v7 = vrot.slane %v11124_v43, 1  ;;  %v3761_v61 = vrot.slane %v3759_v59, 1 }
 0x2c8   : > { %v1286_v46 = vpop.f32.mrf.mxu1 }
 0x2c9   : > { %v2988_v49 = vadd.f32 %v2884_v10, %v2047_v30  ;;  %v1287_v4 = vadd.f32 %v1286_v46, %v13807_v17  ;;  %v4475_v30 = vld [vmem:[%s10156_s23 + $0x18] sm:$0xe]  ;;  %v4476_v10 = vld [vmem:[%s10156_s23 + $0x1c] sm:$0xf]  ;;  %v1673_v27 = vrot.slane %v1600_v3, 1 }
 0x2ca   : > { %v4631_v46 = vunpack.c.l.b16 %v4476_v10  ;;  %v13811_v10 = vld [vmem:[#allocation5_spill] sm:$0xff] }
 0x2cb   : > { %v11108_v25 = vpop.f32.mrf.mxu0  ;;  %8774 = vmatmul.msk.bf16.gmra.mxu1 %vm753_vm1, %v10063_v63  ;;  %8978 = vmatmul.msk.bf16.gmra.mxu2 %vm753_vm1, %v1672_v51  ;;  %v1674_v15 = vsel %vm1601_vm2, %v1671_v38, %v1673_v27  ;;  %v5940_v38 = vld [vmem:[%s10156_s23 + $0x18] sm:$0xc]  ;;  %v3762_v27 = vshll.u32 %v10065_v28, 16 }
 0x2cc   : > { %9182 = vmatmul.msk.bf16.gmra.mxu3 %vm753_vm1, %v2612_v36  ;;  %v4630_v36 = vunpack.c.l.b16 %v4475_v30  ;;  %v11134_v30 = vld [vmem:[%s10156_s23 + $0x20] sm:$0xff] }
 0x2cd   : > { %v3764_v62 = vrot.slane %v3762_v27, 2 }
 0x2ce   : > { %9386 = vmatmul.msk.bf16.gmra.mxu0 %vm753_vm1, %v3344_v31  ;;  %v1946_v8 = vpop.f32.mrf.mxu2  ;;  %v11126_v31 = vadd.f32 %v3613_v35, %v2987_v54  ;;  %v4703_v13 = vpack.c.b16 %v4631_v46, %v4630_v36  ;;  %v3346_v54 = vsel %vm1601_vm2, %v3343_v50, %v3345_v7  ;;  %v13813_v50 = vld [vmem:[#allocation4_spill] sm:$0xff] }
 0x2cf   : > { %v2048_v55 = vadd.f32 %v1946_v8, %v1287_v4  ;;  %v2887_v41 = vpop.f32.mrf.mxu3  ;;  %v3765_v24 = vor.u32 %v3764_v62, %v3761_v61 }
 0x2d0   : > { %v1288_v21 = vpop.f32.mrf.mxu1  ;;  %13809 = vst [vmem:[#allocation34_spill] sm:$0xff] %v11126_v31  ;;  %v5216_v36 = vshrl.u32 %v4703_v13, 16  ;;  %v4740_v19 = vrot.slane %v4703_v13, 1 }
 0x2d1   : > { %v2989_v63 = vadd.f32 %v2887_v41, %v2048_v55  ;;  %v1289_v17 = vadd.f32 %v1288_v21, %v13810_v23  ;;  %v10064_v21 = vld [vmem:[%s10156_s23 + $0x118] sm:$0xff]  ;;  %v3751_v23 = vshrl.u32 %v13811_v10, 16 }
 0x2d3   : > { %v11122_v51 = vpop.f32.mrf.mxu0  ;;  %v3753_v31 = vrot.slane %v3751_v23, 1  ;;  %v13815_v23 = vld [vmem:[#allocation6_spill] sm:$0xff] }
 0x2d6   : > { %v1948_v4 = vpop.f32.mrf.mxu2 }
 0x2d7   : > { %v2049_v8 = vadd.f32 %v1948_v4, %v1289_v17  ;;  %v2889_v55 = vpop.f32.mrf.mxu3  ;;  %v3754_v17 = vshll.u32 %v13811_v10, 16  ;;  %v11148_v4 = vadd.f32 %v11101_v48, %v2988_v49  ;;  %v5953_v10 = vunpack.c.l.b16 %v5940_v38 }
 0x2d8   : > { %v1291_v41 = vpop.f32.mrf.mxu1  ;;  %v5218_v48 = vrot.slane %v5216_v36, 1  ;;  %v4741_v38 = vrot.slane %v11134_v30, 1 }
 0x2d9   : > { %v11131_v3 = vadd.f32 %v2889_v55, %v2049_v8  ;;  %13812 = vst [vmem:[#allocation36_spill] sm:$0xff] %v11148_v4  ;;  %v1292_v7 = vadd.f32 %v1291_v41, %v13813_v50  ;;  %v5219_v8 = vshll.u32 %v4703_v13, 16  ;;  %v5224_v55 = vshrl.u32 %v11134_v30, 16  ;;  %v11168_v13 = vld [vmem:[%s10156_s23 + $0x28] sm:$0xff] }
 0x2da   : > { %v3756_v34 = vrot.slane %v3754_v17, 2  ;;  %v5955_v0 = vpack.c.b16 %v4631_v46, %v5953_v10  ;;  %v5233_v10 = vshrl.u32 %v11168_v13, 16 }
 0x2db   : > { %v11136_v35 = vpop.f32.mrf.mxu0  ;;  %8775 = vmatmul.msk.bf16.gmra.mxu1 %vm753_vm1, %v10064_v21  ;;  %8979 = vmatmul.msk.bf16.gmra.mxu2 %vm753_vm1, %v1674_v15  ;;  %v5227_v15 = vshll.u32 %v11134_v30, 16  ;;  %v5221_v4 = vrot.slane %v5219_v8, 2  ;;  %v5226_v41 = vrot.slane %v5224_v55, 1  ;;  %v5959_v8 = vrot.slane %v11134_v30, 2  ;;  %v10066_v30 = vld [vmem:[%s10156_s23 + $0x1c] sm:$0xff] }
 0x2dc   : > { %9183 = vmatmul.msk.bf16.gmra.mxu3 %vm753_vm1, %v2615_v42  ;;  %v3757_v14 = vor.u32 %v3756_v34, %v3753_v31  ;;  %v5958_v36 = vrot.slane %v5955_v0, 2  ;;  %v3771_v55 = vshll.u32 %v10066_v30, 16 }
 0x2dd   : > { %v5229_v50 = vrot.slane %v5227_v15, 2  ;;  %v5222_v59 = vor.u32 %v5221_v4, %v5218_v48  ;;  %v13817_v15 = vld [vmem:[#allocation7_spill] sm:$0xff] }
 0x2de   : > { %9387 = vmatmul.msk.bf16.gmra.mxu0 %vm753_vm1, %v3346_v54  ;;  %v1951_v21 = vpop.f32.mrf.mxu2  ;;  %v3766_v61 = vsel %vm3749_vm3, %v3757_v14, %v3765_v24  ;;  %v5960_v0 = vsel %vm5957_vm4, %v5958_v36, %v5959_v8  ;;  %v3768_v14 = vshrl.u32 %v10066_v30, 16 }
 0x2df   : > { %v2050_v43 = vadd.f32 %v1951_v21, %v1292_v7  ;;  %v2892_v42 = vpop.f32.mrf.mxu3  ;;  %v11158_v7 = vadd.f32 %v11108_v25, %v2989_v63  ;;  %v4742_v25 = vsel %vm1601_vm2, %v4740_v19, %v4741_v38  ;;  %v11179_v19 = vadd.f32 %v11122_v51, %v11131_v3 }
 0x2e0   : > { %v1293_v28 = vpop.f32.mrf.mxu1 }
 0x2e1   : > { %v2991_v49 = vadd.f32 %v2892_v42, %v2050_v43  ;;  %13814 = vst [vmem:[#allocation5_spill] sm:$0xff] %v11158_v7  ;;  %v1294_v17 = vadd.f32 %v1293_v28, %v13815_v23  ;;  %v5230_v43 = vor.u32 %v5229_v50, %v5226_v41  ;;  %v5236_v42 = vshll.u32 %v11168_v13, 16 }
 0x2e2   : > { %13816 = vst [vmem:[#allocation4_spill] sm:$0xff] %v11179_v19  ;;  %v3770_v23 = vrot.slane %v3768_v14, 1 }
 0x2e3   : > { %v11154_v54 = vpop.f32.mrf.mxu0  ;;  %v5231_v31 = vsel %vm3749_vm3, %v5222_v59, %v5230_v43  ;;  %v5238_v36 = vrot.slane %v5236_v42, 2 }
 0x2e6   : > { %v1953_v27 = vpop.f32.mrf.mxu2 }
 0x2e7   : > { %v2051_v46 = vadd.f32 %v1953_v27, %v1294_v17  ;;  %v2894_v34 = vpop.f32.mrf.mxu3  ;;  %v3773_v17 = vrot.slane %v3771_v55, 2  ;;  %v5235_v27 = vrot.slane %v5233_v10, 1 }
 0x2e8   : > { %v1296_v62 = vpop.f32.mrf.mxu1 }
 0x2e9   : > { %v11164_v63 = vadd.f32 %v2894_v34, %v2051_v46  ;;  %v1297_v21 = vadd.f32 %v1296_v62, %v13817_v15  ;;  %v3774_v3 = vor.u32 %v3773_v17, %v3770_v23  ;;  %v4743_v46 = vrot.slane %v11168_v13, 1  ;;  %v13819_v62 = vld [vmem:[#allocation9_spill] sm:$0xff] }
 0x2ea   : > { %v11191_v34 = vadd.f32 %v11136_v35, %v2991_v49  ;;  %v11201_v35 = vld [vmem:[%s10156_s23 + $0x30] sm:$0xff] }
 0x2eb   : > { %v11170_v4 = vpop.f32.mrf.mxu0  ;;  %9412 = vmatmul.msk.bf16.vlgmr.msra.gmra.mxu1 %vm753_vm1, %v3766_v61  ;;  %9612 = vmatmul.msk.bf16.vlgmr.msra.gmra.mxu2 %vm753_vm1, %v4742_v25  ;;  %v5239_v25 = vor.u32 %v5238_v36, %v5235_v27  ;;  %v3775_v15 = vsel %vm3749_vm3, %v3765_v24, %v3774_v3 }
 0x2ec   : > { %9672 = vmatmul.msk.bf16.vlgmr.msra.gmra.mxu3 %vm753_vm1, %v5231_v31  ;;  %13818 = vst [vmem:[#allocation6_spill] sm:$0xff] %v11191_v34 }
 0x2ed   : > { %v5240_v42 = vsel %vm3749_vm3, %v5230_v43, %v5239_v25  ;;  %v5242_v43 = vshrl.u32 %v11201_v35, 16 }
 0x2ee   : > { %9732 = vmatmul.msk.bf16.vlgmr.msra.gmra.mxu0 %vm753_vm1, %v5960_v0  ;;  %v1956_v28 = vpop.f32.mrf.mxu2  ;;  %v5961_v0 = vrot.slane %v11168_v13, 2  ;;  %v10067_v13 = vld [vmem:[%s10156_s23 + $0x24] sm:$0xff] }
 0x2ef   : > { %v2052_v48 = vadd.f32 %v1956_v28, %v1297_v21  ;;  %v2897_v41 = vpop.f32.mrf.mxu3  ;;  %v4744_v21 = vsel %vm1601_vm2, %v4741_v38, %v4743_v46  ;;  %v3777_v24 = vshrl.u32 %v10067_v13, 16  ;;  %v13820_v38 = vld [vmem:[#allocation11_spill] sm:$0xff] }
 0x2f0   : > { %v1298_v50 = vpop.f32.mrf.mxu1  ;;  %v5962_v28 = vsel %vm5957_vm4, %v5959_v8, %v5961_v0 }
 0x2f1   : > { %v11185_v59 = vadd.f32 %v2897_v41, %v2052_v48  ;;  %v1299_v61 = vadd.f32 %v1298_v50, %v13819_v62  ;;  %v3780_v48 = vshll.u32 %v10067_v13, 16  ;;  %v5245_v50 = vshll.u32 %v11201_v35, 16 }
 0x2f2   : > { %v3779_v36 = vrot.slane %v3777_v24, 1 }
 0x2f3   : > { %v11187_v51 = vpop.f32.mrf.mxu0  ;;  %v3782_v62 = vrot.slane %v3780_v48, 2 }
 0x2f6   : > { %v1958_v31 = vpop.f32.mrf.mxu2 }
 0x2f7   : > { %v2053_v30 = vadd.f32 %v1958_v31, %v1299_v61  ;;  %v2899_v14 = vpop.f32.mrf.mxu3  ;;  %v5244_v31 = vrot.slane %v5242_v43, 1 }
 0x2f8   : > { %v1301_v55 = vpop.f32.mrf.mxu1 }
 0x2f9   : > { %v11197_v10 = vadd.f32 %v2899_v14, %v2053_v30  ;;  %v1302_v41 = vadd.f32 %v1301_v55, %v13820_v38  ;;  %v5247_v30 = vrot.slane %v5245_v50, 2  ;;  %v3783_v55 = vor.u32 %v3782_v62, %v3779_v36 }
 0x2fa   : > { %v5963_v38 = vrot.slane %v11201_v35, 2 }
 0x2fb   : > { %v11203_v49 = vpop.f32.mrf.mxu0  ;;  %9413 = vmatmul.msk.bf16.gmra.mxu1 %vm753_vm1, %v3775_v15  ;;  %9613 = vmatmul.msk.bf16.gmra.mxu2 %vm753_vm1, %v4744_v21  ;;  %v4745_v15 = vrot.slane %v11201_v35, 1  ;;  %v13821_v21 = vld [vmem:[#allocation13_spill] sm:$0xff]  ;;  %v11236_v35 = vadd.f32 %v11154_v54, %v11164_v63 }
 0x2fc   : > { %9673 = vmatmul.msk.bf16.gmra.mxu3 %vm753_vm1, %v5240_v42 }
 0x2fd   : > { %v4746_v43 = vsel %vm1601_vm2, %v4743_v46, %v4745_v15  ;;  %13822 = vst [vmem:[#allocation7_spill] sm:$0xff] %v11236_v35 }
 0x2fe   : > { %9733 = vmatmul.msk.bf16.gmra.mxu0 %vm753_vm1, %v5962_v28  ;;  %v1961_v23 = vpop.f32.mrf.mxu2  ;;  %v5248_v28 = vor.u32 %v5247_v30, %v5244_v31 }
 0x2ff   : > { %v2054_v17 = vadd.f32 %v1961_v23, %v1302_v41  ;;  %v2902_v8 = vpop.f32.mrf.mxu3  ;;  %v3784_v23 = vsel %vm3749_vm3, %v3774_v3, %v3783_v55  ;;  %v10068_v3 = vld [vmem:[%s10156_s23 + $0x2c] sm:$0xff] }
 0x300   : > { %v1303_v27 = vpop.f32.mrf.mxu1  ;;  %v3786_v46 = vshrl.u32 %v10068_v3, 16  ;;  %v3789_v62 = vshll.u32 %v10068_v3, 16 }
 0x301   : > { %v11214_v61 = vadd.f32 %v2902_v8, %v2054_v17  ;;  %v1304_v42 = vadd.f32 %v1303_v27, %v13821_v21  ;;  %v5249_v17 = vsel %vm3749_vm3, %v5239_v25, %v5248_v28  ;;  %v11227_v8 = vld [vmem:[%s10156_s23 + $0x38] sm:$0xff]  ;;  %v5964_v27 = vsel %vm5957_vm4, %v5961_v0, %v5963_v38 }
 0x302   : > { %v13823_v25 = vld [vmem:[#allocation15_spill] sm:$0xff]  ;;  %v5251_v30 = vshrl.u32 %v11227_v8, 16  ;;  %v5254_v0 = vshll.u32 %v11227_v8, 16  ;;  %v3791_v54 = vrot.slane %v3789_v62, 2  ;;  %v4747_v3 = vrot.slane %v11227_v8, 1 }
 0x303   : > { %v11216_v14 = vpop.f32.mrf.mxu0 }
 0x306   : > { %v1963_v13 = vpop.f32.mrf.mxu2 }
 0x307   : > { %v2055_v41 = vadd.f32 %v1963_v13, %v1304_v42  ;;  %v2904_v24 = vpop.f32.mrf.mxu3 }
 0x308   : > { %v1306_v48 = vpop.f32.mrf.mxu1 }
 0x309   : > { %v11223_v50 = vadd.f32 %v2904_v24, %v2055_v41  ;;  %v1307_v31 = vadd.f32 %v1306_v48, %v13823_v25  ;;  %v3788_v24 = vrot.slane %v3786_v46, 1  ;;  %v11250_v48 = vadd.f32 %v11170_v4, %v11185_v59  ;;  %v13825_v25 = vld [vmem:[#allocation17_spill] sm:$0xff]  ;;  %v11261_v59 = vld [vmem:[%s10156_s23 + $0x40] sm:$0xff] }
 0x30a   : > { %v5965_v46 = vrot.slane %v11227_v8, 2  ;;  %v11270_v8 = vadd.f32 %v11187_v51, %v11197_v10 }
 0x30b   : > { %v11229_v36 = vpop.f32.mrf.mxu0  ;;  %9414 = vmatmul.msk.bf16.gmra.mxu1 %vm753_vm1, %v3784_v23  ;;  %9614 = vmatmul.msk.bf16.gmra.mxu2 %vm753_vm1, %v4746_v43  ;;  %v5253_v23 = vrot.slane %v5251_v30, 1  ;;  %v5256_v43 = vrot.slane %v5254_v0, 2  ;;  %13824 = vst [vmem:[#allocation9_spill] sm:$0xff] %v11250_v48 }
 0x30c   : > { %9674 = vmatmul.msk.bf16.gmra.mxu3 %vm753_vm1, %v5249_v17  ;;  %13826 = vst [vmem:[#allocation11_spill] sm:$0xff] %v11270_v8 }
 0x30e   : > { %9734 = vmatmul.msk.bf16.gmra.mxu0 %vm753_vm1, %v5964_v27  ;;  %v1966_v21 = vpop.f32.mrf.mxu2  ;;  %v3792_v27 = vor.u32 %v3791_v54, %v3788_v24 }
 0x30f   : > { %v2056_v42 = vadd.f32 %v1966_v21, %v1307_v31  ;;  %v2907_v13 = vpop.f32.mrf.mxu3  ;;  %v5257_v21 = vor.u32 %v5256_v43, %v5253_v23  ;;  %v5260_v23 = vshrl.u32 %v11261_v59, 16 }
 0x310   : > { %v1308_v41 = vpop.f32.mrf.mxu1 }
 0x311   : > { %v11244_v63 = vadd.f32 %v2907_v13, %v2056_v42  ;;  %v1309_v31 = vadd.f32 %v1308_v41, %v13825_v25  ;;  %v3793_v42 = vsel %vm3749_vm3, %v3783_v55, %v3792_v27  ;;  %v4748_v13 = vsel %vm1601_vm2, %v4745_v15, %v4747_v3  ;;  %v10069_v55 = vld [vmem:[%s10156_s23 + $0x34] sm:$0xff] }
 0x312   : > { %v5258_v4 = vsel %vm3749_vm3, %v5248_v28, %v5257_v21  ;;  %v5966_v41 = vsel %vm5957_vm4, %v5963_v38, %v5965_v46  ;;  %v3795_v15 = vshrl.u32 %v10069_v55, 16  ;;  %v13827_v28 = vld [vmem:[#allocation19_spill] sm:$0xff]  ;;  %v5263_v38 = vshll.u32 %v11261_v59, 16 }
 0x313   : > { %v11246_v17 = vpop.f32.mrf.mxu0 }
 0x316   : > { %v1968_v35 = vpop.f32.mrf.mxu2 }
 0x317   : > { %v2057_v62 = vadd.f32 %v1968_v35, %v1309_v31  ;;  %v2909_v30 = vpop.f32.mrf.mxu3  ;;  %v3798_v35 = vshll.u32 %v10069_v55, 16  ;;  %v4749_v55 = vrot.slane %v11261_v59, 1 }
 0x318   : > { %v1311_v0 = vpop.f32.mrf.mxu1 }
 0x319   : > { %v11257_v34 = vadd.f32 %v2909_v30, %v2057_v62  ;;  %v1312_v54 = vadd.f32 %v1311_v0, %v13827_v28  ;;  %v3797_v30 = vrot.slane %v3795_v15, 1  ;;  %v3800_v51 = vrot.slane %v3798_v35, 2  ;;  %v13829_v28 = vld [vmem:[#allocation21_spill] sm:$0xff] }
 0x31a   : > { %v11284_v0 = vadd.f32 %v11203_v49, %v11214_v61  ;;  %v5967_v15 = vrot.slane %v11261_v59, 2  ;;  %v11295_v61 = vld [vmem:[%s10156_s23 + $0x48] sm:$0xff]  ;;  %v11304_v59 = vadd.f32 %v11216_v14, %v11223_v50 }
 0x31b   : > { %v11263_v24 = vpop.f32.mrf.mxu0  ;;  %9415 = vmatmul.msk.bf16.gmra.mxu1 %vm753_vm1, %v3793_v42  ;;  %9615 = vmatmul.msk.bf16.gmra.mxu2 %vm753_vm1, %v4748_v13  ;;  %v5262_v42 = vrot.slane %v5260_v23, 1  ;;  %v5265_v13 = vrot.slane %v5263_v38, 2 }
 0x31c   : > { %9675 = vmatmul.msk.bf16.gmra.mxu3 %vm753_vm1, %v5258_v4  ;;  %13828 = vst [vmem:[#allocation13_spill] sm:$0xff] %v11284_v0 }
 0x31d   : > { %13830 = vst [vmem:[#allocation15_spill] sm:$0xff] %v11304_v59 }
 0x31e   : > { %9735 = vmatmul.msk.bf16.gmra.mxu0 %vm753_vm1, %v5966_v41  ;;  %v1971_v43 = vpop.f32.mrf.mxu2  ;;  %v3801_v41 = vor.u32 %v3800_v51, %v3797_v30 }
 0x31f   : > { %v2058_v25 = vadd.f32 %v1971_v43, %v1312_v54  ;;  %v2912_v31 = vpop.f32.mrf.mxu3  ;;  %v5266_v43 = vor.u32 %v5265_v13, %v5262_v42  ;;  %v5269_v42 = vshrl.u32 %v11295_v61, 16 }
 0x320   : > { %v1313_v62 = vpop.f32.mrf.mxu1 }
 0x321   : > { %v11278_v10 = vadd.f32 %v2912_v31, %v2058_v25  ;;  %v1314_v54 = vadd.f32 %v1313_v62, %v13829_v28  ;;  %v3802_v25 = vsel %vm3749_vm3, %v3792_v27, %v3801_v41  ;;  %v4750_v31 = vsel %vm1601_vm2, %v4747_v3, %v4749_v55  ;;  %v10070_v27 = vld [vmem:[%s10156_s23 + $0x3c] sm:$0xff] }
 0x322   : > { %v5267_v49 = vsel %vm3749_vm3, %v5257_v21, %v5266_v43  ;;  %v5968_v62 = vsel %vm5957_vm4, %v5965_v46, %v5967_v15  ;;  %v3804_v3 = vshrl.u32 %v10070_v27, 16  ;;  %v13831_v21 = vld [vmem:[#allocation23_spill] sm:$0xff]  ;;  %v5272_v46 = vshll.u32 %v11295_v61, 16 }
 0x323   : > { %v11280_v4 = vpop.f32.mrf.mxu0 }
 0x326   : > { %v1973_v8 = vpop.f32.mrf.mxu2 }
 0x327   : > { %v2059_v35 = vadd.f32 %v1973_v8, %v1314_v54  ;;  %v2914_v23 = vpop.f32.mrf.mxu3  ;;  %v3807_v8 = vshll.u32 %v10070_v27, 16  ;;  %v4751_v27 = vrot.slane %v11295_v61, 1 }
 0x328   : > { %v1316_v38 = vpop.f32.mrf.mxu1 }
 0x329   : > { %v11291_v48 = vadd.f32 %v2914_v23, %v2059_v35  ;;  %v1317_v51 = vadd.f32 %v1316_v38, %v13831_v21  ;;  %v3806_v23 = vrot.slane %v3804_v3, 1  ;;  %v3809_v14 = vrot.slane %v3807_v8, 2  ;;  %v13833_v21 = vld [vmem:[#allocation25_spill] sm:$0xff] }
 0x32a   : > { %v11318_v38 = vadd.f32 %v11229_v36, %v11244_v63  ;;  %v5969_v3 = vrot.slane %v11295_v61, 2  ;;  %v11329_v63 = vld [vmem:[%s10156_s23 + $0x50] sm:$0xff]  ;;  %v11338_v61 = vadd.f32 %v11246_v17, %v11257_v34 }
 0x32b   : > { %v11297_v30 = vpop.f32.mrf.mxu0  ;;  %9416 = vmatmul.msk.bf16.gmra.mxu1 %vm753_vm1, %v3802_v25  ;;  %9616 = vmatmul.msk.bf16.gmra.mxu2 %vm753_vm1, %v4750_v31  ;;  %v5271_v25 = vrot.slane %v5269_v42, 1  ;;  %v5274_v31 = vrot.slane %v5272_v46, 2 }
 0x32c   : > { %9676 = vmatmul.msk.bf16.gmra.mxu3 %vm753_vm1, %v5267_v49  ;;  %13832 = vst [vmem:[#allocation17_spill] sm:$0xff] %v11318_v38 }
 0x32d   : > { %13834 = vst [vmem:[#allocation19_spill] sm:$0xff] %v11338_v61 }
 0x32e   : > { %9736 = vmatmul.msk.bf16.gmra.mxu0 %vm753_vm1, %v5968_v62  ;;  %v1976_v13 = vpop.f32.mrf.mxu2  ;;  %v3810_v62 = vor.u32 %v3809_v14, %v3806_v23 }
 0x32f   : > { %v2060_v28 = vadd.f32 %v1976_v13, %v1317_v51  ;;  %v2917_v54 = vpop.f32.mrf.mxu3  ;;  %v5275_v13 = vor.u32 %v5274_v31, %v5271_v25  ;;  %v5278_v25 = vshrl.u32 %v11329_v63, 16 }
 0x330   : > { %v1318_v35 = vpop.f32.mrf.mxu1 }
 0x331   : > { %v11312_v50 = vadd.f32 %v2917_v54, %v2060_v28  ;;  %v1319_v51 = vadd.f32 %v1318_v35, %v13833_v21  ;;  %v3811_v28 = vsel %vm3749_vm3, %v3801_v41, %v3810_v62  ;;  %v4752_v54 = vsel %vm1601_vm2, %v4749_v55, %v4751_v27  ;;  %v10071_v41 = vld [vmem:[%s10156_s23 + $0x44] sm:$0xff] }
 0x332   : > { %v5276_v36 = vsel %vm3749_vm3, %v5266_v43, %v5275_v13  ;;  %v5970_v35 = vsel %vm5957_vm4, %v5967_v15, %v5969_v3  ;;  %v3813_v55 = vshrl.u32 %v10071_v41, 16  ;;  %v13835_v43 = vld [vmem:[#allocation27_spill] sm:$0xff]  ;;  %v5281_v15 = vshll.u32 %v11329_v63, 16 }
 0x333   : > { %v11314_v49 = vpop.f32.mrf.mxu0 }
 0x336   : > { %v1978_v59 = vpop.f32.mrf.mxu2 }
 0x337   : > { %v2061_v8 = vadd.f32 %v1978_v59, %v1319_v51  ;;  %v2919_v42 = vpop.f32.mrf.mxu3  ;;  %v3816_v59 = vshll.u32 %v10071_v41, 16  ;;  %v4753_v41 = vrot.slane %v11329_v63, 1 }
 0x338   : > { %v1321_v46 = vpop.f32.mrf.mxu1 }
 0x339   : > { %v11325_v0 = vadd.f32 %v2919_v42, %v2061_v8  ;;  %v1322_v14 = vadd.f32 %v1321_v46, %v13835_v43  ;;  %v3815_v42 = vrot.slane %v3813_v55, 1  ;;  %v3818_v34 = vrot.slane %v3816_v59, 2  ;;  %v13837_v43 = vld [vmem:[#allocation29_spill] sm:$0xff] }
 0x33a   : > { %v11352_v46 = vadd.f32 %v11263_v24, %v11278_v10  ;;  %v5971_v55 = vrot.slane %v11329_v63, 2  ;;  %v11363_v10 = vld [vmem:[%s10156_s23 + $0x58] sm:$0xff]  ;;  %v11372_v63 = vadd.f32 %v11280_v4, %v11291_v48 }
 0x33b   : > { %v11331_v23 = vpop.f32.mrf.mxu0  ;;  %9417 = vmatmul.msk.bf16.gmra.mxu1 %vm753_vm1, %v3811_v28  ;;  %9617 = vmatmul.msk.bf16.gmra.mxu2 %vm753_vm1, %v4752_v54  ;;  %v5280_v28 = vrot.slane %v5278_v25, 1  ;;  %v5283_v54 = vrot.slane %v5281_v15, 2 }
 0x33c   : > { %9677 = vmatmul.msk.bf16.gmra.mxu3 %vm753_vm1, %v5276_v36  ;;  %13836 = vst [vmem:[#allocation21_spill] sm:$0xff] %v11352_v46 }
 0x33d   : > { %13838 = vst [vmem:[#allocation23_spill] sm:$0xff] %v11372_v63 }
 0x33e   : > { %9737 = vmatmul.msk.bf16.gmra.mxu0 %vm753_vm1, %v5970_v35  ;;  %v1981_v31 = vpop.f32.mrf.mxu2  ;;  %v3819_v35 = vor.u32 %v3818_v34, %v3815_v42 }
 0x33f   : > { %v2062_v21 = vadd.f32 %v1981_v31, %v1322_v14  ;;  %v2922_v51 = vpop.f32.mrf.mxu3  ;;  %v5284_v31 = vor.u32 %v5283_v54, %v5280_v28  ;;  %v5287_v28 = vshrl.u32 %v11363_v10, 16 }
 0x340   : > { %v1323_v8 = vpop.f32.mrf.mxu1 }
 0x341   : > { %v11346_v17 = vadd.f32 %v2922_v51, %v2062_v21  ;;  %v1324_v14 = vadd.f32 %v1323_v8, %v13837_v43  ;;  %v3820_v21 = vsel %vm3749_vm3, %v3810_v62, %v3819_v35  ;;  %v4754_v51 = vsel %vm1601_vm2, %v4751_v27, %v4753_v41  ;;  %v10072_v62 = vld [vmem:[%s10156_s23 + $0x4c] sm:$0xff] }
 0x342   : > { %v5285_v24 = vsel %vm3749_vm3, %v5275_v13, %v5284_v31  ;;  %v5972_v8 = vsel %vm5957_vm4, %v5969_v3, %v5971_v55  ;;  %v3822_v27 = vshrl.u32 %v10072_v62, 16  ;;  %v13839_v13 = vld [vmem:[#allocation31_spill] sm:$0xff]  ;;  %v5290_v3 = vshll.u32 %v11363_v10, 16 }
 0x343   : > { %v11348_v36 = vpop.f32.mrf.mxu0 }
 0x346   : > { %v1983_v61 = vpop.f32.mrf.mxu2 }
 0x347   : > { %v2063_v59 = vadd.f32 %v1983_v61, %v1324_v14  ;;  %v2924_v25 = vpop.f32.mrf.mxu3  ;;  %v3825_v61 = vshll.u32 %v10072_v62, 16  ;;  %v4755_v62 = vrot.slane %v11363_v10, 1 }
 0x348   : > { %v1326_v15 = vpop.f32.mrf.mxu1 }
 0x349   : > { %v11359_v38 = vadd.f32 %v2924_v25, %v2063_v59  ;;  %v1327_v34 = vadd.f32 %v1326_v15, %v13839_v13  ;;  %v3824_v25 = vrot.slane %v3822_v27, 1  ;;  %v3827_v48 = vrot.slane %v3825_v61, 2  ;;  %v13841_v13 = vld [vmem:[#allocation33_spill] sm:$0xff] }
 0x34a   : > { %v11386_v15 = vadd.f32 %v11297_v30, %v11312_v50  ;;  %v5973_v27 = vrot.slane %v11363_v10, 2  ;;  %v11397_v50 = vld [vmem:[%s10156_s23 + $0x60] sm:$0xff]  ;;  %v11406_v10 = vadd.f32 %v11314_v49, %v11325_v0 }
 0x34b   : > { %v11365_v42 = vpop.f32.mrf.mxu0  ;;  %9418 = vmatmul.msk.bf16.gmra.mxu1 %vm753_vm1, %v3820_v21  ;;  %9618 = vmatmul.msk.bf16.gmra.mxu2 %vm753_vm1, %v4754_v51  ;;  %v5289_v21 = vrot.slane %v5287_v28, 1  ;;  %v5292_v51 = vrot.slane %v5290_v3, 2 }
 0x34c   : > { %9678 = vmatmul.msk.bf16.gmra.mxu3 %vm753_vm1, %v5285_v24  ;;  %13840 = vst [vmem:[#allocation25_spill] sm:$0xff] %v11386_v15 }
 0x34d   : > { %13842 = vst [vmem:[#allocation27_spill] sm:$0xff] %v11406_v10 }
 0x34e   : > { %9738 = vmatmul.msk.bf16.gmra.mxu0 %vm753_vm1, %v5972_v8  ;;  %v1986_v54 = vpop.f32.mrf.mxu2  ;;  %v3828_v8 = vor.u32 %v3827_v48, %v3824_v25 }
 0x34f   : > { %v2064_v43 = vadd.f32 %v1986_v54, %v1327_v34  ;;  %v2927_v14 = vpop.f32.mrf.mxu3  ;;  %v5293_v54 = vor.u32 %v5292_v51, %v5289_v21  ;;  %v5296_v21 = vshrl.u32 %v11397_v50, 16 }
 0x350   : > { %v1328_v59 = vpop.f32.mrf.mxu1 }
 0x351   : > { %v11380_v4 = vadd.f32 %v2927_v14, %v2064_v43  ;;  %v1329_v34 = vadd.f32 %v1328_v59, %v13841_v13  ;;  %v3829_v43 = vsel %vm3749_vm3, %v3819_v35, %v3828_v8  ;;  %v4756_v14 = vsel %vm1601_vm2, %v4753_v41, %v4755_v62  ;;  %v10073_v35 = vld [vmem:[%s10156_s23 + $0x54] sm:$0xff] }
 0x352   : > { %v5294_v30 = vsel %vm3749_vm3, %v5284_v31, %v5293_v54  ;;  %v5974_v59 = vsel %vm5957_vm4, %v5971_v55, %v5973_v27  ;;  %v3831_v41 = vshrl.u32 %v10073_v35, 16  ;;  %v13843_v31 = vld [vmem:[#allocation35_spill] sm:$0xff]  ;;  %v5299_v55 = vshll.u32 %v11397_v50, 16 }
 0x353   : > { %v11382_v24 = vpop.f32.mrf.mxu0 }
 0x356   : > { %v1988_v63 = vpop.f32.mrf.mxu2 }
 0x357   : > { %v2065_v61 = vadd.f32 %v1988_v63, %v1329_v34  ;;  %v2929_v28 = vpop.f32.mrf.mxu3  ;;  %v3834_v63 = vshll.u32 %v10073_v35, 16  ;;  %v4757_v35 = vrot.slane %v11397_v50, 1 }
 0x358   : > { %v1331_v3 = vpop.f32.mrf.mxu1 }
 0x359   : > { %v11393_v46 = vadd.f32 %v2929_v28, %v2065_v61  ;;  %v1332_v48 = vadd.f32 %v1331_v3, %v13843_v31  ;;  %v3833_v28 = vrot.slane %v3831_v41, 1  ;;  %v3836_v0 = vrot.slane %v3834_v63, 2  ;;  %v13845_v31 = vld [vmem:[#allocation37_spill] sm:$0xff] }
 0x35a   : > { %v11420_v3 = vadd.f32 %v11331_v23, %v11346_v17  ;;  %v5975_v41 = vrot.slane %v11397_v50, 2  ;;  %v11431_v17 = vld [vmem:[%s10156_s23 + $0x68] sm:$0xff]  ;;  %v11438_v50 = vadd.f32 %v11348_v36, %v11359_v38 }
 0x35b   : > { %v11399_v25 = vpop.f32.mrf.mxu0  ;;  %9419 = vmatmul.msk.bf16.gmra.mxu1 %vm753_vm1, %v3829_v43  ;;  %9619 = vmatmul.msk.bf16.gmra.mxu2 %vm753_vm1, %v4756_v14  ;;  %v5298_v43 = vrot.slane %v5296_v21, 1  ;;  %v5301_v14 = vrot.slane %v5299_v55, 2 }
 0x35c   : > { %9679 = vmatmul.msk.bf16.gmra.mxu3 %vm753_vm1, %v5294_v30  ;;  %13844 = vst [vmem:[#allocation29_spill] sm:$0xff] %v11420_v3 }
 0x35d   : > { %13846 = vst [vmem:[#allocation31_spill] sm:$0xff] %v11438_v50 }
 0x35e   : > { %9739 = vmatmul.msk.bf16.gmra.mxu0 %vm753_vm1, %v5974_v59  ;;  %v1991_v51 = vpop.f32.mrf.mxu2  ;;  %v3837_v59 = vor.u32 %v3836_v0, %v3833_v28  ;;  %v5305_v0 = vshrl.u32 %v11431_v17, 16 }
 0x35f   : > { %v2066_v13 = vadd.f32 %v1991_v51, %v1332_v48  ;;  %v2932_v34 = vpop.f32.mrf.mxu3  ;;  %v5302_v51 = vor.u32 %v5301_v14, %v5298_v43 }
 0x360   : > { %v1333_v61 = vpop.f32.mrf.mxu1 }
 0x361   : > { %v11414_v49 = vadd.f32 %v2932_v34, %v2066_v13  ;;  %v1334_v48 = vadd.f32 %v1333_v61, %v13845_v31  ;;  %v3838_v13 = vsel %vm3749_vm3, %v3828_v8, %v3837_v59  ;;  %v4758_v34 = vsel %vm1601_vm2, %v4755_v62, %v4757_v35  ;;  %v10074_v8 = vld [vmem:[%s10156_s23 + $0x5c] sm:$0xff] }
 0x362   : > { %v5303_v23 = vsel %vm3749_vm3, %v5293_v54, %v5302_v51  ;;  %v5976_v61 = vsel %vm5957_vm4, %v5973_v27, %v5975_v41  ;;  %v3840_v62 = vshrl.u32 %v10074_v8, 16  ;;  %v5308_v27 = vshll.u32 %v11431_v17, 16 }
 0x363   : > { %v11416_v30 = vpop.f32.mrf.mxu0 }
 0x366   : > { %v1993_v10 = vpop.f32.mrf.mxu2 }
 0x367   : > { %v2067_v63 = vadd.f32 %v1993_v10, %v1334_v48  ;;  %v2934_v21 = vpop.f32.mrf.mxu3  ;;  %v3843_v10 = vshll.u32 %v10074_v8, 16  ;;  %v4759_v8 = vrot.slane %v11431_v17, 1 }
 0x368   : > { %v4223_v55 = vpop.f32.mrf.mxu1 }
 0x369   : > { %v11427_v15 = vadd.f32 %v2934_v21, %v2067_v63  ;;  %v4403_v54 = vadd.f32 %v4223_v55, %v10655_v32  ;;  %v3842_v63 = vrot.slane %v3840_v62, 1  ;;  %v3845_v38 = vrot.slane %v3843_v10, 2  ;;  %v11449_v21 = vld [vmem:[%s13718_s2] ss:$0 sm:$0xff] }
 0x36a   : > { %v5310_v32 = vrot.slane %v5308_v27, 2 }
 0x36b   : > { %v6172_v28 = vpop.f32.mrf.mxu0  ;;  %9420 = vmatmul.msk.bf16.gmra.mxu1 %vm753_vm1, %v3838_v13  ;;  %9620 = vmatmul.msk.bf16.gmra.mxu2 %vm753_vm1, %v4758_v34  ;;  %v5307_v13 = vrot.slane %v5305_v0, 1  ;;  %v5977_v0 = vrot.slane %v11431_v17, 2  ;;  %v10075_v17 = vld [vmem:[%s10156_s23 + $0x64] sm:$0xff] }
 0x36c   : > { %9680 = vmatmul.msk.bf16.gmra.mxu3 %vm753_vm1, %v5303_v23  ;;  %v11453_v23 = vadd.f32 %v11365_v42, %v11380_v4 }
 0x36e   : > { %9740 = vmatmul.msk.bf16.gmra.mxu0 %vm753_vm1, %v5976_v61  ;;  %v4954_v43 = vpop.f32.mrf.mxu2  ;;  %13847 = vst [vmem:[#allocation33_spill] sm:$0xff] %v11453_v23  ;;  %v3846_v61 = vor.u32 %v3845_v38, %v3842_v63 }
 0x36f   : > { %v5134_v14 = vadd.f32 %v4954_v43, %v4403_v54  ;;  %v5688_v31 = vpop.f32.mrf.mxu3  ;;  %v5311_v54 = vor.u32 %v5310_v32, %v5307_v13  ;;  %v3849_v32 = vshrl.u32 %v10075_v17, 16 }
 0x370   : > { %v4225_v48 = vpop.f32.mrf.mxu1  ;;  %v3847_v4 = vsel %vm3749_vm3, %v3837_v59, %v3846_v61  ;;  %v3852_v59 = vshll.u32 %v10075_v17, 16 }
 0x371   : > { %v5868_v36 = vadd.f32 %v5688_v31, %v5134_v14  ;;  %v4404_v10 = vadd.f32 %v4225_v48, %v10664_v29  ;;  %v4760_v31 = vsel %vm1601_vm2, %v4757_v35, %v4759_v8  ;;  %v5312_v38 = vsel %vm3749_vm3, %v5302_v51, %v5311_v54 }
 0x372   : > { %v5978_v48 = vsel %vm5957_vm4, %v5975_v41, %v5977_v0  ;;  %v11475_v35 = vadd.f32 %v11382_v24, %v11393_v46  ;;  %v3854_v46 = vrot.slane %v3852_v59, 2 }
 0x373   : > { %v6174_v55 = vpop.f32.mrf.mxu0  ;;  %v6352_v34 = vadd.f32 %v6172_v28, %v5868_v36  ;;  %v11466_v36 = vld [vmem:[%s10156_s23 + $0x70] sm:$0xff] }
 0x374   : > { %13848 = vst [vmem:[#allocation35_spill] sm:$0xff] %v11475_v35  ;;  %v5314_v41 = vshrl.u32 %v11466_v36, 16 }
 0x375   : > { %v11457_v62 = vadd.f32 %v11449_v21, %v6352_v34 }
 0x376   : > { %v4956_v43 = vpop.f32.mrf.mxu2 }
 0x377   : > { %v6500_v28 = vmax.f32 %v11457_v62, 0.0  ;;  %v5135_v27 = vadd.f32 %v4956_v43, %v4404_v10  ;;  %v5690_v14 = vpop.f32.mrf.mxu3 }
 0x378   : > { %v4228_v42 = vpop.f32.mrf.mxu1 }
 0x379   : > { %v5869_v63 = vadd.f32 %v5690_v14, %v5135_v27  ;;  %v4405_v34 = vadd.f32 %v4228_v42, %v10672_v57  ;;  %v11487_v57 = vadd.f32 %v11399_v25, %v11414_v49 }
 0x37b   : > { %v6177_v29 = vpop.f32.mrf.mxu0  ;;  %v6353_v13 = vadd.f32 %v6174_v55, %v5869_v63  ;;  %9421 = vmatmul.msk.bf16.gmra.mxu1 %vm753_vm1, %v3847_v4  ;;  %9621 = vmatmul.msk.bf16.gmra.mxu2 %vm753_vm1, %v4760_v31  ;;  %v5317_v55 = vshll.u32 %v11466_v36, 16  ;;  %v3851_v31 = vrot.slane %v3849_v32, 1  ;;  %v5316_v63 = vrot.slane %v5314_v41, 1  ;;  %13849 = vst [vmem:[#allocation37_spill] sm:$0xff] %v11487_v57 }
 0x37c   : > { %9681 = vmatmul.msk.bf16.gmra.mxu3 %vm753_vm1, %v5312_v38  ;;  %v5979_v41 = vrot.slane %v11466_v36, 2 }
 0x37d   : > { %v11478_v51 = vadd.f32 %v11449_v21, %v6353_v13  ;;  %v5319_v38 = vrot.slane %v5317_v55, 2  ;;  %v3855_v42 = vor.u32 %v3854_v46, %v3851_v31  ;;  %v11500_v46 = vld [vmem:[%s10156_s23 + $0x78] sm:$0xff] }
 0x37e   : > { %9741 = vmatmul.msk.bf16.gmra.mxu0 %vm753_vm1, %v5978_v48  ;;  %v4959_v10 = vpop.f32.mrf.mxu2  ;;  %v4761_v48 = vrot.slane %v11466_v36, 1  ;;  %v10076_v36 = vld [vmem:[%s10156_s23 + $0x6c] sm:$0xff] }
 0x37f   : > { %v5136_v27 = vadd.f32 %v4959_v10, %v4405_v34  ;;  %v5693_v14 = vpop.f32.mrf.mxu3  ;;  %v5320_v32 = vor.u32 %v5319_v38, %v5316_v63  ;;  %v3856_v49 = vsel %vm3749_vm3, %v3846_v61, %v3855_v42  ;;  %v3858_v63 = vshrl.u32 %v10076_v36, 16 }
 0x380   : > { %v4230_v4 = vpop.f32.mrf.mxu1  ;;  %v3861_v61 = vshll.u32 %v10076_v36, 16 }
 0x381   : > { %v5870_v24 = vadd.f32 %v5693_v14, %v5136_v27  ;;  %v4406_v34 = vadd.f32 %v4230_v4, %v10681_v56  ;;  %v4762_v27 = vsel %vm1601_vm2, %v4759_v8, %v4761_v48  ;;  %v5321_v31 = vsel %vm3749_vm3, %v5311_v54, %v5320_v32 }
 0x382   : > { %v5980_v4 = vsel %vm5957_vm4, %v5977_v0, %v5979_v41  ;;  %v11509_v8 = vadd.f32 %v11416_v30, %v11427_v15  ;;  %v5323_v0 = vshrl.u32 %v11500_v46, 16 }
 0x383   : > { %v6179_v13 = vpop.f32.mrf.mxu0  ;;  %v6354_v17 = vadd.f32 %v6177_v29, %v5870_v24 }
 0x384   : > { %13850 = vst [vmem:[#allocation50_spill] sm:$0xff] %v11509_v8  ;;  %v5325_v30 = vrot.slane %v5323_v0, 1 }
 0x385   : > { %v11491_v43 = vadd.f32 %v11449_v21, %v6354_v17 }
 0x386   : > { %v4961_v59 = vpop.f32.mrf.mxu2 }
 0x387   : > { %v6502_v29 = vmax.f32 %v11491_v43, 0.0  ;;  %v5137_v55 = vadd.f32 %v4961_v59, %v4406_v34  ;;  %v5695_v10 = vpop.f32.mrf.mxu3 }
 0x388   : > { %v4233_v25 = vpop.f32.mrf.mxu1 }
 0x389   : > { %v5871_v14 = vadd.f32 %v5695_v10, %v5137_v55  ;;  %v4407_v38 = vadd.f32 %v4233_v25, %v10689_v39  ;;  %v4763_v25 = vrot.slane %v11500_v46, 1 }
 0x38b   : > { %v6182_v56 = vpop.f32.mrf.mxu0  ;;  %v6355_v24 = vadd.f32 %v6179_v13, %v5871_v14  ;;  %9422 = vmatmul.msk.bf16.gmra.mxu1 %vm753_vm1, %v3856_v49  ;;  %9622 = vmatmul.msk.bf16.gmra.mxu2 %vm753_vm1, %v4762_v27  ;;  %v5326_v13 = vshll.u32 %v11500_v46, 16  ;;  %v3860_v49 = vrot.slane %v3858_v63, 1  ;;  %v3863_v27 = vrot.slane %v3861_v61, 2 }
 0x38c   : > { %9682 = vmatmul.msk.bf16.gmra.mxu3 %vm753_vm1, %v5321_v31 }
 0x38d   : > { %v6431_v54 = vadd.f32 %v11449_v21, %v6355_v24  ;;  %v5328_v14 = vrot.slane %v5326_v13, 2  ;;  %v3864_v39 = vor.u32 %v3863_v27, %v3860_v49  ;;  %v11524_v49 = vld [vmem:[%s10156_s23 + $0x80] sm:$0xff] }
 0x38e   : > { %9742 = vmatmul.msk.bf16.gmra.mxu0 %vm753_vm1, %v5980_v4  ;;  %v4964_v17 = vpop.f32.mrf.mxu2 }
 0x38f   : > { %v6503_v34 = vmax.f32 %v6431_v54, 0.0  ;;  %v5138_v59 = vadd.f32 %v4964_v17, %v4407_v38  ;;  %v5698_v55 = vpop.f32.mrf.mxu3  ;;  %v5329_v54 = vor.u32 %v5328_v14, %v5325_v30  ;;  %v5981_v17 = vrot.slane %v11500_v46, 2  ;;  %v10077_v46 = vld [vmem:[%s10156_s23 + $0x74] sm:$0xff] }
 0x390   : > { %v4235_v10 = vpop.f32.mrf.mxu1  ;;  %v3865_v13 = vsel %vm3749_vm3, %v3855_v42, %v3864_v39  ;;  %v3867_v42 = vshrl.u32 %v10077_v46, 16 }
 0x391   : > { %6575 = vst [vmem:[#allocation2 + $0x18] sm:$0xff] %v6503_v34  ;;  %v5872_v15 = vadd.f32 %v5698_v55, %v5138_v59  ;;  %v4408_v36 = vadd.f32 %v4235_v10, %v10698_v16  ;;  %v5330_v55 = vsel %vm3749_vm3, %v5320_v32, %v5329_v54  ;;  %v5982_v10 = vsel %vm5957_vm4, %v5979_v41, %v5981_v17 }
 0x392   : > { %v5332_v32 = vshrl.u32 %v11524_v49, 16  ;;  %v5335_v41 = vshll.u32 %v11524_v49, 16 }
 0x393   : > { %v6184_v31 = vpop.f32.mrf.mxu0  ;;  %v6356_v24 = vadd.f32 %v6182_v56, %v5872_v15  ;;  %v4764_v56 = vsel %vm1601_vm2, %v4761_v48, %v4763_v25  ;;  %v3870_v15 = vshll.u32 %v10077_v46, 16 }
 0x395   : > { %v6432_v4 = vadd.f32 %v11449_v21, %v6356_v24 }
 0x396   : > { %v4966_v38 = vpop.f32.mrf.mxu2 }
 0x397   : > { %v6504_v63 = vmax.f32 %v6432_v4, 0.0  ;;  %v5139_v61 = vadd.f32 %v4966_v38, %v4408_v36  ;;  %v5700_v34 = vpop.f32.mrf.mxu3  ;;  %v3869_v38 = vrot.slane %v3867_v42, 1 }
 0x398   : > { %v4238_v0 = vpop.f32.mrf.mxu1 }
 0x399   : > { %6576 = vst [vmem:[#allocation2 + $0x20] sm:$0xff] %v6504_v63  ;;  %v5873_v59 = vadd.f32 %v5700_v34, %v5139_v61  ;;  %v4409_v30 = vadd.f32 %v4238_v0, %v10706_v9  ;;  %v3872_v63 = vrot.slane %v3870_v15, 2  ;;  %v5334_v34 = vrot.slane %v5332_v32, 1 }
 0x39a   : > { %v4765_v0 = vrot.slane %v11524_v49, 1 }
 0x39b   : > { %v6187_v16 = vpop.f32.mrf.mxu0  ;;  %v6357_v27 = vadd.f32 %v6184_v31, %v5873_v59  ;;  %9423 = vmatmul.msk.bf16.gmra.mxu1 %vm753_vm1, %v3865_v13  ;;  %9623 = vmatmul.msk.bf16.gmra.mxu2 %vm753_vm1, %v4764_v56  ;;  %v5337_v13 = vrot.slane %v5335_v41, 2  ;;  %v3873_v9 = vor.u32 %v3872_v63, %v3869_v38 }
 0x39c   : > { %9683 = vmatmul.msk.bf16.gmra.mxu3 %vm753_vm1, %v5330_v55 }
 0x39d   : > { %v6433_v48 = vadd.f32 %v11449_v21, %v6357_v27  ;;  %v5338_v27 = vor.u32 %v5337_v13, %v5334_v34  ;;  %v3874_v41 = vsel %vm3749_vm3, %v3864_v39, %v3873_v9 }
 0x39e   : > { %9743 = vmatmul.msk.bf16.gmra.mxu0 %vm753_vm1, %v5982_v10  ;;  %v4969_v14 = vpop.f32.mrf.mxu2 }
 0x39f   : > { %v6505_v31 = vmax.f32 %v6433_v48, 0.0  ;;  %v5140_v24 = vadd.f32 %v4969_v14, %v4409_v30  ;;  %v5703_v4 = vpop.f32.mrf.mxu3  ;;  %v5983_v48 = vrot.slane %v11524_v49, 2  ;;  %v10078_v49 = vld [vmem:[%s10156_s23 + $0x7c] sm:$0xff] }
 0x3a0   : > { %v4240_v36 = vpop.f32.mrf.mxu1  ;;  %v3876_v39 = vshrl.u32 %v10078_v49, 16  ;;  %v3879_v38 = vshll.u32 %v10078_v49, 16 }
 0x3a1   : > { %6577 = vst [vmem:[#allocation2 + $0x28] sm:$0xff] %v6505_v31  ;;  %v5874_v61 = vadd.f32 %v5703_v4, %v5140_v24  ;;  %v4410_v10 = vadd.f32 %v4240_v36, %v10715_v53  ;;  %v5339_v31 = vsel %vm3749_vm3, %v5329_v54, %v5338_v27  ;;  %v11544_v24 = vld [vmem:[%s10156_s23 + $0x88] sm:$0xff]  ;;  %v5984_v4 = vsel %vm5957_vm4, %v5981_v17, %v5983_v48 }
 0x3a2   : > { %v5341_v54 = vshrl.u32 %v11544_v24, 16  ;;  %v5344_v17 = vshll.u32 %v11544_v24, 16  ;;  %v5985_v49 = vrot.slane %v11544_v24, 2 }
 0x3a3   : > { %v6189_v56 = vpop.f32.mrf.mxu0  ;;  %v6358_v59 = vadd.f32 %v6187_v16, %v5874_v61  ;;  %v4766_v16 = vsel %vm1601_vm2, %v4763_v25, %v4765_v0 }
 0x3a5   : > { %v6434_v55 = vadd.f32 %v11449_v21, %v6358_v59 }
 0x3a6   : > { %v4971_v46 = vpop.f32.mrf.mxu2 }
 0x3a7   : > { %v6506_v42 = vmax.f32 %v6434_v55, 0.0  ;;  %v5141_v15 = vadd.f32 %v4971_v46, %v4410_v10  ;;  %v5705_v30 = vpop.f32.mrf.mxu3  ;;  %v3878_v55 = vrot.slane %v3876_v39, 1  ;;  %v3881_v10 = vrot.slane %v3879_v38, 2 }
 0x3a8   : > { %v4243_v32 = vpop.f32.mrf.mxu1 }
 0x3a9   : > { %6578 = vst [vmem:[#allocation2 + $0x30] sm:$0xff] %v6506_v42  ;;  %v5875_v14 = vadd.f32 %v5705_v30, %v5141_v15  ;;  %v4411_v63 = vadd.f32 %v4243_v32, %v10723_v22  ;;  %v5343_v42 = vrot.slane %v5341_v54, 1  ;;  %v5346_v15 = vrot.slane %v5344_v17, 2  ;;  %v6648_v22 = vld [vmem:[#allocation2 + $0x19] sm:$0xff] }
 0x3aa   : > { %v11556_v32 = vor.u32 %v3881_v10, %v3878_v55  ;;  %v6652_v39 = vmax.f32 %v6500_v28, %v6648_v22  ;;  %v11577_v28 = vld [vmem:[%s10156_s23 + $0x90] sm:$0xff] }
 0x3ab   : > { %v6192_v53 = vpop.f32.mrf.mxu0  ;;  %v6359_v36 = vadd.f32 %v6189_v56, %v5875_v14  ;;  %9424 = vmatmul.msk.bf16.gmra.mxu1 %vm753_vm1, %v3874_v41  ;;  %9624 = vmatmul.msk.bf16.gmra.mxu2 %vm753_vm1, %v4766_v16  ;;  %v4767_v16 = vrot.slane %v11544_v24, 1 }
 0x3ac   : > { %9684 = vmatmul.msk.bf16.gmra.mxu3 %vm753_vm1, %v5339_v31  ;;  %v3883_v17 = vsel %vm3749_vm3, %v3873_v9, %v11556_v32 }
 0x3ad   : > { %v6435_v25 = vadd.f32 %v11449_v21, %v6359_v36 }
 0x3ae   : > { %9744 = vmatmul.msk.bf16.gmra.mxu0 %vm753_vm1, %v5984_v4  ;;  %v4974_v61 = vpop.f32.mrf.mxu2  ;;  %v11561_v4 = vor.u32 %v5346_v15, %v5343_v42  ;;  %v5353_v42 = vshll.u32 %v11577_v28, 16 }
 0x3af   : > { %v6507_v34 = vmax.f32 %v6435_v25, 0.0  ;;  %v5142_v13 = vadd.f32 %v4974_v61, %v4411_v63  ;;  %v5708_v56 = vpop.f32.mrf.mxu3 }
 0x3b0   : > { %v4245_v59 = vpop.f32.mrf.mxu1  ;;  %v5348_v62 = vsel %vm3749_vm3, %v5338_v27, %v11561_v4 }
 0x3b1   : > { %6579 = vst [vmem:[#allocation2 + $0x38] sm:$0xff] %v6507_v34  ;;  %v5876_v46 = vadd.f32 %v5708_v56, %v5142_v13  ;;  %v4412_v31 = vadd.f32 %v4245_v59, %v10732_v26  ;;  %v4768_v26 = vsel %vm1601_vm2, %v4765_v0, %v4767_v16  ;;  %v5986_v56 = vsel %vm5957_vm4, %v5983_v48, %v5985_v49  ;;  %v6649_v0 = vld [vmem:[#allocation2 + $0x21] sm:$0xff] }
 0x3b2   : > { %v10079_v59 = vld [vmem:[%s10156_s23 + $0x84] sm:$0xff]  ;;  %v5350_v48 = vshrl.u32 %v11577_v28, 16 }
 0x3b3   : > { %v6194_v30 = vpop.f32.mrf.mxu0  ;;  %v6360_v41 = vadd.f32 %v6192_v53, %v5876_v46  ;;  %v3885_v55 = vshrl.u32 %v10079_v59, 16  ;;  %v3888_v10 = vshll.u32 %v10079_v59, 16 }
 0x3b5   : > { %v6436_v14 = vadd.f32 %v11449_v21, %v6360_v41 }
 0x3b6   : > { %v4976_v36 = vpop.f32.mrf.mxu2 }
 0x3b7   : > { %v6508_v38 = vmax.f32 %v6436_v14, 0.0  ;;  %v5143_v53 = vadd.f32 %v4976_v36, %v4412_v31  ;;  %v5710_v25 = vpop.f32.mrf.mxu3 }
 0x3b8   : > { %v11566_v63 = vld [vmem:[#allocation2 + $0x32] sm:$0xff]  ;;  %v4248_v54 = vpop.f32.mrf.mxu1 }
 0x3b9   : > { %v6660_v61 = vmax.f32 %v6652_v39, %v11566_v63  ;;  %6580 = vst [vmem:[#allocation2 + $0x40] sm:$0xff] %v6508_v38  ;;  %v5877_v34 = vadd.f32 %v5710_v25, %v5143_v53  ;;  %v4413_v46 = vadd.f32 %v4248_v54, %v10740_v1  ;;  %v3887_v38 = vrot.slane %v3885_v55, 1 }
 0x3ba   : > { %v3890_v53 = vrot.slane %v3888_v10, 2  ;;  %v5352_v54 = vrot.slane %v5350_v48, 1  ;;  %v5987_v55 = vrot.slane %v11577_v28, 2 }
 0x3bb   : > { %v6197_v13 = vpop.f32.mrf.mxu0  ;;  %6664 = vst [vmem:[#allocation3] sm:$0xff] %v6660_v61  ;;  %v6361_v9 = vadd.f32 %v6194_v30, %v5877_v34  ;;  %9425 = vmatmul.msk.bf16.gmra.mxu1 %vm753_vm1, %v3883_v17  ;;  %9625 = vmatmul.msk.bf16.gmra.mxu2 %vm753_vm1, %v4768_v26  ;;  %v13851_v30 = vmax.f32 %v11478_v51, 0.0  ;;  %v5355_v17 = vrot.slane %v5353_v42, 2  ;;  %v6650_v34 = vld [vmem:[#allocation2 + $0x29] sm:$0xff] }
 0x3bc   : > { %9685 = vmatmul.msk.bf16.gmra.mxu3 %vm753_vm1, %v5348_v62  ;;  %v11596_v51 = vor.u32 %v3890_v53, %v3887_v38  ;;  %v4769_v62 = vrot.slane %v11577_v28, 1  ;;  %v6654_v10 = vmax.f32 %v6502_v29, %v6650_v34 }
 0x3bd   : > { %v6437_v27 = vadd.f32 %v11449_v21, %v6361_v9  ;;  %v6653_v41 = vmax.f32 %v13851_v30, %v6649_v0  ;;  %v11601_v0 = vor.u32 %v5355_v17, %v5352_v54 }
 0x3be   : > { %9745 = vmatmul.msk.bf16.gmra.mxu0 %vm753_vm1, %v5986_v56  ;;  %v4979_v15 = vpop.f32.mrf.mxu2 }
 0x3bf   : > { %v6509_v22 = vmax.f32 %v6437_v27, 0.0  ;;  %v5144_v14 = vadd.f32 %v4979_v15, %v4413_v46  ;;  %v5713_v31 = vpop.f32.mrf.mxu3  ;;  %v3892_v15 = vsel %vm3749_vm3, %v11556_v32, %v11596_v51  ;;  %v5357_v29 = vsel %vm3749_vm3, %v11561_v4, %v11601_v0 }
 0x3c0   : > { %v11593_v36 = vld [vmem:[#allocation2 + $0x3a] sm:$0xff]  ;;  %v4250_v39 = vpop.f32.mrf.mxu1  ;;  %v5988_v32 = vsel %vm5957_vm4, %v5985_v49, %v5987_v55  ;;  %v10080_v49 = vld [vmem:[%s10156_s23 + $0x8c] sm:$0xff] }
 0x3c1   : > { %v6661_v1 = vmax.f32 %v6653_v41, %v11593_v36  ;;  %6581 = vst [vmem:[#allocation2 + $0x48] sm:$0xff] %v6509_v22  ;;  %v5878_v25 = vadd.f32 %v5713_v31, %v5144_v14  ;;  %v4414_v9 = vadd.f32 %v4250_v39, %v10749_v58  ;;  %v4770_v58 = vsel %vm1601_vm2, %v4767_v16, %v4769_v62 }
 0x3c2   : > { %v3894_v38 = vshrl.u32 %v10080_v49, 16  ;;  %v3897_v53 = vshll.u32 %v10080_v49, 16 }
 0x3c3   : > { %v6199_v26 = vpop.f32.mrf.mxu0  ;;  %6665 = vst [vmem:[#allocation3 + $0x8] sm:$0xff] %v6661_v1  ;;  %v6362_v61 = vadd.f32 %v6197_v13, %v5878_v25  ;;  %v6918_v1 = vld [vmem:[#allocation3] sm:$0x7] }
 0x3c4   : > { %v3896_v17 = vrot.slane %v3894_v38, 1  ;;  %v6930_v34 = vsel %vm6929_vm5, %v6918_v1, -inf }
 0x3c5   : > { %v6438_v56 = vadd.f32 %v11449_v21, %v6362_v61 }
 0x3c6   : > { %v4981_v59 = vpop.f32.mrf.mxu2 }
 0x3c7   : > { %v6510_v27 = vmax.f32 %v6438_v56, 0.0  ;;  %v5145_v46 = vadd.f32 %v4981_v59, %v4414_v9  ;;  %v5715_v13 = vpop.f32.mrf.mxu3  ;;  %v7068_v56 = vld [vmem:[#allocation3 + $0x2] sm:$0x7]  ;;  %v11633_v9 = vld [vmem:[%s10156_s23 + $0x98] sm:$0xff] }
 0x3c8   : > { %v11606_v48 = vld [vmem:[#allocation2 + $0x42] sm:$0xff]  ;;  %v4253_v42 = vpop.f32.mrf.mxu1 }
 0x3c9   : > { %v6662_v30 = vmax.f32 %v6654_v10, %v11606_v48  ;;  %6582 = vst [vmem:[#allocation2 + $0x50] sm:$0xff] %v6510_v27  ;;  %v5879_v43 = vadd.f32 %v5715_v13, %v5145_v46  ;;  %v7207_v59 = vld [vmem:[#allocation3 + $0x4] sm:$0x7]  ;;  %v4415_v27 = vadd.f32 %v4253_v42, %v10757_v45  ;;  %v6931_v13 = vrot.slane %v6930_v34, 4 }
 0x3cb   : > { %v6202_v41 = vpop.f32.mrf.mxu0  ;;  %6666 = vst [vmem:[#allocation3 + $0x10] sm:$0xff] %v6662_v30  ;;  %v6363_v22 = vadd.f32 %v6199_v26, %v5879_v43  ;;  %9426 = vmatmul.msk.bf16.gmra.mxu1 %vm753_vm1, %v3892_v15  ;;  %9626 = vmatmul.msk.bf16.gmra.mxu2 %vm753_vm1, %v4770_v58  ;;  %v3899_v26 = vrot.slane %v3897_v53, 2  ;;  %v7079_v15 = vsel %vm6929_vm5, %v7068_v56, -inf  ;;  %v4771_v58 = vrot.slane %v11633_v9, 1  ;;  %v7346_v56 = vld [vmem:[#allocation3 + $0x6] sm:$0x7] }
 0x3cc   : > { %9686 = vmatmul.msk.bf16.gmra.mxu3 %vm753_vm1, %v5357_v29  ;;  %v7218_v30 = vsel %vm6929_vm5, %v7207_v59, -inf  ;;  %v6932_v53 = vmax.f32 %v6930_v34, %v6931_v13  ;;  %v5989_v13 = vrot.slane %v11633_v9, 2 }
 0x3cd   : > { %v6439_v16 = vadd.f32 %v11449_v21, %v6363_v22  ;;  %v11636_v46 = vor.u32 %v3899_v26, %v3896_v17  ;;  %v5362_v22 = vshll.u32 %v11633_v9, 16  ;;  %v7219_v1 = vrot.slane %v7218_v30, 4 }
 0x3ce   : > { %9746 = vmatmul.msk.bf16.gmra.mxu0 %vm753_vm1, %v5988_v32  ;;  %v4984_v4 = vpop.f32.mrf.mxu2  ;;  %v5359_v32 = vshrl.u32 %v11633_v9, 16 }
 0x3cf   : > { %v6511_v14 = vmax.f32 %v6439_v16, 0.0  ;;  %v5718_v31 = vpop.f32.mrf.mxu3  ;;  %v5146_v43 = vadd.f32 %v4984_v4, %v4415_v27  ;;  %v3901_v42 = vsel %vm3749_vm3, %v11596_v51, %v11636_v46 }
 0x3d0   : > { %v4255_v39 = vpop.f32.mrf.mxu1 }
 0x3d1   : > { %6583 = vst [vmem:[#allocation2 + $0x58] sm:$0xff] %v6511_v14  ;;  %v4416_v29 = vadd.f32 %v4255_v39, %v10766_v47  ;;  %v7080_v14 = vrot.slane %v7079_v15, 4  ;;  %v5880_v49 = vadd.f32 %v5718_v31, %v5146_v43  ;;  %v4772_v47 = vsel %vm1601_vm2, %v4769_v62, %v4771_v58 }
 0x3d2   : > { %v5361_v31 = vrot.slane %v5359_v32, 1  ;;  %v6933_v62 = vrot.slane %v6932_v53, 2  ;;  %v11664_v32 = vld [vmem:[%s10156_s23 + $0xa0] sm:$0xff] }
 0x3d3   : > { %v6204_v24 = vpop.f32.mrf.mxu0  ;;  %v6364_v39 = vadd.f32 %v6202_v41, %v5880_v49  ;;  %v11655_v34 = vmax.f32 %v7079_v15, %v7080_v14  ;;  %v11659_v41 = vmax.f32 %v7218_v30, %v7219_v1  ;;  %v7357_v30 = vsel %vm6929_vm5, %v7346_v56, -inf }
 0x3d4   : > { %v7358_v56 = vrot.slane %v7357_v30, 4 }
 0x3d5   : > { %v6440_v59 = vadd.f32 %v11449_v21, %v6364_v39 }
 0x3d6   : > { %v4986_v25 = vpop.f32.mrf.mxu2 }
 0x3d7   : > { %v5720_v54 = vpop.f32.mrf.mxu3  ;;  %v5147_v45 = vadd.f32 %v4986_v25, %v4416_v29  ;;  %v5364_v25 = vrot.slane %v5362_v22, 2  ;;  %v7624_v22 = vld [vmem:[#allocation3 + $0xa] sm:$0x7] }
 0x3d8   : > { %v4258_v61 = vpop.f32.mrf.mxu1 }
 0x3d9   : > { %v5881_v17 = vadd.f32 %v5720_v54, %v5147_v45  ;;  %v4417_v51 = vadd.f32 %v4258_v61, %v10774_v33  ;;  %v7485_v54 = vld [vmem:[#allocation3 + $0x8] sm:$0x7]  ;;  %v11661_v43 = vor.u32 %v5364_v25, %v5361_v31  ;;  %v6512_v33 = vmax.f32 %v6440_v59, 0.0  ;;  %v10081_v45 = vld [vmem:[%s10156_s23 + $0x94] sm:$0xff] }
 0x3da   : > { %v7496_v1 = vsel %vm6929_vm5, %v7485_v54, -inf  ;;  %v5371_v31 = vshll.u32 %v11664_v32, 16 }
 0x3db   : > { %v6207_v10 = vpop.f32.mrf.mxu0  ;;  %9427 = vmatmul.msk.bf16.gmra.mxu1 %vm753_vm1, %v3901_v42  ;;  %9627 = vmatmul.msk.bf16.gmra.mxu2 %vm753_vm1, %v4772_v47  ;;  %v6365_v27 = vadd.f32 %v6204_v24, %v5881_v17  ;;  %v5990_v24 = vsel %vm5957_vm4, %v5987_v55, %v5989_v13  ;;  %v3903_v42 = vshrl.u32 %v10081_v45, 16  ;;  %6584 = vst [vmem:[#allocation2 + $0x60] sm:$0xff] %v6512_v33  ;;  %v3906_v47 = vshll.u32 %v10081_v45, 16 }
 0x3dc   : > { %v7497_v59 = vrot.slane %v7496_v1, 4  ;;  %v7221_v33 = vrot.slane %v11659_v41, 2  ;;  %v5373_v45 = vrot.slane %v5371_v31, 2 }
 0x3dd   : > { %v6441_v61 = vadd.f32 %v11449_v21, %v6365_v27  ;;  %v3905_v17 = vrot.slane %v3903_v42, 1  ;;  %v3908_v25 = vrot.slane %v3906_v47, 2 }
 0x3de   : > { %v4989_v16 = vpop.f32.mrf.mxu2  ;;  %9747 = vmatmul.msk.bf16.gmra.mxu0 %vm753_vm1, %v5990_v24 }
 0x3df   : > { %v5723_v38 = vpop.f32.mrf.mxu3  ;;  %v5148_v29 = vadd.f32 %v4989_v16, %v4417_v51  ;;  %v5366_v16 = vsel %vm3749_vm3, %v11601_v0, %v11661_v43  ;;  %v6513_v28 = vmax.f32 %v6441_v61, 0.0  ;;  %v5368_v0 = vshrl.u32 %v11664_v32, 16  ;;  %v7763_v61 = vld [vmem:[#allocation3 + $0xc] sm:$0x7] }
 0x3e0   : > { %v4260_v4 = vpop.f32.mrf.mxu1  ;;  %9687 = vmatmul.msk.bf16.gmra.mxu3 %vm753_vm1, %v5366_v16  ;;  %v11690_v16 = vmax.f32 %v6932_v53, %v6933_v62  ;;  %v7774_v53 = vsel %vm6929_vm5, %v7763_v61, -inf  ;;  %v6673_v61 = vld [vmem:[#allocation2 + $0x53] sm:$0xff] }
 0x3e1   : > { %v4418_v15 = vadd.f32 %v4260_v4, %v10783_v2  ;;  %v5882_v14 = vadd.f32 %v5723_v38, %v5148_v29  ;;  %v7635_v38 = vsel %vm6929_vm5, %v7624_v22, -inf  ;;  %6585 = vst [vmem:[#allocation2 + $0x68] sm:$0xff] %v6513_v28  ;;  %v13725_v29 = vrot.slane %v11664_v32, 1  ;;  %v6672_v22 = vld [vmem:[#allocation2 + $0x4b] sm:$0xff] }
 0x3e2   : > { %v7636_v42 = vrot.slane %v7635_v38, 4  ;;  %v7902_v28 = vld [vmem:[#allocation3 + $0xe] sm:$0x7] }
 0x3e3   : > { %v6209_v26 = vpop.f32.mrf.mxu0  ;;  %v6366_v4 = vadd.f32 %v6207_v10, %v5882_v14  ;;  %v7082_v10 = vrot.slane %v11655_v34, 2  ;;  %v4774_v62 = vsel %vm1601_vm2, %v4771_v58, %v13725_v29 }
 0x3e5   : > { %v6442_v27 = vadd.f32 %v11449_v21, %v6366_v4  ;;  %v11697_v4 = vmax.f32 %v7357_v30, %v7358_v56  ;;  %v11710_v31 = vmax.f32 %v11655_v34, %v7082_v10  ;;  %v8180_v56 = vld [vmem:[#allocation3 + $0x12] sm:$0x7] }
 0x3e6   : > { %v4991_v49 = vpop.f32.mrf.mxu2 }
 0x3e7   : > { %v5149_v2 = vadd.f32 %v4991_v49, %v4418_v15  ;;  %v5725_v55 = vpop.f32.mrf.mxu3  ;;  %v11688_v15 = vor.u32 %v3908_v25, %v3905_v17  ;;  %v6514_v14 = vmax.f32 %v6442_v27, 0.0  ;;  %v5370_v49 = vrot.slane %v5368_v0, 1  ;;  %v8041_v0 = vld [vmem:[#allocation3 + $0x10] sm:$0x7]  ;;  %v8319_v27 = vld [vmem:[#allocation3 + $0x14] sm:$0x7] }
 0x3e8   : > { %v4263_v39 = vpop.f32.mrf.mxu1  ;;  %v7913_v25 = vsel %vm6929_vm5, %v7902_v28, -inf  ;;  %v11716_v58 = vld [vmem:[#allocation2 + $0x64] sm:$0xff]  ;;  %v7775_v28 = vrot.slane %v7774_v53, 4 }
 0x3e9   : > { %v5883_v51 = vadd.f32 %v5725_v55, %v5149_v2  ;;  %v4419_v55 = vadd.f32 %v4263_v39, %v10803_v6  ;;  %v3910_v47 = vsel %vm3749_vm3, %v11636_v46, %v11688_v15  ;;  %6586 = vst [vmem:[#allocation2 + $0x70] sm:$0xff] %v6514_v14  ;;  %v6676_v6 = vmax.f32 %v11566_v63, %v6672_v22 }
 0x3ea   : > { %v13724_v46 = vrot.slane %v11664_v32, 2  ;;  %v11719_v63 = vor.u32 %v5373_v45, %v5370_v49  ;;  %v7360_v22 = vrot.slane %v11697_v4, 2  ;;  %v7637_v14 = vmax.f32 %v7635_v38, %v7636_v42 }
 0x3eb   : > { %v6212_v54 = vpop.f32.mrf.mxu0  ;;  %v6367_v24 = vadd.f32 %v6209_v26, %v5883_v51  ;;  %v11699_v26 = vmax.f32 %v7496_v1, %v7497_v59  ;;  %v11713_v51 = vmax.f32 %v11659_v41, %v7221_v33  ;;  %9428 = vmatmul.msk.bf16.gmra.mxu1 %vm753_vm1, %v3910_v47  ;;  %9628 = vmatmul.msk.bf16.gmra.mxu2 %vm753_vm1, %v4774_v62  ;;  %v10082_v41 = vld [vmem:[%s10156_s23 + $0x9c] sm:$0xff]  ;;  %v8052_v49 = vsel %vm6929_vm5, %v8041_v0, -inf }
 0x3ec   : > { %v3912_v10 = vshrl.u32 %v10082_v41, 16  ;;  %v3915_v33 = vshll.u32 %v10082_v41, 16  ;;  %v5992_v47 = vsel %vm5957_vm4, %v5989_v13, %v13724_v46  ;;  %v8330_v38 = vsel %vm6929_vm5, %v8319_v27, -inf  ;;  %v6674_v0 = vld [vmem:[#allocation2 + $0x5b] sm:$0xff] }
 0x3ed   : > { %v6443_v2 = vadd.f32 %v11449_v21, %v6367_v24  ;;  %v6684_v24 = vmax.f32 %v6676_v6, %v11716_v58  ;;  %v6677_v42 = vmax.f32 %v11593_v36, %v6673_v61  ;;  %v5375_v6 = vsel %vm3749_vm3, %v11661_v43, %v11719_v63 }
 0x3ee   : > { %v4994_v17 = vpop.f32.mrf.mxu2  ;;  %v3917_v13 = vrot.slane %v3915_v33, 2  ;;  %9748 = vmatmul.msk.bf16.gmra.mxu0 %vm753_vm1, %v5992_v47  ;;  %v8331_v61 = vrot.slane %v8330_v38, 4  ;;  %v6678_v43 = vmax.f32 %v11606_v48, %v6674_v0 }
 0x3ef   : > { %v6515_v39 = vmax.f32 %v6443_v2, 0.0  ;;  %v5150_v30 = vadd.f32 %v4994_v17, %v4419_v55  ;;  %v5728_v1 = vpop.f32.mrf.mxu3  ;;  %v7499_v2 = vrot.slane %v11699_v26, 2  ;;  %v8191_v55 = vsel %vm6929_vm5, %v8180_v56, -inf  ;;  %6689 = vst [vmem:[#allocation3 + $0x20] sm:$0xff] %v6684_v24 }
 0x3f0   : > { %v11721_v59 = vpop.f32.mrf.mxu1  ;;  %v7914_v17 = vrot.slane %v7913_v25, 4  ;;  %v3914_v56 = vrot.slane %v3912_v10, 1  ;;  %v7776_v24 = vmax.f32 %v7774_v53, %v7775_v28  ;;  %9688 = vmatmul.msk.bf16.gmra.mxu3 %vm753_vm1, %v5375_v6  ;;  %v8332_v29 = vmax.f32 %v8330_v38, %v8331_v61 }
 0x3f1   : > { %6587 = vst [vmem:[#allocation2 + $0x78] sm:$0xff] %v6515_v39  ;;  %v5884_v34 = vadd.f32 %v5728_v1, %v5150_v30  ;;  %v11743_v39 = vld [vmem:[%s10156_s23 + $0xa8] sm:$0xff]  ;;  %v8053_v30 = vrot.slane %v8052_v49, 4  ;;  %v13853_v61 = vrot.slane %v11664_v32, 1 }
 0x3f2   : > { %v11745_v1 = vld [vmem:[#allocation2 + $0x6c] sm:$0xff]  ;;  %v5377_v33 = vshrl.u32 %v11743_v39, 16  ;;  %v5380_v28 = vshll.u32 %v11743_v39, 16  ;;  %v11763_v48 = vor.u32 %v3917_v13, %v3914_v56  ;;  %v7777_v0 = vrot.slane %v7776_v24, 2 }
 0x3f3   : > { %v11728_v45 = vpop.f32.mrf.mxu0  ;;  %v6368_v62 = vadd.f32 %v6212_v54, %v5884_v34  ;;  %v7638_v54 = vrot.slane %v7637_v14, 2  ;;  %v8192_v34 = vrot.slane %v8191_v55, 4  ;;  %v6685_v27 = vmax.f32 %v6677_v42, %v11745_v1 }
 0x3f4   : > { %v8054_v47 = vmax.f32 %v8052_v49, %v8053_v30  ;;  %v6935_v42 = vrot.slane %v11690_v16, 1  ;;  %v7361_v49 = vmax.f32 %v11697_v4, %v7360_v22  ;;  %v5382_v56 = vrot.slane %v5380_v28, 2 }
 0x3f5   : > { %v6444_v9 = vadd.f32 %v11449_v21, %v6368_v62  ;;  %v7915_v21 = vmax.f32 %v7913_v25, %v7914_v17  ;;  %6690 = vst [vmem:[#allocation3 + $0x28] sm:$0xff] %v6685_v27  ;;  %v8193_v6 = vmax.f32 %v8191_v55, %v8192_v34  ;;  %v7223_v27 = vrot.slane %v11713_v51, 1 }
 0x3f6   : > { %v11750_v36 = vpop.f32.mrf.mxu2  ;;  %v7500_v13 = vmax.f32 %v11699_v26, %v7499_v2  ;;  %v8055_v8 = vrot.slane %v8054_v47, 2  ;;  %v3919_v55 = vsel %vm3749_vm3, %v11688_v15, %v11763_v48  ;;  %v6936_v34 = vmax.f32 %v11690_v16, %v6935_v42  ;;  %v6919_v16 = vld [vmem:[#allocation3 + $0x20] sm:$0x7] }
 0x3f7   : > { %v6516_v41 = vmax.f32 %v6444_v9, 0.0  ;;  %v11754_v46 = vpop.f32.mrf.mxu3  ;;  %v7084_v9 = vrot.slane %v11710_v31, 1  ;;  %v7916_v30 = vrot.slane %v7915_v21, 2  ;;  %v7778_v17 = vmax.f32 %v7776_v24, %v7777_v0  ;;  %v7069_v24 = vld [vmem:[#allocation3 + $0x22] sm:$0x7] }
 0x3f8   : > { %v11756_v10 = vld [vmem:[#allocation2 + $0x74] sm:$0xff]  ;;  %v11758_v53 = vpop.f32.mrf.mxu1  ;;  %v8194_v57 = vrot.slane %v8193_v6, 2  ;;  %v13852_v38 = vrot.slane %v11743_v39, 1  ;;  %v7362_v15 = vrot.slane %v7361_v49, 1  ;;  %v7224_v42 = vmax.f32 %v11713_v51, %v7223_v27 }
 0x3f9   : > { %v6686_v62 = vmax.f32 %v6678_v43, %v11756_v10  ;;  %6588 = vst [vmem:[#allocation2 + $0x80] sm:$0xff] %v6516_v41  ;;  %v5379_v43 = vrot.slane %v5377_v33, 1  ;;  %v7639_v41 = vmax.f32 %v7637_v14, %v7638_v54  ;;  %v8333_v33 = vrot.slane %v8332_v29, 2 }
 0x3fa   : > { %v4776_v4 = vsel %vm1601_vm2, %v13853_v61, %v13852_v38  ;;  %v7085_v2 = vmax.f32 %v11710_v31, %v7084_v9  ;;  %v7917_v54 = vmax.f32 %v7915_v21, %v7916_v30  ;;  %v7501_v0 = vrot.slane %v7500_v13, 1  ;;  %v7208_v9 = vld [vmem:[#allocation3 + $0x24] sm:$0x7] }
 0x3fb   : > { %v11766_v25 = vpop.f32.mrf.mxu0  ;;  %6691 = vst [vmem:[#allocation3 + $0x30] sm:$0xff] %v6686_v62  ;;  %9429 = vmatmul.msk.bf16.gmra.mxu1 %vm753_vm1, %v3919_v55  ;;  %v11789_v28 = vor.u32 %v5382_v56, %v5379_v43  ;;  %v7640_v38 = vrot.slane %v7639_v41, 1  ;;  %v8056_v61 = vmax.f32 %v8054_v47, %v8055_v8  ;;  %9629 = vmatmul.msk.bf16.gmra.mxu2 %vm753_vm1, %v4776_v4  ;;  %v7779_v35 = vrot.slane %v7778_v17, 1 }
 0x3fc   : > { %v7007_v26 = vpack.c.bf16 %v6936_v34, %v6936_v34  ;;  %v8195_v31 = vmax.f32 %v8193_v6, %v8194_v57  ;;  %v4420_v21 = vadd.f32 %v11721_v59, %v10812_v11  ;;  %v8334_v43 = vmax.f32 %v8332_v29, %v8333_v33 }
 0x3fd   : > { %v6937_v56 = vsel %vm6929_vm5, %v6919_v16, -inf  ;;  %v7086_v55 = vsel %vm6929_vm5, %v7069_v24, -inf  ;;  %v13854_v51 = vrot.slane %v11743_v39, 2  ;;  %v13855_v8 = vrot.slane %v11664_v32, 2 }
 0x3fe   : > { %v11782_v22 = vpop.f32.mrf.mxu2  ;;  %v7363_v27 = vmax.f32 %v7361_v49, %v7362_v15  ;;  %v7918_v34 = vrot.slane %v7917_v54, 1  ;;  %v5151_v57 = vadd.f32 %v11750_v36, %v4420_v21  ;;  %v5384_v11 = vsel %vm3749_vm3, %v11719_v63, %v11789_v28 }
 0x3ff   : > { %v11785_v14 = vpop.f32.mrf.mxu3  ;;  %v5994_v47 = vsel %vm5957_vm4, %v13855_v8, %v13854_v51  ;;  %v7502_v59 = vmax.f32 %v7500_v13, %v7501_v0  ;;  %v7641_v29 = vmax.f32 %v7639_v41, %v7640_v38  ;;  %v8057_v6 = vrot.slane %v8056_v61, 1  ;;  %v11821_v38 = vld [vmem:[%s10156_s23 + $0xb0] sm:$0xff] }
 0x400   : > { %v11791_v62 = vpop.f32.mrf.mxu1  ;;  %v7225_v4 = vsel %vm6929_vm5, %v7208_v9, -inf  ;;  %v7780_v33 = vmax.f32 %v7778_v17, %v7779_v35  ;;  %v6938_v16 = vrot.slane %v6937_v56, 4  ;;  %v7087_v24 = vrot.slane %v7086_v55, 4  ;;  %9749 = vmatmul.msk.bf16.gmra.mxu0 %vm753_vm1, %v5994_v47  ;;  %9689 = vmatmul.msk.bf16.gmra.mxu3 %vm753_vm1, %v5384_v11  ;;  %v7347_v11 = vld [vmem:[#allocation3 + $0x26] sm:$0x7] }
 0x401   : > { %v7156_v49 = vpack.c.bf16 %v7085_v2, %v7085_v2  ;;  %v7295_v15 = vpack.c.bf16 %v7224_v42, %v7224_v42  ;;  %v8196_v36 = vrot.slane %v8195_v31, 1  ;;  %v8335_v21 = vrot.slane %v8334_v43, 1 }
 0x402   : > { %v7434_v13 = vpack.c.bf16 %v7363_v27, %v7363_v27  ;;  %v7919_v41 = vmax.f32 %v7917_v54, %v7918_v34  ;;  %v7226_v0 = vrot.slane %v7225_v4, 4  ;;  %v5885_v35 = vadd.f32 %v11754_v46, %v5151_v57 }
 0x403   : > { %v11797_v30 = vpop.f32.mrf.mxu0  ;;  %v11823_v9 = vunpack.c.l.b16 %v7007_v26  ;;  %v7573_v51 = vpack.c.bf16 %v7502_v59, %v7502_v59  ;;  %v7712_v2 = vpack.c.bf16 %v7641_v29, %v7641_v29  ;;  %v8058_v42 = vmax.f32 %v8056_v61, %v8057_v6 }
 0x404   : > { %v7851_v8 = vpack.c.bf16 %v7780_v33, %v7780_v33  ;;  %v6939_v47 = vmax.f32 %v6937_v56, %v6938_v16  ;;  %v7088_v23 = vmax.f32 %v7086_v55, %v7087_v24  ;;  %v13726_v54 = vrot.slane %v11821_v38, 1 }
 0x405   : > { %v11828_v27 = vunpack.c.l.b16 %v7156_v49  ;;  %v11830_v46 = vunpack.c.l.b16 %v7295_v15  ;;  %v8197_v34 = vmax.f32 %v8195_v31, %v8196_v36  ;;  %v8336_v57 = vmax.f32 %v8334_v43, %v8335_v21  ;;  %v7486_v31 = vld [vmem:[#allocation3 + $0x28] sm:$0x7]  ;;  %v7764_v21 = vld [vmem:[#allocation3 + $0x2c] sm:$0x7] }
 0x406   : > { %v11812_v32 = vpop.f32.mrf.mxu2  ;;  %v11832_v3 = vunpack.c.l.b16 %v7434_v13  ;;  %v7990_v26 = vpack.c.bf16 %v7919_v41, %v7919_v41  ;;  %v7227_v59 = vmax.f32 %v7225_v4, %v7226_v0  ;;  %v6369_v61 = vadd.f32 %v11728_v45, %v5885_v35  ;;  %v7625_v36 = vld [vmem:[#allocation3 + $0x2a] sm:$0x7] }
 0x407   : > { %v11815_v63 = vpop.f32.mrf.mxu3  ;;  %v11835_v56 = vunpack.c.l.b16 %v7573_v51  ;;  %v11837_v55 = vunpack.c.l.b16 %v7712_v2  ;;  %v8129_v29 = vpack.c.bf16 %v8058_v42, %v8058_v42  ;;  %v7364_v6 = vsel %vm6929_vm5, %v7347_v11, -inf  ;;  %v10083_v41 = vld [vmem:[%s10156_s23 + $0xa4] sm:$0xff] }
 0x408   : > { %v11818_v17 = vpop.f32.mrf.mxu1  ;;  %v11840_v33 = vunpack.c.l.b16 %v7851_v8  ;;  %v6940_v16 = vrot.slane %v6939_v47, 2  ;;  %v7089_v24 = vrot.slane %v7088_v23, 2  ;;  %v13856_v43 = vrot.slane %v11743_v39, 1  ;;  %v11859_v8 = vld [vmem:[%s13718_s2] ss:$0 sm:$0xff] }
 0x409   : > { %v8268_v49 = vpack.c.bf16 %v8197_v34, %v8197_v34  ;;  %v8407_v15 = vpack.c.bf16 %v8336_v57, %v8336_v57  ;;  %v4421_v13 = vadd.f32 %v11758_v53, %v10820_v18  ;;  %v3921_v0 = vshrl.u32 %v10083_v41, 16 }
 0x40a   : > { %v4778_v4 = vsel %vm1601_vm2, %v13856_v43, %v13726_v54  ;;  %v11854_v51 = vunpack.c.l.b16 %v7990_v26  ;;  %v7228_v2 = vrot.slane %v7227_v59, 2  ;;  %v7365_v42 = vrot.slane %v7364_v6, 4 }
 0x40b   : > { %v11825_v50 = vpop.f32.mrf.mxu0  ;;  %v6445_v11 = vadd.f32 %v11859_v8, %v6369_v61  ;;  %v11864_v57 = vunpack.c.l.b16 %v8129_v29  ;;  %v7503_v18 = vsel %vm6929_vm5, %v7486_v31, -inf  ;;  %v5152_v53 = vadd.f32 %v11782_v22, %v4421_v13  ;;  %9630 = vmatmul.msk.bf16.gmra.mxu2 %vm753_vm1, %v4778_v4  ;;  %v7903_v29 = vld [vmem:[#allocation3 + $0x2e] sm:$0x7] }
 0x40c   : > { %13857 = vst [vmem:[#allocation51_spill] sm:$0xff] %v11854_v51  ;;  %v3924_v43 = vshll.u32 %v10083_v41, 16  ;;  %v6941_v26 = vmax.f32 %v6939_v47, %v6940_v16  ;;  %v7090_v54 = vmax.f32 %v7088_v23, %v7089_v24  ;;  %v7642_v19 = vsel %vm6929_vm5, %v7625_v36, -inf }
 0x40d   : > { %13858 = vst [vmem:[#allocation52_spill] sm:$0xff] %v11864_v57  ;;  %v7781_v7 = vsel %vm6929_vm5, %v7764_v21, -inf  ;;  %v11873_v61 = vunpack.c.l.b16 %v8268_v49  ;;  %v11875_v51 = vunpack.c.l.b16 %v8407_v15  ;;  %v3923_v57 = vrot.slane %v3921_v0, 1 }
 0x40e   : > { %v11847_v45 = vpop.f32.mrf.mxu2  ;;  %v5386_v31 = vshrl.u32 %v11821_v38, 16  ;;  %v7229_v22 = vmax.f32 %v7227_v59, %v7228_v2  ;;  %v7366_v13 = vmax.f32 %v7364_v6, %v7365_v42  ;;  %v7504_v41 = vrot.slane %v7503_v18, 4 }
 0x40f   : > { %v11852_v35 = vpop.f32.mrf.mxu3  ;;  %13859 = vst [vmem:[#allocation53_spill] sm:$0xff] %v11875_v51  ;;  %v6517_v4 = vmax.f32 %v6445_v11, 0.0  ;;  %v7643_v47 = vrot.slane %v7642_v19, 4  ;;  %v7782_v23 = vrot.slane %v7781_v7, 4  ;;  %v5886_v16 = vadd.f32 %v11785_v14, %v5152_v53 }
 0x410   : > { %v11862_v34 = vpop.f32.mrf.mxu1  ;;  %v4422_v24 = vadd.f32 %v11791_v62, %v10829_v20  ;;  %v6942_v36 = vrot.slane %v6941_v26, 1  ;;  %v7091_v49 = vrot.slane %v7090_v54, 1  ;;  %v7920_v15 = vsel %vm6929_vm5, %v7903_v29, -inf }
 0x411   : > { %6589 = vst [vmem:[#allocation2 + $0x88] sm:$0xff] %v6517_v4  ;;  %v3926_v21 = vrot.slane %v3924_v43, 2  ;;  %v6370_v51 = vadd.f32 %v11766_v25, %v5886_v16  ;;  %v5388_v6 = vrot.slane %v5386_v31, 1  ;;  %v5389_v2 = vshll.u32 %v11821_v38, 16 }
 0x412   : > { %v5153_v59 = vadd.f32 %v11812_v32, %v4422_v24  ;;  %v7230_v11 = vrot.slane %v7229_v22, 1  ;;  %v7367_v14 = vrot.slane %v7366_v13, 2  ;;  %v11885_v53 = vmax.f32 %v7503_v18, %v7504_v41 }
 0x413   : > { %v11871_v5 = vpop.f32.mrf.mxu0  ;;  %v11887_v20 = vor.u32 %v3926_v21, %v3923_v57  ;;  %v6446_v29 = vadd.f32 %v11859_v8, %v6370_v51  ;;  %v5391_v4 = vrot.slane %v5389_v2, 2  ;;  %v5995_v25 = vrot.slane %v11821_v38, 2 }
 0x414   : > { %v5887_v43 = vadd.f32 %v11815_v63, %v5153_v59  ;;  %v11892_v16 = vmax.f32 %v7642_v19, %v7643_v47  ;;  %v11894_v32 = vmax.f32 %v7781_v7, %v7782_v23  ;;  %v4423_v31 = vadd.f32 %v11818_v17, %v10837_v37 }
 0x415   : > { %v3928_v57 = vsel %vm3749_vm3, %v11763_v48, %v11887_v20  ;;  %v6518_v41 = vmax.f32 %v6446_v29, 0.0  ;;  %v11905_v63 = vor.u32 %v5391_v4, %v5388_v6  ;;  %v13860_v7 = vrot.slane %v11743_v39, 2  ;;  %v10085_v6 = vld [vmem:[%s10156_s23 + $0xac] sm:$0xff] }
 0x416   : > { %v5006_v0 = vpop.f32.mrf.mxu2  ;;  %v6371_v51 = vadd.f32 %v11797_v30, %v5887_v43  ;;  %9430 = vmatmul.msk.bf16.gmra.mxu1 %vm753_vm1, %v3928_v57  ;;  %v11912_v37 = vmax.f32 %v6941_v26, %v6942_v36  ;;  %v11914_v17 = vmax.f32 %v7090_v54, %v7091_v49  ;;  %v7921_v48 = vrot.slane %v7920_v15, 4 }
 0x417   : > { %v5740_v42 = vpop.f32.mrf.mxu3  ;;  %v5996_v19 = vsel %vm5957_vm4, %v13860_v7, %v5995_v25  ;;  %v5154_v30 = vadd.f32 %v11847_v45, %v4423_v31  ;;  %v11918_v47 = vmax.f32 %v7229_v22, %v7230_v11  ;;  %6590 = vst [vmem:[#allocation2 + $0x90] sm:$0xff] %v6518_v41  ;;  %v5393_v39 = vsel %vm3749_vm3, %v11789_v28, %v11905_v63  ;;  %v11933_v22 = vld [vmem:[%s10156_s23 + $0xb8] sm:$0xff] }
 0x418   : > { %v4278_v62 = vpop.f32.mrf.mxu1  ;;  %9750 = vmatmul.msk.bf16.gmra.mxu0 %vm753_vm1, %v5996_v19  ;;  %v6447_v23 = vadd.f32 %v11859_v8, %v6371_v51  ;;  %v4424_v26 = vadd.f32 %v11862_v34, %v10846_v52  ;;  %v11926_v54 = vmax.f32 %v7366_v13, %v7367_v14  ;;  %v7506_v24 = vrot.slane %v11885_v53, 2  ;;  %9690 = vmatmul.msk.bf16.gmra.mxu3 %vm753_vm1, %v5393_v39 }
 0x419   : > { %v7645_v36 = vrot.slane %v11892_v16, 2  ;;  %v7784_v45 = vrot.slane %v11894_v32, 2  ;;  %v5888_v59 = vadd.f32 %v11852_v35, %v5154_v30  ;;  %v3930_v2 = vshrl.u32 %v10085_v6, 16 }
 0x41a   : > { %v6519_v21 = vmax.f32 %v6447_v23, 0.0  ;;  %v5155_v28 = vadd.f32 %v5006_v0, %v4424_v26  ;;  %v7008_v34 = vpack.c.bf16 %v11912_v37, %v11912_v37  ;;  %v7157_v13 = vpack.c.bf16 %v11914_v17, %v11914_v17  ;;  %v8042_v26 = vld [vmem:[#allocation3 + $0x30] sm:$0x7] }
 0x41b   : > { %v11901_v18 = vpop.f32.mrf.mxu0  ;;  %v11941_v11 = vmax.f32 %v7920_v15, %v7921_v48  ;;  %v3933_v14 = vshll.u32 %v10085_v6, 16  ;;  %v6372_v43 = vadd.f32 %v11825_v50, %v5888_v59  ;;  %v3932_v31 = vrot.slane %v3930_v2, 1 }
 0x41c   : > { %6591 = vst [vmem:[#allocation2 + $0x98] sm:$0xff] %v6519_v21  ;;  %v5889_v4 = vadd.f32 %v5740_v42, %v5155_v28  ;;  %v4779_v35 = vrot.slane %v11933_v22, 1  ;;  %v4425_v0 = vadd.f32 %v4278_v62, %v10854_v40  ;;  %v5395_v41 = vshrl.u32 %v11933_v22, 16  ;;  %v6697_v40 = vld [vmem:[#allocation2 + $0x7d] sm:$0xff] }
 0x41d   : > { %v3935_v57 = vrot.slane %v3933_v14, 2  ;;  %v5398_v51 = vshll.u32 %v11933_v22, 16  ;;  %v7296_v15 = vpack.c.bf16 %v11918_v47, %v11918_v47  ;;  %v6448_v19 = vadd.f32 %v11859_v8, %v6372_v43  ;;  %v8181_v14 = vld [vmem:[#allocation3 + $0x32] sm:$0x7] }
 0x41e   : > { %v5009_v49 = vpop.f32.mrf.mxu2  ;;  %v6373_v37 = vadd.f32 %v11871_v5, %v5889_v4  ;;  %v13861_v50 = vrot.slane %v11821_v38, 1  ;;  %v5397_v48 = vrot.slane %v5395_v41, 1  ;;  %v11961_v39 = vmax.f32 %v11885_v53, %v7506_v24 }
 0x41f   : > { %v5743_v52 = vpop.f32.mrf.mxu3  ;;  %v11957_v62 = vor.u32 %v3935_v57, %v3932_v31  ;;  %v5400_v30 = vrot.slane %v5398_v51, 2  ;;  %v5156_v23 = vadd.f32 %v5009_v49, %v4425_v0  ;;  %v6520_v21 = vmax.f32 %v6448_v19, 0.0 }
 0x420   : > { %v4280_v29 = vpop.f32.mrf.mxu1  ;;  %v4780_v42 = vsel %vm1601_vm2, %v13861_v50, %v4779_v35  ;;  %v6449_v5 = vadd.f32 %v11859_v8, %v6373_v37  ;;  %v5997_v59 = vrot.slane %v11933_v22, 2  ;;  %v7369_v28 = vrot.slane %v11926_v54, 1 }
 0x421   : > { %9631 = vmatmul.msk.bf16.gmra.mxu2 %vm753_vm1, %v4780_v42  ;;  %v11967_v6 = vmax.f32 %v11892_v16, %v7645_v36  ;;  %v11970_v2 = vmax.f32 %v11894_v32, %v7784_v45  ;;  %v5890_v43 = vadd.f32 %v5743_v52, %v5156_v23  ;;  %v6701_v53 = vmax.f32 %v11716_v58, %v6697_v40  ;;  %v8320_v36 = vld [vmem:[#allocation3 + $0x34] sm:$0x7]  ;;  %v11999_v40 = vld [vmem:[%s10156_s23 + $0xc0] sm:$0xff] }
 0x422   : > { %6592 = vst [vmem:[#allocation2 + $0xa0] sm:$0xff] %v6520_v21  ;;  %v6521_v24 = vmax.f32 %v6449_v5, 0.0  ;;  %v11973_v4 = vor.u32 %v5400_v30, %v5397_v48  ;;  %v4426_v31 = vadd.f32 %v4280_v29, %v10863_v12  ;;  %v7923_v57 = vrot.slane %v11941_v11, 2 }
 0x423   : > { %v6229_v7 = vpop.f32.mrf.mxu0  ;;  %v8059_v16 = vsel %vm6929_vm5, %v8042_v26, -inf  ;;  %v11978_v32 = vld [vmem:[#allocation2 + $0x96] sm:$0xff]  ;;  %v3937_v45 = vsel %vm3749_vm3, %v11887_v20, %v11957_v62  ;;  %v6374_v58 = vadd.f32 %v11901_v18, %v5890_v43  ;;  %v8198_v41 = vsel %vm6929_vm5, %v8181_v14, -inf  ;;  %v6698_v18 = vld [vmem:[#allocation2 + $0x85] sm:$0xff] }
 0x424   : > { %v6709_v12 = vmax.f32 %v6701_v53, %v11978_v32  ;;  %6593 = vst [vmem:[#allocation2 + $0xa8] sm:$0xff] %v6521_v24  ;;  %v5998_v29 = vsel %vm5957_vm4, %v5995_v25, %v5997_v59  ;;  %v11991_v19 = vunpack.c.l.b16 %v7008_v34  ;;  %v11994_v37 = vmax.f32 %v11926_v54, %v7369_v28  ;;  %v6699_v25 = vld [vmem:[#allocation2 + $0x8d] sm:$0xff] }
 0x425   : > { %v7508_v20 = vrot.slane %v11961_v39, 1  ;;  %v6450_v50 = vadd.f32 %v11859_v8, %v6374_v58  ;;  %v8060_v48 = vrot.slane %v8059_v16, 4  ;;  %v8337_v38 = vsel %vm6929_vm5, %v8320_v36, -inf  ;;  %v10086_v26 = vld [vmem:[%s10156_s23 + $0xb4] sm:$0xff] }
 0x426   : > { %v5011_v49 = vpop.f32.mrf.mxu2  ;;  %6714 = vst [vmem:[#allocation3 + $0x40] sm:$0xff] %v6709_v12  ;;  %9431 = vmatmul.msk.bf16.gmra.mxu1 %vm753_vm1, %v3937_v45  ;;  %v5402_v54 = vsel %vm3749_vm3, %v11905_v63, %v11973_v4  ;;  %v8199_v30 = vrot.slane %v8198_v41, 4  ;;  %v3939_v21 = vshrl.u32 %v10086_v26, 16  ;;  %v3942_v5 = vshll.u32 %v10086_v26, 16 }
 0x427   : > { %v5745_v0 = vpop.f32.mrf.mxu3  ;;  %v5157_v51 = vadd.f32 %v5011_v49, %v4426_v31  ;;  %v6522_v23 = vmax.f32 %v6450_v50, 0.0  ;;  %v6702_v28 = vmax.f32 %v11745_v1, %v6698_v18  ;;  %v4781_v49 = vrot.slane %v11999_v40, 1 }
 0x428   : > { %v4283_v52 = vpop.f32.mrf.mxu1  ;;  %9751 = vmatmul.msk.bf16.gmra.mxu0 %vm753_vm1, %v5998_v29  ;;  %v8338_v53 = vrot.slane %v8337_v38, 4  ;;  %v6703_v24 = vmax.f32 %v11756_v10, %v6699_v25  ;;  %9691 = vmatmul.msk.bf16.gmra.mxu3 %vm753_vm1, %v5402_v54  ;;  %v5404_v63 = vshrl.u32 %v11999_v40, 16  ;;  %v7647_v58 = vrot.slane %v11967_v6, 1 }
 0x429   : > { %v5891_v34 = vadd.f32 %v5745_v0, %v5157_v51  ;;  %v4427_v43 = vadd.f32 %v4283_v52, %v10871_v60  ;;  %v12012_v31 = vld [vmem:[#allocation2 + $0x9e] sm:$0xff]  ;;  %6594 = vst [vmem:[#allocation2 + $0xb0] sm:$0xff] %v6522_v23  ;;  %v8061_v52 = vmax.f32 %v8059_v16, %v8060_v48  ;;  %v3941_v12 = vrot.slane %v3939_v21, 1 }
 0x42a   : > { %v6710_v36 = vmax.f32 %v6702_v28, %v12012_v31  ;;  %v3944_v29 = vrot.slane %v3942_v5, 2  ;;  %v4782_v25 = vsel %vm1601_vm2, %v4779_v35, %v4781_v49  ;;  %v7179_v16 = vunpack.c.l.b16 %v7157_v13 }
 0x42b   : > { %v6232_v42 = vpop.f32.mrf.mxu0  ;;  %v6375_v14 = vadd.f32 %v6229_v7, %v5891_v34  ;;  %v5407_v7 = vshll.u32 %v11999_v40, 16  ;;  %v12020_v10 = vld [vmem:[#allocation2 + $0xa6] sm:$0xff]  ;;  %v7924_v48 = vmax.f32 %v11941_v11, %v7923_v57  ;;  %v8200_v54 = vmax.f32 %v8198_v41, %v8199_v30 }
 0x42c   : > { %6715 = vst [vmem:[#allocation3 + $0x48] sm:$0xff] %v6710_v36  ;;  %v6711_v18 = vmax.f32 %v6703_v24, %v12020_v10  ;;  %v7318_v26 = vunpack.c.l.b16 %v7296_v15  ;;  %v8339_v21 = vmax.f32 %v8337_v38, %v8338_v53  ;;  %v5406_v5 = vrot.slane %v5404_v63, 1 }
 0x42d   : > { %v6451_v1 = vadd.f32 %v11859_v8, %v6375_v14  ;;  %v5409_v28 = vrot.slane %v5407_v7, 2  ;;  %v7786_v35 = vrot.slane %v11970_v2, 1  ;;  %v8062_v14 = vrot.slane %v8061_v52, 2  ;;  %v7209_v63 = vld [vmem:[#allocation3 + $0x44] sm:$0x7] }
 0x42e   : > { %v5014_v0 = vpop.f32.mrf.mxu2  ;;  %6716 = vst [vmem:[#allocation3 + $0x50] sm:$0xff] %v6711_v18  ;;  %v12040_v17 = vor.u32 %v3944_v29, %v3941_v12  ;;  %v7435_v11 = vpack.c.bf16 %v11994_v37, %v11994_v37  ;;  %v7509_v57 = vmax.f32 %v11961_v39, %v7508_v20  ;;  %v7648_v47 = vmax.f32 %v11967_v6, %v7647_v58  ;;  %v7070_v6 = vld [vmem:[#allocation3 + $0x42] sm:$0x7] }
 0x42f   : > { %v5158_v60 = vadd.f32 %v5014_v0, %v4427_v43  ;;  %v5748_v45 = vpop.f32.mrf.mxu3  ;;  %v6523_v50 = vmax.f32 %v6451_v1, 0.0  ;;  %v6920_v43 = vld [vmem:[#allocation3 + $0x40] sm:$0x7]  ;;  %v5999_v15 = vrot.slane %v11999_v40, 2  ;;  %v12051_v41 = vsel %vm7040_vm6, %v11991_v19, %v11823_v9 }
 0x430   : > { %v12022_v51 = vpop.f32.mrf.mxu1  ;;  %v12055_v38 = vsel %vm7040_vm6, %v7179_v16, %v11828_v27  ;;  %v8201_v30 = vrot.slane %v8200_v54, 2  ;;  %v8340_v37 = vrot.slane %v8339_v21, 2  ;;  %v6944_v39 = vsel %vm6929_vm5, %v6920_v43, -inf }
 0x431   : > { %v5892_v34 = vadd.f32 %v5748_v45, %v5158_v60  ;;  %9632 = vmatmul.msk.bf16.gmra.mxu2 %vm753_vm1, %v4782_v25  ;;  %6595 = vst [vmem:[#allocation2 + $0xb8] sm:$0xff] %v6523_v50  ;;  %v12060_v20 = vor.u32 %v5409_v28, %v5406_v5  ;;  %v12065_v9 = vsel %vm7040_vm6, %v7318_v26, %v11830_v46  ;;  %v7457_v7 = vunpack.c.l.b16 %v7435_v11 }
 0x432   : > { %v7787_v27 = vmax.f32 %v11970_v2, %v7786_v35  ;;  %v8063_v19 = vmax.f32 %v8061_v52, %v8062_v14  ;;  %v3946_v0 = vsel %vm3749_vm3, %v11957_v62, %v12040_v17  ;;  %v7574_v60 = vpack.c.bf16 %v7509_v57, %v7509_v57  ;;  %v12081_v2 = vld [vmem:[%s10156_s23 + $0xc8] sm:$0xff] }
 0x433   : > { %v12034_v23 = vpop.f32.mrf.mxu0  ;;  %v6376_v13 = vadd.f32 %v6232_v42, %v5892_v34  ;;  %v7925_v42 = vrot.slane %v7924_v48, 1  ;;  %v7713_v45 = vpack.c.bf16 %v7648_v47, %v7648_v47  ;;  %v6000_v46 = vsel %vm5957_vm4, %v5997_v59, %v5999_v15 }
 0x434   : > { %v8202_v58 = vmax.f32 %v8200_v54, %v8201_v30  ;;  %v6945_v52 = vrot.slane %v6944_v39, 4  ;;  %v7093_v62 = vsel %vm6929_vm5, %v7070_v6, -inf  ;;  %v8341_v18 = vmax.f32 %v8339_v21, %v8340_v37  ;;  %v10087_v54 = vld [vmem:[%s10156_s23 + $0xbc] sm:$0xff]  ;;  %v7348_v21 = vld [vmem:[#allocation3 + $0x46] sm:$0x7] }
 0x435   : > { %v6452_v24 = vadd.f32 %v11859_v8, %v6376_v13  ;;  %v7926_v29 = vmax.f32 %v7924_v48, %v7925_v42  ;;  %v7232_v50 = vsel %vm6929_vm5, %v7209_v63, -inf  ;;  %v5411_v22 = vsel %vm3749_vm3, %v11973_v4, %v12060_v20 }
 0x436   : > { %v12057_v53 = vpop.f32.mrf.mxu2  ;;  %9432 = vmatmul.msk.bf16.gmra.mxu1 %vm753_vm1, %v3946_v0  ;;  %v7852_v59 = vpack.c.bf16 %v7787_v27, %v7787_v27  ;;  %v8064_v16 = vrot.slane %v8063_v19, 1  ;;  %v3948_v34 = vshrl.u32 %v10087_v54, 16  ;;  %v3951_v26 = vshll.u32 %v10087_v54, 16 }
 0x437   : > { %v12071_v36 = vpop.f32.mrf.mxu3  ;;  %v6524_v12 = vmax.f32 %v6452_v24, 0.0  ;;  %v7596_v5 = vunpack.c.l.b16 %v7574_v60  ;;  %v7094_v48 = vrot.slane %v7093_v62, 4  ;;  %v4783_v28 = vrot.slane %v12081_v2, 1 }
 0x438   : > { %v12073_v1 = vpop.f32.mrf.mxu1  ;;  %9752 = vmatmul.msk.bf16.gmra.mxu0 %vm753_vm1, %v6000_v46  ;;  %v5413_v35 = vshrl.u32 %v12081_v2, 16  ;;  %v8203_v14 = vrot.slane %v8202_v58, 1  ;;  %v6946_v43 = vmax.f32 %v6944_v39, %v6945_v52  ;;  %v7233_v13 = vrot.slane %v7232_v50, 4  ;;  %9692 = vmatmul.msk.bf16.gmra.mxu3 %vm753_vm1, %v5411_v22  ;;  %v7487_v52 = vld [vmem:[#allocation3 + $0x48] sm:$0x7] }
 0x439   : > { %6596 = vst [vmem:[#allocation2 + $0xc0] sm:$0xff] %v6524_v12  ;;  %v5416_v4 = vshll.u32 %v12081_v2, 16  ;;  %v12101_v57 = vsel %vm7040_vm6, %v7457_v7, %v11832_v3  ;;  %v7735_v47 = vunpack.c.l.b16 %v7713_v45  ;;  %v7991_v42 = vpack.c.bf16 %v7926_v29, %v7926_v29 }
 0x43a   : > { %v8342_v30 = vrot.slane %v8341_v18, 1  ;;  %v8065_v37 = vmax.f32 %v8063_v19, %v8064_v16  ;;  %v7371_v6 = vsel %vm6929_vm5, %v7348_v21, -inf  ;;  %v3950_v24 = vrot.slane %v3948_v34, 1  ;;  %v7626_v19 = vld [vmem:[#allocation3 + $0x4a] sm:$0x7] }
 0x43b   : > { %v12089_v25 = vpop.f32.mrf.mxu0  ;;  %v3953_v39 = vrot.slane %v3951_v26, 2  ;;  %v7874_v63 = vunpack.c.l.b16 %v7852_v59  ;;  %v7095_v0 = vmax.f32 %v7093_v62, %v7094_v48  ;;  %v4784_v60 = vsel %vm1601_vm2, %v4781_v49, %v4783_v28  ;;  %v7904_v34 = vld [vmem:[#allocation3 + $0x4e] sm:$0x7] }
 0x43c   : > { %v5415_v3 = vrot.slane %v5413_v35, 1  ;;  %v8204_v7 = vmax.f32 %v8202_v58, %v8203_v14  ;;  %v6947_v45 = vrot.slane %v6946_v43, 2  ;;  %v7234_v46 = vmax.f32 %v7232_v50, %v7233_v13  ;;  %v7765_v58 = vld [vmem:[#allocation3 + $0x4c] sm:$0x7] }
 0x43d   : > { %v5418_v12 = vrot.slane %v5416_v4, 2  ;;  %v12115_v22 = vsel %vm7040_vm6, %v7596_v5, %v11835_v56  ;;  %v12119_v62 = vsel %vm7040_vm6, %v7735_v47, %v11837_v55  ;;  %v8013_v59 = vunpack.c.l.b16 %v7991_v42 }
 0x43e   : > { %v12097_v11 = vpop.f32.mrf.mxu2  ;;  %v7372_v16 = vrot.slane %v7371_v6, 4  ;;  %v8130_v49 = vpack.c.bf16 %v8065_v37, %v8065_v37  ;;  %v8343_v54 = vmax.f32 %v8341_v18, %v8342_v30  ;;  %v4428_v50 = vadd.f32 %v12022_v51, %v10880_v44 }
 0x43f   : > { %v12111_v29 = vpop.f32.mrf.mxu3  ;;  %v12123_v26 = vor.u32 %v3953_v39, %v3950_v24  ;;  %v7096_v48 = vrot.slane %v7095_v0, 2  ;;  %v7510_v56 = vsel %vm6929_vm5, %v7487_v52, -inf  ;;  %v7649_v5 = vsel %vm6929_vm5, %v7626_v19, -inf  ;;  %v6722_v19 = vld [vmem:[#allocation2 + $0xaf] sm:$0xff] }
 0x440   : > { %v12104_v27 = vpop.f32.mrf.mxu1  ;;  %v13727_v55 = vrot.slane %v12081_v2, 2  ;;  %v8269_v35 = vpack.c.bf16 %v8204_v7, %v8204_v7  ;;  %v6948_v18 = vmax.f32 %v6946_v43, %v6947_v45  ;;  %v7235_v14 = vrot.slane %v7234_v46, 2 }
 0x441   : > { %9633 = vmatmul.msk.bf16.gmra.mxu2 %vm753_vm1, %v4784_v60  ;;  %v12131_v13 = vor.u32 %v5418_v12, %v5415_v3  ;;  %v7373_v44 = vmax.f32 %v7371_v6, %v7372_v16  ;;  %v7788_v51 = vsel %vm6929_vm5, %v7765_v58, -inf  ;;  %v7927_v47 = vsel %vm6929_vm5, %v7904_v34, -inf  ;;  %v13862_v60 = vld [vmem:[#allocation51_spill] sm:$0xff]  ;;  %v8182_v58 = vld [vmem:[#allocation3 + $0x52] sm:$0x7] }
 0x442   : > { %v5159_v42 = vadd.f32 %v12057_v53, %v4428_v50  ;;  %v8408_v30 = vpack.c.bf16 %v8343_v54, %v8343_v54  ;;  %v7511_v37 = vrot.slane %v7510_v56, 4  ;;  %v7650_v24 = vrot.slane %v7649_v5, 4 }
 0x443   : > { %v12129_v21 = vpop.f32.mrf.mxu0  ;;  %v3955_v39 = vsel %vm3749_vm3, %v12040_v17, %v12123_v26  ;;  %v12141_v43 = vsel %vm7040_vm6, %v7874_v63, %v11840_v33  ;;  %v12145_v6 = vsel %vm7040_vm6, %v8013_v59, %v13862_v60  ;;  %v12147_v3 = vmax.f32 %v7095_v0, %v7096_v48  ;;  %v8043_v63 = vld [vmem:[#allocation3 + $0x50] sm:$0x7] }
 0x444   : > { %v6002_v53 = vsel %vm5957_vm4, %v5999_v15, %v13727_v55  ;;  %v6949_v45 = vrot.slane %v6948_v18, 1  ;;  %v12156_v17 = vmax.f32 %v7234_v46, %v7235_v14  ;;  %v7789_v52 = vrot.slane %v7788_v51, 4  ;;  %v13863_v48 = vld [vmem:[#allocation38_spill] sm:$0xff] }
 0x445   : > { %v7928_v33 = vrot.slane %v7927_v47, 4  ;;  %v12158_v12 = vunpack.c.l.b16 %v8130_v49  ;;  %v7374_v59 = vrot.slane %v7373_v44, 2  ;;  %v5893_v0 = vadd.f32 %v12071_v36, %v5159_v42  ;;  %v8321_v42 = vld [vmem:[#allocation3 + $0x54] sm:$0x7] }
 0x446   : > { %v5021_v4 = vpop.f32.mrf.mxu2  ;;  %9433 = vmatmul.msk.bf16.gmra.mxu1 %vm753_vm1, %v3955_v39  ;;  %v5420_v40 = vsel %vm3749_vm3, %v12060_v20, %v12131_v13  ;;  %v12165_v15 = vunpack.c.l.b16 %v8269_v35  ;;  %v12167_v16 = vunpack.c.l.b16 %v8408_v30  ;;  %v7512_v46 = vmax.f32 %v7510_v56, %v7511_v37 }
 0x447   : > { %v12169_v54 = vmax.f32 %v7649_v5, %v7650_v24  ;;  %v5755_v49 = vpop.f32.mrf.mxu3  ;;  %v8066_v36 = vsel %vm6929_vm5, %v8043_v63, -inf  ;;  %v6726_v50 = vmax.f32 %v11978_v32, %v6722_v19  ;;  %v4429_v20 = vadd.f32 %v12073_v1, %v13863_v48 }
 0x448   : > { %v12154_v7 = vpop.f32.mrf.mxu1  ;;  %9753 = vmatmul.msk.bf16.gmra.mxu0 %vm753_vm1, %v6002_v53  ;;  %v12177_v35 = vmax.f32 %v6948_v18, %v6949_v45  ;;  %v12180_v56 = vmax.f32 %v7788_v51, %v7789_v52  ;;  %v12182_v5 = vmax.f32 %v7927_v47, %v7928_v33  ;;  %9693 = vmatmul.msk.bf16.gmra.mxu3 %vm753_vm1, %v5420_v40  ;;  %v8205_v37 = vsel %vm6929_vm5, %v8182_v58, -inf  ;;  %v13864_v47 = vld [vmem:[#allocation39_spill] sm:$0xff]  ;;  %v10088_v52 = vld [vmem:[%s10156_s23 + $0xc4] sm:$0xff] }
 0x449   : > { %v12185_v30 = vmax.f32 %v7373_v44, %v7374_v59  ;;  %v6377_v32 = vadd.f32 %v12034_v23, %v5893_v0  ;;  %v5160_v1 = vadd.f32 %v12097_v11, %v4429_v20  ;;  %v7513_v24 = vrot.slane %v7512_v46, 2  ;;  %v6723_v0 = vld [vmem:[#allocation2 + $0xb7] sm:$0xff] }
 0x44a   : > { %v7652_v51 = vrot.slane %v12169_v54, 2  ;;  %v8067_v39 = vrot.slane %v8066_v36, 4  ;;  %v4430_v60 = vadd.f32 %v12104_v27, %v13864_v47  ;;  %v8344_v44 = vsel %vm6929_vm5, %v8321_v42, -inf  ;;  %v12206_v20 = vld [vmem:[%s10156_s23 + $0xd0] sm:$0xff] }
 0x44b   : > { %v12190_v18 = vpop.f32.mrf.mxu0  ;;  %v12197_v45 = vadd.f32 %v11859_v8, %v6377_v32  ;;  %v5894_v23 = vadd.f32 %v12111_v29, %v5160_v1  ;;  %v3957_v11 = vshrl.u32 %v10088_v52, 16  ;;  %v7791_v33 = vrot.slane %v12180_v56, 2 }
 0x44c   : > { %v7930_v63 = vrot.slane %v12182_v5, 2  ;;  %v8206_v19 = vrot.slane %v8205_v37, 4  ;;  %v5161_v59 = vadd.f32 %v5021_v4, %v4430_v60  ;;  %v3960_v48 = vshll.u32 %v10088_v52, 16 }
 0x44d   : > { %v6525_v27 = vmax.f32 %v12197_v45, 0.0  ;;  %v6378_v40 = vadd.f32 %v12089_v25, %v5894_v23  ;;  %v3959_v58 = vrot.slane %v3957_v11, 1  ;;  %v7376_v29 = vrot.slane %v12185_v30, 1 }
 0x44e   : > { %v5024_v53 = vpop.f32.mrf.mxu2  ;;  %v8068_v32 = vmax.f32 %v8066_v36, %v8067_v39  ;;  %v8345_v1 = vrot.slane %v8344_v44, 4  ;;  %v5895_v47 = vadd.f32 %v5755_v49, %v5161_v59  ;;  %v3962_v60 = vrot.slane %v3960_v48, 2  ;;  %v6724_v36 = vld [vmem:[#allocation2 + $0xbf] sm:$0xff] }
 0x44f   : > { %v6734_v14 = vmax.f32 %v6726_v50, %v6525_v27  ;;  %v12214_v4 = vadd.f32 %v11859_v8, %v6378_v40  ;;  %v4785_v25 = vrot.slane %v12206_v20, 1  ;;  %v12217_v23 = vmax.f32 %v7512_v46, %v7513_v24  ;;  %v5758_v55 = vpop.f32.mrf.mxu3 }
 0x450   : > { %v12208_v42 = vpop.f32.mrf.mxu1  ;;  %v8207_v52 = vmax.f32 %v8205_v37, %v8206_v19  ;;  %v6727_v11 = vmax.f32 %v12012_v31, %v6723_v0  ;;  %v6379_v34 = vadd.f32 %v12129_v21, %v5895_v47  ;;  %v12222_v39 = vor.u32 %v3962_v60, %v3959_v58  ;;  %v13865_v21 = vld [vmem:[#allocation40_spill] sm:$0xff] }
 0x451   : > { %6739 = vst [vmem:[#allocation3 + $0x60] sm:$0xff] %v6734_v14  ;;  %v13730_v49 = vmax.f32 %v12214_v4, 0.0  ;;  %v4786_v50 = vsel %vm1601_vm2, %v4783_v28, %v4785_v25  ;;  %v5422_v46 = vshrl.u32 %v12206_v20, 16  ;;  %v8069_v37 = vrot.slane %v8068_v32, 2 }
 0x452   : > { %v8346_v24 = vmax.f32 %v8344_v44, %v8345_v1  ;;  %v12231_v31 = vadd.f32 %v11859_v8, %v6379_v34  ;;  %v4431_v14 = vadd.f32 %v12154_v7, %v13865_v21  ;;  %9634 = vmatmul.msk.bf16.gmra.mxu2 %vm753_vm1, %v4786_v50  ;;  %v3964_v59 = vsel %vm3749_vm3, %v12123_v26, %v12222_v39 }
 0x453   : > { %v6735_v19 = vmax.f32 %v6727_v11, %v13730_v49  ;;  %v5424_v28 = vrot.slane %v5422_v46, 1  ;;  %v5425_v0 = vshll.u32 %v12206_v20, 16  ;;  %v12242_v40 = vpop.f32.mrf.mxu0  ;;  %v6728_v34 = vmax.f32 %v12020_v10, %v6724_v36  ;;  %v13867_v46 = vld [vmem:[#allocation52_spill] sm:$0xff] }
 0x454   : > { %v13728_v44 = vmax.f32 %v12231_v31, 0.0  ;;  %v6003_v7 = vrot.slane %v12206_v20, 2  ;;  %v5162_v58 = vadd.f32 %v5024_v53, %v4431_v14  ;;  %v7653_v1 = vmax.f32 %v12169_v54, %v7652_v51 }
 0x455   : > { %v7792_v47 = vmax.f32 %v12180_v56, %v7791_v33  ;;  %v8208_v60 = vrot.slane %v8207_v52, 2  ;;  %6740 = vst [vmem:[#allocation3 + $0x68] sm:$0xff] %v6735_v19  ;;  %v5427_v26 = vrot.slane %v5425_v0, 2  ;;  %v8347_v11 = vrot.slane %v8346_v24, 2 }
 0x456   : > { %v12247_v48 = vpop.f32.mrf.mxu2  ;;  %9434 = vmatmul.msk.bf16.gmra.mxu1 %vm753_vm1, %v3964_v59  ;;  %v6736_v10 = vmax.f32 %v6728_v34, %v13728_v44  ;;  %v13866_v36 = vrot.slane %v12081_v2, 2  ;;  %v5896_v50 = vadd.f32 %v5758_v55, %v5162_v58  ;;  %v12262_v54 = vsel %vm7040_vm6, %v12158_v12, %v13867_v46  ;;  %v13877_v44 = vld [vmem:[#allocation47_spill] sm:$0xff] }
 0x457   : > { %v13868_v56 = vrot.slane %v12147_v3, 1  ;;  %v13869_v33 = vrot.slane %v12156_v17, 1  ;;  %v12270_v14 = vor.u32 %v5427_v26, %v5424_v28  ;;  %v7009_v55 = vpack.c.bf16 %v12177_v35, %v12177_v35  ;;  %v12285_v28 = vld [vmem:[%s10156_s23 + $0xd8] sm:$0xff] }
 0x458   : > { %v6004_v53 = vsel %vm5957_vm4, %v13866_v36, %v6003_v7  ;;  %v12273_v2 = vpop.f32.mrf.mxu1  ;;  %v7931_v12 = vmax.f32 %v12182_v5, %v7930_v63  ;;  %v8070_v19 = vmax.f32 %v8068_v32, %v8069_v37  ;;  %v6380_v59 = vadd.f32 %v12190_v18, %v5896_v50  ;;  %6741 = vst [vmem:[#allocation3 + $0x70] sm:$0xff] %v6736_v10  ;;  %v5760_v18 = vpop.f32.mrf.mxu3  ;;  %v13870_v63 = vld [vmem:[#allocation53_spill] sm:$0xff] }
 0x459   : > { %v7099_v51 = vmax.f32 %v12147_v3, %v13868_v56  ;;  %v7238_v21 = vmax.f32 %v12156_v17, %v13869_v33  ;;  %9754 = vmatmul.msk.bf16.gmra.mxu0 %vm753_vm1, %v6004_v53  ;;  %v7377_v3 = vmax.f32 %v12185_v30, %v7376_v29  ;;  %v7515_v0 = vrot.slane %v12217_v23, 1 }
 0x45a   : > { %v7654_v34 = vrot.slane %v7653_v1, 1  ;;  %v5429_v17 = vsel %vm3749_vm3, %v12131_v13, %v12270_v14  ;;  %v7793_v58 = vrot.slane %v7792_v47, 1  ;;  %v8209_v26 = vmax.f32 %v8207_v52, %v8208_v60  ;;  %v6921_v60 = vld [vmem:[#allocation3 + $0x60] sm:$0x7] }
 0x45b   : > { %v8348_v35 = vmax.f32 %v8346_v24, %v8347_v11  ;;  %9694 = vmatmul.msk.bf16.gmra.mxu3 %vm753_vm1, %v5429_v17  ;;  %v6456_v5 = vadd.f32 %v11859_v8, %v6380_v59  ;;  %v12292_v30 = vsel %vm7040_vm6, %v12165_v15, %v11873_v61  ;;  %v12297_v29 = vsel %vm7040_vm6, %v12167_v16, %v13870_v63  ;;  %v7071_v8 = vld [vmem:[#allocation3 + $0x62] sm:$0x7]  ;;  %v12301_v53 = vpop.f32.mrf.mxu0  ;;  %v13871_v59 = vld [vmem:[#allocation41_spill] sm:$0xff] }
 0x45c   : > { %v4787_v13 = vrot.slane %v12285_v28, 1  ;;  %v7158_v32 = vpack.c.bf16 %v7099_v51, %v7099_v51  ;;  %v7297_v52 = vpack.c.bf16 %v7238_v21, %v7238_v21  ;;  %v7932_v37 = vrot.slane %v7931_v12, 1  ;;  %v7210_v61 = vld [vmem:[#allocation3 + $0x64] sm:$0x7] }
 0x45d   : > { %v8071_v24 = vrot.slane %v8070_v19, 1  ;;  %v7031_v11 = vunpack.c.l.b16 %v7009_v55  ;;  %v7436_v10 = vpack.c.bf16 %v7377_v3, %v7377_v3  ;;  %v7516_v36 = vmax.f32 %v12217_v23, %v7515_v0 }
 0x45e   : > { %v6528_v15 = vmax.f32 %v6456_v5, 0.0  ;;  %v7655_v50 = vmax.f32 %v7653_v1, %v7654_v34  ;;  %v7794_v16 = vmax.f32 %v7792_v47, %v7793_v58  ;;  %v8210_v46 = vrot.slane %v8209_v26, 1  ;;  %v12303_v33 = vpop.f32.mrf.mxu2 }
 0x45f   : > { %v8349_v56 = vrot.slane %v8348_v35, 1  ;;  %v6951_v51 = vsel %vm6929_vm5, %v6921_v60, -inf  ;;  %v7100_v21 = vsel %vm6929_vm5, %v7071_v8, -inf  ;;  %v4432_v55 = vadd.f32 %v12208_v42, %v13871_v59 }
 0x460   : > { %6600 = vst [vmem:[#allocation2 + $0xe0] sm:$0xff] %v6528_v15  ;;  %v4788_v23 = vsel %vm1601_vm2, %v4785_v25, %v4787_v13  ;;  %v12314_v1 = vpop.f32.mrf.mxu1  ;;  %v7180_v47 = vunpack.c.l.b16 %v7158_v32  ;;  %v7933_v3 = vmax.f32 %v7931_v12, %v7932_v37  ;;  %v8072_v0 = vmax.f32 %v8070_v19, %v8071_v24  ;;  %v10089_v15 = vld [vmem:[%s10156_s23 + $0xcc] sm:$0xff] }
 0x461   : > { %v7239_v34 = vsel %vm6929_vm5, %v7210_v61, -inf  ;;  %v12319_v17 = vsel %vm7042_vm7, %v7031_v11, %v12051_v41  ;;  %v7319_v58 = vunpack.c.l.b16 %v7297_v52  ;;  %v7458_v42 = vunpack.c.l.b16 %v7436_v10 }
 0x462   : > { %v5163_v5 = vadd.f32 %v12247_v48, %v4432_v55  ;;  %v7575_v63 = vpack.c.bf16 %v7516_v36, %v7516_v36  ;;  %v7714_v60 = vpack.c.bf16 %v7655_v50, %v7655_v50  ;;  %v6952_v8 = vrot.slane %v6951_v51, 4  ;;  %9635 = vmatmul.msk.bf16.gmra.mxu2 %vm753_vm1, %v4788_v23  ;;  %v7488_v55 = vld [vmem:[#allocation3 + $0x68] sm:$0x7] }
 0x463   : > { %v7101_v25 = vrot.slane %v7100_v21, 4  ;;  %v7853_v32 = vpack.c.bf16 %v7794_v16, %v7794_v16  ;;  %v8211_v12 = vmax.f32 %v8209_v26, %v8210_v46  ;;  %v8350_v19 = vmax.f32 %v8348_v35, %v8349_v56  ;;  %v12324_v11 = vpop.f32.mrf.mxu3  ;;  %v12338_v10 = vpop.f32.mrf.mxu0  ;;  %v7349_v56 = vld [vmem:[#allocation3 + $0x66] sm:$0x7]  ;;  %v7627_v23 = vld [vmem:[#allocation3 + $0x6a] sm:$0x7] }
 0x464   : > { %v7240_v37 = vrot.slane %v7239_v34, 4  ;;  %v7992_v24 = vpack.c.bf16 %v7933_v3, %v7933_v3  ;;  %v8131_v61 = vpack.c.bf16 %v8072_v0, %v8072_v0  ;;  %v3966_v59 = vshrl.u32 %v10089_v15, 16 }
 0x465   : > { %v3969_v41 = vshll.u32 %v10089_v15, 16  ;;  %v12328_v48 = vsel %vm7042_vm7, %v7180_v47, %v12055_v38  ;;  %v12332_v52 = vsel %vm7042_vm7, %v7319_v58, %v12065_v9  ;;  %v12336_v26 = vsel %vm7042_vm7, %v7458_v42, %v12101_v57 }
 0x466   : > { %v5897_v35 = vadd.f32 %v5760_v18, %v5163_v5  ;;  %v7597_v36 = vunpack.c.l.b16 %v7575_v63  ;;  %v7736_v50 = vunpack.c.l.b16 %v7714_v60  ;;  %v6953_v16 = vmax.f32 %v6951_v51, %v6952_v8  ;;  %v12340_v38 = vpop.f32.mrf.mxu2 }
 0x467   : > { %v7102_v46 = vmax.f32 %v7100_v21, %v7101_v25  ;;  %v7875_v47 = vunpack.c.l.b16 %v7853_v32  ;;  %v8270_v3 = vpack.c.bf16 %v8211_v12, %v8211_v12  ;;  %v8409_v9 = vpack.c.bf16 %v8350_v19, %v8350_v19 }
 0x468   : > { %v7241_v0 = vmax.f32 %v7239_v34, %v7240_v37  ;;  %v12342_v58 = vpop.f32.mrf.mxu1  ;;  %v8014_v57 = vunpack.c.l.b16 %v7992_v24  ;;  %v8153_v42 = vunpack.c.l.b16 %v8131_v61  ;;  %v3968_v18 = vrot.slane %v3966_v59, 1  ;;  %v7766_v61 = vld [vmem:[#allocation3 + $0x6c] sm:$0x7] }
 0x469   : > { %v3971_v5 = vrot.slane %v3969_v41, 2  ;;  %v7378_v63 = vsel %vm6929_vm5, %v7349_v56, -inf  ;;  %v7517_v51 = vsel %vm6929_vm5, %v7488_v55, -inf  ;;  %v7656_v21 = vsel %vm6929_vm5, %v7627_v23, -inf }
 0x46a   : > { %v6381_v60 = vadd.f32 %v12242_v40, %v5897_v35  ;;  %v12350_v8 = vsel %vm7042_vm7, %v7597_v36, %v12115_v22  ;;  %v12354_v34 = vsel %vm7042_vm7, %v7736_v50, %v12119_v62  ;;  %v6954_v25 = vrot.slane %v6953_v16, 2 }
 0x46b   : > { %v7103_v32 = vrot.slane %v7102_v46, 2  ;;  %v12358_v12 = vsel %vm7042_vm7, %v7875_v47, %v12141_v43  ;;  %v8292_v19 = vunpack.c.l.b16 %v8270_v3  ;;  %v8431_v37 = vunpack.c.l.b16 %v8409_v9  ;;  %v5765_v41 = vpop.f32.mrf.mxu3  ;;  %v12371_v43 = vld [vmem:[%s13718_s2] ss:$0 sm:$0xff]  ;;  %v12376_v50 = vpop.f32.mrf.mxu0 }
 0x46c   : > { %v7242_v24 = vrot.slane %v7241_v0, 2  ;;  %v12362_v40 = vsel %vm7042_vm7, %v8014_v57, %v12145_v6  ;;  %v7379_v22 = vrot.slane %v7378_v63, 4  ;;  %v7518_v15 = vrot.slane %v7517_v51, 4  ;;  %v7905_v57 = vld [vmem:[#allocation3 + $0x6e] sm:$0x7] }
 0x46d   : > { %v7657_v59 = vrot.slane %v7656_v21, 4  ;;  %v12366_v62 = vsel %vm7042_vm7, %v8153_v42, %v12262_v54  ;;  %v6457_v35 = vadd.f32 %v12371_v43, %v6381_v60  ;;  %v12374_v36 = vor.u32 %v3971_v5, %v3968_v18 }
 0x46e   : > { %v6955_v6 = vmax.f32 %v6953_v16, %v6954_v25  ;;  %v7104_v56 = vmax.f32 %v7102_v46, %v7103_v32  ;;  %v7795_v55 = vsel %vm6929_vm5, %v7766_v61, -inf  ;;  %v5431_v23 = vshrl.u32 %v12285_v28, 16  ;;  %v12380_v47 = vpop.f32.mrf.mxu2  ;;  %v13872_v32 = vld [vmem:[#allocation42_spill] sm:$0xff] }
 0x46f   : > { %v12384_v54 = vsel %vm7042_vm7, %v8292_v19, %v12292_v30  ;;  %v12388_v3 = vsel %vm7042_vm7, %v8431_v37, %v12297_v29  ;;  %v7243_v9 = vmax.f32 %v7241_v0, %v7242_v24  ;;  %v5434_v42 = vshll.u32 %v12285_v28, 16 }
 0x470   : > { %v7380_v16 = vmax.f32 %v7378_v63, %v7379_v22  ;;  %v7519_v46 = vmax.f32 %v7517_v51, %v7518_v15  ;;  %v7658_v18 = vmax.f32 %v7656_v21, %v7657_v59  ;;  %v12391_v5 = vpop.f32.mrf.mxu1  ;;  %v7796_v60 = vrot.slane %v7795_v55, 4  ;;  %v13873_v59 = vld [vmem:[#allocation43_spill] sm:$0xff] }
 0x471   : > { %v6529_v25 = vmax.f32 %v6457_v35, 0.0  ;;  %v4433_v61 = vadd.f32 %v12273_v2, %v13872_v32  ;;  %v3973_v30 = vsel %vm3749_vm3, %v12222_v39, %v12374_v36  ;;  %v6956_v29 = vrot.slane %v6955_v6, 1 }
 0x472   : > { %v7105_v19 = vrot.slane %v7104_v56, 1  ;;  %v7934_v0 = vsel %vm6929_vm5, %v7905_v57, -inf  ;;  %9435 = vmatmul.msk.bf16.gmra.mxu1 %vm753_vm1, %v3973_v30  ;;  %v5433_v63 = vrot.slane %v5431_v23, 1  ;;  %v7244_v51 = vrot.slane %v7243_v9, 1 }
 0x473   : > { %6601 = vst [vmem:[#allocation2 + $0xe8] sm:$0xff] %v6529_v25  ;;  %v5436_v21 = vrot.slane %v5434_v42, 2  ;;  %v6005_v37 = vrot.slane %v12285_v28, 2  ;;  %v5164_v24 = vadd.f32 %v12303_v33, %v4433_v61  ;;  %v7381_v22 = vrot.slane %v7380_v16, 2  ;;  %v12404_v35 = vpop.f32.mrf.mxu3  ;;  %v12414_v42 = vpop.f32.mrf.mxu0 }
 0x474   : > { %v7520_v2 = vrot.slane %v7519_v46, 2  ;;  %v7659_v15 = vrot.slane %v7658_v18, 2  ;;  %v4434_v39 = vadd.f32 %v12314_v1, %v13873_v59  ;;  %v7797_v57 = vmax.f32 %v7795_v55, %v7796_v60 }
 0x475   : > { %v12406_v32 = vor.u32 %v5436_v21, %v5433_v63  ;;  %v6006_v23 = vsel %vm5957_vm4, %v6003_v7, %v6005_v37  ;;  %v5898_v33 = vadd.f32 %v12324_v11, %v5164_v24  ;;  %v6957_v25 = vmax.f32 %v6955_v6, %v6956_v29  ;;  %v10091_v63 = vld [vmem:[%s10156_s23 + $0xd4] sm:$0xff]  ;;  %v12424_v11 = vld [vmem:[%s10156_s23 + $0xe0] sm:$0xff] }
 0x476   : > { %v7106_v61 = vmax.f32 %v7104_v56, %v7105_v19  ;;  %v7935_v30 = vrot.slane %v7934_v0, 4  ;;  %9755 = vmatmul.msk.bf16.gmra.mxu0 %vm753_vm1, %v6006_v23  ;;  %v5165_v1 = vadd.f32 %v12340_v38, %v4434_v39  ;;  %v5036_v55 = vpop.f32.mrf.mxu2  ;;  %v3975_v7 = vshrl.u32 %v10091_v63, 16 }
 0x477   : > { %v5438_v60 = vsel %vm3749_vm3, %v12270_v14, %v12406_v32  ;;  %v6382_v20 = vadd.f32 %v12301_v53, %v5898_v33  ;;  %v3978_v21 = vshll.u32 %v10091_v63, 16  ;;  %v12426_v24 = vmax.f32 %v7243_v9, %v7244_v51  ;;  %v8183_v63 = vld [vmem:[#allocation3 + $0x72] sm:$0x7] }
 0x478   : > { %v12428_v6 = vmax.f32 %v7380_v16, %v7381_v22  ;;  %v12430_v56 = vmax.f32 %v7519_v46, %v7520_v2  ;;  %9695 = vmatmul.msk.bf16.gmra.mxu3 %vm753_vm1, %v5438_v60  ;;  %v5899_v38 = vadd.f32 %v5765_v41, %v5165_v1  ;;  %v3977_v19 = vrot.slane %v3975_v7, 1  ;;  %v4308_v16 = vpop.f32.mrf.mxu1  ;;  %v8044_v46 = vld [vmem:[#allocation3 + $0x70] sm:$0x7] }
 0x479   : > { %v6458_v29 = vadd.f32 %v12371_v43, %v6382_v20  ;;  %v3980_v14 = vrot.slane %v3978_v21, 2  ;;  %v4789_v53 = vrot.slane %v12424_v11, 1  ;;  %v12435_v59 = vmax.f32 %v7658_v18, %v7659_v15 }
 0x47a   : > { %v7798_v39 = vrot.slane %v7797_v57, 2  ;;  %v12437_v23 = vmax.f32 %v7934_v0, %v7935_v30  ;;  %v6383_v9 = vadd.f32 %v12338_v10, %v5899_v38  ;;  %v7010_v51 = vpack.c.bf16 %v6957_v25, %v6957_v25  ;;  %v13874_v30 = vld [vmem:[#allocation44_spill] sm:$0xff]  ;;  %v8322_v38 = vld [vmem:[#allocation3 + $0x74] sm:$0x7] }
 0x47b   : > { %v6530_v22 = vmax.f32 %v6458_v29, 0.0  ;;  %v12440_v2 = vor.u32 %v3980_v14, %v3977_v19  ;;  %v4790_v41 = vsel %vm1601_vm2, %v4787_v13, %v4789_v53  ;;  %v7159_v33 = vpack.c.bf16 %v7106_v61, %v7106_v61  ;;  %v5770_v15 = vpop.f32.mrf.mxu3 }
 0x47c   : > { %v7298_v18 = vpack.c.bf16 %v12426_v24, %v12426_v24  ;;  %v7383_v0 = vrot.slane %v12428_v6, 1  ;;  %v6459_v10 = vadd.f32 %v12371_v43, %v6383_v9  ;;  %9636 = vmatmul.msk.bf16.gmra.mxu2 %vm753_vm1, %v4790_v41  ;;  %v7522_v25 = vrot.slane %v12430_v56, 1 }
 0x47d   : > { %6602 = vst [vmem:[#allocation2 + $0xf0] sm:$0xff] %v6530_v22  ;;  %v4435_v1 = vadd.f32 %v12342_v58, %v13874_v30  ;;  %v5440_v60 = vshrl.u32 %v12424_v11, 16  ;;  %v5443_v13 = vshll.u32 %v12424_v11, 16  ;;  %v7661_v61 = vrot.slane %v12435_v59, 1  ;;  %v6257_v9 = vpop.f32.mrf.mxu0 }
 0x47e   : > { %v8073_v20 = vsel %vm6929_vm5, %v8044_v46, -inf  ;;  %v6531_v7 = vmax.f32 %v6459_v10, 0.0  ;;  %v3982_v21 = vsel %vm3749_vm3, %v12374_v36, %v12440_v2  ;;  %v5039_v24 = vpop.f32.mrf.mxu2  ;;  %v13729_v58 = vrot.slane %v12424_v11, 2  ;;  %v13875_v10 = vld [vmem:[#allocation45_spill] sm:$0xff] }
 0x47f   : > { %v5442_v29 = vrot.slane %v5440_v60, 1  ;;  %v5445_v19 = vrot.slane %v5443_v13, 2  ;;  %v5166_v14 = vadd.f32 %v12380_v47, %v4435_v1  ;;  %v7032_v22 = vunpack.c.l.b16 %v7010_v51  ;;  %v10092_v51 = vld [vmem:[%s10156_s23 + $0xdc] sm:$0xff] }
 0x480   : > { %v12464_v41 = vmax.f32 %v7797_v57, %v7798_v39  ;;  %v7937_v46 = vrot.slane %v12437_v23, 2  ;;  %6603 = vst [vmem:[#allocation2 + $0xf8] sm:$0xff] %v6531_v7  ;;  %v4436_v30 = vadd.f32 %v12391_v5, %v13875_v10  ;;  %v12469_v36 = vunpack.c.l.b16 %v7159_v33 }
 0x481   : > { %v8212_v60 = vsel %vm6929_vm5, %v8183_v63, -inf  ;;  %v12472_v13 = vor.u32 %v5445_v19, %v5442_v29  ;;  %v5900_v47 = vadd.f32 %v12404_v35, %v5166_v14  ;;  %v8074_v1 = vrot.slane %v8073_v20, 4  ;;  %v13876_v63 = vld [vmem:[#allocation46_spill] sm:$0xff]  ;;  %v12486_v35 = vld [vmem:[%s10156_s23 + $0xe8] sm:$0xff] }
 0x482   : > { %v8351_v57 = vsel %vm6929_vm5, %v8322_v38, -inf  ;;  %9436 = vmatmul.msk.bf16.gmra.mxu1 %vm753_vm1, %v3982_v21  ;;  %v5167_v39 = vadd.f32 %v5036_v55, %v4436_v30  ;;  %v3984_v7 = vshrl.u32 %v10092_v51, 16  ;;  %v6008_v5 = vsel %vm5957_vm4, %v6005_v37, %v13729_v58  ;;  %v4310_v30 = vpop.f32.mrf.mxu1 }
 0x483   : > { %v6384_v33 = vadd.f32 %v12376_v50, %v5900_v47  ;;  %v4437_v29 = vadd.f32 %v4308_v16, %v13876_v63  ;;  %v3987_v19 = vshll.u32 %v10092_v51, 16  ;;  %v12488_v14 = vunpack.c.l.b16 %v7298_v18  ;;  %v5773_v10 = vpop.f32.mrf.mxu3 }
 0x484   : > { %v12491_v21 = vmax.f32 %v12428_v6, %v7383_v0  ;;  %v8213_v55 = vrot.slane %v8212_v60, 4  ;;  %v5901_v38 = vadd.f32 %v5770_v15, %v5167_v39  ;;  %v5447_v28 = vsel %vm3749_vm3, %v12406_v32, %v12472_v13 }
 0x485   : > { %v6460_v50 = vadd.f32 %v12371_v43, %v6384_v33  ;;  %v4791_v37 = vrot.slane %v12486_v35, 1  ;;  %v5168_v16 = vadd.f32 %v5039_v24, %v4437_v29  ;;  %v8075_v47 = vmax.f32 %v8073_v20, %v8074_v1 }
 0x486   : > { %v8352_v51 = vrot.slane %v8351_v57, 4  ;;  %9756 = vmatmul.msk.bf16.gmra.mxu0 %vm753_vm1, %v6008_v5  ;;  %v6385_v6 = vadd.f32 %v12414_v42, %v5901_v38  ;;  %v3986_v18 = vrot.slane %v3984_v7, 1  ;;  %v5041_v0 = vpop.f32.mrf.mxu2  ;;  %v3989_v39 = vrot.slane %v3987_v19, 2 }
 0x487   : > { %v6532_v15 = vmax.f32 %v6460_v50, 0.0  ;;  %v5902_v63 = vadd.f32 %v5773_v10, %v5168_v16  ;;  %v4438_v58 = vadd.f32 %v4310_v30, %v13877_v44  ;;  %v8214_v49 = vmax.f32 %v8212_v60, %v8213_v55  ;;  %v6259_v44 = vpop.f32.mrf.mxu0 }
 0x488   : > { %9696 = vmatmul.msk.bf16.gmra.mxu3 %vm753_vm1, %v5447_v28  ;;  %v6461_v32 = vadd.f32 %v12371_v43, %v6385_v6  ;;  %v5449_v24 = vshrl.u32 %v12486_v35, 16  ;;  %v5452_v20 = vshll.u32 %v12486_v35, 16  ;;  %v7800_v1 = vrot.slane %v12464_v41, 1  ;;  %v6748_v6 = vld [vmem:[#allocation2 + $0xe9] sm:$0xff] }
 0x489   : > { %6604 = vst [vmem:[#allocation2 + $0x100] sm:$0xff] %v6532_v15  ;;  %v4792_v42 = vsel %vm1601_vm2, %v4789_v53, %v4791_v37  ;;  %v6386_v7 = vadd.f32 %v6257_v9, %v5902_v63  ;;  %v5169_v60 = vadd.f32 %v5041_v0, %v4438_v58  ;;  %v7938_v5 = vmax.f32 %v12437_v23, %v7937_v46  ;;  %v6747_v9 = vld [vmem:[#allocation2 + $0xe1] sm:$0xff] }
 0x48a   : > { %v8076_v33 = vrot.slane %v8075_v47, 2  ;;  %v8353_v29 = vmax.f32 %v8351_v57, %v8352_v51  ;;  %v6533_v19 = vmax.f32 %v6461_v32, 0.0  ;;  %v7523_v55 = vmax.f32 %v12430_v56, %v7522_v25  ;;  %v10093_v63 = vld [vmem:[%s10156_s23 + $0xe4] sm:$0xff] }
 0x48b   : > { %v7662_v38 = vmax.f32 %v12435_v59, %v7661_v61  ;;  %v12518_v10 = vor.u32 %v3989_v39, %v3986_v18  ;;  %v6462_v53 = vadd.f32 %v12371_v43, %v6386_v7  ;;  %v12523_v58 = vsel %vm7044_vm8, %v7032_v22, %v12319_v17  ;;  %v5775_v56 = vpop.f32.mrf.mxu3  ;;  %v6749_v39 = vld [vmem:[#allocation2 + $0xf1] sm:$0xff] }
 0x48c   : > { %v8215_v23 = vrot.slane %v8214_v49, 2  ;;  %6605 = vst [vmem:[#allocation2 + $0x108] sm:$0xff] %v6533_v19  ;;  %9637 = vmatmul.msk.bf16.gmra.mxu2 %vm753_vm1, %v4792_v42  ;;  %v5451_v46 = vrot.slane %v5449_v24, 1  ;;  %v5454_v57 = vrot.slane %v5452_v20, 2  ;;  %v12529_v59 = vsel %vm7044_vm8, %v12469_v36, %v12328_v48 }
 0x48d   : > { %v7437_v25 = vpack.c.bf16 %v12491_v21, %v12491_v21  ;;  %v6534_v61 = vmax.f32 %v6462_v53, 0.0  ;;  %v5903_v30 = vadd.f32 %v5775_v56, %v5169_v60  ;;  %v7801_v17 = vmax.f32 %v12464_v41, %v7800_v1 }
 0x48e   : > { %v7939_v22 = vrot.slane %v7938_v5, 1  ;;  %v8077_v28 = vmax.f32 %v8075_v47, %v8076_v33  ;;  %v8354_v50 = vrot.slane %v8353_v29, 2  ;;  %v12534_v16 = vpop.f32.mrf.mxu2  ;;  %v6751_v51 = vmax.f32 %v6525_v27, %v6747_v9 }
 0x48f   : > { %v3991_v48 = vsel %vm3749_vm3, %v12440_v2, %v12518_v10  ;;  %v6009_v36 = vrot.slane %v12486_v35, 2  ;;  %6606 = vst [vmem:[#allocation2 + $0x110] sm:$0xff] %v6534_v61  ;;  %v6387_v21 = vadd.f32 %v6259_v44, %v5903_v30  ;;  %v7576_v18 = vpack.c.bf16 %v7523_v55, %v7523_v55 }
 0x490   : > { %v7715_v41 = vpack.c.bf16 %v7662_v38, %v7662_v38  ;;  %v8216_v0 = vmax.f32 %v8214_v49, %v8215_v23  ;;  %v12542_v47 = vld [vmem:[#allocation2 + $0xfa] sm:$0xff]  ;;  %v12544_v15 = vor.u32 %v5454_v57, %v5451_v46  ;;  %v3993_v32 = vshrl.u32 %v10093_v63, 16 }
 0x491   : > { %v6759_v45 = vmax.f32 %v6751_v51, %v12542_v47  ;;  %v6463_v27 = vadd.f32 %v12371_v43, %v6387_v21  ;;  %v3996_v2 = vshll.u32 %v10093_v63, 16  ;;  %v7459_v24 = vunpack.c.l.b16 %v7437_v25 }
 0x492   : > { %v7854_v20 = vpack.c.bf16 %v7801_v17, %v7801_v17  ;;  %v7940_v1 = vmax.f32 %v7938_v5, %v7939_v22  ;;  %v13878_v42 = vmax.f32 %v12214_v4, 0.0  ;;  %9437 = vmatmul.msk.bf16.gmra.mxu1 %vm753_vm1, %v3991_v48  ;;  %v8078_v44 = vrot.slane %v8077_v28, 1  ;;  %v12564_v4 = vld [vmem:[%s10156_s23 + $0xf0] sm:$0xff] }
 0x493   : > { %v12552_v49 = vpop.f32.mrf.mxu1  ;;  %v8355_v60 = vmax.f32 %v8353_v29, %v8354_v50  ;;  %6764 = vst [vmem:[#allocation3 + $0x80] sm:$0xff] %v6759_v45  ;;  %v12554_v33 = vld [vmem:[#allocation2 + $0x102] sm:$0xff]  ;;  %v13879_v19 = vrot.slane %v12424_v11, 2  ;;  %v6535_v38 = vmax.f32 %v6463_v27, 0.0  ;;  %v8217_v53 = vrot.slane %v8216_v0, 1 }
 0x494   : > { %v6752_v7 = vmax.f32 %v13878_v42, %v6748_v6  ;;  %v13880_v23 = vmax.f32 %v12231_v31, 0.0  ;;  %v5456_v46 = vsel %vm3749_vm3, %v12472_v13, %v12544_v15  ;;  %v3995_v57 = vrot.slane %v3993_v32, 1 }
 0x495   : > { %v6010_v55 = vsel %vm5957_vm4, %v13879_v19, %v6009_v36  ;;  %v12561_v5 = vpop.f32.mrf.mxu0  ;;  %6607 = vst [vmem:[#allocation2 + $0x118] sm:$0xff] %v6535_v38  ;;  %v3998_v11 = vrot.slane %v3996_v2, 2  ;;  %v13732_v56 = vrot.slane %v12564_v4, 1  ;;  %v7598_v25 = vunpack.c.l.b16 %v7576_v18 }
 0x496   : > { %v6753_v9 = vmax.f32 %v13880_v23, %v6749_v39  ;;  %v6760_v29 = vmax.f32 %v6752_v7, %v12554_v33  ;;  %v7737_v61 = vunpack.c.l.b16 %v7715_v41  ;;  %v7876_v30 = vunpack.c.l.b16 %v7854_v20  ;;  %9757 = vmatmul.msk.bf16.gmra.mxu0 %vm753_vm1, %v6010_v55  ;;  %v12574_v31 = vld [vmem:[#allocation2 + $0x10a] sm:$0xff]  ;;  %v12583_v51 = vpop.f32.mrf.mxu2 }
 0x497   : > { %v7993_v17 = vpack.c.bf16 %v7940_v1, %v7940_v1  ;;  %13881 = vst [vmem:[#allocation51_spill] sm:$0xff] %v12574_v31  ;;  %v12579_v22 = vsel %vm7044_vm8, %v12488_v14, %v12332_v52  ;;  %v5458_v50 = vshrl.u32 %v12564_v4, 16  ;;  %v12587_v6 = vsel %vm7044_vm8, %v7459_v24, %v12336_v26 }
 0x498   : > { %6765 = vst [vmem:[#allocation3 + $0x88] sm:$0xff] %v6760_v29  ;;  %v6761_v13 = vmax.f32 %v6753_v9, %v12574_v31  ;;  %v12589_v48 = vmax.f32 %v8077_v28, %v8078_v44  ;;  %v8356_v21 = vrot.slane %v8355_v60, 1  ;;  %9697 = vmatmul.msk.bf16.gmra.mxu3 %vm753_vm1, %v5456_v46  ;;  %v5461_v18 = vshll.u32 %v12564_v4, 16 }
 0x499   : > { %v12593_v41 = vmax.f32 %v8216_v0, %v8217_v53  ;;  %v12595_v52 = vor.u32 %v3998_v11, %v3995_v57  ;;  %v4794_v14 = vsel %vm1601_vm2, %v4791_v37, %v13732_v56  ;;  %v13731_v26 = vrot.slane %v12564_v4, 2 }
 0x49a   : > { %6766 = vst [vmem:[#allocation3 + $0x90] sm:$0xff] %v6761_v13  ;;  %v12605_v28 = vsel %vm7044_vm8, %v7598_v25, %v12350_v8  ;;  %v12609_v39 = vsel %vm7044_vm8, %v7737_v61, %v12354_v34  ;;  %v12613_v0 = vsel %vm7044_vm8, %v7876_v30, %v12358_v12  ;;  %v12615_v45 = vunpack.c.l.b16 %v7993_v17  ;;  %v6922_v27 = vld [vmem:[#allocation3 + $0x80] sm:$0x7]  ;;  %v7211_v32 = vld [vmem:[#allocation3 + $0x84] sm:$0x7] }
 0x49b   : > { %13882 = vst [vmem:[#allocation38_spill] sm:$0xff] %v12613_v0  ;;  %v7072_v63 = vld [vmem:[#allocation3 + $0x82] sm:$0x7]  ;;  %v12617_v37 = vpop.f32.mrf.mxu1  ;;  %v6958_v2 = vsel %vm6929_vm5, %v6922_v27, -inf  ;;  %v7246_v24 = vsel %vm6929_vm5, %v7211_v32, -inf  ;;  %v5460_v20 = vrot.slane %v5458_v50, 1  ;;  %v12622_v34 = vpop.f32.mrf.mxu3  ;;  %v8132_v19 = vpack.c.bf16 %v12589_v48, %v12589_v48 }
 0x49c   : > { %v7107_v8 = vsel %vm6929_vm5, %v7072_v63, -inf  ;;  %v6959_v12 = vrot.slane %v6958_v2, 4  ;;  %v7247_v7 = vrot.slane %v7246_v24, 4  ;;  %9638 = vmatmul.msk.bf16.gmra.mxu2 %vm753_vm1, %v4794_v14  ;;  %v5463_v44 = vrot.slane %v5461_v18, 2  ;;  %v12641_v50 = vld [vmem:[%s10156_s23 + $0xf8] sm:$0xff] }
 0x49d   : > { %v12624_v1 = vpop.f32.mrf.mxu0  ;;  %v7108_v42 = vrot.slane %v7107_v8, 4  ;;  %v12631_v38 = vmax.f32 %v8355_v60, %v8356_v21  ;;  %v4000_v29 = vsel %vm3749_vm3, %v12518_v10, %v12595_v52 }
 0x49e   : > { %v6960_v46 = vmax.f32 %v6958_v2, %v6959_v12  ;;  %v7248_v11 = vmax.f32 %v7246_v24, %v7247_v7  ;;  %v12643_v14 = vor.u32 %v5463_v44, %v5460_v20  ;;  %v10094_v7 = vld [vmem:[%s10156_s23 + $0xec] sm:$0xff] }
 0x49f   : > { %v7350_v53 = vld [vmem:[#allocation3 + $0x86] sm:$0x7]  ;;  %v7628_v9 = vld [vmem:[#allocation3 + $0x8a] sm:$0x7]  ;;  %v7109_v57 = vmax.f32 %v7107_v8, %v7108_v42  ;;  %v8410_v27 = vpack.c.bf16 %v12631_v38, %v12631_v38  ;;  %v6012_v42 = vsel %vm5957_vm4, %v6009_v36, %v13731_v26  ;;  %v4002_v44 = vshrl.u32 %v10094_v7, 16 }
 0x4a0   : > { %v7489_v23 = vld [vmem:[#allocation3 + $0x88] sm:$0x7]  ;;  %v7385_v25 = vsel %vm6929_vm5, %v7350_v53, -inf  ;;  %v7767_v61 = vld [vmem:[#allocation3 + $0x8c] sm:$0x7]  ;;  %v7663_v13 = vsel %vm6929_vm5, %v7628_v9, -inf  ;;  %v5465_v36 = vsel %vm3749_vm3, %v12544_v15, %v12643_v14  ;;  %v12675_v15 = vsel %vm7044_vm8, %v12615_v45, %v12362_v40 }
 0x4a1   : > { %v7386_v30 = vrot.slane %v7385_v25, 4  ;;  %v7524_v17 = vsel %vm6929_vm5, %v7489_v23, -inf  ;;  %v7802_v60 = vsel %vm6929_vm5, %v7767_v61, -inf  ;;  %v6961_v48 = vrot.slane %v6960_v46, 2  ;;  %v7906_v10 = vld [vmem:[#allocation3 + $0x8e] sm:$0x7] }
 0x4a2   : > { %v7110_v21 = vrot.slane %v7109_v57, 2  ;;  %v7249_v18 = vrot.slane %v7248_v11, 2  ;;  %v7525_v32 = vrot.slane %v7524_v17, 4  ;;  %v7664_v2 = vrot.slane %v7663_v13, 4  ;;  %9438 = vmatmul.msk.bf16.gmra.mxu1 %vm753_vm1, %v4000_v29 }
 0x4a3   : > { %v7387_v63 = vmax.f32 %v7385_v25, %v7386_v30  ;;  %v6962_v24 = vmax.f32 %v6960_v46, %v6961_v48  ;;  %v7803_v12 = vrot.slane %v7802_v60, 4  ;;  %v12655_v20 = vpop.f32.mrf.mxu1  ;;  %v7941_v38 = vsel %vm6929_vm5, %v7906_v10, -inf  ;;  %v12659_v53 = vpop.f32.mrf.mxu3 }
 0x4a4   : > { %v12647_v8 = vpop.f32.mrf.mxu2  ;;  %v4005_v9 = vshll.u32 %v10094_v7, 16  ;;  %v5467_v46 = vshrl.u32 %v12641_v50, 16  ;;  %v5470_v29 = vshll.u32 %v12641_v50, 16  ;;  %v8154_v25 = vunpack.c.l.b16 %v8132_v19  ;;  %v13883_v7 = vld [vmem:[#allocation48_spill] sm:$0xff] }
 0x4a5   : > { %v12661_v23 = vpop.f32.mrf.mxu0  ;;  %v7111_v61 = vmax.f32 %v7109_v57, %v7110_v21  ;;  %v7250_v35 = vmax.f32 %v7248_v11, %v7249_v18  ;;  %v7388_v30 = vrot.slane %v7387_v63, 2  ;;  %v7526_v48 = vmax.f32 %v7524_v17, %v7525_v32 }
 0x4a6   : > { %v7665_v26 = vmax.f32 %v7663_v13, %v7664_v2  ;;  %v13734_v10 = vrot.slane %v12641_v50, 1  ;;  %v6963_v55 = vrot.slane %v6962_v24, 1  ;;  %v7804_v56 = vmax.f32 %v7802_v60, %v7803_v12  ;;  %9758 = vmatmul.msk.bf16.gmra.mxu0 %vm753_vm1, %v6012_v42 }
 0x4a7   : > { %v7942_v31 = vrot.slane %v7941_v38, 4  ;;  %v4439_v0 = vadd.f32 %v12552_v49, %v13883_v7  ;;  %v4004_v19 = vrot.slane %v4002_v44, 1  ;;  %v4007_v57 = vrot.slane %v4005_v9, 2 }
 0x4a8   : > { %v5469_v11 = vrot.slane %v5467_v46, 1  ;;  %v5472_v21 = vrot.slane %v5470_v29, 2  ;;  %v7112_v17 = vrot.slane %v7111_v61, 1  ;;  %v7251_v13 = vrot.slane %v7250_v35, 1  ;;  %9698 = vmatmul.msk.bf16.gmra.mxu3 %vm753_vm1, %v5465_v36 }
 0x4a9   : > { %v5170_v60 = vadd.f32 %v12534_v16, %v4439_v0  ;;  %v7389_v18 = vmax.f32 %v7387_v63, %v7388_v30  ;;  %v7527_v32 = vrot.slane %v7526_v48, 2  ;;  %v7666_v49 = vrot.slane %v7665_v26, 2 }
 0x4aa   : > { %v13884_v2 = vrot.slane %v12564_v4, 1  ;;  %v13885_v40 = vpack.c.bf16 %v12593_v41, %v12593_v41  ;;  %v6964_v44 = vmax.f32 %v6962_v24, %v6963_v55  ;;  %v7805_v9 = vrot.slane %v7804_v56, 2 }
 0x4ab   : > { %v7943_v46 = vmax.f32 %v7941_v38, %v7942_v31  ;;  %v4320_v29 = vpop.f32.mrf.mxu1  ;;  %v12689_v16 = vsel %vm7044_vm8, %v8154_v25, %v12366_v62  ;;  %v8432_v0 = vunpack.c.l.b16 %v8410_v27  ;;  %v12691_v63 = vor.u32 %v4007_v57, %v4004_v19  ;;  %v5783_v30 = vpop.f32.mrf.mxu3  ;;  %v12699_v62 = vld [vmem:[#allocation2 + $0x113] sm:$0xff] }
 0x4ac   : > { %v4796_v12 = vsel %vm1601_vm2, %v13884_v2, %v13734_v10  ;;  %v5051_v42 = vpop.f32.mrf.mxu2  ;;  %v8293_v45 = vunpack.c.l.b16 %v13885_v40  ;;  %v12693_v36 = vor.u32 %v5472_v21, %v5469_v11  ;;  %v7113_v7 = vmax.f32 %v7111_v61, %v7112_v17  ;;  %v13886_v10 = vld [vmem:[#allocation49_spill] sm:$0xff]  ;;  %v8323_v40 = vld [vmem:[#allocation3 + $0x94] sm:$0x7] }
 0x4ad   : > { %v7252_v2 = vmax.f32 %v7250_v35, %v7251_v13  ;;  %v4440_v41 = vadd.f32 %v12617_v37, %v13886_v10  ;;  %9639 = vmatmul.msk.bf16.gmra.mxu2 %vm753_vm1, %v4796_v12  ;;  %v6013_v31 = vrot.slane %v12641_v50, 2  ;;  %v7390_v55 = vrot.slane %v7389_v18, 1  ;;  %v6269_v25 = vpop.f32.mrf.mxu0  ;;  %v8045_v10 = vld [vmem:[#allocation3 + $0x90] sm:$0x7] }
 0x4ae   : > { %v7528_v24 = vmax.f32 %v7526_v48, %v7527_v32  ;;  %v7667_v38 = vmax.f32 %v7665_v26, %v7666_v49  ;;  %v5904_v27 = vadd.f32 %v12622_v34, %v5170_v60  ;;  %v7011_v19 = vpack.c.bf16 %v6964_v44, %v6964_v44  ;;  %v8184_v13 = vld [vmem:[#allocation3 + $0x92] sm:$0x7] }
 0x4af   : > { %v7806_v57 = vmax.f32 %v7804_v56, %v7805_v9  ;;  %v7944_v11 = vrot.slane %v7943_v46, 2  ;;  %v5171_v61 = vadd.f32 %v12583_v51, %v4440_v41  ;;  %v12705_v37 = vsel %vm7044_vm8, %v8293_v45, %v12384_v54  ;;  %v13888_v9 = vld [vmem:[#allocation8_spill] sm:$0xff] }
 0x4b0   : > { %v12709_v35 = vsel %vm7044_vm8, %v8432_v0, %v12388_v3  ;;  %v4009_v26 = vsel %vm3749_vm3, %v12595_v52, %v12691_v63  ;;  %v5474_v34 = vsel %vm3749_vm3, %v12643_v14, %v12693_v36  ;;  %v7160_v56 = vpack.c.bf16 %v7113_v7, %v7113_v7 }
 0x4b1   : > { %v7299_v48 = vpack.c.bf16 %v7252_v2, %v7252_v2  ;;  %v6776_v51 = vmax.f32 %v12542_v47, %v12699_v62  ;;  %v13887_v54 = vrot.slane %v12564_v4, 2  ;;  %v12724_v21 = vmax.f32 %v7389_v18, %v7390_v55 }
 0x4b2   : > { %v7529_v52 = vrot.slane %v7528_v24, 1  ;;  %v7668_v17 = vrot.slane %v7667_v38, 1  ;;  %v6388_v14 = vadd.f32 %v12561_v5, %v5904_v27  ;;  %v7033_v32 = vunpack.c.l.b16 %v7011_v19  ;;  %9439 = vmatmul.msk.bf16.gmra.mxu1 %vm753_vm1, %v4009_v26  ;;  %v13889_v5 = vld [vmem:[#allocation10_spill] sm:$0xff] }
 0x4b3   : > { %v6014_v3 = vsel %vm5957_vm4, %v13887_v54, %v6013_v31  ;;  %v7807_v49 = vrot.slane %v7806_v57, 1  ;;  %v12729_v12 = vmax.f32 %v7943_v46, %v7944_v11  ;;  %v5905_v45 = vadd.f32 %v12659_v53, %v5171_v61  ;;  %v4323_v4 = vpop.f32.mrf.mxu1  ;;  %v5785_v2 = vpop.f32.mrf.mxu3  ;;  %v10095_v54 = vld [vmem:[%s10156_s23 + $0xf4] sm:$0xff] }
 0x4b4   : > { %v12727_v60 = vpop.f32.mrf.mxu2  ;;  %v8080_v18 = vsel %vm6929_vm5, %v8045_v10, -inf  ;;  %v6464_v44 = vadd.f32 %v12371_v43, %v6388_v14  ;;  %v4441_v0 = vadd.f32 %v12655_v20, %v13888_v9  ;;  %v4442_v7 = vadd.f32 %v4320_v29, %v13889_v5 }
 0x4b5   : > { %v7182_v41 = vunpack.c.l.b16 %v7160_v56  ;;  %v12738_v55 = vunpack.c.l.b16 %v7299_v48  ;;  %v8219_v46 = vsel %vm6929_vm5, %v8184_v13, -inf  ;;  %v6389_v53 = vadd.f32 %v12624_v1, %v5905_v45  ;;  %v12748_v1 = vpop.f32.mrf.mxu0 }
 0x4b6   : > { %v8358_v27 = vsel %vm6929_vm5, %v8323_v40, -inf  ;;  %v6536_v19 = vmax.f32 %v6464_v44, 0.0  ;;  %v5172_v11 = vadd.f32 %v12647_v8, %v4441_v0  ;;  %v5173_v61 = vadd.f32 %v5051_v42, %v4442_v7  ;;  %9759 = vmatmul.msk.bf16.gmra.mxu0 %vm753_vm1, %v6014_v3  ;;  %v12752_v40 = vld [vmem:[%s10156_s23 + $0x100] sm:$0xff] }
 0x4b7   : > { %v7438_v20 = vpack.c.bf16 %v12724_v21, %v12724_v21  ;;  %v7530_v29 = vmax.f32 %v7528_v24, %v7529_v52  ;;  %v8081_v26 = vrot.slane %v8080_v18, 4  ;;  %v6465_v56 = vadd.f32 %v12371_v43, %v6389_v53 }
 0x4b8   : > { %6608 = vst [vmem:[#allocation2 + $0x120] sm:$0xff] %v6536_v19  ;;  %v5906_v48 = vadd.f32 %v5783_v30, %v5172_v11  ;;  %v5907_v10 = vadd.f32 %v5785_v2, %v5173_v61  ;;  %v4011_v13 = vshrl.u32 %v10095_v54, 16  ;;  %v4014_v14 = vshll.u32 %v10095_v54, 16  ;;  %9699 = vmatmul.msk.bf16.gmra.mxu3 %vm753_vm1, %v5474_v34 }
 0x4b9   : > { %v12754_v8 = vmax.f32 %v7667_v38, %v7668_v17  ;;  %v8220_v42 = vrot.slane %v8219_v46, 4  ;;  %v8359_v21 = vrot.slane %v8358_v27, 4  ;;  %v6537_v24 = vmax.f32 %v6465_v56, 0.0  ;;  %v13891_v56 = vld [vmem:[#allocation12_spill] sm:$0xff] }
 0x4ba   : > { %v6390_v52 = vadd.f32 %v12661_v23, %v5906_v48  ;;  %v6391_v3 = vadd.f32 %v6269_v25, %v5907_v10  ;;  %v4013_v45 = vrot.slane %v4011_v13, 1  ;;  %v4016_v30 = vrot.slane %v4014_v14, 2 }
 0x4bb   : > { %v12758_v9 = vmax.f32 %v7806_v57, %v7807_v49  ;;  %v7946_v0 = vrot.slane %v12729_v12, 1  ;;  %v8082_v5 = vmax.f32 %v8080_v18, %v8081_v26  ;;  %6609 = vst [vmem:[#allocation2 + $0x128] sm:$0xff] %v6537_v24  ;;  %v4797_v38 = vrot.slane %v12752_v40, 1  ;;  %v4325_v17 = vpop.f32.mrf.mxu1  ;;  %v5788_v25 = vpop.f32.mrf.mxu3 }
 0x4bc   : > { %v5056_v44 = vpop.f32.mrf.mxu2  ;;  %v6466_v7 = vadd.f32 %v12371_v43, %v6390_v52  ;;  %v6467_v2 = vadd.f32 %v12371_v43, %v6391_v3  ;;  %v12764_v34 = vor.u32 %v4016_v30, %v4013_v45  ;;  %v5476_v23 = vshrl.u32 %v12752_v40, 16 }
 0x4bd   : > { %v12769_v57 = vsel %vm7046_vm9, %v7033_v32, %v12523_v58  ;;  %v8221_v49 = vmax.f32 %v8219_v46, %v8220_v42  ;;  %v8360_v53 = vmax.f32 %v8358_v27, %v8359_v21  ;;  %v13890_v18 = vrot.slane %v12641_v50, 1  ;;  %v6274_v3 = vpop.f32.mrf.mxu0 }
 0x4be   : > { %v12778_v11 = vsel %vm7046_vm9, %v7182_v41, %v12529_v59  ;;  %v6538_v61 = vmax.f32 %v6466_v7, 0.0  ;;  %v6539_v26 = vmax.f32 %v6467_v2, 0.0  ;;  %v4443_v48 = vadd.f32 %v4323_v4, %v13891_v56  ;;  %v13892_v41 = vld [vmem:[#allocation14_spill] sm:$0xff]  ;;  %v12799_v7 = vld [vmem:[%s10156_s23 + $0x108] sm:$0xff] }
 0x4bf   : > { %v4798_v19 = vsel %vm1601_vm2, %v13890_v18, %v4797_v38  ;;  %v7577_v58 = vpack.c.bf16 %v7530_v29, %v7530_v29  ;;  %v8083_v32 = vrot.slane %v8082_v5, 2  ;;  %v4018_v46 = vsel %vm3749_vm3, %v12691_v63, %v12764_v34  ;;  %v6773_v21 = vld [vmem:[#allocation2 + $0x11b] sm:$0xff] }
 0x4c0   : > { %9640 = vmatmul.msk.bf16.gmra.mxu2 %vm753_vm1, %v4798_v19  ;;  %v5479_v27 = vshll.u32 %v12752_v40, 16  ;;  %6610 = vst [vmem:[#allocation2 + $0x130] sm:$0xff] %v6538_v61  ;;  %v5478_v10 = vrot.slane %v5476_v23, 1  ;;  %v6015_v54 = vrot.slane %v12752_v40, 2  ;;  %v5174_v59 = vadd.f32 %v12727_v60, %v4443_v48 }
 0x4c1   : > { %v4444_v13 = vadd.f32 %v4325_v17, %v13892_v41  ;;  %v7460_v4 = vunpack.c.l.b16 %v7438_v20  ;;  %v7716_v29 = vpack.c.bf16 %v12754_v8, %v12754_v8  ;;  %v8222_v14 = vrot.slane %v8221_v49, 2  ;;  %6611 = vst [vmem:[#allocation2 + $0x138] sm:$0xff] %v6539_v26  ;;  %v10096_v20 = vld [vmem:[%s10156_s23 + $0xfc] sm:$0xff] }
 0x4c2   : > { %v8361_v42 = vrot.slane %v8360_v53, 2  ;;  %v7855_v63 = vpack.c.bf16 %v12758_v9, %v12758_v9  ;;  %v5481_v24 = vrot.slane %v5479_v27, 2  ;;  %v5908_v52 = vadd.f32 %v5788_v25, %v5174_v59  ;;  %9440 = vmatmul.msk.bf16.gmra.mxu1 %vm753_vm1, %v4018_v46  ;;  %v13893_v27 = vld [vmem:[#allocation16_spill] sm:$0xff] }
 0x4c3   : > { %v5175_v45 = vadd.f32 %v5056_v44, %v4444_v13  ;;  %v7599_v60 = vunpack.c.l.b16 %v7577_v58  ;;  %v12794_v30 = vmax.f32 %v12729_v12, %v7946_v0  ;;  %v4020_v8 = vshrl.u32 %v10096_v20, 16  ;;  %v5790_v12 = vpop.f32.mrf.mxu3  ;;  %v4328_v26 = vpop.f32.mrf.mxu1 }
 0x4c4   : > { %v4023_v17 = vshll.u32 %v10096_v20, 16  ;;  %v8084_v2 = vmax.f32 %v8082_v5, %v8083_v32  ;;  %v12801_v23 = vor.u32 %v5481_v24, %v5478_v10  ;;  %v6016_v44 = vsel %vm5957_vm4, %v6013_v31, %v6015_v54  ;;  %v5059_v0 = vpop.f32.mrf.mxu2 }
 0x4c5   : > { %v6392_v9 = vadd.f32 %v12748_v1, %v5908_v52  ;;  %v8223_v25 = vmax.f32 %v8221_v49, %v8222_v14  ;;  %v8362_v18 = vmax.f32 %v8360_v53, %v8361_v42  ;;  %v6777_v19 = vmax.f32 %v12554_v33, %v6773_v21 }
 0x4c6   : > { %v5909_v61 = vadd.f32 %v5790_v12, %v5175_v45  ;;  %v5483_v5 = vsel %vm3749_vm3, %v12693_v36, %v12801_v23  ;;  %v4022_v48 = vrot.slane %v4020_v8, 1  ;;  %v4799_v50 = vrot.slane %v12799_v7, 1  ;;  %9760 = vmatmul.msk.bf16.gmra.mxu0 %vm753_vm1, %v6016_v44  ;;  %v10097_v45 = vld [vmem:[%s10156_s23 + $0x104] sm:$0xff]  ;;  %v12848_v8 = vld [vmem:[%s10156_s23 + $0x110] sm:$0xff] }
 0x4c7   : > { %v6468_v56 = vadd.f32 %v12371_v43, %v6392_v9  ;;  %v12815_v31 = vld [vmem:[#allocation2 + $0x12c] sm:$0xff]  ;;  %v4025_v49 = vrot.slane %v4023_v17, 2  ;;  %v5485_v53 = vshrl.u32 %v12799_v7, 16  ;;  %v5488_v33 = vshll.u32 %v12799_v7, 16 }
 0x4c8   : > { %v6393_v1 = vadd.f32 %v6274_v3, %v5909_v61  ;;  %v7738_v58 = vunpack.c.l.b16 %v7716_v29  ;;  %v6784_v36 = vmax.f32 %v6776_v51, %v12815_v31  ;;  %v12824_v32 = vld [vmem:[#allocation2 + $0x134] sm:$0xff]  ;;  %v4445_v10 = vadd.f32 %v4328_v26, %v13893_v27  ;;  %9700 = vmatmul.msk.bf16.gmra.mxu3 %vm753_vm1, %v5483_v5  ;;  %v6277_v3 = vpop.f32.mrf.mxu0 }
 0x4c9   : > { %v6540_v46 = vmax.f32 %v6468_v56, 0.0  ;;  %v8085_v59 = vrot.slane %v8084_v2, 1  ;;  %v8224_v41 = vrot.slane %v8223_v25, 1  ;;  %v6785_v13 = vmax.f32 %v6777_v19, %v12824_v32  ;;  %v13894_v9 = vld [vmem:[#allocation38_spill] sm:$0xff] }
 0x4ca   : > { %v6469_v14 = vadd.f32 %v12371_v43, %v6393_v1  ;;  %v7877_v29 = vunpack.c.l.b16 %v7855_v63  ;;  %v8363_v42 = vrot.slane %v8362_v18, 1  ;;  %6789 = vst [vmem:[#allocation3 + $0xa0] sm:$0xff] %v6784_v36  ;;  %v4800_v47 = vsel %vm1601_vm2, %v4797_v38, %v4799_v50 }
 0x4cb   : > { %v5176_v62 = vadd.f32 %v5059_v0, %v4445_v10  ;;  %6790 = vst [vmem:[#allocation3 + $0xa8] sm:$0xff] %v6785_v13  ;;  %v12835_v21 = vor.u32 %v4025_v49, %v4022_v48  ;;  %v5487_v24 = vrot.slane %v5485_v53, 1  ;;  %v5490_v52 = vrot.slane %v5488_v33, 2  ;;  %v13895_v49 = vld [vmem:[#allocation51_spill] sm:$0xff] }
 0x4cc   : > { %v6541_v51 = vmax.f32 %v6469_v14, 0.0  ;;  %v12840_v43 = vsel %vm7046_vm9, %v12738_v55, %v12579_v22  ;;  %v12844_v63 = vsel %vm7046_vm9, %v7460_v4, %v12587_v6  ;;  %6612 = vst [vmem:[#allocation2 + $0x140] sm:$0xff] %v6540_v46  ;;  %v4029_v38 = vshrl.u32 %v10097_v45, 16  ;;  %v5793_v6 = vpop.f32.mrf.mxu3 }
 0x4cd   : > { %v4032_v20 = vshll.u32 %v10097_v45, 16  ;;  %v12852_v17 = vsel %vm7046_vm9, %v7599_v60, %v12605_v28  ;;  %v7994_v44 = vpack.c.bf16 %v12794_v30, %v12794_v30  ;;  %v12856_v22 = vmax.f32 %v8084_v2, %v8085_v59  ;;  %v6774_v28 = vld [vmem:[#allocation2 + $0x123] sm:$0xff]  ;;  %v12871_v2 = vpop.f32.mrf.mxu2 }
 0x4ce   : > { %v12858_v55 = vmax.f32 %v8223_v25, %v8224_v41  ;;  %6613 = vst [vmem:[#allocation2 + $0x148] sm:$0xff] %v6541_v51  ;;  %v12862_v4 = vsel %vm7046_vm9, %v7738_v58, %v12609_v39  ;;  %v12866_v12 = vsel %vm7046_vm9, %v7877_v29, %v13894_v9  ;;  %v12868_v0 = vmax.f32 %v8362_v18, %v8363_v42  ;;  %v4330_v41 = vpop.f32.mrf.mxu1 }
 0x4cf   : > { %v5910_v60 = vadd.f32 %v5793_v6, %v5176_v62  ;;  %v4027_v25 = vsel %vm3749_vm3, %v12764_v34, %v12835_v21  ;;  %v12876_v19 = vor.u32 %v5490_v52, %v5487_v24  ;;  %v6017_v39 = vrot.slane %v12799_v7, 2 }
 0x4d0   : > { %9641 = vmatmul.msk.bf16.gmra.mxu2 %vm753_vm1, %v4800_v47  ;;  %v4801_v61 = vrot.slane %v12848_v8, 1  ;;  %v4031_v26 = vrot.slane %v4029_v38, 1  ;;  %v4034_v5 = vrot.slane %v4032_v20, 2  ;;  %v5494_v18 = vshrl.u32 %v12848_v8, 16 }
 0x4d1   : > { %v5497_v56 = vshll.u32 %v12848_v8, 16  ;;  %v8133_v48 = vpack.c.bf16 %v12856_v22, %v12856_v22  ;;  %v8272_v1 = vpack.c.bf16 %v12858_v55, %v12858_v55  ;;  %v6778_v34 = vmax.f32 %v13895_v49, %v6774_v28  ;;  %v6923_v53 = vld [vmem:[#allocation3 + $0xa0] sm:$0x7]  ;;  %v7212_v58 = vld [vmem:[#allocation3 + $0xa4] sm:$0x7] }
 0x4d2   : > { %v7073_v33 = vld [vmem:[#allocation3 + $0xa2] sm:$0x7]  ;;  %v6965_v36 = vsel %vm6929_vm5, %v6923_v53, -inf  ;;  %v7253_v27 = vsel %vm6929_vm5, %v7212_v58, -inf  ;;  %v7351_v10 = vld [vmem:[#allocation3 + $0xa6] sm:$0x7]  ;;  %v6394_v59 = vadd.f32 %v6277_v3, %v5910_v60  ;;  %9441 = vmatmul.msk.bf16.gmra.mxu1 %vm753_vm1, %v4027_v25  ;;  %v5492_v45 = vsel %vm3749_vm3, %v12801_v23, %v12876_v19  ;;  %v12906_v23 = vpop.f32.mrf.mxu0 }
 0x4d3   : > { %v7114_v46 = vsel %vm6929_vm5, %v7073_v33, -inf  ;;  %v6966_v13 = vrot.slane %v6965_v36, 4  ;;  %v7254_v29 = vrot.slane %v7253_v27, 4  ;;  %v7392_v42 = vsel %vm6929_vm5, %v7351_v10, -inf  ;;  %v7490_v47 = vld [vmem:[#allocation3 + $0xa8] sm:$0x7] }
 0x4d4   : > { %v7115_v14 = vrot.slane %v7114_v46, 4  ;;  %v7393_v62 = vrot.slane %v7392_v42, 4  ;;  %v7531_v51 = vsel %vm6929_vm5, %v7490_v47, -inf  ;;  %v7629_v24 = vld [vmem:[#allocation3 + $0xaa] sm:$0x7]  ;;  %v6018_v3 = vsel %vm5957_vm4, %v6015_v54, %v6017_v39  ;;  %v12901_v6 = vld [vmem:[#allocation2 + $0x13c] sm:$0xff] }
 0x4d5   : > { %v7768_v52 = vld [vmem:[#allocation3 + $0xac] sm:$0x7]  ;;  %v6967_v38 = vmax.f32 %v6965_v36, %v6966_v13  ;;  %v7255_v22 = vmax.f32 %v7253_v27, %v7254_v29  ;;  %v7532_v55 = vrot.slane %v7531_v51, 4  ;;  %v7670_v28 = vsel %vm6929_vm5, %v7629_v24, -inf  ;;  %v12912_v54 = vld [vmem:[%s13718_s2] ss:$0 sm:$0xff]  ;;  %v12915_v27 = vpop.f32.mrf.mxu2  ;;  %v5795_v29 = vpop.f32.mrf.mxu3 }
 0x4d6   : > { %v7116_v20 = vmax.f32 %v7114_v46, %v7115_v14  ;;  %v7394_v9 = vmax.f32 %v7392_v42, %v7393_v62  ;;  %v7809_v60 = vsel %vm6929_vm5, %v7768_v52, -inf  ;;  %v6786_v25 = vmax.f32 %v6778_v34, %v12901_v6  ;;  %9761 = vmatmul.msk.bf16.gmra.mxu0 %vm753_vm1, %v6018_v3 }
 0x4d7   : > { %v6968_v49 = vrot.slane %v6967_v38, 2  ;;  %v7256_v40 = vrot.slane %v7255_v22, 2  ;;  %v6470_v33 = vadd.f32 %v12912_v54, %v6394_v59  ;;  %v7533_v36 = vmax.f32 %v7531_v51, %v7532_v55 }
 0x4d8   : > { %v7117_v53 = vrot.slane %v7116_v20, 2  ;;  %v7395_v58 = vrot.slane %v7394_v9, 2  ;;  %v7671_v46 = vrot.slane %v7670_v28, 4  ;;  %6791 = vst [vmem:[#allocation3 + $0xb0] sm:$0xff] %v6786_v25  ;;  %v8016_v34 = vunpack.c.l.b16 %v7994_v44  ;;  %9701 = vmatmul.msk.bf16.gmra.mxu3 %vm753_vm1, %v5492_v45  ;;  %v4333_v45 = vpop.f32.mrf.mxu1 }
 0x4d9   : > { %v8155_v10 = vunpack.c.l.b16 %v8133_v48  ;;  %v8411_v13 = vpack.c.bf16 %v12868_v0, %v12868_v0  ;;  %v7810_v14 = vrot.slane %v7809_v60, 4  ;;  %v8294_v42 = vunpack.c.l.b16 %v8272_v1 }
 0x4da   : > { %v6969_v59 = vmax.f32 %v6967_v38, %v6968_v49  ;;  %v7118_v47 = vmax.f32 %v7116_v20, %v7117_v53  ;;  %v7257_v62 = vmax.f32 %v7255_v22, %v7256_v40  ;;  %v12923_v51 = vor.u32 %v4034_v5, %v4031_v26  ;;  %v13896_v38 = vld [vmem:[#allocation18_spill] sm:$0xff]  ;;  %v12948_v40 = vld [vmem:[#allocation2 + $0x145] sm:$0xff] }
 0x4db   : > { %v4802_v30 = vsel %vm1601_vm2, %v4799_v50, %v4801_v61  ;;  %v5496_v44 = vrot.slane %v5494_v18, 1  ;;  %v5499_v48 = vrot.slane %v5497_v56, 2  ;;  %v7396_v24 = vmax.f32 %v7394_v9, %v7395_v58 }
 0x4dc   : > { %v7534_v0 = vrot.slane %v7533_v36, 2  ;;  %v7672_v52 = vmax.f32 %v7670_v28, %v7671_v46  ;;  %v6542_v3 = vmax.f32 %v6470_v33, 0.0  ;;  %v8433_v55 = vunpack.c.l.b16 %v8411_v13 }
 0x4dd   : > { %v7811_v1 = vmax.f32 %v7809_v60, %v7810_v14  ;;  %v4446_v20 = vadd.f32 %v4330_v41, %v13896_v38  ;;  %v6019_v26 = vrot.slane %v12848_v8, 2  ;;  %v12934_v5 = vsel %vm7046_vm9, %v8016_v34, %v12675_v15 }
 0x4de   : > { %v6970_v22 = vrot.slane %v6969_v59, 1  ;;  %v7119_v25 = vrot.slane %v7118_v47, 1  ;;  %v7258_v50 = vrot.slane %v7257_v62, 1  ;;  %6614 = vst [vmem:[#allocation2 + $0x150] sm:$0xff] %v6542_v3  ;;  %v12938_v18 = vsel %vm7046_vm9, %v8155_v10, %v12689_v16  ;;  %v12950_v16 = vpop.f32.mrf.mxu0 }
 0x4df   : > { %v7907_v56 = vld [vmem:[#allocation3 + $0xae] sm:$0x7]  ;;  %v5177_v9 = vadd.f32 %v12871_v2, %v4446_v20  ;;  %v4036_v41 = vsel %vm3749_vm3, %v12835_v21, %v12923_v51  ;;  %v12945_v28 = vor.u32 %v5499_v48, %v5496_v44  ;;  %v7397_v15 = vrot.slane %v7396_v24, 1  ;;  %v8185_v14 = vld [vmem:[#allocation3 + $0xb2] sm:$0x7]  ;;  %v13897_v44 = vld [vmem:[#allocation20_spill] sm:$0xff] }
 0x4e0   : > { %9642 = vmatmul.msk.bf16.gmra.mxu2 %vm753_vm1, %v4802_v30  ;;  %v7535_v60 = vmax.f32 %v7533_v36, %v7534_v0  ;;  %v7673_v49 = vrot.slane %v7672_v52, 2  ;;  %v7948_v53 = vsel %vm6929_vm5, %v7907_v56, -inf  ;;  %v12954_v2 = vsel %vm7046_vm9, %v8294_v42, %v12705_v37  ;;  %v8046_v58 = vld [vmem:[#allocation3 + $0xb0] sm:$0x7]  ;;  %v8324_v30 = vld [vmem:[#allocation3 + $0xb4] sm:$0x7]  ;;  %v5066_v37 = vpop.f32.mrf.mxu2 }
 0x4e1   : > { %v12958_v21 = vsel %vm7046_vm9, %v8433_v55, %v12709_v35  ;;  %v7812_v33 = vrot.slane %v7811_v1, 2  ;;  %v6020_v36 = vsel %vm5957_vm4, %v6017_v39, %v6019_v26  ;;  %v6971_v46 = vmax.f32 %v6969_v59, %v6970_v22  ;;  %v5798_v39 = vpop.f32.mrf.mxu3 }
 0x4e2   : > { %v7120_v34 = vmax.f32 %v7118_v47, %v7119_v25  ;;  %v7259_v10 = vmax.f32 %v7257_v62, %v7258_v50  ;;  %v7949_v13 = vrot.slane %v7948_v53, 4  ;;  %v6801_v42 = vmax.f32 %v12815_v31, %v12948_v40  ;;  %9442 = vmatmul.msk.bf16.gmra.mxu1 %vm753_vm1, %v4036_v41  ;;  %v4335_v50 = vpop.f32.mrf.mxu1 }
 0x4e3   : > { %v5911_v35 = vadd.f32 %v5795_v29, %v5177_v9  ;;  %v4447_v48 = vadd.f32 %v4333_v45, %v13897_v44  ;;  %v5501_v7 = vsel %vm3749_vm3, %v12876_v19, %v12945_v28  ;;  %v12972_v59 = vmax.f32 %v7396_v24, %v7397_v15 }
 0x4e4   : > { %v7536_v47 = vrot.slane %v7535_v60, 1  ;;  %v7674_v62 = vmax.f32 %v7672_v52, %v7673_v49  ;;  %v7950_v0 = vmax.f32 %v7948_v53, %v7949_v13  ;;  %v7813_v3 = vmax.f32 %v7811_v1, %v7812_v33  ;;  %v10099_v13 = vld [vmem:[%s10156_s23 + $0x10c] sm:$0xff] }
 0x4e5   : > { %v8087_v55 = vsel %vm6929_vm5, %v8046_v58, -inf  ;;  %v8226_v38 = vsel %vm6929_vm5, %v8185_v14, -inf  ;;  %v8365_v29 = vsel %vm6929_vm5, %v8324_v30, -inf  ;;  %v7012_v45 = vpack.c.bf16 %v6971_v46, %v6971_v46 }
 0x4e6   : > { %v7161_v20 = vpack.c.bf16 %v7120_v34, %v7120_v34  ;;  %v7300_v22 = vpack.c.bf16 %v7259_v10, %v7259_v10  ;;  %v8088_v25 = vrot.slane %v8087_v55, 4  ;;  %v7951_v19 = vrot.slane %v7950_v0, 2  ;;  %9762 = vmatmul.msk.bf16.gmra.mxu0 %vm753_vm1, %v6020_v36  ;;  %v13898_v34 = vld [vmem:[#allocation22_spill] sm:$0xff]  ;;  %v6284_v10 = vpop.f32.mrf.mxu0 }
 0x4e7   : > { %v8227_v56 = vrot.slane %v8226_v38, 4  ;;  %v8366_v24 = vrot.slane %v8365_v29, 4  ;;  %v6395_v52 = vadd.f32 %v12906_v23, %v5911_v35  ;;  %v7439_v1 = vpack.c.bf16 %v12972_v59, %v12972_v59 }
 0x4e8   : > { %v12981_v9 = vmax.f32 %v7535_v60, %v7536_v47  ;;  %v7675_v41 = vrot.slane %v7674_v62, 1  ;;  %v8089_v15 = vmax.f32 %v8087_v55, %v8088_v25  ;;  %9702 = vmatmul.msk.bf16.gmra.mxu3 %vm753_vm1, %v5501_v7  ;;  %v5178_v58 = vadd.f32 %v12915_v27, %v4447_v48  ;;  %v12991_v7 = vpop.f32.mrf.mxu2 }
 0x4e9   : > { %v8228_v49 = vmax.f32 %v8226_v38, %v8227_v56  ;;  %v8367_v53 = vmax.f32 %v8365_v29, %v8366_v24  ;;  %v6471_v33 = vadd.f32 %v12912_v54, %v6395_v52  ;;  %v7034_v46 = vunpack.c.l.b16 %v7012_v45  ;;  %v12989_v29 = vld [vmem:[%s10156_s23 + $0x118] sm:$0xff]  ;;  %v5800_v25 = vpop.f32.mrf.mxu3 }
 0x4ea   : > { %v7814_v23 = vrot.slane %v7813_v3, 1  ;;  %v4448_v36 = vadd.f32 %v4335_v50, %v13898_v34  ;;  %v4038_v14 = vshrl.u32 %v10099_v13, 16  ;;  %v7952_v60 = vmax.f32 %v7950_v0, %v7951_v19 }
 0x4eb   : > { %v8090_v30 = vrot.slane %v8089_v15, 2  ;;  %v6543_v35 = vmax.f32 %v6471_v33, 0.0  ;;  %v5912_v44 = vadd.f32 %v5798_v39, %v5178_v58  ;;  %v7183_v59 = vunpack.c.l.b16 %v7161_v20 }
 0x4ec   : > { %v7322_v47 = vunpack.c.l.b16 %v7300_v22  ;;  %v8229_v55 = vrot.slane %v8228_v49, 2  ;;  %v5179_v38 = vadd.f32 %v5066_v37, %v4448_v36  ;;  %v7676_v27 = vmax.f32 %v7674_v62, %v7675_v41 }
 0x4ed   : > { %v8368_v48 = vrot.slane %v8367_v53, 2  ;;  %6615 = vst [vmem:[#allocation2 + $0x158] sm:$0xff] %v6543_v35  ;;  %v6396_v45 = vadd.f32 %v12950_v16, %v5912_v44  ;;  %v4041_v50 = vshll.u32 %v10099_v13, 16  ;;  %v7815_v56 = vmax.f32 %v7813_v3, %v7814_v23 }
 0x4ee   : > { %v5913_v0 = vadd.f32 %v5800_v25, %v5179_v38  ;;  %v4040_v19 = vrot.slane %v4038_v14, 1  ;;  %v4803_v39 = vrot.slane %v12989_v29, 1  ;;  %v7953_v20 = vrot.slane %v7952_v60, 1 }
 0x4ef   : > { %v8091_v22 = vmax.f32 %v8089_v15, %v8090_v30  ;;  %v6472_v37 = vadd.f32 %v12912_v54, %v6396_v45  ;;  %v4043_v24 = vrot.slane %v4041_v50, 2  ;;  %v7578_v52 = vpack.c.bf16 %v12981_v9, %v12981_v9  ;;  %v4338_v33 = vpop.f32.mrf.mxu1  ;;  %v13027_v45 = vld [vmem:[%s10156_s23 + $0x120] sm:$0xff] }
 0x4f0   : > { %v8230_v62 = vmax.f32 %v8228_v49, %v8229_v55  ;;  %v6397_v41 = vadd.f32 %v6284_v10, %v5913_v0  ;;  %v4804_v16 = vsel %vm1601_vm2, %v4801_v61, %v4803_v39  ;;  %v7461_v3 = vunpack.c.l.b16 %v7439_v1  ;;  %v13899_v50 = vld [vmem:[#allocation24_spill] sm:$0xff] }
 0x4f1   : > { %v7717_v58 = vpack.c.bf16 %v7676_v27, %v7676_v27  ;;  %v8369_v23 = vmax.f32 %v8367_v53, %v8368_v48  ;;  %v6544_v34 = vmax.f32 %v6472_v37, 0.0  ;;  %9643 = vmatmul.msk.bf16.gmra.mxu2 %vm753_vm1, %v4804_v16  ;;  %v13006_v15 = vsel %vm7048_vm10, %v7034_v46, %v12769_v57  ;;  %v5071_v48 = vpop.f32.mrf.mxu2 }
 0x4f2   : > { %v7856_v9 = vpack.c.bf16 %v7815_v56, %v7815_v56  ;;  %v6473_v49 = vadd.f32 %v12912_v54, %v6397_v41  ;;  %v13009_v36 = vor.u32 %v4043_v24, %v4040_v19  ;;  %v7954_v10 = vmax.f32 %v7952_v60, %v7953_v20  ;;  %v6798_v41 = vld [vmem:[#allocation2 + $0x14d] sm:$0xff] }
 0x4f3   : > { %v8092_v13 = vrot.slane %v8091_v22, 1  ;;  %6616 = vst [vmem:[#allocation2 + $0x160] sm:$0xff] %v6544_v34  ;;  %v5503_v61 = vshrl.u32 %v12989_v29, 16  ;;  %v5506_v1 = vshll.u32 %v12989_v29, 16  ;;  %v13015_v53 = vsel %vm7048_vm10, %v7183_v59, %v12778_v11  ;;  %v6287_v46 = vpop.f32.mrf.mxu0 }
 0x4f4   : > { %v8231_v14 = vrot.slane %v8230_v62, 1  ;;  %v6545_v57 = vmax.f32 %v6473_v49, 0.0  ;;  %v4045_v30 = vsel %vm3749_vm3, %v12923_v51, %v13009_v36  ;;  %v13022_v60 = vsel %vm7048_vm10, %v7322_v47, %v12840_v43  ;;  %v10100_v43 = vld [vmem:[%s10156_s23 + $0x114] sm:$0xff] }
 0x4f5   : > { %v7600_v35 = vunpack.c.l.b16 %v7578_v52  ;;  %v7739_v44 = vunpack.c.l.b16 %v7717_v58  ;;  %v8370_v55 = vrot.slane %v8369_v23, 1  ;;  %9443 = vmatmul.msk.bf16.gmra.mxu1 %vm753_vm1, %v4045_v30  ;;  %v7878_v11 = vunpack.c.l.b16 %v7856_v9 }
 0x4f6   : > { %6617 = vst [vmem:[#allocation2 + $0x168] sm:$0xff] %v6545_v57  ;;  %v5505_v59 = vrot.slane %v5503_v61, 1  ;;  %v5508_v38 = vrot.slane %v5506_v1, 2  ;;  %v6021_v27 = vrot.slane %v12989_v29, 2  ;;  %v7995_v51 = vpack.c.bf16 %v7954_v10, %v7954_v10  ;;  %v13081_v57 = vld [vmem:[%s10156_s23 + $0x128] sm:$0xff] }
 0x4f7   : > { %v8093_v25 = vmax.f32 %v8091_v22, %v8092_v13  ;;  %v4449_v56 = vadd.f32 %v4338_v33, %v13899_v50  ;;  %v4047_v47 = vshrl.u32 %v10100_v43, 16  ;;  %v8232_v0 = vmax.f32 %v8230_v62, %v8231_v14  ;;  %v4340_v37 = vpop.f32.mrf.mxu1 }
 0x4f8   : > { %v13031_v19 = vor.u32 %v5508_v38, %v5505_v59  ;;  %v6022_v20 = vsel %vm5957_vm4, %v6019_v26, %v6021_v27  ;;  %v4050_v24 = vshll.u32 %v10100_v43, 16  ;;  %v8371_v52 = vmax.f32 %v8369_v23, %v8370_v55  ;;  %v13087_v59 = vld [vmem:[#allocation2 + $0x155] sm:$0xff] }
 0x4f9   : > { %9763 = vmatmul.msk.bf16.gmra.mxu0 %vm753_vm1, %v6022_v20  ;;  %v5180_v22 = vadd.f32 %v12991_v7, %v4449_v56  ;;  %v4049_v33 = vrot.slane %v4047_v47, 1  ;;  %v4805_v16 = vrot.slane %v13027_v45, 1  ;;  %v5512_v26 = vshrl.u32 %v13027_v45, 16 }
 0x4fa   : > { %v13041_v62 = vld [vmem:[#allocation2 + $0x15e] sm:$0xff]  ;;  %v5510_v58 = vsel %vm3749_vm3, %v12945_v28, %v13031_v19  ;;  %v4052_v8 = vrot.slane %v4050_v24, 2  ;;  %v5515_v34 = vshll.u32 %v13027_v45, 16  ;;  %v13050_v23 = vsel %vm7048_vm10, %v7461_v3, %v12844_v63 }
 0x4fb   : > { %v13054_v7 = vsel %vm7048_vm10, %v7600_v35, %v12852_v17  ;;  %v8134_v9 = vpack.c.bf16 %v8093_v25, %v8093_v25  ;;  %v6809_v49 = vmax.f32 %v6801_v42, %v13041_v62  ;;  %9703 = vmatmul.msk.bf16.gmra.mxu3 %vm753_vm1, %v5510_v58  ;;  %v13063_v28 = vsel %vm7048_vm10, %v7739_v44, %v12862_v4  ;;  %v5803_v10 = vpop.f32.mrf.mxu3  ;;  %v6289_v13 = vpop.f32.mrf.mxu0  ;;  %v13900_v44 = vld [vmem:[#allocation26_spill] sm:$0xff] }
 0x4fc   : > { %v13067_v63 = vsel %vm7048_vm10, %v7878_v11, %v12866_v12  ;;  %v13069_v3 = vunpack.c.l.b16 %v7995_v51  ;;  %v6802_v17 = vmax.f32 %v12824_v32, %v6798_v41  ;;  %v8273_v61 = vpack.c.bf16 %v8232_v0, %v8232_v0 }
 0x4fd   : > { %v8412_v31 = vpack.c.bf16 %v8371_v52, %v8371_v52  ;;  %6814 = vst [vmem:[#allocation3 + $0xc0] sm:$0xff] %v6809_v49  ;;  %v13072_v40 = vld [vmem:[#allocation2 + $0x166] sm:$0xff]  ;;  %v5914_v42 = vadd.f32 %v5803_v10, %v5180_v22  ;;  %v4806_v4 = vsel %vm1601_vm2, %v4803_v39, %v4805_v16  ;;  %v4053_v1 = vor.u32 %v4052_v8, %v4049_v33  ;;  %v10101_v39 = vld [vmem:[%s10156_s23 + $0x11c] sm:$0xff] }
 0x4fe   : > { %v6810_v12 = vmax.f32 %v6802_v17, %v13072_v40  ;;  %v5514_v14 = vrot.slane %v5512_v26, 1  ;;  %v5517_v32 = vrot.slane %v5515_v34, 2  ;;  %v13083_v30 = vunpack.c.l.b16 %v8134_v9 }
 0x4ff   : > { %v6398_v35 = vadd.f32 %v6287_v46, %v5914_v42  ;;  %v4450_v55 = vadd.f32 %v4340_v37, %v13900_v44  ;;  %v13735_v11 = vrot.slane %v13027_v45, 2  ;;  %v4343_v38 = vpop.f32.mrf.mxu1  ;;  %v5074_v51 = vpop.f32.mrf.mxu2  ;;  %v4056_v25 = vshrl.u32 %v10101_v39, 16 }
 0x500   : > { %6815 = vst [vmem:[#allocation3 + $0xc8] sm:$0xff] %v6810_v12  ;;  %v4059_v50 = vshll.u32 %v10101_v39, 16  ;;  %v5521_v56 = vshrl.u32 %v13081_v57, 16  ;;  %v5524_v43 = vshll.u32 %v13081_v57, 16  ;;  %v13092_v47 = vunpack.c.l.b16 %v8273_v61 }
 0x501   : > { %v13094_v0 = vunpack.c.l.b16 %v8412_v31  ;;  %v6474_v46 = vadd.f32 %v12912_v54, %v6398_v35  ;;  %v5181_v20 = vadd.f32 %v5071_v48, %v4450_v55  ;;  %9644 = vmatmul.msk.bf16.gmra.mxu2 %vm753_vm1, %v4806_v4  ;;  %v4054_v37 = vsel %vm3749_vm3, %v13009_v36, %v4053_v1  ;;  %v13901_v48 = vld [vmem:[#allocation28_spill] sm:$0xff] }
 0x502   : > { %v13100_v24 = vor.u32 %v5517_v32, %v5514_v14  ;;  %v4058_v52 = vrot.slane %v4056_v25, 1  ;;  %v4061_v41 = vrot.slane %v4059_v50, 2  ;;  %v6803_v22 = vmax.f32 %v12901_v6, %v13087_v59 }
 0x503   : > { %v6546_v33 = vmax.f32 %v6474_v46, 0.0  ;;  %v5523_v58 = vrot.slane %v5521_v56, 1  ;;  %v5526_v8 = vrot.slane %v5524_v43, 2  ;;  %v5805_v49 = vpop.f32.mrf.mxu3  ;;  %v4451_v17 = vadd.f32 %v4343_v38, %v13901_v48  ;;  %v13105_v10 = vpop.f32.mrf.mxu0 }
 0x504   : > { %v6924_v26 = vld [vmem:[#allocation3 + $0xc0] sm:$0x7]  ;;  %v7213_v9 = vld [vmem:[#allocation3 + $0xc4] sm:$0x7]  ;;  %v6024_v36 = vsel %vm5957_vm4, %v6021_v27, %v13735_v11  ;;  %v13112_v61 = vor.u32 %v4061_v41, %v4058_v52  ;;  %v5915_v4 = vadd.f32 %v5805_v49, %v5181_v20  ;;  %v5519_v29 = vsel %vm3749_vm3, %v13031_v19, %v13100_v24 }
 0x505   : > { %v7074_v34 = vld [vmem:[#allocation3 + $0xc2] sm:$0x7]  ;;  %v6972_v6 = vsel %vm6929_vm5, %v6924_v26, -inf  ;;  %v7260_v42 = vsel %vm6929_vm5, %v7213_v9, -inf  ;;  %6618 = vst [vmem:[#allocation2 + $0x170] sm:$0xff] %v6546_v33  ;;  %9444 = vmatmul.msk.bf16.gmra.mxu1 %vm753_vm1, %v4054_v37  ;;  %v5182_v59 = vadd.f32 %v5074_v51, %v4451_v17  ;;  %v13125_v39 = vor.u32 %v5526_v8, %v5523_v58 }
 0x506   : > { %v7121_v31 = vsel %vm6929_vm5, %v7074_v34, -inf  ;;  %v6973_v12 = vrot.slane %v6972_v6, 4  ;;  %v7261_v32 = vrot.slane %v7260_v42, 4  ;;  %v6399_v55 = vadd.f32 %v6289_v13, %v5915_v4 }
 0x507   : > { %v7122_v14 = vrot.slane %v7121_v31, 4  ;;  %v7352_v27 = vld [vmem:[#allocation3 + $0xc6] sm:$0x7]  ;;  %v7630_v44 = vld [vmem:[#allocation3 + $0xca] sm:$0x7]  ;;  %v13123_v38 = vsel %vm3749_vm3, %v4053_v1, %v13112_v61  ;;  %v13128_v20 = vpop.f32.mrf.mxu1  ;;  %v13130_v19 = vpop.f32.mrf.mxu2 }
 0x508   : > { %v7491_v35 = vld [vmem:[#allocation3 + $0xc8] sm:$0x7]  ;;  %v6974_v25 = vmax.f32 %v6972_v6, %v6973_v12  ;;  %v7262_v56 = vmax.f32 %v7260_v42, %v7261_v32  ;;  %v7399_v43 = vsel %vm6929_vm5, %v7352_v27, -inf  ;;  %v7769_v46 = vld [vmem:[#allocation3 + $0xcc] sm:$0x7]  ;;  %v7677_v51 = vsel %vm6929_vm5, %v7630_v44, -inf }
 0x509   : > { %v7123_v50 = vmax.f32 %v7121_v31, %v7122_v14  ;;  %v7400_v37 = vrot.slane %v7399_v43, 4  ;;  %v7538_v13 = vsel %vm6929_vm5, %v7491_v35, -inf  ;;  %v7816_v1 = vsel %vm6929_vm5, %v7769_v46, -inf  ;;  %9764 = vmatmul.msk.bf16.gmra.mxu0 %vm753_vm1, %v6024_v36 }
 0x50a   : > { %v6975_v52 = vrot.slane %v6974_v25, 2  ;;  %v7263_v33 = vrot.slane %v7262_v56, 2  ;;  %v7539_v58 = vrot.slane %v7538_v13, 4  ;;  %v7678_v26 = vrot.slane %v7677_v51, 4 }
 0x50b   : > { %v7124_v41 = vrot.slane %v7123_v50, 2  ;;  %v7401_v8 = vmax.f32 %v7399_v43, %v7400_v37  ;;  %v7817_v34 = vrot.slane %v7816_v1, 4  ;;  %v6475_v9 = vadd.f32 %v12912_v54, %v6399_v55  ;;  %9704 = vmatmul.msk.bf16.gmra.mxu3 %vm753_vm1, %v5519_v29  ;;  %v5808_v42 = vpop.f32.mrf.mxu3  ;;  %v13140_v4 = vpop.f32.mrf.mxu0 }
 0x50c   : > { %v6976_v49 = vmax.f32 %v6974_v25, %v6975_v52  ;;  %v7264_v17 = vmax.f32 %v7262_v56, %v7263_v33  ;;  %v7540_v6 = vmax.f32 %v7538_v13, %v7539_v58  ;;  %v13138_v31 = vld [vmem:[#allocation2 + $0x16e] sm:$0xff]  ;;  %v7679_v12 = vmax.f32 %v7677_v51, %v7678_v26 }
 0x50d   : > { %v7125_v48 = vmax.f32 %v7123_v50, %v7124_v41  ;;  %v7402_v36 = vrot.slane %v7401_v8, 2  ;;  %v7818_v14 = vmax.f32 %v7816_v1, %v7817_v34  ;;  %v6811_v32 = vmax.f32 %v6803_v22, %v13138_v31 }
 0x50e   : > { %v6977_v27 = vrot.slane %v6976_v49, 1  ;;  %v7265_v44 = vrot.slane %v7264_v17, 1  ;;  %v7541_v55 = vrot.slane %v7540_v6, 2  ;;  %v7680_v29 = vrot.slane %v7679_v12, 2 }
 0x50f   : > { %v7126_v35 = vrot.slane %v7125_v48, 1  ;;  %v7403_v43 = vmax.f32 %v7401_v8, %v7402_v36  ;;  %v7819_v25 = vrot.slane %v7818_v14, 2  ;;  %6816 = vst [vmem:[#allocation3 + $0xd0] sm:$0xff] %v6811_v32  ;;  %v13143_v13 = vpop.f32.mrf.mxu1  ;;  %v6547_v1 = vmax.f32 %v6475_v9, 0.0  ;;  %v13145_v33 = vpop.f32.mrf.mxu2 }
 0x510   : > { %v6978_v50 = vmax.f32 %v6976_v49, %v6977_v27  ;;  %v7266_v46 = vmax.f32 %v7264_v17, %v7265_v44  ;;  %v7542_v37 = vmax.f32 %v7540_v6, %v7541_v55  ;;  %v7681_v41 = vmax.f32 %v7679_v12, %v7680_v29 }
 0x511   : > { %v7127_v56 = vmax.f32 %v7125_v48, %v7126_v35  ;;  %v7404_v52 = vrot.slane %v7403_v43, 1  ;;  %v7820_v51 = vmax.f32 %v7818_v14, %v7819_v25  ;;  %6619 = vst [vmem:[#allocation2 + $0x178] sm:$0xff] %v6547_v1  ;;  %v5916_v49 = vadd.f32 %v5808_v42, %v5182_v59 }
 0x512   : > { %v7013_v22 = vpack.c.bf16 %v6978_v50, %v6978_v50  ;;  %v7301_v26 = vpack.c.bf16 %v7266_v46, %v7266_v46  ;;  %v7543_v34 = vrot.slane %v7542_v37, 1  ;;  %v7682_v36 = vrot.slane %v7681_v41, 1 }
 0x513   : > { %v7162_v58 = vpack.c.bf16 %v7127_v56, %v7127_v56  ;;  %v7405_v8 = vmax.f32 %v7403_v43, %v7404_v52  ;;  %v7821_v11 = vrot.slane %v7820_v51, 1  ;;  %v13150_v48 = vsel %vm7048_vm10, %v13069_v3, %v12934_v5  ;;  %v13157_v6 = vpop.f32.mrf.mxu3  ;;  %v13159_v12 = vpop.f32.mrf.mxu0 }
 0x514   : > { %v13155_v9 = vsel %vm7048_vm10, %v13083_v30, %v12938_v18  ;;  %v7544_v17 = vmax.f32 %v7542_v37, %v7543_v34  ;;  %v7035_v14 = vunpack.c.l.b16 %v7013_v22  ;;  %v7323_v27 = vunpack.c.l.b16 %v7301_v26 }
 0x515   : > { %v7184_v32 = vunpack.c.l.b16 %v7162_v58  ;;  %v7683_v59 = vmax.f32 %v7681_v41, %v7682_v36  ;;  %9445 = vmatmul.msk.bf16.gmra.mxu1 %vm753_vm1, %v13123_v38  ;;  %v13166_v5 = vsel %vm7048_vm10, %v13092_v47, %v12954_v2  ;;  %v13171_v18 = vsel %vm7048_vm10, %v13094_v0, %v12958_v21 }
 0x516   : > { %v7440_v3 = vpack.c.bf16 %v7405_v8, %v7405_v8  ;;  %v7908_v30 = vld [vmem:[#allocation3 + $0xce] sm:$0x7]  ;;  %v8186_v35 = vld [vmem:[#allocation3 + $0xd2] sm:$0x7]  ;;  %v5528_v44 = vsel %vm3749_vm3, %v13100_v24, %v13125_v39  ;;  %v7579_v55 = vpack.c.bf16 %v7544_v17, %v7544_v17  ;;  %v7822_v38 = vmax.f32 %v7820_v51, %v7821_v11 }
 0x517   : > { %v8047_v42 = vld [vmem:[#allocation3 + $0xd0] sm:$0x7]  ;;  %v7955_v43 = vsel %vm6929_vm5, %v7908_v30, -inf  ;;  %v8325_v29 = vld [vmem:[#allocation3 + $0xd4] sm:$0x7]  ;;  %v6400_v2 = vadd.f32 %v13105_v10, %v5916_v49  ;;  %v7718_v47 = vpack.c.bf16 %v7683_v59, %v7683_v59  ;;  %v8233_v0 = vsel %vm6929_vm5, %v8186_v35, -inf  ;;  %v4350_v50 = vpop.f32.mrf.mxu1 }
 0x518   : > { %v7956_v25 = vrot.slane %v7955_v43, 4  ;;  %v8094_v21 = vsel %vm6929_vm5, %v8047_v42, -inf  ;;  %v13182_v56 = vsel %vm7050_vm11, %v7035_v14, %v13006_v15  ;;  %v13186_v24 = vsel %vm7050_vm11, %v7184_v32, %v13015_v53  ;;  %v5081_v15 = vpop.f32.mrf.mxu2  ;;  %v13902_v14 = vld [vmem:[#allocation30_spill] sm:$0xff] }
 0x519   : > { %v13190_v11 = vsel %vm7050_vm11, %v7323_v27, %v13022_v60  ;;  %v8095_v10 = vrot.slane %v8094_v21, 4  ;;  %v7462_v46 = vunpack.c.l.b16 %v7440_v3  ;;  %v8234_v52 = vrot.slane %v8233_v0, 4  ;;  %v13903_v27 = vld [vmem:[#allocation34_spill] sm:$0xff] }
 0x51a   : > { %v7957_v37 = vmax.f32 %v7955_v43, %v7956_v25  ;;  %v8372_v41 = vsel %vm6929_vm5, %v8325_v29, -inf  ;;  %v7601_v51 = vunpack.c.l.b16 %v7579_v55  ;;  %v7857_v1 = vpack.c.bf16 %v7822_v38, %v7822_v38 }
 0x51b   : > { %v8096_v22 = vmax.f32 %v8094_v21, %v8095_v10  ;;  %v8373_v58 = vrot.slane %v8372_v41, 4  ;;  %9705 = vmatmul.msk.bf16.gmra.mxu3 %vm753_vm1, %v5528_v44  ;;  %v7740_v26 = vunpack.c.l.b16 %v7718_v47  ;;  %v8235_v34 = vmax.f32 %v8233_v0, %v8234_v52  ;;  %v5813_v60 = vpop.f32.mrf.mxu3  ;;  %v13195_v36 = vpop.f32.mrf.mxu0 }
 0x51c   : > { %v7958_v53 = vrot.slane %v7957_v37, 2  ;;  %v6476_v8 = vadd.f32 %v12912_v54, %v6400_v2  ;;  %v4452_v32 = vadd.f32 %v13128_v20, %v13902_v14  ;;  %v4453_v59 = vadd.f32 %v13143_v13, %v13903_v27 }
 0x51d   : > { %v8097_v49 = vrot.slane %v8096_v22, 2  ;;  %v8374_v17 = vmax.f32 %v8372_v41, %v8373_v58  ;;  %v8236_v30 = vrot.slane %v8235_v34, 2  ;;  %v4807_v35 = vrot.slane %v13081_v57, 1  ;;  %v13905_v41 = vld [vmem:[#allocation36_spill] sm:$0xff] }
 0x51e   : > { %v7959_v3 = vmax.f32 %v7957_v37, %v7958_v53  ;;  %v6548_v42 = vmax.f32 %v6476_v8, 0.0  ;;  %v5183_v38 = vadd.f32 %v13130_v19, %v4452_v32  ;;  %v6025_v43 = vrot.slane %v13081_v57, 2 }
 0x51f   : > { %v8098_v44 = vmax.f32 %v8096_v22, %v8097_v49  ;;  %v8375_v55 = vrot.slane %v8374_v17, 2  ;;  %v8237_v2 = vmax.f32 %v8235_v34, %v8236_v30  ;;  %v4808_v20 = vsel %vm1601_vm2, %v4805_v16, %v4807_v35  ;;  %v4353_v47 = vpop.f32.mrf.mxu1 }
 0x520   : > { %v7960_v29 = vrot.slane %v7959_v3, 1  ;;  %6620 = vst [vmem:[#allocation2 + $0x180] sm:$0xff] %v6548_v42  ;;  %v5184_v13 = vadd.f32 %v13145_v33, %v4453_v59  ;;  %v5917_v0 = vadd.f32 %v13157_v6, %v5183_v38  ;;  %9645 = vmatmul.msk.bf16.gmra.mxu2 %vm753_vm1, %v4808_v20  ;;  %v13904_v19 = vrot.slane %v13027_v45, 2  ;;  %v5084_v59 = vpop.f32.mrf.mxu2 }
 0x521   : > { %v8099_v25 = vrot.slane %v8098_v44, 1  ;;  %v8376_v21 = vmax.f32 %v8374_v17, %v8375_v55  ;;  %v8238_v52 = vrot.slane %v8237_v2, 1  ;;  %v4454_v33 = vadd.f32 %v4350_v50, %v13905_v41 }
 0x522   : > { %v6026_v10 = vsel %vm5957_vm4, %v13904_v19, %v6025_v43  ;;  %v7961_v37 = vmax.f32 %v7959_v3, %v7960_v29  ;;  %v5918_v16 = vadd.f32 %v5813_v60, %v5184_v13  ;;  %v7879_v22 = vunpack.c.l.b16 %v7857_v1  ;;  %v6822_v1 = vld [vmem:[#allocation2 + $0x177] sm:$0xff]  ;;  %v13906_v29 = vld [vmem:[#allocation5_spill] sm:$0xff] }
 0x523   : > { %9765 = vmatmul.msk.bf16.gmra.mxu0 %vm753_vm1, %v6026_v10  ;;  %v8100_v58 = vmax.f32 %v8098_v44, %v8099_v25  ;;  %v8377_v53 = vrot.slane %v8376_v21, 1  ;;  %v6401_v6 = vadd.f32 %v13140_v4, %v5917_v0  ;;  %v8239_v8 = vmax.f32 %v8237_v2, %v8238_v52  ;;  %v5815_v45 = vpop.f32.mrf.mxu3  ;;  %v13221_v14 = vpop.f32.mrf.mxu0  ;;  %v13244_v44 = vld [vmem:[%s10156_s23 + $0x130] sm:$0xff]  ;;  %v10102_v13 = vld [vmem:[%s10156_s23 + $0x124] sm:$0xff] }
 0x524   : > { %v7996_v34 = vpack.c.bf16 %v7961_v37, %v7961_v37  ;;  %v6402_v49 = vadd.f32 %v13159_v12, %v5918_v16  ;;  %v5185_v17 = vadd.f32 %v5081_v15, %v4454_v33  ;;  %v13225_v32 = vsel %vm7050_vm11, %v7462_v46, %v13050_v23 }
 0x525   : > { %v8135_v60 = vpack.c.bf16 %v8100_v58, %v8100_v58  ;;  %v8378_v50 = vmax.f32 %v8376_v21, %v8377_v53  ;;  %v6477_v27 = vadd.f32 %v12912_v54, %v6401_v6  ;;  %v13230_v4 = vsel %vm7050_vm11, %v7601_v51, %v13054_v7 }
 0x526   : > { %v8018_v12 = vunpack.c.l.b16 %v7996_v34  ;;  %v8274_v15 = vpack.c.bf16 %v8239_v8, %v8239_v8  ;;  %v13233_v3 = vadd.f32 %v12912_v54, %v6402_v49  ;;  %v13237_v23 = vsel %vm7050_vm11, %v7740_v26, %v13063_v28  ;;  %v13907_v49 = vld [vmem:[#allocation4_spill] sm:$0xff] }
 0x527   : > { %v13241_v46 = vsel %vm7050_vm11, %v7879_v22, %v13067_v63  ;;  %v6549_v30 = vmax.f32 %v6477_v27, 0.0  ;;  %v5919_v42 = vadd.f32 %v5815_v45, %v5185_v17  ;;  %v8157_v7 = vunpack.c.l.b16 %v8135_v60  ;;  %v6823_v55 = vld [vmem:[#allocation2 + $0x17f] sm:$0xff]  ;;  %v4355_v20 = vpop.f32.mrf.mxu1 }
 0x528   : > { %v6826_v51 = vmax.f32 %v13041_v62, %v6822_v1  ;;  %v6550_v38 = vmax.f32 %v13233_v3, 0.0  ;;  %v4455_v2 = vadd.f32 %v4353_v47, %v13906_v29  ;;  %v13251_v28 = vsel %vm7050_vm11, %v8018_v12, %v13150_v48  ;;  %v13908_v45 = vld [vmem:[#allocation32_spill] sm:$0xff]  ;;  %v5086_v27 = vpop.f32.mrf.mxu2 }
 0x529   : > { %v8413_v26 = vpack.c.bf16 %v8378_v50, %v8378_v50  ;;  %6621 = vst [vmem:[#allocation2 + $0x188] sm:$0xff] %v6549_v30  ;;  %v6403_v63 = vadd.f32 %v13195_v36, %v5919_v42  ;;  %v4065_v25 = vshrl.u32 %v10102_v13, 16  ;;  %v8296_v21 = vunpack.c.l.b16 %v8274_v15 }
 0x52a   : > { %v6834_v62 = vmax.f32 %v6826_v51, %v6550_v38  ;;  %v4068_v0 = vshll.u32 %v10102_v13, 16  ;;  %v4809_v19 = vrot.slane %v13244_v44, 1  ;;  %v6827_v47 = vmax.f32 %v13072_v40, %v6823_v55  ;;  %v5941_v51 = vld [vmem:[%s10156_s23 + $0x138] sm:$0x3] }
 0x52b   : > { %v13260_v10 = vadd.f32 %v12912_v54, %v6403_v63  ;;  %v4067_v48 = vrot.slane %v4065_v25, 1  ;;  %v5530_v37 = vshrl.u32 %v13244_v44, 16  ;;  %v13265_v36 = vsel %vm7050_vm11, %v8157_v7, %v13155_v9  ;;  %v5818_v33 = vpop.f32.mrf.mxu3  ;;  %v6304_v22 = vpop.f32.mrf.mxu0  ;;  %v4547_v9 = vld [vmem:[%s10156_s23 + $0x138] sm:$0x1] }
 0x52c   : > { %6839 = vst [vmem:[#allocation3 + $0xe0] sm:$0xff] %v6834_v62  ;;  %v4070_v52 = vrot.slane %v4068_v0, 2  ;;  %v5533_v16 = vshll.u32 %v13244_v44, 16  ;;  %v6027_v41 = vrot.slane %v13244_v44, 2  ;;  %v4810_v58 = vsel %vm1601_vm2, %v4807_v35, %v4809_v19 }
 0x52d   : > { %v6551_v40 = vmax.f32 %v13260_v10, 0.0  ;;  %v5532_v53 = vrot.slane %v5530_v37, 1  ;;  %v5186_v6 = vadd.f32 %v5084_v59, %v4455_v2  ;;  %v4456_v17 = vadd.f32 %v4355_v20, %v13907_v49 }
 0x52e   : > { %v4071_v34 = vor.u32 %v4070_v52, %v4067_v48  ;;  %v5535_v8 = vrot.slane %v5533_v16, 2  ;;  %v4074_v60 = vshrl.u32 %v13908_v45, 16  ;;  %v6028_v1 = vsel %vm5957_vm4, %v6025_v43, %v6027_v41 }
 0x52f   : > { %v6835_v50 = vmax.f32 %v6827_v47, %v6551_v40  ;;  %v5920_v35 = vadd.f32 %v5818_v33, %v5186_v6  ;;  %v4077_v59 = vshll.u32 %v13908_v45, 16  ;;  %v4702_v7 = vunpack.c.l.b16 %v4547_v9  ;;  %v4358_v29 = vpop.f32.mrf.mxu1 }
 0x530   : > { %v6824_v12 = vld [vmem:[#allocation2 + $0x187] sm:$0xff]  ;;  %v4072_v15 = vsel %vm3749_vm3, %v13112_v61, %v4071_v34  ;;  %v13288_v30 = vor.u32 %v5535_v8, %v5532_v53  ;;  %v4076_v42 = vrot.slane %v4074_v60, 1  ;;  %v13293_v55 = vsel %vm7050_vm11, %v8296_v21, %v13166_v5  ;;  %9646 = vmatmul.msk.bf16.gmra.mxu2 %vm753_vm1, %v4810_v58  ;;  %v13909_v53 = vld [vmem:[#allocation6_spill] sm:$0xff] }
 0x531   : > { %v13295_v57 = vunpack.c.l.b16 %v8413_v26  ;;  %6840 = vst [vmem:[#allocation3 + $0xe8] sm:$0xff] %v6835_v50  ;;  %9446 = vmatmul.msk.bf16.gmra.mxu1 %vm753_vm1, %v4072_v15  ;;  %v6404_v43 = vadd.f32 %v13221_v14, %v5920_v35  ;;  %v5187_v2 = vadd.f32 %v5086_v27, %v4456_v17  ;;  %v4079_v20 = vrot.slane %v4077_v59, 2 }
 0x532   : > { %v5537_v61 = vsel %vm3749_vm3, %v13125_v39, %v13288_v30  ;;  %v13304_v5 = vpack.c.b16 %v4702_v7, %v4702_v7  ;;  %v6828_v26 = vmax.f32 %v13138_v31, %v6824_v12  ;;  %v5954_v21 = vunpack.c.l.b16 %v5941_v51 }
 0x533   : > { %9766 = vmatmul.msk.bf16.gmra.mxu0 %vm753_vm1, %v6028_v1  ;;  %v6925_v63 = vld [vmem:[#allocation3 + $0xe0] sm:$0x7]  ;;  %v7214_v25 = vld [vmem:[#allocation3 + $0xe4] sm:$0x7]  ;;  %9706 = vmatmul.msk.bf16.gmra.mxu3 %vm753_vm1, %v5537_v61  ;;  %v13309_v14 = vadd.f32 %v12912_v54, %v6404_v43  ;;  %v5820_v47 = vpop.f32.mrf.mxu3  ;;  %v13314_v48 = vpop.f32.mrf.mxu0  ;;  %v4080_v37 = vor.u32 %v4079_v20, %v4076_v42  ;;  %v13318_v54 = vadd.f32 %v4358_v29, %v13909_v53 }
 0x534   : > { %v7075_v13 = vld [vmem:[#allocation3 + $0xe2] sm:$0x7]  ;;  %v6979_v62 = vsel %vm6929_vm5, %v6925_v63, -inf  ;;  %v7267_v0 = vsel %vm6929_vm5, %v7214_v25, -inf  ;;  %v5921_v58 = vadd.f32 %v5820_v47, %v5187_v2  ;;  %v4811_v6 = vrot.slane %v13304_v5, 1  ;;  %v13331_v29 = vpop.f32.mrf.mxu2 }
 0x535   : > { %v7128_v39 = vsel %vm6929_vm5, %v7075_v13, -inf  ;;  %v6980_v31 = vrot.slane %v6979_v62, 4  ;;  %v7268_v16 = vrot.slane %v7267_v0, 4  ;;  %v6552_v33 = vmax.f32 %v13309_v14, 0.0 }
 0x536   : > { %v7129_v52 = vrot.slane %v7128_v39, 4  ;;  %v5539_v9 = vshrl.u32 %v13304_v5, 16  ;;  %v6405_v35 = vadd.f32 %v6304_v22, %v5921_v58  ;;  %v4081_v27 = vsel %vm3749_vm3, %v4071_v34, %v4080_v37 }
 0x537   : > { %v6981_v8 = vmax.f32 %v6979_v62, %v6980_v31  ;;  %v7269_v17 = vmax.f32 %v7267_v0, %v7268_v16  ;;  %v6836_v45 = vmax.f32 %v6828_v26, %v6552_v33  ;;  %v4812_v59 = vsel %vm1601_vm2, %v4809_v19, %v4811_v6  ;;  %v13336_v13 = vpop.f32.mrf.mxu1 }
 0x538   : > { %v7130_v49 = vmax.f32 %v7128_v39, %v7129_v52  ;;  %v7353_v60 = vld [vmem:[#allocation3 + $0xe6] sm:$0x7]  ;;  %v7631_v1 = vld [vmem:[#allocation3 + $0xea] sm:$0x7]  ;;  %v13328_v12 = vpack.c.b16 %v5954_v21, %v5954_v21  ;;  %v13341_v39 = vld [vmem:[%s13718_s2] ss:$0 sm:$0xff] }
 0x539   : > { %v7492_v50 = vld [vmem:[#allocation3 + $0xe8] sm:$0x7]  ;;  %v6982_v15 = vrot.slane %v6981_v8, 2  ;;  %v7270_v7 = vrot.slane %v7269_v17, 2  ;;  %v7406_v51 = vsel %vm6929_vm5, %v7353_v60, -inf  ;;  %v7684_v34 = vsel %vm6929_vm5, %v7631_v1, -inf }
 0x53a   : > { %v7131_v42 = vrot.slane %v7130_v49, 2  ;;  %v7770_v43 = vld [vmem:[#allocation3 + $0xec] sm:$0x7]  ;;  %v7407_v61 = vrot.slane %v7406_v51, 4  ;;  %v7545_v22 = vsel %vm6929_vm5, %v7492_v50, -inf  ;;  %6841 = vst [vmem:[#allocation3 + $0xf0] sm:$0xff] %v6836_v45  ;;  %v6481_v0 = vadd.f32 %v13341_v39, %v6405_v35 }
 0x53b   : > { %v7823_v2 = vsel %vm6929_vm5, %v7770_v43, -inf  ;;  %v6983_v19 = vmax.f32 %v6981_v8, %v6982_v15  ;;  %v7271_v26 = vmax.f32 %v7269_v17, %v7270_v7  ;;  %v7546_v63 = vrot.slane %v7545_v22, 4  ;;  %v13344_v47 = vpop.f32.mrf.mxu3  ;;  %v13346_v58 = vpop.f32.mrf.mxu0 }
 0x53c   : > { %v7132_v20 = vmax.f32 %v7130_v49, %v7131_v42  ;;  %v7408_v25 = vmax.f32 %v7406_v51, %v7407_v61  ;;  %v7685_v21 = vrot.slane %v7684_v34, 4  ;;  %v7824_v62 = vrot.slane %v7823_v2, 4 }
 0x53d   : > { %v6984_v37 = vrot.slane %v6983_v19, 1  ;;  %v7272_v52 = vrot.slane %v7271_v26, 1  ;;  %v7547_v16 = vmax.f32 %v7545_v22, %v7546_v63  ;;  %v6553_v49 = vmax.f32 %v6481_v0, 0.0 }
 0x53e   : > { %v7133_v31 = vrot.slane %v7132_v20, 1  ;;  %v7409_v53 = vrot.slane %v7408_v25, 2  ;;  %v7686_v6 = vmax.f32 %v7684_v34, %v7685_v21  ;;  %v7825_v8 = vmax.f32 %v7823_v2, %v7824_v62  ;;  %v13352_v34 = vpop.f32.mrf.mxu2 }
 0x53f   : > { %v6985_v17 = vmax.f32 %v6983_v19, %v6984_v37  ;;  %v7273_v60 = vmax.f32 %v7271_v26, %v7272_v52  ;;  %v7548_v50 = vrot.slane %v7547_v16, 2  ;;  %6625 = vst [vmem:[#allocation2 + $0x1a8] sm:$0xff] %v6553_v49  ;;  %v13348_v42 = vrot.slane %v5539_v9, 1  ;;  %v13356_v62 = vpop.f32.mrf.mxu1 }
 0x540   : > { %v7134_v45 = vmax.f32 %v7132_v20, %v7133_v31  ;;  %v7410_v1 = vmax.f32 %v7408_v25, %v7409_v53  ;;  %v7687_v35 = vrot.slane %v7686_v6, 2  ;;  %v7826_v15 = vrot.slane %v7825_v8, 2  ;;  %9647 = vmatmul.msk.bf16.gmra.mxu2 %vm753_vm1, %v4812_v59 }
 0x541   : > { %v7014_v7 = vpack.c.bf16 %v6985_v17, %v6985_v17  ;;  %v7302_v43 = vpack.c.bf16 %v7273_v60, %v7273_v60  ;;  %v7549_v61 = vmax.f32 %v7547_v16, %v7548_v50  ;;  %v7909_v22 = vld [vmem:[#allocation3 + $0xee] sm:$0x7]  ;;  %9447 = vmatmul.msk.bf16.gmra.mxu1 %vm753_vm1, %v4081_v27  ;;  %v8187_v49 = vld [vmem:[#allocation3 + $0xf2] sm:$0x7] }
 0x542   : > { %v7163_v51 = vpack.c.bf16 %v7134_v45, %v7134_v45  ;;  %v7411_v2 = vrot.slane %v7410_v1, 1  ;;  %v7688_v19 = vmax.f32 %v7686_v6, %v7687_v35  ;;  %v7827_v20 = vmax.f32 %v7825_v8, %v7826_v15  ;;  %v8048_v8 = vld [vmem:[#allocation3 + $0xf0] sm:$0x7]  ;;  %v8326_v17 = vld [vmem:[#allocation3 + $0xf4] sm:$0x7] }
 0x543   : > { %v7962_v26 = vsel %vm6929_vm5, %v7909_v22, -inf  ;;  %v7036_v63 = vunpack.c.l.b16 %v7014_v7  ;;  %v7324_v25 = vunpack.c.l.b16 %v7302_v43  ;;  %v7550_v21 = vrot.slane %v7549_v61, 1  ;;  %v13358_v27 = vpop.f32.mrf.mxu3  ;;  %v13371_v45 = vpop.f32.mrf.mxu0 }
 0x544   : > { %v7185_v9 = vunpack.c.l.b16 %v7163_v51  ;;  %v7412_v0 = vmax.f32 %v7410_v1, %v7411_v2  ;;  %v7689_v37 = vrot.slane %v7688_v19, 1  ;;  %v7828_v31 = vrot.slane %v7827_v20, 1 }
 0x545   : > { %v7963_v52 = vrot.slane %v7962_v26, 4  ;;  %v7053_v59 = vsel %vm7052_vm12, %v7036_v63, %v13182_v56  ;;  %v7334_v53 = vsel %vm7052_vm12, %v7324_v25, %v13190_v11  ;;  %v7551_v6 = vmax.f32 %v7549_v61, %v7550_v21 }
 0x546   : > { %v7195_v16 = vsel %vm7052_vm12, %v7185_v9, %v13186_v24  ;;  %v7056_v60 = vpack.c.b16 %v7053_v59, %v7053_v59  ;;  %v7337_v1 = vpack.c.b16 %v7334_v53, %v7334_v53  ;;  %v7441_v35 = vpack.c.bf16 %v7412_v0, %v7412_v0  ;;  %v5094_v25 = vpop.f32.mrf.mxu2 }
 0x547   : > { %v7198_v50 = vpack.c.b16 %v7195_v16, %v7195_v16  ;;  %v7580_v56 = vpack.c.bf16 %v7551_v6, %v7551_v6  ;;  %v7690_v15 = vmax.f32 %v7688_v19, %v7689_v37  ;;  %v7829_v7 = vmax.f32 %v7827_v20, %v7828_v31  ;;  %v13386_v59 = vpop.f32.mrf.mxu1 }
 0x548   : > { %v7964_v51 = vmax.f32 %v7962_v26, %v7963_v52  ;;  %7061 = vst.msk [vmem:[%s13363_s29] sm:$0xf] %vm7060_vm13, %v7056_v60  ;;  %v7463_v24 = vunpack.c.l.b16 %v7441_v35  ;;  %v8101_v11 = vsel %vm6929_vm5, %v8048_v8, -inf  ;;  %v8240_v43 = vsel %vm6929_vm5, %v8187_v49, -inf }
 0x549   : > { %v8379_v61 = vsel %vm6929_vm5, %v8326_v17, -inf  ;;  %9768 = vst.msk [vmem:[%s13363_s29 + $0x8] sm:$0xf] %vm7060_vm13, %v7198_v50  ;;  %v7602_v22 = vunpack.c.l.b16 %v7580_v56  ;;  %v7719_v2 = vpack.c.bf16 %v7690_v15, %v7690_v15  ;;  %v7858_v63 = vpack.c.bf16 %v7829_v7, %v7829_v7 }
 0x54a   : > { %v7965_v9 = vrot.slane %v7964_v51, 2  ;;  %9771 = vst.msk [vmem:[%s13363_s29 + $0x10] sm:$0xf] %vm7060_vm13, %v7337_v1  ;;  %v7473_v19 = vsel %vm7052_vm12, %v7463_v24, %v13225_v32  ;;  %v8102_v20 = vrot.slane %v8101_v11, 4  ;;  %v8241_v26 = vrot.slane %v8240_v43, 4 }
 0x54b   : > { %v8380_v21 = vrot.slane %v8379_v61, 4  ;;  %v7476_v0 = vpack.c.b16 %v7473_v19, %v7473_v19  ;;  %v7612_v37 = vsel %vm7052_vm12, %v7602_v22, %v13230_v4  ;;  %v7741_v31 = vunpack.c.l.b16 %v7719_v2  ;;  %v5828_v49 = vpop.f32.mrf.mxu3  ;;  %v13394_v4 = vpop.f32.mrf.mxu0 }
 0x54c   : > { %v7880_v52 = vunpack.c.l.b16 %v7858_v63  ;;  %v7615_v16 = vpack.c.b16 %v7612_v37, %v7612_v37  ;;  %v7966_v53 = vmax.f32 %v7964_v51, %v7965_v9  ;;  %v8103_v6 = vmax.f32 %v8101_v11, %v8102_v20 }
 0x54d   : > { %v8242_v8 = vmax.f32 %v8240_v43, %v8241_v26  ;;  %9774 = vst.msk [vmem:[%s13363_s29 + $0x18] sm:$0xf] %vm7060_vm13, %v7476_v0  ;;  %v7751_v32 = vsel %vm7052_vm12, %v7741_v31, %v13237_v23  ;;  %v8381_v60 = vmax.f32 %v8379_v61, %v8380_v21  ;;  %v5542_v51 = vshll.u32 %v13304_v5, 16  ;;  %v13910_v43 = vld [vmem:[#allocation7_spill] sm:$0xff]  ;;  %v13911_v21 = vld [vmem:[#allocation9_spill] sm:$0xff] }
 0x54e   : > { %v7890_v17 = vsel %vm7052_vm12, %v7880_v52, %v13241_v46  ;;  %9777 = vst.msk [vmem:[%s13363_s29 + $0x20] sm:$0xf] %vm7060_vm13, %v7615_v16  ;;  %v7754_v50 = vpack.c.b16 %v7751_v32, %v7751_v32  ;;  %v7967_v35 = vrot.slane %v7966_v53, 1  ;;  %v8104_v56 = vrot.slane %v8103_v6, 2 }
 0x54f   : > { %v7893_v1 = vpack.c.b16 %v7890_v17, %v7890_v17  ;;  %v8243_v15 = vrot.slane %v8242_v8, 2  ;;  %v8382_v7 = vrot.slane %v8381_v60, 2  ;;  %v6029_v24 = vrot.slane %v13328_v12, 2  ;;  %v5096_v12 = vpop.f32.mrf.mxu2  ;;  %v4368_v37 = vpop.f32.mrf.mxu1 }
 0x550   : > { %9780 = vst.msk [vmem:[%s13363_s29 + $0x28] sm:$0xf] %vm7060_vm13, %v7754_v50  ;;  %v7968_v23 = vmax.f32 %v7966_v53, %v7967_v35  ;;  %v8105_v46 = vmax.f32 %v8103_v6, %v8104_v56  ;;  %v5188_v11 = vadd.f32 %v13331_v29, %v13318_v54  ;;  %v4458_v61 = vadd.f32 %v13336_v13, %v13910_v43 }
 0x551   : > { %9783 = vst.msk [vmem:[%s13363_s29 + $0x30] sm:$0xf] %vm7060_vm13, %v7893_v1  ;;  %v8244_v22 = vmax.f32 %v8242_v8, %v8243_v15  ;;  %v8383_v2 = vmax.f32 %v8381_v60, %v8382_v7  ;;  %v5544_v63 = vrot.slane %v5542_v51, 2  ;;  %v6030_v5 = vsel %vm5957_vm4, %v6027_v41, %v6029_v24 }
 0x552   : > { %v7997_v9 = vpack.c.bf16 %v7968_v23, %v7968_v23  ;;  %v8106_v19 = vrot.slane %v8105_v46, 1  ;;  %9767 = vmatmul.msk.bf16.gmra.mxu0 %vm753_vm1, %v6030_v5  ;;  %v5922_v20 = vadd.f32 %v13344_v47, %v5188_v11  ;;  %v5189_v54 = vadd.f32 %v13352_v34, %v4458_v61 }
 0x553   : > { %v8245_v29 = vrot.slane %v8244_v22, 1  ;;  %v8384_v13 = vrot.slane %v8383_v2, 1  ;;  %v5545_v26 = vor.u32 %v5544_v63, %v13348_v42  ;;  %v4459_v0 = vadd.f32 %v13356_v62, %v13911_v21  ;;  %v5830_v16 = vpop.f32.mrf.mxu3  ;;  %v6317_v8 = vpop.f32.mrf.mxu0 }
 0x554   : > { %v8019_v44 = vunpack.c.l.b16 %v7997_v9  ;;  %v8107_v31 = vmax.f32 %v8105_v46, %v8106_v19  ;;  %v6406_v41 = vadd.f32 %v13314_v48, %v5922_v20  ;;  %v5923_v52 = vadd.f32 %v13358_v27, %v5189_v54  ;;  %v13913_v46 = vld [vmem:[#allocation13_spill] sm:$0xff]  ;;  %v13914_v54 = vld [vmem:[#allocation15_spill] sm:$0xff] }
 0x555   : > { %v8246_v53 = vmax.f32 %v8244_v22, %v8245_v29  ;;  %v8385_v6 = vmax.f32 %v8383_v2, %v8384_v13  ;;  %v5546_v47 = vsel %vm3749_vm3, %v13288_v30, %v5545_v26  ;;  %v5190_v34 = vadd.f32 %v5094_v25, %v4459_v0  ;;  %v13912_v25 = vld [vmem:[#allocation11_spill] sm:$0xff] }
 0x556   : > { %v8029_v42 = vsel %vm7052_vm12, %v8019_v44, %v13251_v28  ;;  %v8136_v62 = vpack.c.bf16 %v8107_v31, %v8107_v31  ;;  %9707 = vmatmul.msk.bf16.gmra.mxu3 %vm753_vm1, %v5546_v47  ;;  %v6482_v32 = vadd.f32 %v13341_v39, %v6406_v41  ;;  %v6407_v48 = vadd.f32 %v13346_v58, %v5923_v52 }
 0x557   : > { %v8032_v27 = vpack.c.b16 %v8029_v42, %v8029_v42  ;;  %v8275_v17 = vpack.c.bf16 %v8246_v53, %v8246_v53  ;;  %v8414_v60 = vpack.c.bf16 %v8385_v6, %v8385_v6  ;;  %v5924_v50 = vadd.f32 %v5828_v49, %v5190_v34  ;;  %v5099_v51 = vpop.f32.mrf.mxu2  ;;  %v4370_v43 = vpop.f32.mrf.mxu1  ;;  %v13915_v53 = vld [vmem:[#allocation17_spill] sm:$0xff] }
 0x558   : > { %v8158_v1 = vunpack.c.l.b16 %v8136_v62  ;;  %v6554_v35 = vmax.f32 %v6482_v32, 0.0  ;;  %v6483_v30 = vadd.f32 %v13341_v39, %v6407_v48  ;;  %v4460_v56 = vadd.f32 %v13386_v59, %v13912_v25 }
 0x559   : > { %v8445_v28 = vsel %vm7050_vm11, %v13295_v57, %v13171_v18  ;;  %9786 = vst.msk [vmem:[%s13363_s29 + $0x38] sm:$0xf] %vm7060_vm13, %v8032_v27  ;;  %v8297_v15 = vunpack.c.l.b16 %v8275_v17  ;;  %v8436_v7 = vunpack.c.l.b16 %v8414_v60  ;;  %v6408_v58 = vadd.f32 %v13371_v45, %v5924_v50 }
 0x55a   : > { %v8168_v49 = vsel %vm7052_vm12, %v8158_v1, %v13265_v36  ;;  %6626 = vst [vmem:[#allocation2 + $0x1b0] sm:$0xff] %v6554_v35  ;;  %v6555_v24 = vmax.f32 %v6483_v30, 0.0  ;;  %v5191_v23 = vadd.f32 %v5096_v12, %v4460_v56  ;;  %v4461_v59 = vadd.f32 %v4368_v37, %v13913_v46  ;;  %v13916_v56 = vld [vmem:[#allocation19_spill] sm:$0xff] }
 0x55b   : > { %v8171_v11 = vpack.c.b16 %v8168_v49, %v8168_v49  ;;  %v8307_v18 = vsel %vm7052_vm12, %v8297_v15, %v13293_v55  ;;  %v8446_v57 = vsel %vm7052_vm12, %v8436_v7, %v8445_v28  ;;  %v6484_v45 = vadd.f32 %v13341_v39, %v6408_v58  ;;  %v5833_v63 = vpop.f32.mrf.mxu3  ;;  %v6319_v12 = vpop.f32.mrf.mxu0 }
 0x55c   : > { %v8310_v61 = vpack.c.b16 %v8307_v18, %v8307_v18  ;;  %v8449_v22 = vpack.c.b16 %v8446_v57, %v8446_v57  ;;  %6627 = vst [vmem:[#allocation2 + $0x1b8] sm:$0xff] %v6555_v24  ;;  %v5925_v36 = vadd.f32 %v5830_v16, %v5191_v23  ;;  %v5192_v2 = vadd.f32 %v5099_v51, %v4461_v59 }
 0x55d   : > { %9789 = vst.msk [vmem:[%s13363_s29 + $0x40] sm:$0xf] %vm7060_vm13, %v8171_v11  ;;  %v6556_v5 = vmax.f32 %v6484_v45, 0.0  ;;  %v4462_v29 = vadd.f32 %v4370_v43, %v13914_v54 }
 0x55e   : > { %9792 = vst.msk [vmem:[%s13363_s29 + $0x48] sm:$0xf] %vm7060_vm13, %v8310_v61  ;;  %v6409_v55 = vadd.f32 %v13394_v4, %v5925_v36  ;;  %v5926_v9 = vadd.f32 %v5833_v63, %v5192_v2  ;;  %v13917_v2 = vld [vmem:[#allocation21_spill] sm:$0xff] }
 0x55f   : > { %9795 = vst.msk [vmem:[%s13363_s29 + $0x50] sm:$0xf] %vm7060_vm13, %v8449_v22  ;;  %v5101_v13 = vpop.f32.mrf.mxu2  ;;  %v4373_v37 = vpop.f32.mrf.mxu1 }
 0x560   : > { %6628 = vst [vmem:[#allocation2 + $0x1c0] sm:$0xff] %v6556_v5  ;;  %v6485_v19 = vadd.f32 %v13341_v39, %v6409_v55  ;;  %v6410_v20 = vadd.f32 %v6317_v8, %v5926_v9  ;;  %v5193_v0 = vadd.f32 %v5101_v13, %v4462_v29  ;;  %v4463_v6 = vadd.f32 %v4373_v37, %v13915_v53  ;;  %v13918_v55 = vld [vmem:[#allocation23_spill] sm:$0xff] }
 0x561   : > { %v6847_v52 = vld [vmem:[#allocation2 + $0x1a9] sm:$0xff] }
 0x562   : > { %v6557_v26 = vmax.f32 %v6485_v19, 0.0  ;;  %v6486_v21 = vadd.f32 %v13341_v39, %v6410_v20  ;;  %v6851_v42 = vmax.f32 %v6550_v38, %v6847_v52  ;;  %v13919_v19 = vld [vmem:[#allocation25_spill] sm:$0xff] }
 0x563   : > { %v5835_v31 = vpop.f32.mrf.mxu3  ;;  %v6322_v4 = vpop.f32.mrf.mxu0  ;;  %v6848_v47 = vld [vmem:[#allocation2 + $0x1b1] sm:$0xff] }
 0x564   : > { %6629 = vst [vmem:[#allocation2 + $0x1c8] sm:$0xff] %v6557_v26  ;;  %v6558_v44 = vmax.f32 %v6486_v21, 0.0  ;;  %v5927_v41 = vadd.f32 %v5835_v31, %v5193_v0  ;;  %v6852_v17 = vmax.f32 %v6551_v40, %v6848_v47 }
 0x566   : > { %6630 = vst [vmem:[#allocation2 + $0x1d0] sm:$0xff] %v6558_v44  ;;  %v6411_v16 = vadd.f32 %v6319_v12, %v5927_v41 }
 0x567   : > { %v5104_v8 = vpop.f32.mrf.mxu2  ;;  %v4375_v27 = vpop.f32.mrf.mxu1  ;;  %v6849_v25 = vld [vmem:[#allocation2 + $0x1b9] sm:$0xff] }
 0x568   : > { %v6487_v34 = vadd.f32 %v13341_v39, %v6411_v16  ;;  %v5194_v62 = vadd.f32 %v5104_v8, %v4463_v6  ;;  %v4464_v28 = vadd.f32 %v4375_v27, %v13916_v56  ;;  %v6853_v7 = vmax.f32 %v6552_v33, %v6849_v25 }
 0x56a   : > { %v6559_v48 = vmax.f32 %v6487_v34, 0.0 }
 0x56b   : > { %v13456_v32 = vld [vmem:[#allocation2 + $0x1c2] sm:$0xff]  ;;  %v5838_v50 = vpop.f32.mrf.mxu3  ;;  %v6324_v38 = vpop.f32.mrf.mxu0 }
 0x56c   : > { %v6859_v60 = vmax.f32 %v6851_v42, %v13456_v32  ;;  %6631 = vst [vmem:[#allocation2 + $0x1d8] sm:$0xff] %v6559_v48  ;;  %v5928_v35 = vadd.f32 %v5838_v50, %v5194_v62 }
 0x56d   : > { %v13461_v1 = vld [vmem:[#allocation2 + $0x1ca] sm:$0xff] }
 0x56e   : > { %6864 = vst [vmem:[#allocation3 + $0x100] sm:$0xff] %v6859_v60  ;;  %v6860_v30 = vmax.f32 %v6852_v17, %v13461_v1  ;;  %v6412_v3 = vadd.f32 %v6322_v4, %v5928_v35  ;;  %v13920_v4 = vld [vmem:[#allocation27_spill] sm:$0xff] }
 0x56f   : > { %v5106_v10 = vpop.f32.mrf.mxu2 }
 0x570   : > { %6865 = vst [vmem:[#allocation3 + $0x108] sm:$0xff] %v6860_v30  ;;  %v6488_v15 = vadd.f32 %v13341_v39, %v6412_v3  ;;  %v5195_v40 = vadd.f32 %v5106_v10, %v4464_v28 }
 0x572   : > { %v6560_v58 = vmax.f32 %v6488_v15, 0.0  ;;  %v4378_v51 = vpop.f32.mrf.mxu1 }
 0x573   : > { %v13468_v49 = vld [vmem:[#allocation2 + $0x1d2] sm:$0xff]  ;;  %v5840_v24 = vpop.f32.mrf.mxu3  ;;  %v4465_v63 = vadd.f32 %v4378_v51, %v13917_v2 }
 0x574   : > { %v6861_v23 = vmax.f32 %v6853_v7, %v13468_v49  ;;  %v5929_v46 = vadd.f32 %v5840_v24, %v5195_v40  ;;  %6632 = vst [vmem:[#allocation2 + $0x1e0] sm:$0xff] %v6560_v58 }
 0x575   : > { %v6926_v7 = vld [vmem:[#allocation3 + $0x100] sm:$0x7]  ;;  %v7215_v24 = vld [vmem:[#allocation3 + $0x104] sm:$0x7] }
 0x576   : > { %6866 = vst [vmem:[#allocation3 + $0x110] sm:$0xff] %v6861_v23  ;;  %v6413_v59 = vadd.f32 %v6324_v38, %v5929_v46  ;;  %v6327_v11 = vpop.f32.mrf.mxu0  ;;  %v7076_v51 = vld [vmem:[#allocation3 + $0x102] sm:$0x7]  ;;  %v13921_v46 = vld [vmem:[#allocation29_spill] sm:$0xff] }
 0x577   : > { %v5109_v18 = vpop.f32.mrf.mxu2 }
 0x578   : > { %v6489_v57 = vadd.f32 %v13341_v39, %v6413_v59  ;;  %v5196_v12 = vadd.f32 %v5109_v18, %v4465_v63  ;;  %v7274_v18 = vsel %vm6929_vm5, %v7215_v24, -inf }
 0x579   : > { %v7275_v63 = vrot.slane %v7274_v18, 4 }
 0x57a   : > { %v4380_v45 = vpop.f32.mrf.mxu1  ;;  %v6561_v43 = vmax.f32 %v6489_v57, 0.0 }
 0x57b   : > { %v4466_v9 = vadd.f32 %v4380_v45, %v13918_v55  ;;  %v6872_v35 = vld [vmem:[#allocation2 + $0x1db] sm:$0xff] }
 0x57c   : > { %6633 = vst [vmem:[#allocation2 + $0x1e8] sm:$0xff] %v6561_v43  ;;  %v6876_v25 = vmax.f32 %v13456_v32, %v6872_v35  ;;  %v7354_v43 = vld [vmem:[#allocation3 + $0x106] sm:$0x7] }
 0x57e   : > { %v5843_v61 = vpop.f32.mrf.mxu3  ;;  %v6329_v33 = vpop.f32.mrf.mxu0 }
 0x57f   : > { %v5111_v14 = vpop.f32.mrf.mxu2  ;;  %v5930_v54 = vadd.f32 %v5843_v61, %v5196_v12  ;;  %v7413_v12 = vsel %vm6929_vm5, %v7354_v43, -inf }
 0x580   : > { %v5197_v13 = vadd.f32 %v5111_v14, %v4466_v9  ;;  %v7493_v9 = vld [vmem:[#allocation3 + $0x108] sm:$0x7] }
 0x581   : > { %v6414_v37 = vadd.f32 %v6327_v11, %v5930_v54  ;;  %v7135_v11 = vsel %vm6929_vm5, %v7076_v51, -inf  ;;  %v7276_v54 = vmax.f32 %v7274_v18, %v7275_v63  ;;  %v8327_v63 = vld [vmem:[#allocation3 + $0x114] sm:$0x7] }
 0x582   : > { %v4383_v22 = vpop.f32.mrf.mxu1  ;;  %v7136_v2 = vrot.slane %v7135_v11, 4 }
 0x583   : > { %v4467_v20 = vadd.f32 %v4383_v22, %v13919_v19  ;;  %v6490_v41 = vadd.f32 %v13341_v39, %v6414_v37  ;;  %v6873_v3 = vld [vmem:[#allocation2 + $0x1e3] sm:$0xff] }
 0x584   : > { %v6877_v56 = vmax.f32 %v13461_v1, %v6873_v3  ;;  %v6986_v1 = vsel %vm6929_vm5, %v6926_v7, -inf  ;;  %v7910_v7 = vld [vmem:[#allocation3 + $0x10e] sm:$0x7] }
 0x585   : > { %v6562_v47 = vmax.f32 %v6490_v41, 0.0 }
 0x586   : > { %v5845_v36 = vpop.f32.mrf.mxu3  ;;  %v6332_v29 = vpop.f32.mrf.mxu0 }
 0x587   : > { %v5114_v5 = vpop.f32.mrf.mxu2  ;;  %v5931_v44 = vadd.f32 %v5845_v36, %v5197_v13  ;;  %6634 = vst [vmem:[#allocation2 + $0x1f0] sm:$0xff] %v6562_v47  ;;  %v7632_v13 = vld [vmem:[#allocation3 + $0x10a] sm:$0x7] }
 0x588   : > { %v5198_v26 = vadd.f32 %v5114_v5, %v4467_v20  ;;  %v7691_v41 = vsel %vm6929_vm5, %v7632_v13, -inf }
 0x589   : > { %v6415_v53 = vadd.f32 %v6329_v33, %v5931_v44  ;;  %v6987_v33 = vrot.slane %v6986_v1, 4 }
 0x58a   : > { %v4385_v0 = vpop.f32.mrf.mxu1 }
 0x58b   : > { %v4468_v52 = vadd.f32 %v4385_v0, %v13920_v4  ;;  %v6491_v8 = vadd.f32 %v13341_v39, %v6415_v53  ;;  %v6988_v19 = vmax.f32 %v6986_v1, %v6987_v33  ;;  %v7552_v0 = vsel %vm6929_vm5, %v7493_v9, -inf  ;;  %v8049_v1 = vld [vmem:[#allocation3 + $0x110] sm:$0x7] }
 0x58d   : > { %v6563_v62 = vmax.f32 %v6491_v8, 0.0 }
 0x58e   : > { %v5848_v21 = vpop.f32.mrf.mxu3  ;;  %v6334_v60 = vpop.f32.mrf.mxu0  ;;  %v6874_v23 = vld [vmem:[#allocation2 + $0x1eb] sm:$0xff] }
 0x58f   : > { %v5932_v31 = vadd.f32 %v5848_v21, %v5198_v26  ;;  %v5116_v16 = vpop.f32.mrf.mxu2  ;;  %6635 = vst [vmem:[#allocation2 + $0x1f8] sm:$0xff] %v6563_v62  ;;  %v6878_v57 = vmax.f32 %v13468_v49, %v6874_v23  ;;  %v7137_v49 = vmax.f32 %v7135_v11, %v7136_v2  ;;  %v7771_v26 = vld [vmem:[#allocation3 + $0x10c] sm:$0x7]  ;;  %v8108_v2 = vsel %vm6929_vm5, %v8049_v1, -inf }
 0x590   : > { %v5199_v34 = vadd.f32 %v5116_v16, %v4468_v52  ;;  %v7830_v4 = vsel %vm6929_vm5, %v7771_v26, -inf  ;;  %v7277_v16 = vrot.slane %v7276_v54, 2 }
 0x591   : > { %v6416_v6 = vadd.f32 %v6332_v29, %v5932_v31  ;;  %v7414_v29 = vrot.slane %v7413_v12, 4  ;;  %v6989_v31 = vrot.slane %v6988_v19, 2  ;;  %v7138_v52 = vrot.slane %v7137_v49, 2 }
 0x592   : > { %v4388_v40 = vpop.f32.mrf.mxu1 }
 0x593   : > { %v6492_v42 = vadd.f32 %v13341_v39, %v6416_v6  ;;  %v4469_v32 = vadd.f32 %v4388_v40, %v13921_v46  ;;  %v7415_v53 = vmax.f32 %v7413_v12, %v7414_v29  ;;  %v7553_v6 = vrot.slane %v7552_v0, 4 }
 0x594   : > { %v6990_v8 = vmax.f32 %v6988_v19, %v6989_v31  ;;  %v13923_v31 = vld [vmem:[#allocation33_spill] sm:$0xff] }
 0x595   : > { %v6564_v48 = vmax.f32 %v6492_v42, 0.0  ;;  %v7831_v42 = vrot.slane %v7830_v4, 4 }
 0x596   : > { %v5850_v27 = vpop.f32.mrf.mxu3  ;;  %v13482_v28 = vld [vmem:[#allocation2 + $0x1f4] sm:$0xff] }
 0x597   : > { %v5933_v17 = vadd.f32 %v5850_v27, %v5199_v34  ;;  %6636 = vst [vmem:[#allocation2 + $0x200] sm:$0xff] %v6564_v48  ;;  %v6884_v15 = vmax.f32 %v6876_v25, %v13482_v28  ;;  %v7692_v34 = vrot.slane %v7691_v41, 4  ;;  %v7139_v48 = vmax.f32 %v7137_v49, %v7138_v52 }
 0x598   : > { %v7278_v27 = vmax.f32 %v7276_v54, %v7277_v16  ;;  %v7832_v3 = vmax.f32 %v7830_v4, %v7831_v42 }
 0x599   : > { %v6417_v50 = vadd.f32 %v6334_v60, %v5933_v17  ;;  %6889 = vst [vmem:[#allocation3 + $0x120] sm:$0xff] %v6884_v15  ;;  %v7416_v17 = vrot.slane %v7415_v53, 2  ;;  %v7554_v60 = vmax.f32 %v7552_v0, %v7553_v6  ;;  %v7693_v35 = vmax.f32 %v7691_v41, %v7692_v34 }
 0x59a   : > { %v4390_v20 = vpop.f32.mrf.mxu1  ;;  %v7140_v25 = vrot.slane %v7139_v48, 1  ;;  %v7833_v46 = vrot.slane %v7832_v3, 2  ;;  %v8386_v0 = vsel %vm6929_vm5, %v8327_v63, -inf }
 0x59b   : > { %v6493_v30 = vadd.f32 %v13341_v39, %v6417_v50  ;;  %v7417_v15 = vmax.f32 %v7415_v53, %v7416_v17  ;;  %v7555_v40 = vrot.slane %v7554_v60, 2  ;;  %v7694_v24 = vrot.slane %v7693_v35, 2 }
 0x59c   : > { %v7141_v18 = vmax.f32 %v7139_v48, %v7140_v25  ;;  %v13508_v12 = vmax.f32 %v7832_v3, %v7833_v46 }
 0x59d   : > { %v6565_v38 = vmax.f32 %v6493_v30, 0.0  ;;  %v6991_v30 = vrot.slane %v6990_v8, 1  ;;  %v7556_v43 = vmax.f32 %v7554_v60, %v7555_v40 }
 0x59e   : > { %v13485_v10 = vld [vmem:[#allocation2 + $0x1fc] sm:$0xff]  ;;  %v5853_v14 = vpop.f32.mrf.mxu3  ;;  %v7835_v17 = vrot.slane %v13508_v12, 1 }
 0x59f   : > { %6637 = vst [vmem:[#allocation2 + $0x208] sm:$0xff] %v6565_v38  ;;  %v6885_v58 = vmax.f32 %v6877_v56, %v13485_v10  ;;  %v7279_v56 = vrot.slane %v7278_v27, 1  ;;  %v6992_v23 = vmax.f32 %v6990_v8, %v6991_v30  ;;  %v7557_v29 = vrot.slane %v7556_v43, 1 }
 0x5a0   : > { %v6337_v5 = vpop.f32.mrf.mxu0  ;;  %v6927_v13 = vld [vmem:[#allocation3 + $0x120] sm:$0x7] }
 0x5a1   : > { %6890 = vst [vmem:[#allocation3 + $0x128] sm:$0xff] %v6885_v58  ;;  %v13922_v58 = vld [vmem:[#allocation31_spill] sm:$0xff]  ;;  %v7077_v26 = vld [vmem:[#allocation3 + $0x122] sm:$0x7]  ;;  %v6993_v8 = vsel %vm6929_vm5, %v6927_v13, -inf }
 0x5a2   : > { %v4470_v51 = vadd.f32 %v4390_v20, %v13922_v58  ;;  %v7164_v20 = vpack.c.bf16 %v7141_v18, %v7141_v18  ;;  %v7142_v42 = vsel %vm6929_vm5, %v7077_v26, -inf }
 0x5a3   : > { %v5119_v59 = vpop.f32.mrf.mxu2  ;;  %v7143_v58 = vrot.slane %v7142_v42, 4 }
 0x5a4   : > { %v5200_v45 = vadd.f32 %v5119_v59, %v4469_v32  ;;  %v7969_v32 = vsel %vm6929_vm5, %v7910_v7, -inf  ;;  %v6994_v7 = vrot.slane %v6993_v8, 4 }
 0x5a6   : > { %v13493_v61 = vld [vmem:[#allocation2 + $0x204] sm:$0xff]  ;;  %v5934_v36 = vadd.f32 %v5853_v14, %v5200_v45  ;;  %v5855_v47 = vpop.f32.mrf.mxu3  ;;  %v7418_v45 = vrot.slane %v7417_v15, 1  ;;  %v8188_v14 = vld [vmem:[#allocation3 + $0x112] sm:$0x7] }
 0x5a7   : > { %v6886_v22 = vmax.f32 %v6878_v57, %v13493_v61  ;;  %v13503_v57 = vmax.f32 %v7278_v27, %v7279_v56 }
 0x5a8   : > { %v6418_v55 = vadd.f32 %v6337_v5, %v5934_v36  ;;  %v6339_v62 = vpop.f32.mrf.mxu0  ;;  %v7970_v36 = vrot.slane %v7969_v32, 4  ;;  %v7015_v5 = vpack.c.bf16 %v6992_v23, %v6992_v23  ;;  %v13513_v54 = vmax.f32 %v7417_v15, %v7418_v45  ;;  %v7355_v6 = vld [vmem:[#allocation3 + $0x126] sm:$0x7]  ;;  %v7633_v26 = vld [vmem:[#allocation3 + $0x12a] sm:$0x7] }
 0x5a9   : > { %6891 = vst [vmem:[#allocation3 + $0x130] sm:$0xff] %v6886_v22  ;;  %v13505_v22 = vmax.f32 %v7693_v35, %v7694_v24  ;;  %v7303_v49 = vpack.c.bf16 %v13503_v57, %v13503_v57  ;;  %v7420_v30 = vsel %vm6929_vm5, %v7355_v6, -inf  ;;  %v7494_v3 = vld [vmem:[#allocation3 + $0x128] sm:$0x7] }
 0x5aa   : > { %v6494_v21 = vadd.f32 %v13341_v39, %v6418_v55  ;;  %v8247_v55 = vsel %vm6929_vm5, %v8188_v14, -inf  ;;  %v7971_v16 = vmax.f32 %v7969_v32, %v7970_v36  ;;  %v13525_v24 = vunpack.c.l.b16 %v7015_v5 }
 0x5ab   : > { %v5121_v37 = vpop.f32.mrf.mxu2  ;;  %v7696_v52 = vrot.slane %v13505_v22, 1  ;;  %v8248_v53 = vrot.slane %v8247_v55, 4  ;;  %v7559_v18 = vsel %vm6929_vm5, %v7494_v3, -inf  ;;  %v13528_v14 = vunpack.c.l.b16 %v7164_v20 }
 0x5ac   : > { %v6566_v44 = vmax.f32 %v6494_v21, 0.0  ;;  %v5201_v59 = vadd.f32 %v5121_v37, %v4470_v51  ;;  %v8109_v21 = vrot.slane %v8108_v2, 4  ;;  %v7216_v37 = vld [vmem:[#allocation3 + $0x124] sm:$0x7]  ;;  %v7144_v5 = vmax.f32 %v7142_v42, %v7143_v58 }
 0x5ad   : > { %v7281_v60 = vsel %vm6929_vm5, %v7216_v37, -inf  ;;  %v8249_v40 = vmax.f32 %v8247_v55, %v8248_v53  ;;  %v6995_v55 = vmax.f32 %v6993_v8, %v6994_v7  ;;  %v7442_v37 = vpack.c.bf16 %v13513_v54, %v13513_v54 }
 0x5ae   : > { %6638 = vst [vmem:[#allocation2 + $0x210] sm:$0xff] %v6566_v44  ;;  %v4393_v50 = vpop.f32.mrf.mxu1  ;;  %v5935_v9 = vadd.f32 %v5855_v47, %v5201_v59  ;;  %v13924_v47 = vld [vmem:[#allocation35_spill] sm:$0xff]  ;;  %v8110_v35 = vmax.f32 %v8108_v2, %v8109_v21  ;;  %v7282_v23 = vrot.slane %v7281_v60, 4  ;;  %v7421_v59 = vrot.slane %v7420_v30, 4  ;;  %v7772_v21 = vld [vmem:[#allocation3 + $0x12c] sm:$0x7] }
 0x5af   : > { %v4471_v41 = vadd.f32 %v4393_v50, %v13923_v31  ;;  %v8250_v63 = vrot.slane %v8249_v40, 2  ;;  %v7697_v31 = vmax.f32 %v13505_v22, %v7696_v52  ;;  %v7698_v53 = vsel %vm6929_vm5, %v7633_v26, -inf }
 0x5b0   : > { %v6342_v33 = vpop.f32.mrf.mxu0  ;;  %v6419_v44 = vadd.f32 %v6339_v62, %v5935_v9  ;;  %v8387_v62 = vrot.slane %v8386_v0, 4  ;;  %v8111_v36 = vrot.slane %v8110_v35, 2  ;;  %v7283_v13 = vmax.f32 %v7281_v60, %v7282_v23  ;;  %v13925_v23 = vld [vmem:[#allocation37_spill] sm:$0xff] }
 0x5b1   : > { %v7837_v6 = vsel %vm6929_vm5, %v7772_v21, -inf  ;;  %v8251_v54 = vmax.f32 %v8249_v40, %v8250_v63  ;;  %v13541_v22 = vunpack.c.l.b16 %v7303_v49 }
 0x5b2   : > { %v6495_v48 = vadd.f32 %v13341_v39, %v6419_v44  ;;  %v8388_v1 = vmax.f32 %v8386_v0, %v8387_v62  ;;  %v7422_v44 = vmax.f32 %v7420_v30, %v7421_v59  ;;  %v7284_v8 = vrot.slane %v7283_v13, 2 }
 0x5b3   : > { %v5124_v38 = vpop.f32.mrf.mxu2  ;;  %v7699_v62 = vrot.slane %v7698_v53, 4  ;;  %v7838_v60 = vrot.slane %v7837_v6, 4  ;;  %v8252_v57 = vrot.slane %v8251_v54, 1 }
 0x5b4   : > { %v5202_v27 = vadd.f32 %v5124_v38, %v4471_v41  ;;  %v6567_v25 = vmax.f32 %v6495_v48, 0.0  ;;  %v7972_v38 = vrot.slane %v7971_v16, 2  ;;  %v8389_v20 = vrot.slane %v8388_v1, 2 }
 0x5b5   : > { %v7836_v41 = vmax.f32 %v13508_v12, %v7835_v17  ;;  %v13543_v12 = vunpack.c.l.b16 %v7442_v37  ;;  %v7423_v48 = vrot.slane %v7422_v44, 2  ;;  %v7285_v49 = vmax.f32 %v7283_v13, %v7284_v8  ;;  %v8328_v37 = vld [vmem:[#allocation3 + $0x134] sm:$0x7] }
 0x5b6   : > { %v5858_v11 = vpop.f32.mrf.mxu3  ;;  %v4395_v19 = vpop.f32.mrf.mxu1  ;;  %6639 = vst [vmem:[#allocation2 + $0x218] sm:$0xff] %v6567_v25  ;;  %v8390_v52 = vmax.f32 %v8388_v1, %v8389_v20  ;;  %v7700_v1 = vmax.f32 %v7698_v53, %v7699_v62  ;;  %v7839_v59 = vmax.f32 %v7837_v6, %v7838_v60  ;;  %v8393_v8 = vsel %vm6929_vm5, %v8328_v37, -inf }
 0x5b7   : > { %v4472_v34 = vadd.f32 %v4395_v19, %v13924_v47  ;;  %v5936_v56 = vadd.f32 %v5858_v11, %v5202_v27  ;;  %v7558_v11 = vmax.f32 %v7556_v43, %v7557_v29  ;;  %v7973_v19 = vmax.f32 %v7971_v16, %v7972_v38 }
 0x5b8   : > { %v6344_v32 = vpop.f32.mrf.mxu0  ;;  %v7145_v16 = vrot.slane %v7144_v5, 2  ;;  %v7720_v27 = vpack.c.bf16 %v7697_v31, %v7697_v31  ;;  %v7859_v3 = vpack.c.bf16 %v7836_v41, %v7836_v41  ;;  %v8391_v58 = vrot.slane %v8390_v52, 1 }
 0x5b9   : > { %v6420_v46 = vadd.f32 %v6342_v33, %v5936_v56  ;;  %v7560_v33 = vrot.slane %v7559_v18, 4  ;;  %v7581_v29 = vpack.c.bf16 %v7558_v11, %v7558_v11 }
 0x5ba   : > { %v7146_v56 = vmax.f32 %v7144_v5, %v7145_v16  ;;  %v13556_v5 = vunpack.c.l.b16 %v7859_v3  ;;  %v13562_v26 = vmax.f32 %v8390_v52, %v8391_v58 }
 0x5bb   : > { %v5126_v4 = vpop.f32.mrf.mxu2  ;;  %v6496_v2 = vadd.f32 %v13341_v39, %v6420_v46  ;;  %v7561_v42 = vmax.f32 %v7559_v18, %v7560_v33  ;;  %v13545_v30 = vunpack.c.l.b16 %v7581_v29  ;;  %v13560_v33 = vmax.f32 %v8251_v54, %v8252_v57 }
 0x5bc   : > { %v5203_v50 = vadd.f32 %v5126_v4, %v4472_v34  ;;  %v8112_v4 = vmax.f32 %v8110_v35, %v8111_v36  ;;  %v7974_v34 = vrot.slane %v7973_v19, 1  ;;  %v7147_v36 = vrot.slane %v7146_v56, 1 }
 0x5bd   : > { %v6568_v0 = vmax.f32 %v6496_v2, 0.0  ;;  %v7562_v7 = vrot.slane %v7561_v42, 2  ;;  %v7840_v29 = vrot.slane %v7839_v59, 2  ;;  %v8276_v52 = vpack.c.bf16 %v13560_v33, %v13560_v33 }
 0x5be   : > { %v5860_v15 = vpop.f32.mrf.mxu3  ;;  %v4398_v47 = vpop.f32.mrf.mxu1  ;;  %v8113_v17 = vrot.slane %v8112_v4, 1  ;;  %v13547_v40 = vmax.f32 %v7973_v19, %v7974_v34  ;;  %v7148_v16 = vmax.f32 %v7146_v56, %v7147_v36  ;;  %v8394_v56 = vrot.slane %v8393_v8, 4 }
 0x5bf   : > { %v5937_v51 = vadd.f32 %v5860_v15, %v5203_v50  ;;  %6640 = vst [vmem:[#allocation2 + $0x220] sm:$0xff] %v6568_v0  ;;  %v6897_v50 = vld [vmem:[#allocation2 + $0x20d] sm:$0xff]  ;;  %v4473_v46 = vadd.f32 %v4398_v47, %v13925_v23  ;;  %v7563_v19 = vmax.f32 %v7561_v42, %v7562_v7 }
 0x5c0   : > { %v7911_v15 = vld [vmem:[#allocation3 + $0x12e] sm:$0x7]  ;;  %v6901_v38 = vmax.f32 %v13482_v28, %v6897_v50  ;;  %v7998_v13 = vpack.c.bf16 %v13547_v40, %v13547_v40  ;;  %v8189_v0 = vld [vmem:[#allocation3 + $0x132] sm:$0x7]  ;;  %v7841_v50 = vmax.f32 %v7839_v59, %v7840_v29  ;;  %v7165_v58 = vpack.c.bf16 %v7148_v16, %v7148_v16 }
 0x5c1   : > { %v6421_v45 = vadd.f32 %v6344_v32, %v5937_v51  ;;  %v7424_v51 = vmax.f32 %v7422_v44, %v7423_v48  ;;  %v13551_v32 = vmax.f32 %v8112_v4, %v8113_v17  ;;  %v7976_v18 = vsel %vm6929_vm5, %v7911_v15, -inf  ;;  %v8050_v28 = vld [vmem:[#allocation3 + $0x130] sm:$0x7]  ;;  %v10104_v15 = vld [vmem:[%s13718_s2] ss:$0 sm:$0xff] }
 0x5c2   : > { %v7977_v31 = vrot.slane %v7976_v18, 4  ;;  %v8115_v53 = vsel %vm6929_vm5, %v8050_v28, -inf  ;;  %v7564_v34 = vrot.slane %v7563_v19, 1  ;;  %v8254_v54 = vsel %vm6929_vm5, %v8189_v0, -inf  ;;  %v13926_v17 = vld [vmem:[#allocation50_spill] sm:$0xff] }
 0x5c3   : > { %v6497_v9 = vadd.f32 %v13341_v39, %v6421_v45  ;;  %v6996_v39 = vrot.slane %v6995_v55, 2  ;;  %v5129_v35 = vpop.f32.mrf.mxu2  ;;  %v7425_v21 = vrot.slane %v7424_v51, 1  ;;  %v8137_v44 = vpack.c.bf16 %v13551_v32, %v13551_v32 }
 0x5c4   : > { %v5204_v63 = vadd.f32 %v5129_v35, %v4473_v46  ;;  %v7978_v35 = vmax.f32 %v7976_v18, %v7977_v31  ;;  %v8116_v3 = vrot.slane %v8115_v53, 4  ;;  %v7842_v0 = vrot.slane %v7841_v50, 1 }
 0x5c5   : > { %v6569_v43 = vmax.f32 %v6497_v9, 0.0  ;;  %v6997_v25 = vmax.f32 %v6995_v55, %v6996_v39  ;;  %v13554_v55 = vunpack.c.l.b16 %v7720_v27  ;;  %v7286_v9 = vrot.slane %v7285_v49, 1 }
 0x5c6   : > { %v4400_v20 = vpop.f32.mrf.mxu1  ;;  %v7426_v48 = vmax.f32 %v7424_v51, %v7425_v21  ;;  %v13577_v51 = vmax.f32 %v7563_v19, %v7564_v34  ;;  %v7979_v19 = vrot.slane %v7978_v35, 2  ;;  %v8395_v16 = vmax.f32 %v8393_v8, %v8394_v56  ;;  %v6898_v34 = vld [vmem:[#allocation2 + $0x215] sm:$0xff] }
 0x5c7   : > { %6641 = vst [vmem:[#allocation2 + $0x228] sm:$0xff] %v6569_v43  ;;  %v6998_v11 = vrot.slane %v6997_v25, 1  ;;  %v7701_v43 = vrot.slane %v7700_v1, 2  ;;  %v7287_v47 = vmax.f32 %v7285_v49, %v7286_v9  ;;  %v4474_v62 = vadd.f32 %v4400_v20, %v13926_v17 }
 0x5c8   : > { %v7443_v36 = vpack.c.bf16 %v7426_v48, %v7426_v48  ;;  %v8117_v20 = vmax.f32 %v8115_v53, %v8116_v3 }
 0x5c9   : > { %v6999_v39 = vmax.f32 %v6997_v25, %v6998_v11  ;;  %v13572_v60 = vmax.f32 %v7700_v1, %v7701_v43  ;;  %v8255_v25 = vrot.slane %v8254_v54, 4 }
 0x5ca   : > { %v8118_v53 = vrot.slane %v8117_v20, 2 }
 0x5cb   : > { %v5131_v42 = vpop.f32.mrf.mxu2  ;;  %v7016_v7 = vpack.c.bf16 %v6999_v39, %v6999_v39  ;;  %v7703_v21 = vrot.slane %v13572_v60, 1  ;;  %v8256_v39 = vmax.f32 %v8254_v54, %v8255_v25  ;;  %v6902_v54 = vmax.f32 %v13485_v10, %v6898_v34 }
 0x5cc   : > { %v5205_v49 = vadd.f32 %v5131_v42, %v4474_v62  ;;  %v7582_v62 = vpack.c.bf16 %v13577_v51, %v13577_v51  ;;  %v13586_v25 = vunpack.c.l.b16 %v7443_v36 }
 0x5ce   : > { %v6905_v45 = vld [vmem:[#allocation2 + $0x226] sm:$0xff] }
 0x5cf   : > { %v6909_v2 = vmax.f32 %v6901_v38, %v6905_v45  ;;  %v6347_v41 = vpop.f32.mrf.mxu0  ;;  %v7304_v38 = vpack.c.bf16 %v7287_v47, %v7287_v47  ;;  %v7187_v47 = vunpack.c.l.b16 %v7165_v58 }
 0x5d1   : > { %6914 = vst [vmem:[#allocation3 + $0x140] sm:$0xff] %v6909_v2  ;;  %v7326_v17 = vunpack.c.l.b16 %v7304_v38 }
 0x5d8   : > { %v6928_v23 = vld [vmem:[#allocation3 + $0x140] sm:$0x7]  ;;  %v7217_v1 = vld [vmem:[#allocation3 + $0x144] sm:$0x7] }
 0x5d9   : > { %v5863_v4 = vpop.f32.mrf.mxu3  ;;  %v7078_v46 = vld [vmem:[#allocation3 + $0x142] sm:$0x7]  ;;  %v7000_v59 = vsel %vm6929_vm5, %v6928_v23, -inf  ;;  %v7288_v45 = vsel %vm6929_vm5, %v7217_v1, -inf  ;;  %v8257_v1 = vrot.slane %v8256_v39, 2 }
 0x5da   : > { %v5938_v6 = vadd.f32 %v5863_v4, %v5204_v63  ;;  %v7149_v18 = vsel %vm6929_vm5, %v7078_v46, -inf  ;;  %v7001_v2 = vrot.slane %v7000_v59, 4  ;;  %v7289_v9 = vrot.slane %v7288_v45, 4 }
 0x5db   : > { %v7150_v63 = vrot.slane %v7149_v18, 4  ;;  %v7038_v4 = vunpack.c.l.b16 %v7016_v7  ;;  %v8396_v7 = vrot.slane %v8395_v16, 2 }
 0x5dc   : > { %v6422_v27 = vadd.f32 %v6347_v41, %v5938_v6  ;;  %v7002_v43 = vmax.f32 %v7000_v59, %v7001_v2  ;;  %v7290_v31 = vmax.f32 %v7288_v45, %v7289_v9  ;;  %v6349_v41 = vpop.f32.mrf.mxu0  ;;  %v8119_v45 = vmax.f32 %v8117_v20, %v8118_v53 }
 0x5dd   : > { %v7151_v29 = vmax.f32 %v7149_v18, %v7150_v63  ;;  %v7054_v51 = vsel %vm7040_vm6, %v7038_v4, %v13525_v24  ;;  %v8258_v9 = vmax.f32 %v8256_v39, %v8257_v1  ;;  %v8397_v36 = vmax.f32 %v8395_v16, %v8396_v7 }
 0x5de   : > { %v6498_v57 = vadd.f32 %v10104_v15, %v6422_v27  ;;  %v7003_v42 = vrot.slane %v7002_v43, 2  ;;  %v7291_v27 = vrot.slane %v7290_v31, 2  ;;  %v8120_v20 = vrot.slane %v8119_v45, 1 }
 0x5df   : > { %v7152_v48 = vrot.slane %v7151_v29, 2  ;;  %v8259_v4 = vrot.slane %v8258_v9, 1  ;;  %v8398_v39 = vrot.slane %v8397_v36, 1  ;;  %v7604_v53 = vunpack.c.l.b16 %v7582_v62 }
 0x5e0   : > { %v6570_v11 = vmax.f32 %v6498_v57, 0.0  ;;  %v7980_v57 = vmax.f32 %v7978_v35, %v7979_v19  ;;  %v7004_v3 = vmax.f32 %v7002_v43, %v7003_v42  ;;  %v7292_v46 = vmax.f32 %v7290_v31, %v7291_v27 }
 0x5e1   : > { %v5865_v28 = vpop.f32.mrf.mxu3  ;;  %v7153_v23 = vmax.f32 %v7151_v29, %v7152_v48  ;;  %v7704_v35 = vmax.f32 %v13572_v60, %v7703_v21  ;;  %v7196_v60 = vsel %vm7040_vm6, %v7187_v47, %v13528_v14  ;;  %v7065_v14 = vld [vmem:[%s13363_s29 + $0x4] sm:$0x3]  ;;  %v9772_v48 = vld [vmem:[%s13363_s29 + $0x14] sm:$0x3] }
 0x5e2   : > { %6642 = vst [vmem:[#allocation2 + $0x230] sm:$0xff] %v6570_v11  ;;  %v5939_v37 = vadd.f32 %v5865_v28, %v5205_v49  ;;  %v7005_v56 = vrot.slane %v7004_v3, 1  ;;  %v7293_v59 = vrot.slane %v7292_v46, 1  ;;  %v7981_v10 = vrot.slane %v7980_v57, 1  ;;  %v6899_v28 = vld [vmem:[#allocation2 + $0x21d] sm:$0xff] }
 0x5e3   : > { %v7154_v58 = vrot.slane %v7153_v23, 1  ;;  %v7721_v21 = vpack.c.bf16 %v7704_v35, %v7704_v35  ;;  %v6903_v16 = vmax.f32 %v13493_v61, %v6899_v28  ;;  %v13624_v28 = vmax.f32 %v8397_v36, %v8398_v39 }
 0x5e4   : > { %v6423_v6 = vadd.f32 %v6349_v41, %v5939_v37  ;;  %v7006_v11 = vmax.f32 %v7004_v3, %v7005_v56  ;;  %v7294_v63 = vmax.f32 %v7292_v46, %v7293_v59  ;;  %v7982_v41 = vmax.f32 %v7980_v57, %v7981_v10 }
 0x5e5   : > { %v7155_v2 = vmax.f32 %v7153_v23, %v7154_v58  ;;  %v7743_v3 = vunpack.c.l.b16 %v7721_v21  ;;  %v13622_v10 = vmax.f32 %v8258_v9, %v8259_v4  ;;  %v7613_v21 = vsel %vm7040_vm6, %v7604_v53, %v13545_v30 }
 0x5e6   : > { %v6499_v49 = vadd.f32 %v10104_v15, %v6423_v6  ;;  %v7843_v15 = vmax.f32 %v7841_v50, %v7842_v0  ;;  %v7017_v19 = vpack.c.bf16 %v7006_v11, %v7006_v11  ;;  %v7305_v24 = vpack.c.bf16 %v7294_v63, %v7294_v63 }
 0x5e7   : > { %v7166_v37 = vpack.c.bf16 %v7155_v2, %v7155_v2  ;;  %v7335_v50 = vsel %vm7040_vm6, %v7326_v17, %v13541_v22  ;;  %v9769_v22 = vld [vmem:[%s13363_s29 + $0xc] sm:$0x3]  ;;  %v13620_v63 = vmax.f32 %v8119_v45, %v8120_v20  ;;  %v7752_v45 = vsel %vm7040_vm6, %v7743_v3, %v13554_v55 }
 0x5e8   : > { %v6571_v8 = vmax.f32 %v6499_v49, 0.0  ;;  %v7860_v0 = vpack.c.bf16 %v7843_v15, %v7843_v15  ;;  %v7039_v43 = vunpack.c.l.b16 %v7017_v19  ;;  %v7327_v31 = vunpack.c.l.b16 %v7305_v24 }
 0x5e9   : > { %v6906_v38 = vld [vmem:[#allocation2 + $0x22e] sm:$0xff]  ;;  %v7188_v29 = vunpack.c.l.b16 %v7166_v37  ;;  %v7999_v15 = vpack.c.bf16 %v7982_v41, %v7982_v41  ;;  %v7474_v37 = vsel %vm7040_vm6, %v13586_v25, %v13543_v12  ;;  %v8138_v12 = vpack.c.bf16 %v13620_v63, %v13620_v63 }
 0x5ea   : > { %v6910_v18 = vmax.f32 %v6902_v54, %v6906_v38  ;;  %6643 = vst [vmem:[#allocation2 + $0x238] sm:$0x7f] %v6571_v8  ;;  %v7055_v47 = vsel %vm7042_vm7, %v7039_v43, %v7054_v51  ;;  %v7336_v42 = vsel %vm7042_vm7, %v7327_v31, %v7335_v50  ;;  %v7882_v23 = vunpack.c.l.b16 %v7860_v0 }
 0x5eb   : > { %v7197_v34 = vsel %vm7042_vm7, %v7188_v29, %v7196_v60  ;;  %v7057_v17 = vpack.c.b16 %v7055_v47, %v7055_v47  ;;  %v7338_v61 = vpack.c.b16 %v7336_v42, %v7336_v42  ;;  %v13636_v0 = vunpack.c.l.b16 %v7999_v15 }
 0x5ec   : > { %6915 = vst [vmem:[#allocation3 + $0x148] sm:$0xff] %v6910_v18  ;;  %v7199_v57 = vpack.c.b16 %v7197_v34, %v7197_v34  ;;  %v7891_v9 = vsel %vm7040_vm6, %v7882_v23, %v13556_v5  ;;  %v8277_v25 = vpack.c.bf16 %v13622_v10, %v13622_v10  ;;  %v8416_v30 = vpack.c.bf16 %v13624_v28, %v13624_v28 }
 0x5ed   : > { %v7066_v54 = vsel %vm13598_vm0, %v7057_v17, %v7065_v14  ;;  %v7344_v56 = vsel %vm13598_vm0, %v7338_v61, %v9772_v48  ;;  %v8298_v63 = vunpack.c.l.b16 %v8276_v52 }
 0x5ee   : > { %v7205_v8 = vsel %vm13598_vm0, %v7199_v57, %v9769_v22  ;;  %7067 = vst [vmem:[%s13363_s29 + $0x4] sm:$0x3] %v7066_v54  ;;  %v8438_v10 = vunpack.c.l.b16 %v8416_v30  ;;  %v9790_v30 = vld [vmem:[%s13363_s29 + $0x44] sm:$0x3] }
 0x5ef   : > { %9770 = vst [vmem:[%s13363_s29 + $0xc] sm:$0x3] %v7205_v8 }
 0x5f0   : > { %9773 = vst [vmem:[%s13363_s29 + $0x14] sm:$0x3] %v7344_v56 }
 0x5f1   : > { %v6907_v27 = vld [vmem:[#allocation2 + $0x236] sm:$0xff] }
 0x5f2   : > { %v6911_v49 = vmax.f32 %v6903_v16, %v6907_v27 }
 0x5f3   : > { %v7356_v46 = vld [vmem:[#allocation3 + $0x146] sm:$0x7]  ;;  %v7634_v7 = vld [vmem:[#allocation3 + $0x14a] sm:$0x7] }
 0x5f4   : > { %v7495_v1 = vld [vmem:[#allocation3 + $0x148] sm:$0x7]  ;;  %v7427_v58 = vsel %vm6929_vm5, %v7356_v46, -inf  ;;  %v7773_v59 = vld [vmem:[#allocation3 + $0x14c] sm:$0x7]  ;;  %6916 = vst [vmem:[#allocation3 + $0x150] sm:$0xff] %v6911_v49 }
 0x5f5   : > { %v7428_v62 = vrot.slane %v7427_v58, 4  ;;  %v7566_v38 = vsel %vm6929_vm5, %v7495_v1, -inf  ;;  %v7705_v51 = vsel %vm6929_vm5, %v7634_v7, -inf  ;;  %v7844_v35 = vsel %vm6929_vm5, %v7773_v59, -inf }
 0x5f6   : > { %v7567_v18 = vrot.slane %v7566_v38, 4  ;;  %v7706_v11 = vrot.slane %v7705_v51, 4  ;;  %v7845_v2 = vrot.slane %v7844_v35, 4 }
 0x5f7   : > { %v7429_v19 = vmax.f32 %v7427_v58, %v7428_v62 }
 0x5f8   : > { %v7568_v24 = vmax.f32 %v7566_v38, %v7567_v18  ;;  %v7707_v60 = vmax.f32 %v7705_v51, %v7706_v11  ;;  %v7846_v50 = vmax.f32 %v7844_v35, %v7845_v2 }
 0x5f9   : > { %v7430_v36 = vrot.slane %v7429_v19, 2 }
 0x5fa   : > { %v7569_v20 = vrot.slane %v7568_v24, 2  ;;  %v7708_v43 = vrot.slane %v7707_v60, 2  ;;  %v7847_v29 = vrot.slane %v7846_v50, 2 }
 0x5fb   : > { %v7431_v31 = vmax.f32 %v7429_v19, %v7430_v36  ;;  %v7912_v55 = vld [vmem:[#allocation3 + $0x14e] sm:$0x7]  ;;  %v8190_v4 = vld [vmem:[#allocation3 + $0x152] sm:$0x7] }
 0x5fc   : > { %v8051_v41 = vld [vmem:[#allocation3 + $0x150] sm:$0x7]  ;;  %v7570_v5 = vmax.f32 %v7568_v24, %v7569_v20  ;;  %v7709_v39 = vmax.f32 %v7707_v60, %v7708_v43  ;;  %v7848_v16 = vmax.f32 %v7846_v50, %v7847_v29  ;;  %v7983_v14 = vsel %vm6929_vm5, %v7912_v55, -inf  ;;  %v8329_v22 = vld [vmem:[#allocation3 + $0x154] sm:$0x7] }
 0x5fd   : > { %v7432_v47 = vrot.slane %v7431_v31, 1  ;;  %v7984_v34 = vrot.slane %v7983_v14, 4  ;;  %v8122_v42 = vsel %vm6929_vm5, %v8051_v41, -inf  ;;  %v8261_v48 = vsel %vm6929_vm5, %v8190_v4, -inf  ;;  %v9775_v20 = vld [vmem:[%s13363_s29 + $0x1c] sm:$0x3] }
 0x5fe   : > { %v7571_v27 = vrot.slane %v7570_v5, 1  ;;  %v7710_v17 = vrot.slane %v7709_v39, 1  ;;  %v7849_v57 = vrot.slane %v7848_v16, 1  ;;  %v8123_v61 = vrot.slane %v8122_v42, 4  ;;  %v9778_v4 = vld [vmem:[%s13363_s29 + $0x24] sm:$0x3] }
 0x5ff   : > { %v7433_v49 = vmax.f32 %v7431_v31, %v7432_v47  ;;  %v7985_v53 = vmax.f32 %v7983_v14, %v7984_v34  ;;  %v8262_v3 = vrot.slane %v8261_v48, 4  ;;  %v8400_v23 = vsel %vm6929_vm5, %v8329_v22, -inf  ;;  %v9784_v14 = vld [vmem:[%s13363_s29 + $0x34] sm:$0x3] }
 0x600   : > { %v7572_v46 = vmax.f32 %v7570_v5, %v7571_v27  ;;  %v7711_v1 = vmax.f32 %v7709_v39, %v7710_v17  ;;  %v7850_v7 = vmax.f32 %v7848_v16, %v7849_v57  ;;  %v8124_v54 = vmax.f32 %v8122_v42, %v8123_v61  ;;  %v9781_v39 = vld [vmem:[%s13363_s29 + $0x2c] sm:$0x3] }
 0x601   : > { %v7444_v8 = vpack.c.bf16 %v7433_v49, %v7433_v49  ;;  %v7986_v56 = vrot.slane %v7985_v53, 2  ;;  %v8263_v58 = vmax.f32 %v8261_v48, %v8262_v3  ;;  %v8401_v59 = vrot.slane %v8400_v23, 4 }
 0x602   : > { %v7583_v62 = vpack.c.bf16 %v7572_v46, %v7572_v46  ;;  %v7722_v38 = vpack.c.bf16 %v7711_v1, %v7711_v1  ;;  %v7861_v51 = vpack.c.bf16 %v7850_v7, %v7850_v7  ;;  %v8125_v35 = vrot.slane %v8124_v54, 2 }
 0x603   : > { %v7466_v15 = vunpack.c.l.b16 %v7444_v8  ;;  %v7987_v18 = vmax.f32 %v7985_v53, %v7986_v56  ;;  %v8264_v11 = vrot.slane %v8263_v58, 2  ;;  %v8402_v2 = vmax.f32 %v8400_v23, %v8401_v59 }
 0x604   : > { %v7605_v19 = vunpack.c.l.b16 %v7583_v62  ;;  %v7744_v24 = vunpack.c.l.b16 %v7722_v38  ;;  %v7883_v60 = vunpack.c.l.b16 %v7861_v51  ;;  %v8126_v50 = vmax.f32 %v8124_v54, %v8125_v35  ;;  %v9793_v38 = vld [vmem:[%s13363_s29 + $0x4c] sm:$0x3] }
 0x605   : > { %v7475_v36 = vsel %vm7042_vm7, %v7466_v15, %v7474_v37  ;;  %v7988_v43 = vrot.slane %v7987_v18, 1  ;;  %v8265_v29 = vmax.f32 %v8263_v58, %v8264_v11  ;;  %v8403_v31 = vrot.slane %v8402_v2, 2 }
 0x606   : > { %v7477_v55 = vpack.c.b16 %v7475_v36, %v7475_v36  ;;  %v7614_v41 = vsel %vm7042_vm7, %v7605_v19, %v7613_v21  ;;  %v7753_v5 = vsel %vm7042_vm7, %v7744_v24, %v7752_v45  ;;  %v7892_v16 = vsel %vm7042_vm7, %v7883_v60, %v7891_v9 }
 0x607   : > { %v7616_v22 = vpack.c.b16 %v7614_v41, %v7614_v41  ;;  %v7755_v47 = vpack.c.b16 %v7753_v5, %v7753_v5  ;;  %v7894_v34 = vpack.c.b16 %v7892_v16, %v7892_v16  ;;  %v7989_v37 = vmax.f32 %v7987_v18, %v7988_v43 }
 0x608   : > { %v7483_v42 = vsel %vm13598_vm0, %v7477_v55, %v9775_v20  ;;  %v8127_v48 = vrot.slane %v8126_v50, 1  ;;  %v8266_v27 = vrot.slane %v8265_v29, 1  ;;  %v8404_v17 = vmax.f32 %v8402_v2, %v8403_v31  ;;  %v9796_v2 = vld [vmem:[%s13363_s29 + $0x54] sm:$0x3] }
 0x609   : > { %9776 = vst [vmem:[%s13363_s29 + $0x1c] sm:$0x3] %v7483_v42  ;;  %v7622_v21 = vsel %vm13598_vm0, %v7616_v22, %v9778_v4  ;;  %v7761_v45 = vsel %vm13598_vm0, %v7755_v47, %v9781_v39  ;;  %v7900_v9 = vsel %vm13598_vm0, %v7894_v34, %v9784_v14  ;;  %v8000_v57 = vpack.c.bf16 %v7989_v37, %v7989_v37 }
 0x60a   : > { %v8020_v61 = vunpack.c.l.b16 %v7998_v13  ;;  %9779 = vst [vmem:[%s13363_s29 + $0x24] sm:$0x3] %v7622_v21  ;;  %v8128_v49 = vmax.f32 %v8126_v50, %v8127_v48  ;;  %v8267_v53 = vmax.f32 %v8265_v29, %v8266_v27  ;;  %v8405_v3 = vrot.slane %v8404_v17, 1 }
 0x60b   : > { %v8415_v23 = vpack.c.bf16 %v13562_v26, %v13562_v26  ;;  %v8160_v46 = vunpack.c.l.b16 %v8138_v12  ;;  %v8299_v1 = vunpack.c.l.b16 %v8277_v25  ;;  %9782 = vst [vmem:[%s13363_s29 + $0x2c] sm:$0x3] %v7761_v45  ;;  %v8022_v7 = vunpack.c.l.b16 %v8000_v57  ;;  %v9787_v12 = vld [vmem:[%s13363_s29 + $0x3c] sm:$0x3] }
 0x60c   : > { %v8030_v40 = vsel %vm7040_vm6, %v13636_v0, %v8020_v61  ;;  %9785 = vst [vmem:[%s13363_s29 + $0x34] sm:$0x3] %v7900_v9  ;;  %v8139_v13 = vpack.c.bf16 %v8128_v49, %v8128_v49  ;;  %v8278_v54 = vpack.c.bf16 %v8267_v53, %v8267_v53  ;;  %v8406_v8 = vmax.f32 %v8404_v17, %v8405_v3 }
 0x60d   : > { %v8159_v26 = vunpack.c.l.b16 %v8137_v44  ;;  %v8031_v0 = vsel %vm7042_vm7, %v8022_v7, %v8030_v40  ;;  %v8437_v32 = vunpack.c.l.b16 %v8415_v23  ;;  %v8308_v33 = vsel %vm7040_vm6, %v8299_v1, %v8298_v63 }
 0x60e   : > { %v8033_v25 = vpack.c.b16 %v8031_v0, %v8031_v0  ;;  %v8161_v56 = vunpack.c.l.b16 %v8139_v13  ;;  %v8300_v58 = vunpack.c.l.b16 %v8278_v54  ;;  %v8417_v59 = vpack.c.bf16 %v8406_v8, %v8406_v8 }
 0x60f   : > { %v8169_v44 = vsel %vm7040_vm6, %v8160_v46, %v8159_v26  ;;  %v8447_v35 = vsel %vm7040_vm6, %v8438_v10, %v8437_v32 }
 0x610   : > { %v8039_v52 = vsel %vm13598_vm0, %v8033_v25, %v9787_v12  ;;  %v8170_v28 = vsel %vm7042_vm7, %v8161_v56, %v8169_v44  ;;  %v8309_v62 = vsel %vm7042_vm7, %v8300_v58, %v8308_v33  ;;  %v8439_v51 = vunpack.c.l.b16 %v8417_v59 }
 0x611   : > { %9788 = vst [vmem:[%s13363_s29 + $0x3c] sm:$0x3] %v8039_v52  ;;  %v8172_v15 = vpack.c.b16 %v8170_v28, %v8170_v28  ;;  %v8311_v18 = vpack.c.b16 %v8309_v62, %v8309_v62 }
 0x612   : > { %v8448_v11 = vsel %vm7042_vm7, %v8439_v51, %v8447_v35 }
 0x613   : > { %v8178_v19 = vsel %vm13598_vm0, %v8172_v15, %v9790_v30  ;;  %v8317_v24 = vsel %vm13598_vm0, %v8311_v18, %v9793_v38  ;;  %v8450_v60 = vpack.c.b16 %v8448_v11, %v8448_v11 }
 0x614   : > { %9791 = vst [vmem:[%s13363_s29 + $0x44] sm:$0x3] %v8178_v19 }
 0x615   : > { %9794 = vst [vmem:[%s13363_s29 + $0x4c] sm:$0x3] %v8317_v24  ;;  %v8456_v50 = vsel %vm13598_vm0, %v8450_v60, %v9796_v2 }
 0x616   : > { %9797 = vst [vmem:[%s13363_s29 + $0x54] sm:$0x3] %v8456_v50 }
 0x617 PF: > { %s13_s12 = sadd.s32 1, %s10111_s12  }
 0x618   : > { %p10_p4 = scmp.ge.s32.totalorder %s13_s12, 4  }
 0x61a   :  { %12 = sbr.rel (!%p10_p4) target bundleno = 1 (0x1), region = 90 }

</bundles_post_ra>
